<compile_context>
chip_gen: v7x
topology: tpu7x:2x2x1
jax: 0.10.0
libtpu: 0.0.40
codegen_flags: <defaults>
</compile_context>

<pallas_src>
import jax
import jax.numpy as jnp
import numpy as np
from jax.experimental import pallas as pl
from jax.experimental.pallas import tpu as pltpu


VMEM_LIMIT = 32 * 1024 * 1024  # per-kernel scoped VMEM; working sets kept <= ~20 MiB
                               # (incl. double buffering) so tiles also fit v7x's 64 MiB.


def _mosaic_params(sem):
    return pltpu.CompilerParams(dimension_semantics=sem, vmem_limit_bytes=VMEM_LIMIT)


def _pick_tile_m(m, target):
    """Largest M tile <= target; prefer divisors of m, floor at 128 (bf16 packing / MXU fill)."""
    if m <= target:
        return m
    for t in (1024, 768, 512, 384, 256, 128):
        if t <= target and m % t == 0:
            return t
    return target  # ragged tail: Pallas masks the partial block (correct, slightly slower).


# ---------------------------------------------------------------------------
# Kernel 1: fused conv1 + conv2 (two 1x1x1 convs sharing the same input tile).
# x (1920ch) is streamed from HBM once per M tile; two MXU dots per tile.
# ---------------------------------------------------------------------------
def _pointwise_pair_kernel(x_ref, wa_ref, ba_ref, wb_ref, bb_ref, oa_ref, ob_ref):
    x = x_ref[...]
    oa_ref[...] = (jnp.dot(x, wa_ref[...], preferred_element_type=jnp.float32)
                   + ba_ref[...]).astype(oa_ref.dtype)
    ob_ref[...] = (jnp.dot(x, wb_ref[...], preferred_element_type=jnp.float32)
                   + bb_ref[...]).astype(ob_ref.dtype)


def pointwise_pair(x2d, wa, ba, wb, bb, *, tm):
    m, k = x2d.shape
    na, nb = wa.shape[1], wb.shape[1]
    return pl.pallas_call(
        _pointwise_pair_kernel,
        grid=(pl.cdiv(m, tm),),
        in_specs=[
            pl.BlockSpec((tm, k), lambda i: (i, 0)),
            pl.BlockSpec((k, na), lambda i: (0, 0)),
            pl.BlockSpec((1, na), lambda i: (0, 0)),
            pl.BlockSpec((k, nb), lambda i: (0, 0)),
            pl.BlockSpec((1, nb), lambda i: (0, 0)),
        ],
        out_specs=(
            pl.BlockSpec((tm, na), lambda i: (i, 0)),
            pl.BlockSpec((tm, nb), lambda i: (i, 0)),
        ),
        out_shape=(
            jax.ShapeDtypeStruct((m, na), jnp.bfloat16),
            jax.ShapeDtypeStruct((m, nb), jnp.bfloat16),
        ),
        compiler_params=_mosaic_params(("parallel",)),
    )(x2d, wa, ba, wb, bb)


# ---------------------------------------------------------------------------
# Kernel 2: generic 3-tap conv along one spatial axis (conv3/D, conv4/H, conv5/W).
#
# Per batch sample the activation is a flattened (S, Cin) slab (S = D*H*W, row
# order d,h,w), zero-padded with R rows on each side, where R is the row stride
# of the conv axis (R=H*W for D, R=W for H, R=1 for W).  One grid step = one
# sample: the padded slab is DMA'd once, each tap weight multiplies the WHOLE
# slab on the MXU, and the three shifted row-windows of the f32 results are
# accumulated.  Windows are sliced from f32 values (plain sublane shifts).
# Taps whose neighbour crosses an H/W border inside the slab are zeroed with
# precomputed per-row 0/1 masks.
# TODO(synk): tile S with a halo (extra grid axis) for very large D*H*W volumes
#   and for megacore sharding when the batch is 1; unnecessary at these sizes.
# ---------------------------------------------------------------------------
def _make_tap_kernel(s, r):
    def kernel(x_ref, w_ref, b_ref, m0_ref, m2_ref, o_ref):
        xs = x_ref[0]                                    # (s + 2r, Cin) bf16, offset-0 load
        acc = jnp.dot(xs, w_ref[0], preferred_element_type=jnp.float32)[0:s] * m0_ref[...]
        acc = acc + jnp.dot(xs, w_ref[1], preferred_element_type=jnp.float32)[r:r + s]
        acc = acc + (jnp.dot(xs, w_ref[2], preferred_element_type=jnp.float32)[2 * r:2 * r + s]
                     * m2_ref[...])
        o_ref[0] = (acc + b_ref[...]).astype(o_ref.dtype)
    return kernel


def _row_masks(s, sub_div, sub_mod):
    """0/1 masks killing tap-0 / tap-2 rows whose neighbour crosses an intra-slab border."""
    if sub_mod is None:
        ones = jnp.ones((s, 1), jnp.float32)
        return ones, ones
    idx = (jnp.arange(s, dtype=jnp.int32) // sub_div) % sub_mod
    m0 = (idx != 0).astype(jnp.float32).reshape(s, 1)
    m2 = (idx != sub_mod - 1).astype(jnp.float32).reshape(s, 1)
    return m0, m2


def tap_conv_1d(x2d, w_taps, bias, *, n, s, r, sub_div=None, sub_mod=None):
    cin = x2d.shape[-1]
    cout = w_taps.shape[-1]
    x_slab = jnp.pad(x2d.reshape(n, s, cin), ((0, 0), (r, r), (0, 0)))  # (n, s+2r, cin)
    m0, m2 = _row_masks(s, sub_div, sub_mod)
    sp = s + 2 * r
    out = pl.pallas_call(
        _make_tap_kernel(s, r),
        grid=(n,),
        in_specs=[
            pl.BlockSpec((1, sp, cin), lambda g: (g, 0, 0)),
            pl.BlockSpec((3, cin, cout), lambda g: (0, 0, 0)),   # full 3-tap weight, constant
            pl.BlockSpec((1, cout), lambda g: (0, 0)),
            pl.BlockSpec((s, 1), lambda g: (0, 0)),
            pl.BlockSpec((s, 1), lambda g: (0, 0)),
        ],
        out_specs=pl.BlockSpec((1, s, cout), lambda g: (g, 0, 0)),
        out_shape=jax.ShapeDtypeStruct((n, s, cout), jnp.bfloat16),
        compiler_params=_mosaic_params(("parallel",)),
    )(x_slab, w_taps, bias, m0, m2)
    return out.reshape(n * s, cout)


# ---------------------------------------------------------------------------
# Kernel 3: conv6 (1x1x1, 448->1920) with the x1/x2 channel-concat folded in
# (two dots on split weights) + bias + f32 residual add, all fused.
# ---------------------------------------------------------------------------
def _conv6_residual_kernel(x1_ref, x2_ref, wa_ref, wb_ref, b_ref, r_ref, o_ref):
    acc = jnp.dot(x1_ref[...], wa_ref[...], preferred_element_type=jnp.float32)
    acc = acc + jnp.dot(x2_ref[...], wb_ref[...], preferred_element_type=jnp.float32)
    o_ref[...] = acc + b_ref[...] + r_ref[...]


def conv6_residual(x1, x2, wa, wb, bias, residual, *, tm):
    m, ka = x1.shape
    kb = x2.shape[1]
    nout = wa.shape[1]
    return pl.pallas_call(
        _conv6_residual_kernel,
        grid=(pl.cdiv(m, tm),),
        in_specs=[
            pl.BlockSpec((tm, ka), lambda i: (i, 0)),
            pl.BlockSpec((tm, kb), lambda i: (i, 0)),
            pl.BlockSpec((ka, nout), lambda i: (0, 0)),
            pl.BlockSpec((kb, nout), lambda i: (0, 0)),
            pl.BlockSpec((1, nout), lambda i: (0, 0)),
            pl.BlockSpec((tm, nout), lambda i: (i, 0)),
        ],
        out_specs=pl.BlockSpec((tm, nout), lambda i: (i, 0)),
        out_shape=jax.ShapeDtypeStruct((m, nout), jnp.float32),
        compiler_params=_mosaic_params(("parallel",)),
    )(x1, x2, wa, wb, bias, residual)


# ---------------------------------------------------------------------------
# InceptionC forward (Pallas path).  Input NCDHW f32, output NCDHW f32.
# ---------------------------------------------------------------------------
def inception_c(x_ncdhw, p):
    n, c, d, h, w = x_ncdhw.shape
    m = n * d * h * w
    s = d * h * w
    hw = h * w

    # Boundary layout pass (drop if the surrounding network is already channels-last).
    x_ndhwc = jnp.transpose(x_ncdhw, (0, 2, 3, 4, 1))
    x_res = x_ndhwc.reshape(m, c)                    # f32 residual -> exact identity path
    x2d = x_res.astype(jnp.bfloat16)                 # bf16 MXU input

    bf = lambda a: a.astype(jnp.bfloat16)
    b2d = lambda bias: bias.reshape(1, -1).astype(jnp.float32)

    # PyTorch Conv3d weight layout (Cout, Cin, kD, kH, kW) -> matmul layouts (bf16).
    w1_2d = bf(jnp.transpose(p["w1"][:, :, 0, 0, 0], (1, 0)))      # (1920, 192)
    w2_2d = bf(jnp.transpose(p["w2"][:, :, 0, 0, 0], (1, 0)))      # (1920, 128)
    w3_t = bf(jnp.transpose(p["w3"][:, :, :, 0, 0], (2, 1, 0)))    # (3, 128, 192)
    w4_t = bf(jnp.transpose(p["w4"][:, :, 0, :, 0], (2, 1, 0)))    # (3, 192, 224)
    w5_t = bf(jnp.transpose(p["w5"][:, :, 0, 0, :], (2, 1, 0)))    # (3, 224, 256)
    w6_2d = jnp.transpose(p["w6"][:, :, 0, 0, 0], (1, 0))          # (448, 1920)
    c1 = p["w1"].shape[0]
    w6a, w6b = bf(w6_2d[:c1]), bf(w6_2d[c1:])                      # (192,1920), (256,1920)

    # conv1 + conv2 fused; ~12 MiB/step at tm=1024 incl. double buffering.
    x1, x2 = pointwise_pair(x2d, w1_2d, b2d(p["b1"]), w2_2d, b2d(p["b2"]),
                            tm=_pick_tile_m(m, 1024))

    # conv3 [3,1,1] over D, conv4 [1,3,1] over H, conv5 [1,1,3] over W: halo-slab kernels.
    x2 = tap_conv_1d(x2, w3_t, b2d(p["b3"]), n=n, s=s, r=hw)                        # (m,192)
    x2 = tap_conv_1d(x2, w4_t, b2d(p["b4"]), n=n, s=s, r=w, sub_div=w, sub_mod=h)   # (m,224)
    x2 = tap_conv_1d(x2, w5_t, b2d(p["b5"]), n=n, s=s, r=1, sub_div=1, sub_mod=w)   # (m,256)

    # conv6 + channel concat + f32 residual fused; ~20 MiB/step at tm=512.
    y = conv6_residual(x1, x2, w6a, w6b, b2d(p["b6"]), x_res, tm=_pick_tile_m(m, 512))

    return jnp.transpose(y.reshape(n, d, h, w, c), (0, 4, 1, 2, 3))   # back to NCDHW


# ---------------------------------------------------------------------------
# Deterministic parameter init (shapes from the PyTorch __init__).
# ---------------------------------------------------------------------------
def init_params(key):
    specs = {
        "w1": (192, 1920, 1, 1, 1),
        "w2": (128, 1920, 1, 1, 1),
        "w3": (192, 128, 3, 1, 1),
        "w4": (224, 192, 1, 3, 1),
        "w5": (256, 224, 1, 1, 3),
        "w6": (1920, 448, 1, 1, 1),
    }
    params = {}
    keys = jax.random.split(key, 2 * len(specs))
    for i, (name, shp) in enumerate(specs.items()):
        fan_in = shp[1] * shp[2] * shp[3] * shp[4]
        params[name] = jax.random.normal(keys[2 * i], shp, jnp.float32) / jnp.sqrt(fan_in)
        params["b" + name[1:]] = jax.random.normal(keys[2 * i + 1], (shp[0],), jnp.float32) * 0.01
    return params


# ---------------------------------------------------------------------------
# Pure-JAX (XLA conv, f32 HIGHEST) reference for correctness checking.
# ---------------------------------------------------------------------------
def _ref_conv3d(x_ncdhw, w, b, padding):
    y = jax.lax.conv_general_dilated(
        x_ncdhw, w, window_strides=(1, 1, 1),
        padding=[(pd, pd) for pd in padding],
        dimension_numbers=("NCDHW", "OIDHW", "NCDHW"),
        precision=jax.lax.Precision.HIGHEST,
    )
    return y + b.reshape(1, -1, 1, 1, 1)


def ref_forward(x, p):
    x1 = _ref_conv3d(x, p["w1"], p["b1"], (0, 0, 0))
    x2 = _ref_conv3d(x, p["w2"], p["b2"], (0, 0, 0))
    x2 = _ref_conv3d(x2, p["w3"], p["b3"], (1, 0, 0))
    x2 = _ref_conv3d(x2, p["w4"], p["b4"], (0, 1, 0))
    x2 = _ref_conv3d(x2, p["w5"], p["b5"], (0, 0, 1))
    x3 = jnp.concatenate([x1, x2], axis=1)
    x3 = _ref_conv3d(x3, p["w6"], p["b6"], (0, 0, 0))
    return x + x3


if __name__ == "__main__":
    key = jax.random.PRNGKey(0)
    kp, kx = jax.random.split(key)
    params = init_params(kp)
    # Input channels are fixed at 1920 by the module; keep the spatial volume small.
    x = jax.random.normal(kx, (1, 1920, 4, 4, 4), jnp.float32)

    y = jax.block_until_ready(jax.jit(inception_c)(x, params))
    assert y.shape == x.shape and y.dtype == jnp.float32

    y_ref = jax.block_until_ready(ref_forward(x, params))
    # bf16 MXU operands / bf16 inter-stage activations (f32 accumulation, f32 identity path)
    # vs the f32 HIGHEST-precision XLA reference.
    np.testing.assert_allclose(np.asarray(y), np.asarray(y_ref), rtol=3e-2, atol=3e-2)

    print("KERNEL_OK")
</pallas_src>

<mosaic_0001>
module attributes {stable_mosaic.version = 11 : i64} {
  func.func @kernel(%arg0: i32, %arg1: memref<1x96x128xbf16, #tpu.memory_space<vmem>>, %arg2: memref<3x128x192xbf16, #tpu.memory_space<vmem>>, %arg3: memref<1x192xf32, #tpu.memory_space<vmem>>, %arg4: memref<64x1xf32, #tpu.memory_space<vmem>>, %arg5: memref<64x1xf32, #tpu.memory_space<vmem>>, %arg6: memref<1x64x192xbf16, #tpu.memory_space<vmem>>) attributes {dimension_semantics = [#tpu.dimension_semantics<parallel>], iteration_bounds = array<i64: 1>, scalar_prefetch = 0 : i64, scratch_operands = 0 : i64, tpu.core_type = #tpu.core_type<tc>, window_params = [{transform_indices = @transform_0, window_bounds = array<i64: 1, 96, 128>}, {pipeline_mode = #tpu.pipeline_mode<synchronous>, transform_indices = @transform_1, window_bounds = array<i64: 3, 128, 192>}, {pipeline_mode = #tpu.pipeline_mode<synchronous>, transform_indices = @transform_2, window_bounds = array<i64: 1, 192>}, {pipeline_mode = #tpu.pipeline_mode<synchronous>, transform_indices = @transform_3, window_bounds = array<i64: 64, 1>}, {pipeline_mode = #tpu.pipeline_mode<synchronous>, transform_indices = @transform_4, window_bounds = array<i64: 64, 1>}, {transform_indices = @transform_5, window_bounds = array<i64: 1, 64, 192>}]} {
    %c0 = arith.constant 0 : index
    %c0_0 = arith.constant 0 : index
    %c0_1 = arith.constant 0 : index
    %0 = vector.load %arg1[%c0, %c0_0, %c0_1] : memref<1x96x128xbf16, #tpu.memory_space<vmem>>, vector<1x96x128xbf16>
    %1 = vector.shape_cast %0 : vector<1x96x128xbf16> to vector<96x128xbf16>
    %c0_2 = arith.constant 0 : index
    %c0_3 = arith.constant 0 : index
    %c0_4 = arith.constant 0 : index
    %2 = vector.load %arg2[%c0_2, %c0_3, %c0_4] : memref<3x128x192xbf16, #tpu.memory_space<vmem>>, vector<1x128x192xbf16>
    %3 = vector.shape_cast %2 : vector<1x128x192xbf16> to vector<128x192xbf16>
    %cst = arith.constant dense<0.000000e+00> : vector<96x192xf32>
    %4 = tpu.matmul %1, %3, %cst {dimension_numbers = #tpu.dot_dimension_numbers<[1], [0], [0], [1], [0, 0, 1, 1], [], []>} : vector<96x128xbf16>, vector<128x192xbf16>, vector<96x192xf32> -> vector<96x192xf32>
    %5 = vector.extract_strided_slice %4 {offsets = [0, 0], sizes = [64, 192], strides = [1, 1]} : vector<96x192xf32> to vector<64x192xf32>
    %c0_5 = arith.constant 0 : index
    %c0_6 = arith.constant 0 : index
    %6 = vector.load %arg4[%c0_5, %c0_6] : memref<64x1xf32, #tpu.memory_space<vmem>>, vector<64x1xf32>
    %7 = vector.broadcast %6 : vector<64x1xf32> to vector<64x192xf32>
    %8 = arith.mulf %5, %7 : vector<64x192xf32>
    %c1 = arith.constant 1 : index
    %c0_7 = arith.constant 0 : index
    %c0_8 = arith.constant 0 : index
    %9 = vector.load %arg2[%c1, %c0_7, %c0_8] : memref<3x128x192xbf16, #tpu.memory_space<vmem>>, vector<1x128x192xbf16>
    %10 = vector.shape_cast %9 : vector<1x128x192xbf16> to vector<128x192xbf16>
    %cst_9 = arith.constant dense<0.000000e+00> : vector<96x192xf32>
    %11 = tpu.matmul %1, %10, %cst_9 {dimension_numbers = #tpu.dot_dimension_numbers<[1], [0], [0], [1], [0, 0, 1, 1], [], []>} : vector<96x128xbf16>, vector<128x192xbf16>, vector<96x192xf32> -> vector<96x192xf32>
    %12 = vector.extract_strided_slice %11 {offsets = [16, 0], sizes = [64, 192], strides = [1, 1]} : vector<96x192xf32> to vector<64x192xf32>
    %13 = arith.addf %8, %12 : vector<64x192xf32>
    %c2 = arith.constant 2 : index
    %c0_10 = arith.constant 0 : index
    %c0_11 = arith.constant 0 : index
    %14 = vector.load %arg2[%c2, %c0_10, %c0_11] : memref<3x128x192xbf16, #tpu.memory_space<vmem>>, vector<1x128x192xbf16>
    %15 = vector.shape_cast %14 : vector<1x128x192xbf16> to vector<128x192xbf16>
    %cst_12 = arith.constant dense<0.000000e+00> : vector<96x192xf32>
    %16 = tpu.matmul %1, %15, %cst_12 {dimension_numbers = #tpu.dot_dimension_numbers<[1], [0], [0], [1], [0, 0, 1, 1], [], []>} : vector<96x128xbf16>, vector<128x192xbf16>, vector<96x192xf32> -> vector<96x192xf32>
    %17 = vector.extract_strided_slice %16 {offsets = [32, 0], sizes = [64, 192], strides = [1, 1]} : vector<96x192xf32> to vector<64x192xf32>
    %c0_13 = arith.constant 0 : index
    %c0_14 = arith.constant 0 : index
    %18 = vector.load %arg5[%c0_13, %c0_14] : memref<64x1xf32, #tpu.memory_space<vmem>>, vector<64x1xf32>
    %19 = vector.broadcast %18 : vector<64x1xf32> to vector<64x192xf32>
    %20 = arith.mulf %17, %19 : vector<64x192xf32>
    %21 = arith.addf %13, %20 : vector<64x192xf32>
    %c0_15 = arith.constant 0 : index
    %c0_16 = arith.constant 0 : index
    %22 = vector.load %arg3[%c0_15, %c0_16] : memref<1x192xf32, #tpu.memory_space<vmem>>, vector<1x192xf32>
    %23 = vector.broadcast %22 : vector<1x192xf32> to vector<64x192xf32>
    %24 = arith.addf %21, %23 : vector<64x192xf32>
    %25 = arith.truncf %24 : vector<64x192xf32> to vector<64x192xbf16>
    %c0_17 = arith.constant 0 : index
    %c0_18 = arith.constant 0 : index
    %c0_19 = arith.constant 0 : index
    %26 = vector.load %arg6[%c0_17, %c0_18, %c0_19] : memref<1x64x192xbf16, #tpu.memory_space<vmem>>, vector<1x64x192xbf16>
    %27 = vector.shape_cast %26 : vector<1x64x192xbf16> to vector<64x192xbf16>
    %28 = vector.shape_cast %25 : vector<64x192xbf16> to vector<1x64x192xbf16>
    tpu.vector_store %arg6[%c0_17, %c0_18, %c0_19], %28 {strides = array<i32>} : memref<1x64x192xbf16, #tpu.memory_space<vmem>>, vector<1x64x192xbf16>,
    return
  }
  func.func @transform_0(%arg0: i32) -> (i32, i32, i32) {
    %c0_i32 = arith.constant 0 : i32
    %c0_i32_0 = arith.constant 0 : i32
    %c0_i32_1 = arith.constant 0 : i32
    return %arg0, %c0_i32, %c0_i32_0 : i32, i32, i32
  }
  func.func @transform_1(%arg0: i32) -> (i32, i32, i32) {
    %c0_i32 = arith.constant 0 : i32
    %c0_i32_0 = arith.constant 0 : i32
    %c0_i32_1 = arith.constant 0 : i32
    %c0_i32_2 = arith.constant 0 : i32
    return %c0_i32, %c0_i32_0, %c0_i32_1 : i32, i32, i32
  }
  func.func @transform_2(%arg0: i32) -> (i32, i32) {
    %c0_i32 = arith.constant 0 : i32
    %c0_i32_0 = arith.constant 0 : i32
    %c0_i32_1 = arith.constant 0 : i32
    return %c0_i32, %c0_i32_0 : i32, i32
  }
  func.func @transform_3(%arg0: i32) -> (i32, i32) {
    %c0_i32 = arith.constant 0 : i32
    %c0_i32_0 = arith.constant 0 : i32
    %c0_i32_1 = arith.constant 0 : i32
    return %c0_i32, %c0_i32_0 : i32, i32
  }
  func.func @transform_4(%arg0: i32) -> (i32, i32) {
    %c0_i32 = arith.constant 0 : i32
    %c0_i32_0 = arith.constant 0 : i32
    %c0_i32_1 = arith.constant 0 : i32
    return %c0_i32, %c0_i32_0 : i32, i32
  }
  func.func @transform_5(%arg0: i32) -> (i32, i32, i32) {
    %c0_i32 = arith.constant 0 : i32
    %c0_i32_0 = arith.constant 0 : i32
    %c0_i32_1 = arith.constant 0 : i32
    return %arg0, %c0_i32, %c0_i32_0 : i32, i32, i32
  }
}

module attributes {stable_mosaic.version = 11 : i64} {
  func.func @_pointwise_pair_kernel(%arg0: i32, %arg1: memref<64x1920xbf16, #tpu.memory_space<vmem>>, %arg2: memref<1920x192xbf16, #tpu.memory_space<vmem>>, %arg3: memref<1x192xf32, #tpu.memory_space<vmem>>, %arg4: memref<1920x128xbf16, #tpu.memory_space<vmem>>, %arg5: memref<1x128xf32, #tpu.memory_space<vmem>>, %arg6: memref<64x192xbf16, #tpu.memory_space<vmem>>, %arg7: memref<64x128xbf16, #tpu.memory_space<vmem>>) attributes {dimension_semantics = [#tpu.dimension_semantics<parallel>], iteration_bounds = array<i64: 1>, scalar_prefetch = 0 : i64, scratch_operands = 0 : i64, tpu.core_type = #tpu.core_type<tc>, window_params = [{transform_indices = @transform_0, window_bounds = array<i64: 64, 1920>}, {pipeline_mode = #tpu.pipeline_mode<synchronous>, transform_indices = @transform_1, window_bounds = array<i64: 1920, 192>}, {pipeline_mode = #tpu.pipeline_mode<synchronous>, transform_indices = @transform_2, window_bounds = array<i64: 1, 192>}, {pipeline_mode = #tpu.pipeline_mode<synchronous>, transform_indices = @transform_3, window_bounds = array<i64: 1920, 128>}, {pipeline_mode = #tpu.pipeline_mode<synchronous>, transform_indices = @transform_4, window_bounds = array<i64: 1, 128>}, {transform_indices = @transform_5, window_bounds = array<i64: 64, 192>}, {transform_indices = @transform_6, window_bounds = array<i64: 64, 128>}]} {
    %c0 = arith.constant 0 : index
    %c0_0 = arith.constant 0 : index
    %0 = vector.load %arg1[%c0, %c0_0] : memref<64x1920xbf16, #tpu.memory_space<vmem>>, vector<64x1920xbf16>
    %c0_1 = arith.constant 0 : index
    %c0_2 = arith.constant 0 : index
    %1 = vector.load %arg2[%c0_1, %c0_2] : memref<1920x192xbf16, #tpu.memory_space<vmem>>, vector<1920x192xbf16>
    %cst = arith.constant dense<0.000000e+00> : vector<64x192xf32>
    %2 = tpu.matmul %0, %1, %cst {dimension_numbers = #tpu.dot_dimension_numbers<[1], [0], [0], [1], [0, 0, 1, 1], [], []>} : vector<64x1920xbf16>, vector<1920x192xbf16>, vector<64x192xf32> -> vector<64x192xf32>
    %c0_3 = arith.constant 0 : index
    %c0_4 = arith.constant 0 : index
    %3 = vector.load %arg3[%c0_3, %c0_4] : memref<1x192xf32, #tpu.memory_space<vmem>>, vector<1x192xf32>
    %4 = vector.broadcast %3 : vector<1x192xf32> to vector<64x192xf32>
    %5 = arith.addf %2, %4 : vector<64x192xf32>
    %6 = arith.truncf %5 : vector<64x192xf32> to vector<64x192xbf16>
    %c0_5 = arith.constant 0 : index
    %c0_6 = arith.constant 0 : index
    %7 = vector.load %arg6[%c0_5, %c0_6] : memref<64x192xbf16, #tpu.memory_space<vmem>>, vector<64x192xbf16>
    tpu.vector_store %arg6[%c0_5, %c0_6], %6 {strides = array<i32>} : memref<64x192xbf16, #tpu.memory_space<vmem>>, vector<64x192xbf16>,
    %c0_7 = arith.constant 0 : index
    %c0_8 = arith.constant 0 : index
    %8 = vector.load %arg4[%c0_7, %c0_8] : memref<1920x128xbf16, #tpu.memory_space<vmem>>, vector<1920x128xbf16>
    %cst_9 = arith.constant dense<0.000000e+00> : vector<64x128xf32>
    %9 = tpu.matmul %0, %8, %cst_9 {dimension_numbers = #tpu.dot_dimension_numbers<[1], [0], [0], [1], [0, 0, 1, 1], [], []>} : vector<64x1920xbf16>, vector<1920x128xbf16>, vector<64x128xf32> -> vector<64x128xf32>
    %c0_10 = arith.constant 0 : index
    %c0_11 = arith.constant 0 : index
    %10 = vector.load %arg5[%c0_10, %c0_11] : memref<1x128xf32, #tpu.memory_space<vmem>>, vector<1x128xf32>
    %11 = vector.broadcast %10 : vector<1x128xf32> to vector<64x128xf32>
    %12 = arith.addf %9, %11 : vector<64x128xf32>
    %13 = arith.truncf %12 : vector<64x128xf32> to vector<64x128xbf16>
    %c0_12 = arith.constant 0 : index
    %c0_13 = arith.constant 0 : index
    %14 = vector.load %arg7[%c0_12, %c0_13] : memref<64x128xbf16, #tpu.memory_space<vmem>>, vector<64x128xbf16>
    tpu.vector_store %arg7[%c0_12, %c0_13], %13 {strides = array<i32>} : memref<64x128xbf16, #tpu.memory_space<vmem>>, vector<64x128xbf16>,
    return
  }
  func.func @transform_0(%arg0: i32) -> (i32, i32) {
    %c0_i32 = arith.constant 0 : i32
    %c0_i32_0 = arith.constant 0 : i32
    return %arg0, %c0_i32 : i32, i32
  }
  func.func @transform_1(%arg0: i32) -> (i32, i32) {
    %c0_i32 = arith.constant 0 : i32
    %c0_i32_0 = arith.constant 0 : i32
    %c0_i32_1 = arith.constant 0 : i32
    return %c0_i32, %c0_i32_0 : i32, i32
  }
  func.func @transform_2(%arg0: i32) -> (i32, i32) {
    %c0_i32 = arith.constant 0 : i32
    %c0_i32_0 = arith.constant 0 : i32
    %c0_i32_1 = arith.constant 0 : i32
    return %c0_i32, %c0_i32_0 : i32, i32
  }
  func.func @transform_3(%arg0: i32) -> (i32, i32) {
    %c0_i32 = arith.constant 0 : i32
    %c0_i32_0 = arith.constant 0 : i32
    %c0_i32_1 = arith.constant 0 : i32
    return %c0_i32, %c0_i32_0 : i32, i32
  }
  func.func @transform_4(%arg0: i32) -> (i32, i32) {
    %c0_i32 = arith.constant 0 : i32
    %c0_i32_0 = arith.constant 0 : i32
    %c0_i32_1 = arith.constant 0 : i32
    return %c0_i32, %c0_i32_0 : i32, i32
  }
  func.func @transform_5(%arg0: i32) -> (i32, i32) {
    %c0_i32 = arith.constant 0 : i32
    %c0_i32_0 = arith.constant 0 : i32
    return %arg0, %c0_i32 : i32, i32
  }
  func.func @transform_6(%arg0: i32) -> (i32, i32) {
    %c0_i32 = arith.constant 0 : i32
    %c0_i32_0 = arith.constant 0 : i32
    return %arg0, %c0_i32 : i32, i32
  }
}

module attributes {stable_mosaic.version = 11 : i64} {
  func.func @kernel(%arg0: i32, %arg1: memref<1x72x192xbf16, #tpu.memory_space<vmem>>, %arg2: memref<3x192x224xbf16, #tpu.memory_space<vmem>>, %arg3: memref<1x224xf32, #tpu.memory_space<vmem>>, %arg4: memref<64x1xf32, #tpu.memory_space<vmem>>, %arg5: memref<64x1xf32, #tpu.memory_space<vmem>>, %arg6: memref<1x64x224xbf16, #tpu.memory_space<vmem>>) attributes {dimension_semantics = [#tpu.dimension_semantics<parallel>], iteration_bounds = array<i64: 1>, scalar_prefetch = 0 : i64, scratch_operands = 0 : i64, tpu.core_type = #tpu.core_type<tc>, window_params = [{transform_indices = @transform_0, window_bounds = array<i64: 1, 72, 192>}, {pipeline_mode = #tpu.pipeline_mode<synchronous>, transform_indices = @transform_1, window_bounds = array<i64: 3, 192, 224>}, {pipeline_mode = #tpu.pipeline_mode<synchronous>, transform_indices = @transform_2, window_bounds = array<i64: 1, 224>}, {pipeline_mode = #tpu.pipeline_mode<synchronous>, transform_indices = @transform_3, window_bounds = array<i64: 64, 1>}, {pipeline_mode = #tpu.pipeline_mode<synchronous>, transform_indices = @transform_4, window_bounds = array<i64: 64, 1>}, {transform_indices = @transform_5, window_bounds = array<i64: 1, 64, 224>}]} {
    %c0 = arith.constant 0 : index
    %c0_0 = arith.constant 0 : index
    %c0_1 = arith.constant 0 : index
    %0 = vector.load %arg1[%c0, %c0_0, %c0_1] : memref<1x72x192xbf16, #tpu.memory_space<vmem>>, vector<1x72x192xbf16>
    %1 = vector.shape_cast %0 : vector<1x72x192xbf16> to vector<72x192xbf16>
    %c0_2 = arith.constant 0 : index
    %c0_3 = arith.constant 0 : index
    %c0_4 = arith.constant 0 : index
    %2 = vector.load %arg2[%c0_2, %c0_3, %c0_4] : memref<3x192x224xbf16, #tpu.memory_space<vmem>>, vector<1x192x224xbf16>
    %3 = vector.shape_cast %2 : vector<1x192x224xbf16> to vector<192x224xbf16>
    %cst = arith.constant dense<0.000000e+00> : vector<72x224xf32>
    %4 = tpu.matmul %1, %3, %cst {dimension_numbers = #tpu.dot_dimension_numbers<[1], [0], [0], [1], [0, 0, 1, 1], [], []>} : vector<72x192xbf16>, vector<192x224xbf16>, vector<72x224xf32> -> vector<72x224xf32>
    %5 = vector.extract_strided_slice %4 {offsets = [0, 0], sizes = [64, 224], strides = [1, 1]} : vector<72x224xf32> to vector<64x224xf32>
    %c0_5 = arith.constant 0 : index
    %c0_6 = arith.constant 0 : index
    %6 = vector.load %arg4[%c0_5, %c0_6] : memref<64x1xf32, #tpu.memory_space<vmem>>, vector<64x1xf32>
    %7 = vector.broadcast %6 : vector<64x1xf32> to vector<64x224xf32>
    %8 = arith.mulf %5, %7 : vector<64x224xf32>
    %c1 = arith.constant 1 : index
    %c0_7 = arith.constant 0 : index
    %c0_8 = arith.constant 0 : index
    %9 = vector.load %arg2[%c1, %c0_7, %c0_8] : memref<3x192x224xbf16, #tpu.memory_space<vmem>>, vector<1x192x224xbf16>
    %10 = vector.shape_cast %9 : vector<1x192x224xbf16> to vector<192x224xbf16>
    %cst_9 = arith.constant dense<0.000000e+00> : vector<72x224xf32>
    %11 = tpu.matmul %1, %10, %cst_9 {dimension_numbers = #tpu.dot_dimension_numbers<[1], [0], [0], [1], [0, 0, 1, 1], [], []>} : vector<72x192xbf16>, vector<192x224xbf16>, vector<72x224xf32> -> vector<72x224xf32>
    %12 = vector.extract_strided_slice %11 {offsets = [4, 0], sizes = [64, 224], strides = [1, 1]} : vector<72x224xf32> to vector<64x224xf32>
    %13 = arith.addf %8, %12 : vector<64x224xf32>
    %c2 = arith.constant 2 : index
    %c0_10 = arith.constant 0 : index
    %c0_11 = arith.constant 0 : index
    %14 = vector.load %arg2[%c2, %c0_10, %c0_11] : memref<3x192x224xbf16, #tpu.memory_space<vmem>>, vector<1x192x224xbf16>
    %15 = vector.shape_cast %14 : vector<1x192x224xbf16> to vector<192x224xbf16>
    %cst_12 = arith.constant dense<0.000000e+00> : vector<72x224xf32>
    %16 = tpu.matmul %1, %15, %cst_12 {dimension_numbers = #tpu.dot_dimension_numbers<[1], [0], [0], [1], [0, 0, 1, 1], [], []>} : vector<72x192xbf16>, vector<192x224xbf16>, vector<72x224xf32> -> vector<72x224xf32>
    %17 = vector.extract_strided_slice %16 {offsets = [8, 0], sizes = [64, 224], strides = [1, 1]} : vector<72x224xf32> to vector<64x224xf32>
    %c0_13 = arith.constant 0 : index
    %c0_14 = arith.constant 0 : index
    %18 = vector.load %arg5[%c0_13, %c0_14] : memref<64x1xf32, #tpu.memory_space<vmem>>, vector<64x1xf32>
    %19 = vector.broadcast %18 : vector<64x1xf32> to vector<64x224xf32>
    %20 = arith.mulf %17, %19 : vector<64x224xf32>
    %21 = arith.addf %13, %20 : vector<64x224xf32>
    %c0_15 = arith.constant 0 : index
    %c0_16 = arith.constant 0 : index
    %22 = vector.load %arg3[%c0_15, %c0_16] : memref<1x224xf32, #tpu.memory_space<vmem>>, vector<1x224xf32>
    %23 = vector.broadcast %22 : vector<1x224xf32> to vector<64x224xf32>
    %24 = arith.addf %21, %23 : vector<64x224xf32>
    %25 = arith.truncf %24 : vector<64x224xf32> to vector<64x224xbf16>
    %c0_17 = arith.constant 0 : index
    %c0_18 = arith.constant 0 : index
    %c0_19 = arith.constant 0 : index
    %26 = vector.load %arg6[%c0_17, %c0_18, %c0_19] : memref<1x64x224xbf16, #tpu.memory_space<vmem>>, vector<1x64x224xbf16>
    %27 = vector.shape_cast %26 : vector<1x64x224xbf16> to vector<64x224xbf16>
    %28 = vector.shape_cast %25 : vector<64x224xbf16> to vector<1x64x224xbf16>
    tpu.vector_store %arg6[%c0_17, %c0_18, %c0_19], %28 {strides = array<i32>} : memref<1x64x224xbf16, #tpu.memory_space<vmem>>, vector<1x64x224xbf16>,
    return
  }
  func.func @transform_0(%arg0: i32) -> (i32, i32, i32) {
    %c0_i32 = arith.constant 0 : i32
    %c0_i32_0 = arith.constant 0 : i32
    %c0_i32_1 = arith.constant 0 : i32
    return %arg0, %c0_i32, %c0_i32_0 : i32, i32, i32
  }
  func.func @transform_1(%arg0: i32) -> (i32, i32, i32) {
    %c0_i32 = arith.constant 0 : i32
    %c0_i32_0 = arith.constant 0 : i32
    %c0_i32_1 = arith.constant 0 : i32
    %c0_i32_2 = arith.constant 0 : i32
    return %c0_i32, %c0_i32_0, %c0_i32_1 : i32, i32, i32
  }
  func.func @transform_2(%arg0: i32) -> (i32, i32) {
    %c0_i32 = arith.constant 0 : i32
    %c0_i32_0 = arith.constant 0 : i32
    %c0_i32_1 = arith.constant 0 : i32
    return %c0_i32, %c0_i32_0 : i32, i32
  }
  func.func @transform_3(%arg0: i32) -> (i32, i32) {
    %c0_i32 = arith.constant 0 : i32
    %c0_i32_0 = arith.constant 0 : i32
    %c0_i32_1 = arith.constant 0 : i32
    return %c0_i32, %c0_i32_0 : i32, i32
  }
  func.func @transform_4(%arg0: i32) -> (i32, i32) {
    %c0_i32 = arith.constant 0 : i32
    %c0_i32_0 = arith.constant 0 : i32
    %c0_i32_1 = arith.constant 0 : i32
    return %c0_i32, %c0_i32_0 : i32, i32
  }
  func.func @transform_5(%arg0: i32) -> (i32, i32, i32) {
    %c0_i32 = arith.constant 0 : i32
    %c0_i32_0 = arith.constant 0 : i32
    %c0_i32_1 = arith.constant 0 : i32
    return %arg0, %c0_i32, %c0_i32_0 : i32, i32, i32
  }
}

module attributes {stable_mosaic.version = 11 : i64} {
  func.func @kernel(%arg0: i32, %arg1: memref<1x66x224xbf16, #tpu.memory_space<vmem>>, %arg2: memref<3x224x256xbf16, #tpu.memory_space<vmem>>, %arg3: memref<1x256xf32, #tpu.memory_space<vmem>>, %arg4: memref<64x1xf32, #tpu.memory_space<vmem>>, %arg5: memref<64x1xf32, #tpu.memory_space<vmem>>, %arg6: memref<1x64x256xbf16, #tpu.memory_space<vmem>>) attributes {dimension_semantics = [#tpu.dimension_semantics<parallel>], iteration_bounds = array<i64: 1>, scalar_prefetch = 0 : i64, scratch_operands = 0 : i64, tpu.core_type = #tpu.core_type<tc>, window_params = [{transform_indices = @transform_0, window_bounds = array<i64: 1, 66, 224>}, {pipeline_mode = #tpu.pipeline_mode<synchronous>, transform_indices = @transform_1, window_bounds = array<i64: 3, 224, 256>}, {pipeline_mode = #tpu.pipeline_mode<synchronous>, transform_indices = @transform_2, window_bounds = array<i64: 1, 256>}, {pipeline_mode = #tpu.pipeline_mode<synchronous>, transform_indices = @transform_3, window_bounds = array<i64: 64, 1>}, {pipeline_mode = #tpu.pipeline_mode<synchronous>, transform_indices = @transform_4, window_bounds = array<i64: 64, 1>}, {transform_indices = @transform_5, window_bounds = array<i64: 1, 64, 256>}]} {
    %c0 = arith.constant 0 : index
    %c0_0 = arith.constant 0 : index
    %c0_1 = arith.constant 0 : index
    %0 = vector.load %arg1[%c0, %c0_0, %c0_1] : memref<1x66x224xbf16, #tpu.memory_space<vmem>>, vector<1x66x224xbf16>
    %1 = vector.shape_cast %0 : vector<1x66x224xbf16> to vector<66x224xbf16>
    %c0_2 = arith.constant 0 : index
    %c0_3 = arith.constant 0 : index
    %c0_4 = arith.constant 0 : index
    %2 = vector.load %arg2[%c0_2, %c0_3, %c0_4] : memref<3x224x256xbf16, #tpu.memory_space<vmem>>, vector<1x224x256xbf16>
    %3 = vector.shape_cast %2 : vector<1x224x256xbf16> to vector<224x256xbf16>
    %cst = arith.constant dense<0.000000e+00> : vector<66x256xf32>
    %4 = tpu.matmul %1, %3, %cst {dimension_numbers = #tpu.dot_dimension_numbers<[1], [0], [0], [1], [0, 0, 1, 1], [], []>} : vector<66x224xbf16>, vector<224x256xbf16>, vector<66x256xf32> -> vector<66x256xf32>
    %5 = vector.extract_strided_slice %4 {offsets = [0, 0], sizes = [64, 256], strides = [1, 1]} : vector<66x256xf32> to vector<64x256xf32>
    %c0_5 = arith.constant 0 : index
    %c0_6 = arith.constant 0 : index
    %6 = vector.load %arg4[%c0_5, %c0_6] : memref<64x1xf32, #tpu.memory_space<vmem>>, vector<64x1xf32>
    %7 = vector.broadcast %6 : vector<64x1xf32> to vector<64x256xf32>
    %8 = arith.mulf %5, %7 : vector<64x256xf32>
    %c1 = arith.constant 1 : index
    %c0_7 = arith.constant 0 : index
    %c0_8 = arith.constant 0 : index
    %9 = vector.load %arg2[%c1, %c0_7, %c0_8] : memref<3x224x256xbf16, #tpu.memory_space<vmem>>, vector<1x224x256xbf16>
    %10 = vector.shape_cast %9 : vector<1x224x256xbf16> to vector<224x256xbf16>
    %cst_9 = arith.constant dense<0.000000e+00> : vector<66x256xf32>
    %11 = tpu.matmul %1, %10, %cst_9 {dimension_numbers = #tpu.dot_dimension_numbers<[1], [0], [0], [1], [0, 0, 1, 1], [], []>} : vector<66x224xbf16>, vector<224x256xbf16>, vector<66x256xf32> -> vector<66x256xf32>
    %12 = vector.extract_strided_slice %11 {offsets = [1, 0], sizes = [64, 256], strides = [1, 1]} : vector<66x256xf32> to vector<64x256xf32>
    %13 = arith.addf %8, %12 : vector<64x256xf32>
    %c2 = arith.constant 2 : index
    %c0_10 = arith.constant 0 : index
    %c0_11 = arith.constant 0 : index
    %14 = vector.load %arg2[%c2, %c0_10, %c0_11] : memref<3x224x256xbf16, #tpu.memory_space<vmem>>, vector<1x224x256xbf16>
    %15 = vector.shape_cast %14 : vector<1x224x256xbf16> to vector<224x256xbf16>
    %cst_12 = arith.constant dense<0.000000e+00> : vector<66x256xf32>
    %16 = tpu.matmul %1, %15, %cst_12 {dimension_numbers = #tpu.dot_dimension_numbers<[1], [0], [0], [1], [0, 0, 1, 1], [], []>} : vector<66x224xbf16>, vector<224x256xbf16>, vector<66x256xf32> -> vector<66x256xf32>
    %17 = vector.extract_strided_slice %16 {offsets = [2, 0], sizes = [64, 256], strides = [1, 1]} : vector<66x256xf32> to vector<64x256xf32>
    %c0_13 = arith.constant 0 : index
    %c0_14 = arith.constant 0 : index
    %18 = vector.load %arg5[%c0_13, %c0_14] : memref<64x1xf32, #tpu.memory_space<vmem>>, vector<64x1xf32>
    %19 = vector.broadcast %18 : vector<64x1xf32> to vector<64x256xf32>
    %20 = arith.mulf %17, %19 : vector<64x256xf32>
    %21 = arith.addf %13, %20 : vector<64x256xf32>
    %c0_15 = arith.constant 0 : index
    %c0_16 = arith.constant 0 : index
    %22 = vector.load %arg3[%c0_15, %c0_16] : memref<1x256xf32, #tpu.memory_space<vmem>>, vector<1x256xf32>
    %23 = vector.broadcast %22 : vector<1x256xf32> to vector<64x256xf32>
    %24 = arith.addf %21, %23 : vector<64x256xf32>
    %25 = arith.truncf %24 : vector<64x256xf32> to vector<64x256xbf16>
    %c0_17 = arith.constant 0 : index
    %c0_18 = arith.constant 0 : index
    %c0_19 = arith.constant 0 : index
    %26 = vector.load %arg6[%c0_17, %c0_18, %c0_19] : memref<1x64x256xbf16, #tpu.memory_space<vmem>>, vector<1x64x256xbf16>
    %27 = vector.shape_cast %26 : vector<1x64x256xbf16> to vector<64x256xbf16>
    %28 = vector.shape_cast %25 : vector<64x256xbf16> to vector<1x64x256xbf16>
    tpu.vector_store %arg6[%c0_17, %c0_18, %c0_19], %28 {strides = array<i32>} : memref<1x64x256xbf16, #tpu.memory_space<vmem>>, vector<1x64x256xbf16>,
    return
  }
  func.func @transform_0(%arg0: i32) -> (i32, i32, i32) {
    %c0_i32 = arith.constant 0 : i32
    %c0_i32_0 = arith.constant 0 : i32
    %c0_i32_1 = arith.constant 0 : i32
    return %arg0, %c0_i32, %c0_i32_0 : i32, i32, i32
  }
  func.func @transform_1(%arg0: i32) -> (i32, i32, i32) {
    %c0_i32 = arith.constant 0 : i32
    %c0_i32_0 = arith.constant 0 : i32
    %c0_i32_1 = arith.constant 0 : i32
    %c0_i32_2 = arith.constant 0 : i32
    return %c0_i32, %c0_i32_0, %c0_i32_1 : i32, i32, i32
  }
  func.func @transform_2(%arg0: i32) -> (i32, i32) {
    %c0_i32 = arith.constant 0 : i32
    %c0_i32_0 = arith.constant 0 : i32
    %c0_i32_1 = arith.constant 0 : i32
    return %c0_i32, %c0_i32_0 : i32, i32
  }
  func.func @transform_3(%arg0: i32) -> (i32, i32) {
    %c0_i32 = arith.constant 0 : i32
    %c0_i32_0 = arith.constant 0 : i32
    %c0_i32_1 = arith.constant 0 : i32
    return %c0_i32, %c0_i32_0 : i32, i32
  }
  func.func @transform_4(%arg0: i32) -> (i32, i32) {
    %c0_i32 = arith.constant 0 : i32
    %c0_i32_0 = arith.constant 0 : i32
    %c0_i32_1 = arith.constant 0 : i32
    return %c0_i32, %c0_i32_0 : i32, i32
  }
  func.func @transform_5(%arg0: i32) -> (i32, i32, i32) {
    %c0_i32 = arith.constant 0 : i32
    %c0_i32_0 = arith.constant 0 : i32
    %c0_i32_1 = arith.constant 0 : i32
    return %arg0, %c0_i32, %c0_i32_0 : i32, i32, i32
  }
}

module attributes {stable_mosaic.version = 11 : i64} {
  func.func @_conv6_residual_kernel(%arg0: i32, %arg1: memref<64x192xbf16, #tpu.memory_space<vmem>>, %arg2: memref<64x256xbf16, #tpu.memory_space<vmem>>, %arg3: memref<192x1920xbf16, #tpu.memory_space<vmem>>, %arg4: memref<256x1920xbf16, #tpu.memory_space<vmem>>, %arg5: memref<1x1920xf32, #tpu.memory_space<vmem>>, %arg6: memref<64x1920xf32, #tpu.memory_space<vmem>>, %arg7: memref<64x1920xf32, #tpu.memory_space<vmem>>) attributes {dimension_semantics = [#tpu.dimension_semantics<parallel>], iteration_bounds = array<i64: 1>, scalar_prefetch = 0 : i64, scratch_operands = 0 : i64, tpu.core_type = #tpu.core_type<tc>, window_params = [{transform_indices = @transform_0, window_bounds = array<i64: 64, 192>}, {transform_indices = @transform_1, window_bounds = array<i64: 64, 256>}, {pipeline_mode = #tpu.pipeline_mode<synchronous>, transform_indices = @transform_2, window_bounds = array<i64: 192, 1920>}, {pipeline_mode = #tpu.pipeline_mode<synchronous>, transform_indices = @transform_3, window_bounds = array<i64: 256, 1920>}, {pipeline_mode = #tpu.pipeline_mode<synchronous>, transform_indices = @transform_4, window_bounds = array<i64: 1, 1920>}, {transform_indices = @transform_5, window_bounds = array<i64: 64, 1920>}, {transform_indices = @transform_6, window_bounds = array<i64: 64, 1920>}]} {
    %c0 = arith.constant 0 : index
    %c0_0 = arith.constant 0 : index
    %0 = vector.load %arg1[%c0, %c0_0] : memref<64x192xbf16, #tpu.memory_space<vmem>>, vector<64x192xbf16>
    %c0_1 = arith.constant 0 : index
    %c0_2 = arith.constant 0 : index
    %1 = vector.load %arg3[%c0_1, %c0_2] : memref<192x1920xbf16, #tpu.memory_space<vmem>>, vector<192x1920xbf16>
    %cst = arith.constant dense<0.000000e+00> : vector<64x1920xf32>
    %2 = tpu.matmul %0, %1, %cst {dimension_numbers = #tpu.dot_dimension_numbers<[1], [0], [0], [1], [0, 0, 1, 1], [], []>} : vector<64x192xbf16>, vector<192x1920xbf16>, vector<64x1920xf32> -> vector<64x1920xf32>
    %c0_3 = arith.constant 0 : index
    %c0_4 = arith.constant 0 : index
    %3 = vector.load %arg2[%c0_3, %c0_4] : memref<64x256xbf16, #tpu.memory_space<vmem>>, vector<64x256xbf16>
    %c0_5 = arith.constant 0 : index
    %c0_6 = arith.constant 0 : index
    %4 = vector.load %arg4[%c0_5, %c0_6] : memref<256x1920xbf16, #tpu.memory_space<vmem>>, vector<256x1920xbf16>
    %cst_7 = arith.constant dense<0.000000e+00> : vector<64x1920xf32>
    %5 = tpu.matmul %3, %4, %cst_7 {dimension_numbers = #tpu.dot_dimension_numbers<[1], [0], [0], [1], [0, 0, 1, 1], [], []>} : vector<64x256xbf16>, vector<256x1920xbf16>, vector<64x1920xf32> -> vector<64x1920xf32>
    %6 = arith.addf %2, %5 : vector<64x1920xf32>
    %c0_8 = arith.constant 0 : index
    %c0_9 = arith.constant 0 : index
    %7 = vector.load %arg5[%c0_8, %c0_9] : memref<1x1920xf32, #tpu.memory_space<vmem>>, vector<1x1920xf32>
    %8 = vector.broadcast %7 : vector<1x1920xf32> to vector<64x1920xf32>
    %9 = arith.addf %6, %8 : vector<64x1920xf32>
    %c0_10 = arith.constant 0 : index
    %c0_11 = arith.constant 0 : index
    %10 = vector.load %arg6[%c0_10, %c0_11] : memref<64x1920xf32, #tpu.memory_space<vmem>>, vector<64x1920xf32>
    %11 = arith.addf %9, %10 : vector<64x1920xf32>
    %c0_12 = arith.constant 0 : index
    %c0_13 = arith.constant 0 : index
    %12 = vector.load %arg7[%c0_12, %c0_13] : memref<64x1920xf32, #tpu.memory_space<vmem>>, vector<64x1920xf32>
    tpu.vector_store %arg7[%c0_12, %c0_13], %11 {strides = array<i32>} : memref<64x1920xf32, #tpu.memory_space<vmem>>, vector<64x1920xf32>,
    return
  }
  func.func @transform_0(%arg0: i32) -> (i32, i32) {
    %c0_i32 = arith.constant 0 : i32
    %c0_i32_0 = arith.constant 0 : i32
    return %arg0, %c0_i32 : i32, i32
  }
  func.func @transform_1(%arg0: i32) -> (i32, i32) {
    %c0_i32 = arith.constant 0 : i32
    %c0_i32_0 = arith.constant 0 : i32
    return %arg0, %c0_i32 : i32, i32
  }
  func.func @transform_2(%arg0: i32) -> (i32, i32) {
    %c0_i32 = arith.constant 0 : i32
    %c0_i32_0 = arith.constant 0 : i32
    %c0_i32_1 = arith.constant 0 : i32
    return %c0_i32, %c0_i32_0 : i32, i32
  }
  func.func @transform_3(%arg0: i32) -> (i32, i32) {
    %c0_i32 = arith.constant 0 : i32
    %c0_i32_0 = arith.constant 0 : i32
    %c0_i32_1 = arith.constant 0 : i32
    return %c0_i32, %c0_i32_0 : i32, i32
  }
  func.func @transform_4(%arg0: i32) -> (i32, i32) {
    %c0_i32 = arith.constant 0 : i32
    %c0_i32_0 = arith.constant 0 : i32
    %c0_i32_1 = arith.constant 0 : i32
    return %c0_i32, %c0_i32_0 : i32, i32
  }
  func.func @transform_5(%arg0: i32) -> (i32, i32) {
    %c0_i32 = arith.constant 0 : i32
    %c0_i32_0 = arith.constant 0 : i32
    return %arg0, %c0_i32 : i32, i32
  }
  func.func @transform_6(%arg0: i32) -> (i32, i32) {
    %c0_i32 = arith.constant 0 : i32
    %c0_i32_0 = arith.constant 0 : i32
    return %arg0, %c0_i32 : i32, i32
  }
}

</mosaic_0001>

<bundles_post_ra>
// kernel: inception_c.6
= control target key start
LH: loop header
LB: loop body
LE: loop exit
PB: predicated region body
PF: predicated region fallthrough
CT: control target
= control target key end

     0   :  { %v1064_v1 = vmov 0   ;;  %vm850_vm0 = vcmask 1043456   ;;  %vm851_vm1 = vcmask 523268   ;;  %s1463_s1 = inlined_call_operand.vmem [shape: bf16[3,128,192], index: 1, kind: input, shape index: {}]   ;;  %s1464_s0 = inlined_call_operand.vmem [shape: bf16[1,96,128], index: 0, kind: input, shape index: {}]   ;;  %s1465_s3 = inlined_call_operand.vmem [shape: f32[64,1], index: 3, kind: input, shape index: {}, may-alias: {3,4}]   ;;  %s1466_s4 = inlined_call_operand.vmem [shape: f32[64,1], index: 4, kind: input, shape index: {}, may-alias: {3,4}]   ;;  %s1467_s2 = inlined_call_operand.vmem [shape: f32[1,192], index: 2, kind: input, shape index: {}]   ;;  %s1468_s5 = inlined_call_operand.vmem [shape: bf16[1,64,192], index: 5, kind: output, shape index: {}]  }
   0x1   :  { %v986_v0 = vld [vmem:[%s1463_s1 + $0x4] ss:$8 sps:$4 sm:$0xff]   ;;  %197 = vmatprep.mubr.bf16.mxu0 %v1064_v1  ;;  %443 = vmatprep.mubr.bf16.mxu1 %v1064_v1  ;;  %v990_v3 = vld [vmem:[%s1463_s1] ss:$8 sps:$4 sm:$0xff]   ;;  %v992_v5 = vld [vmem:[%s1463_s1 + $0x14] ss:$8 sps:$4 sm:$0xff]  }
   0x2   :  { %v988_v2 = vld [vmem:[%s1463_s1 + $0x84] ss:$8 sps:$4 sm:$0xff]   ;;  %984 = vset.pattern.permute.xlu0 %v1064_v1  ;;  %985 = vset.pattern.permute.xlu1 %v1064_v1  ;;  %v991_v4 = vld [vmem:[%s1463_s1 + $0x80] ss:$8 sps:$4 sm:$0xff]   ;;  %v994_v6 = vld [vmem:[%s1463_s1 + $0x94] ss:$8 sps:$4 sm:$0xff]  }
   0x3   :  { %165 = vmatprep.subr.bf16.mxu0 %v986_v0  ;;  %411 = vmatprep.subr.bf16.mxu1 %v988_v2  ;;  %v996_v7 = vld [vmem:[%s1463_s1 + $0x10] ss:$8 sps:$4 sm:$0xff]   ;;  %v998_v9 = vld [vmem:[%s1463_s1 + $0x24] ss:$8 sps:$4 sm:$0xff]   ;;  %v1002_v11 = vld [vmem:[%s1463_s1 + $0x20] ss:$8 sps:$4 sm:$0xff]  }
   0x4   :  { %166 = vmatpush1.bf16.msra.mxu0 %v990_v3  ;;  %412 = vmatpush1.bf16.msra.mxu1 %v991_v4  ;;  %v997_v8 = vld [vmem:[%s1463_s1 + $0x90] ss:$8 sps:$4 sm:$0xff]   ;;  %v1000_v10 = vld [vmem:[%s1463_s1 + $0xa4] ss:$8 sps:$4 sm:$0xff]   ;;  %v1003_v12 = vld [vmem:[%s1463_s1 + $0xa0] ss:$8 sps:$4 sm:$0xff]  }
   0x5   :  { %167 = vmatprep.subr.bf16.mxu0 %v992_v5  ;;  %413 = vmatprep.subr.bf16.mxu1 %v994_v6  ;;  %v1004_v13 = vld [vmem:[%s1463_s1 + $0x34] ss:$8 sps:$4 sm:$0xff]   ;;  %v1008_v15 = vld [vmem:[%s1463_s1 + $0x30] ss:$8 sps:$4 sm:$0xff]   ;;  %v1010_v17 = vld [vmem:[%s1463_s1 + $0x44] ss:$8 sps:$4 sm:$0xff]  }
   0x6   :  { %v1006_v14 = vld [vmem:[%s1463_s1 + $0xb4] ss:$8 sps:$4 sm:$0xff]   ;;  %v1009_v16 = vld [vmem:[%s1463_s1 + $0xb0] ss:$8 sps:$4 sm:$0xff]   ;;  %v1012_v18 = vld [vmem:[%s1463_s1 + $0xc4] ss:$8 sps:$4 sm:$0xff]  }
   0x7   :  { %v1014_v19 = vld [vmem:[%s1463_s1 + $0x40] ss:$8 sps:$4 sm:$0xff]   ;;  %v1016_v21 = vld [vmem:[%s1463_s1 + $0x54] ss:$8 sps:$4 sm:$0xff]   ;;  %v1020_v23 = vld [vmem:[%s1463_s1 + $0x50] ss:$8 sps:$4 sm:$0xff]  }
   0x8   :  { %168 = vmatpush1.bf16.msra.mxu0 %v996_v7  ;;  %414 = vmatpush1.bf16.msra.mxu1 %v997_v8  ;;  %v1015_v20 = vld [vmem:[%s1463_s1 + $0xc0] ss:$8 sps:$4 sm:$0xff]   ;;  %v1018_v22 = vld [vmem:[%s1463_s1 + $0xd4] ss:$8 sps:$4 sm:$0xff]   ;;  %v1021_v24 = vld [vmem:[%s1463_s1 + $0xd0] ss:$8 sps:$4 sm:$0xff]  }
   0x9   :  { %169 = vmatprep.subr.bf16.mxu0 %v998_v9  ;;  %415 = vmatprep.subr.bf16.mxu1 %v1000_v10  ;;  %v1022_v25 = vld [vmem:[%s1463_s1 + $0x64] ss:$8 sps:$4 sm:$0xff]   ;;  %v1026_v27 = vld [vmem:[%s1463_s1 + $0x60] ss:$8 sps:$4 sm:$0xff]   ;;  %v1028_v29 = vld [vmem:[%s1463_s1 + $0x74] ss:$8 sps:$4 sm:$0xff]  }
   0xa   :  { %v1024_v26 = vld [vmem:[%s1463_s1 + $0xe4] ss:$8 sps:$4 sm:$0xff]   ;;  %v1027_v28 = vld [vmem:[%s1463_s1 + $0xe0] ss:$8 sps:$4 sm:$0xff]   ;;  %v1030_v30 = vld [vmem:[%s1463_s1 + $0xf4] ss:$8 sps:$4 sm:$0xff]  }
   0xb   :  { %v1032_v31 = vld [vmem:[%s1463_s1 + $0x70] ss:$8 sps:$4 sm:$0xff]   ;;  %v1037_v33 = vld [vmem:[%s1463_s1 + $0x104] ss:$8 sps:$4 sm:$0xff]   ;;  %v1035_v35 = vld [vmem:[%s1463_s1 + $0x100] ss:$8 sps:$4 sm:$0xff]  }
   0xc   :  { %170 = vmatpush1.bf16.msra.mxu0 %v1002_v11  ;;  %416 = vmatpush1.bf16.msra.mxu1 %v1003_v12  ;;  %v1033_v32 = vld [vmem:[%s1463_s1 + $0xf0] ss:$8 sps:$4 sm:$0xff]   ;;  %v1201_v34 = vld [vmem:[%s1464_s0] sm:$0xff]   ;;  %v1040_v36 = vld [vmem:[%s1463_s1 + $0x114] ss:$8 sps:$4 sm:$0xff]  }
   0xd   :  { %171 = vmatprep.subr.bf16.mxu0 %v1004_v13  ;;  %417 = vmatprep.subr.bf16.mxu1 %v1006_v14  ;;  %v1038_v37 = vld [vmem:[%s1463_s1 + $0x110] ss:$8 sps:$4 sm:$0xff]   ;;  %v1044_v38 = vld [vmem:[%s1463_s1 + $0x124] ss:$8 sps:$4 sm:$0xff]   ;;  %v1042_v42 = vld [vmem:[%s1463_s1 + $0x120] ss:$8 sps:$4 sm:$0xff]  }
   0xe   :  { %v250_v39 = vld [vmem:[%s1465_s3] sm:$0xff]  ;;  %v252_v40 = vld [vmem:[%s1465_s3 + $0x10] sm:$0xff]  ;;  %v1228_v41 = vld [vmem:[%s1464_s0 + $0x8] sm:$0xff]  }
   0xf   :  { %260 = vperm.xlu0 %984, %v250_v39   ;;  %270 = vperm.xlu1 %985, %v252_v40   ;;  %v1048_v43 = vld [vmem:[%s1463_s1 + $0x134] ss:$8 sps:$4 sm:$0xff]   ;;  %v1046_v44 = vld [vmem:[%s1463_s1 + $0x130] ss:$8 sps:$4 sm:$0xff]   ;;  %v251_v45 = vld [vmem:[%s1465_s3 + $0x8] sm:$0xff] }
  0x10   :  { %172 = vmatpush1.bf16.msra.mxu0 %v1008_v15  ;;  %418 = vmatpush1.bf16.msra.mxu1 %v1009_v16  ;;  %v253_v46 = vld [vmem:[%s1465_s3 + $0x18] sm:$0xff]  ;;  %v1052_v47 = vld [vmem:[%s1463_s1 + $0x144] ss:$8 sps:$4 sm:$0xff]   ;;  %v1255_v48 = vld [vmem:[%s1464_s0 + $0x10] sm:$0xff]  }
  0x11   :  { %173 = vmatprep.subr.bf16.mxu0 %v1010_v17  ;;  %419 = vmatprep.subr.bf16.mxu1 %v1012_v18  ;;  %v1050_v49 = vld [vmem:[%s1463_s1 + $0x140] ss:$8 sps:$4 sm:$0xff]   ;;  %v1055_v50 = vld [vmem:[%s1463_s1 + $0x154] ss:$8 sps:$4 sm:$0xff]   ;;  %v1053_v53 = vld [vmem:[%s1463_s1 + $0x150] ss:$8 sps:$4 sm:$0xff]  }
  0x12   :  { %v254_v51 = vld [vmem:[%s1465_s3 + $0x20] sm:$0xff]  ;;  %v255_v52 = vld [vmem:[%s1465_s3 + $0x28] sm:$0xff]  ;;  %v1049_v55 = vld [vmem:[%s1464_s0 + $0x18] sm:$0xff]  }
  0x13   :  { %265 = vperm.xlu0 %984, %v251_v45   ;;  %275 = vperm.xlu1 %985, %v253_v46   ;;  %v1059_v54 = vld [vmem:[%s1463_s1 + $0x164] ss:$8 sps:$4 sm:$0xff]   ;;  %v1057_v56 = vld [vmem:[%s1463_s1 + $0x160] ss:$8 sps:$4 sm:$0xff]   ;;  %v1063_v57 = vld [vmem:[%s1463_s1 + $0x174] ss:$8 sps:$4 sm:$0xff]  }
  0x14   :  { %174 = vmatpush1.bf16.msra.mxu0 %v1014_v19  ;;  %420 = vmatpush1.bf16.msra.mxu1 %v1015_v20  ;;  %v257_v58 = vld [vmem:[%s1465_s3 + $0x38] sm:$0xff]  ;;  %v256_v59 = vld [vmem:[%s1465_s3 + $0x30] sm:$0xff]  ;;  %v1056_v61 = vld [vmem:[%s1464_s0 + $0x20] sm:$0xff]  }
  0x15   :  { %175 = vmatprep.subr.bf16.mxu0 %v1016_v21  ;;  %421 = vmatprep.subr.bf16.mxu1 %v1018_v22  ;;  %v1061_v60 = vld [vmem:[%s1463_s1 + $0x170] ss:$8 sps:$4 sm:$0xff]   ;;  %v695_v62 = vld [vmem:[%s1466_s4 + $0x8] sm:$0xff]  ;;  %v694_v63 = vld [vmem:[%s1466_s4] sm:$0xff] }
  0x16   :  { %v697_v0 = vld [vmem:[%s1466_s4 + $0x18] sm:$0xff]  ;;  %v696_v2 = vld [vmem:[%s1466_s4 + $0x10] sm:$0xff]  ;;  %v1060_v3 = vld [vmem:[%s1464_s0 + $0x28] sm:$0xff]  }
  0x17   :  { %280 = vperm.xlu0 %984, %v254_v51   ;;  %285 = vperm.xlu1 %985, %v255_v52   ;;  %v699_v4 = vld [vmem:[%s1466_s4 + $0x28] sm:$0xff]  ;;  %v698_v5 = vld [vmem:[%s1466_s4 + $0x20] sm:$0xff]  ;;  %v701_v6 = vld [vmem:[%s1466_s4 + $0x38] sm:$0xff] }
  0x18   :  { %176 = vmatpush1.bf16.msra.mxu0 %v1020_v23  ;;  %422 = vmatpush1.bf16.msra.mxu1 %v1021_v24  ;;  %v700_v7 = vld [vmem:[%s1466_s4 + $0x30] sm:$0xff]  ;;  %vm1389_vm2 = vmor %vm851_vm1, %vm850_vm0 }
  0x19   :  { %177 = vmatprep.subr.bf16.mxu0 %v1022_v25  ;;  %423 = vmatprep.subr.bf16.mxu1 %v1024_v26 }
  0x1b   :  { %295 = vperm.xlu1 %985, %v257_v58   ;;  %290 = vperm.xlu0 %984, %v256_v59  }
  0x1c   :  { %178 = vmatpush1.bf16.msra.mxu0 %v1026_v27  ;;  %424 = vmatpush1.bf16.msra.mxu1 %v1027_v28 }
  0x1d   :  { %179 = vmatprep.subr.bf16.mxu0 %v1028_v29  ;;  %425 = vmatprep.subr.bf16.mxu1 %v1030_v30 }
  0x1f   :  { %709 = vperm.xlu1 %985, %v695_v62   ;;  %704 = vperm.xlu0 %984, %v694_v63  }
  0x20   :  { %180 = vmatpush1.bf16.msra.mxu0 %v1032_v31  ;;  %426 = vmatpush1.bf16.msra.mxu1 %v1033_v32 }
  0x21   :  { %609 = vmatprep.subr.bf16.mxu0 %v1037_v33  ;;  %967 = vmatprep.subr.bf16.mxu1 %v1037_v33 }
  0x23   :  { %198 = vmatmul.mubr.bf16.vlgmr.msra.gmra.mrb[0].mxu0 %v1201_v34  ;;  %444 = vmatmul.mubr.bf16.vlgmr.msra.gmra.mrb[0].mxu1 %v1201_v34 }
  0x24   :  { %610 = vmatpush1.bf16.msra.mxu0 %v1035_v35  ;;  %975 = vmatpush1.bf16.msra.mxu1 %v1035_v35 }
  0x25   :  { %611 = vmatprep.subr.bf16.mxu0 %v1040_v36  ;;  %968 = vmatprep.subr.bf16.mxu1 %v1040_v36 }
  0x26   :  { %207 = vmatprep.mubr.bf16.mxu0 %v1064_v1  ;;  %449 = vmatprep.mubr.bf16.mxu1 %v1064_v1 }
  0x27   :  { %719 = vperm.xlu1 %985, %v697_v0   ;;  %714 = vperm.xlu0 %984, %v696_v2  }
  0x28   :  { %612 = vmatpush1.bf16.msra.mxu0 %v1038_v37  ;;  %976 = vmatpush1.bf16.msra.mxu1 %v1038_v37 }
  0x29   :  { %613 = vmatprep.subr.bf16.mxu0 %v1044_v38  ;;  %969 = vmatprep.subr.bf16.mxu1 %v1044_v38 }
  0x2b   :  { %208 = vmatmul.mubr.bf16.gmra.mrb[4].mxu0 %v1228_v41  ;;  %450 = vmatmul.mubr.bf16.gmra.mrb[4].mxu1 %v1228_v41 }
  0x2c   :  { %614 = vmatpush1.bf16.msra.mxu0 %v1042_v42  ;;  %977 = vmatpush1.bf16.msra.mxu1 %v1042_v42 }
  0x2d   :  { %217 = vmatprep.mubr.bf16.mxu0 %v1064_v1  ;;  %459 = vmatprep.mubr.bf16.mxu1 %v1064_v1 }
  0x2e   :  { %615 = vmatprep.subr.bf16.mxu0 %v1048_v43  ;;  %970 = vmatprep.subr.bf16.mxu1 %v1048_v43 }
  0x2f   :  { %729 = vperm.xlu1 %985, %v699_v4   ;;  %724 = vperm.xlu0 %984, %v698_v5  }
  0x30   :  { %616 = vmatpush1.bf16.msra.mxu0 %v1046_v44  ;;  %978 = vmatpush1.bf16.msra.mxu1 %v1046_v44 }
  0x31   :  { %617 = vmatprep.subr.bf16.mxu0 %v1052_v47  ;;  %971 = vmatprep.subr.bf16.mxu1 %v1052_v47 }
  0x33   :  { %218 = vmatmul.mubr.bf16.gmra.mrb[8].mxu0 %v1255_v48  ;;  %460 = vmatmul.mubr.bf16.gmra.mrb[8].mxu1 %v1255_v48 }
  0x34   :  { %227 = vmatprep.mubr.bf16.mxu0 %v1064_v1  ;;  %469 = vmatprep.mubr.bf16.mxu1 %v1064_v1 }
  0x35   :  { %618 = vmatpush1.bf16.msra.mxu0 %v1050_v49  ;;  %979 = vmatpush1.bf16.msra.mxu1 %v1050_v49 }
  0x36   :  { %619 = vmatprep.subr.bf16.mxu0 %v1055_v50  ;;  %972 = vmatprep.subr.bf16.mxu1 %v1055_v50 }
  0x37   :  { %739 = vperm.xlu1 %985, %v701_v6   ;;  %734 = vperm.xlu0 %984, %v700_v7  }
  0x39   :  { %620 = vmatpush1.bf16.msra.mxu0 %v1053_v53  ;;  %980 = vmatpush1.bf16.msra.mxu1 %v1053_v53 }
  0x3a   :  { %621 = vmatprep.subr.bf16.mxu0 %v1059_v54  ;;  %973 = vmatprep.subr.bf16.mxu1 %v1059_v54 }
  0x3b   :  { %228 = vmatmul.mubr.bf16.gmra.mrb[12].mxu0 %v1049_v55  ;;  %470 = vmatmul.mubr.bf16.gmra.mrb[12].mxu1 %v1049_v55 }
  0x3c   :  { %237 = vmatprep.mubr.bf16.mxu0 %v1064_v1  ;;  %479 = vmatprep.mubr.bf16.mxu1 %v1064_v1 }
  0x3d   :  { %622 = vmatpush1.bf16.msra.mxu0 %v1057_v56  ;;  %981 = vmatpush1.bf16.msra.mxu1 %v1057_v56 }
  0x3e   :  { %623 = vmatprep.subr.bf16.mxu0 %v1063_v57  ;;  %974 = vmatprep.subr.bf16.mxu1 %v1063_v57 }
  0x41   :  { %624 = vmatpush1.bf16.msra.mxu0 %v1061_v60  ;;  %982 = vmatpush1.bf16.msra.mxu1 %v1061_v60 }
  0x43   :  { %238 = vmatmul.mubr.bf16.gmra.mrb[16].mxu0 %v1056_v61  ;;  %480 = vmatmul.mubr.bf16.gmra.mrb[16].mxu1 %v1056_v61 }
  0x44   :  { %243 = vmatprep.mubr.bf16.mxu0 %v1064_v1  ;;  %489 = vmatprep.mubr.bf16.mxu1 %v1064_v1 }
  0x4b   :  { %244 = vmatmul.mubr.bf16.gmra.mrb[20].mxu0 %v1060_v3  ;;  %490 = vmatmul.mubr.bf16.gmra.mrb[20].mxu1 %v1060_v3 }
  0x4c   :  { %641 = vmatprep.mubr.bf16.mxu0 %v1064_v1  ;;  %663 = vmatprep.mubr.bf16.mxu1 %v1064_v1 }
  0x53   :  { %642 = vmatmul.mubr.bf16.vlgmr.msra.gmra.mrb[24].mxu0 %v1201_v34  ;;  %664 = vmatmul.mubr.bf16.vlgmr.msra.gmra.mrb[24].mxu1 %v1049_v55 }
  0x54   :  { %647 = vmatprep.mubr.bf16.mxu0 %v1064_v1  ;;  %673 = vmatprep.mubr.bf16.mxu1 %v1064_v1 }
  0x5b   :  { %648 = vmatmul.mubr.bf16.gmra.mrb[28].mxu0 %v1228_v41  ;;  %674 = vmatmul.mubr.bf16.gmra.mrb[28].mxu1 %v1056_v61 }
  0x5c   :  { %653 = vmatprep.mubr.bf16.mxu0 %v1064_v1  ;;  %683 = vmatprep.mubr.bf16.mxu1 %v1064_v1 }
  0x63   :  { %654 = vmatmul.mubr.bf16.gmra.mrb[32].mxu0 %v1255_v48  ;;  %684 = vmatmul.mubr.bf16.gmra.mrb[32].mxu1 %v1060_v3 }
  0x8e   :  { %v261_v8 = vpop.permute.xlu0 %260  ;;  %v271_v19 = vpop.permute.xlu1 %270 }
  0x92   :  { %v266_v17 = vpop.permute.xlu0 %265  ;;  %v276_v34 = vpop.permute.xlu1 %275 }
  0x96   :  { %v281_v50 = vpop.permute.xlu0 %280  ;;  %v286_v52 = vpop.permute.xlu1 %285 }
  0x9a   :  { %v291_v5 = vpop.permute.xlu0 %290  ;;  %v296_v7 = vpop.permute.xlu1 %295 }
  0xf6   :  { %v199_v9 = vpop.f32.mrb[0].mxu0  ;;  %v445_v10 = vpop.f32.mrb[0].mxu1 }
  0xf7   :  { %v201_v11 = vpop.f32.mrb[1].mxu0  ;;  %v446_v12 = vpop.f32.mrb[1].mxu1  ;;  %v298_v18 = vmul.f32 %v261_v8, %v199_v9 }
  0xf8   :  { %v203_v13 = vpop.f32.mrb[2].mxu0  ;;  %v447_v14 = vpop.f32.mrb[2].mxu1  ;;  %v299_v20 = vmul.f32 %v261_v8, %v201_v11 }
  0xf9   :  { %v205_v15 = vpop.f32.mrb[3].mxu0  ;;  %v448_v16 = vpop.f32.mrb[3].mxu1  ;;  %v300_v23 = vmul.f32 %v266_v17, %v203_v13 }
  0xfa   :  { %v301_v26 = vmul.f32 %v266_v17, %v205_v15 }
  0xfe   :  { %v209_v21 = vpop.f32.mrb[4].mxu0  ;;  %v451_v22 = vpop.f32.mrb[4].mxu1 }
  0xff   :  { %v1340_v1 = vadd.f32 %v451_v22, %v298_v18  ;;  %v211_v24 = vpop.f32.mrb[5].mxu0  ;;  %v453_v25 = vpop.f32.mrb[5].mxu1  ;;  %v302_v35 = vmul.f32 %v271_v19, %v209_v21 }
 0x100   :  { %v1342_v27 = vadd.f32 %v453_v25, %v299_v20  ;;  %v213_v28 = vpop.f32.mrb[6].mxu0  ;;  %v455_v29 = vpop.f32.mrb[6].mxu1  ;;  %v303_v36 = vmul.f32 %v271_v19, %v211_v24  ;;  %v776_v24 = vlaneseq }
 0x101   :  { %v1344_v30 = vadd.f32 %v455_v29, %v300_v23  ;;  %v215_v31 = vpop.f32.mrb[7].mxu0  ;;  %v457_v32 = vpop.f32.mrb[7].mxu1  ;;  %v304_v39 = vmul.f32 %v276_v34, %v213_v28 }
 0x102   :  { %v1346_v33 = vadd.f32 %v457_v32, %v301_v26  ;;  %v305_v43 = vmul.f32 %v276_v34, %v215_v31  ;;  %v1372_v25 = vpop.permute.xlu1 %709  ;;  %v1374_v26 = vpop.permute.xlu0 %704  ;;  %v777_v34 = vshrl.u32 %v776_v24, 7 }
 0x106   :  { %v219_v37 = vpop.f32.mrb[8].mxu0  ;;  %v461_v38 = vpop.f32.mrb[8].mxu1 }
 0x107   :  { %v1348_v40 = vadd.f32 %v461_v38, %v302_v35  ;;  %v221_v41 = vpop.f32.mrb[9].mxu0  ;;  %v463_v42 = vpop.f32.mrb[9].mxu1  ;;  %v306_v53 = vmul.f32 %v281_v50, %v219_v37 }
 0x108   :  { %v1350_v44 = vadd.f32 %v463_v42, %v303_v36  ;;  %v223_v45 = vpop.f32.mrb[10].mxu0  ;;  %v465_v46 = vpop.f32.mrb[10].mxu1  ;;  %v307_v54 = vmul.f32 %v281_v50, %v221_v41  ;;  %v774_v41 = vld [vmem:[%s1467_s2] sm:$0x3]  ;;  %v782_v42 = vsub.s32 1, %v777_v34 }
 0x109   :  { %v1352_v47 = vadd.f32 %v465_v46, %v304_v39  ;;  %v225_v48 = vpop.f32.mrb[11].mxu0  ;;  %v467_v49 = vpop.f32.mrb[11].mxu1  ;;  %v308_v57 = vmul.f32 %v286_v52, %v223_v45  ;;  %v778_v39 = vsub.s32 0, %v777_v34 }
 0x10a   :  { %v1354_v51 = vadd.f32 %v467_v49, %v305_v43  ;;  %v309_v61 = vmul.f32 %v286_v52, %v225_v48  ;;  %v720_v43 = vpop.permute.xlu1 %719  ;;  %v715_v45 = vpop.permute.xlu0 %714 }
 0x10b   :  { %v1379_v50 = vrot.slane %v774_v41, %v778_v39 }
 0x10e   :  { %v229_v55 = vpop.f32.mrb[12].mxu0  ;;  %v471_v56 = vpop.f32.mrb[12].mxu1 }
 0x10f   :  { %v1356_v58 = vadd.f32 %v471_v56, %v306_v53  ;;  %v231_v59 = vpop.f32.mrb[13].mxu0  ;;  %v473_v60 = vpop.f32.mrb[13].mxu1  ;;  %v310_v8 = vmul.f32 %v291_v5, %v229_v55  ;;  %v1381_v55 = vrot.slane %v774_v41, %v782_v42 }
 0x110   :  { %v1358_v62 = vadd.f32 %v473_v60, %v307_v54  ;;  %v233_v63 = vpop.f32.mrb[14].mxu0  ;;  %v475_v0 = vpop.f32.mrb[14].mxu1  ;;  %v311_v9 = vmul.f32 %v291_v5, %v231_v59 }
 0x111   :  { %v1360_v2 = vadd.f32 %v475_v0, %v308_v57  ;;  %v235_v3 = vpop.f32.mrb[15].mxu0  ;;  %v477_v4 = vpop.f32.mrb[15].mxu1  ;;  %v312_v12 = vmul.f32 %v296_v7, %v233_v63 }
 0x112   :  { %v1362_v6 = vadd.f32 %v477_v4, %v309_v61  ;;  %v313_v16 = vmul.f32 %v296_v7, %v235_v3 }
 0x116   :  { %v239_v10 = vpop.f32.mrb[16].mxu0  ;;  %v481_v11 = vpop.f32.mrb[16].mxu1 }
 0x117   :  { %v1364_v13 = vadd.f32 %v481_v11, %v310_v8  ;;  %v240_v14 = vpop.f32.mrb[17].mxu0  ;;  %v483_v15 = vpop.f32.mrb[17].mxu1 }
 0x118   :  { %v1366_v17 = vadd.f32 %v483_v15, %v311_v9  ;;  %v241_v18 = vpop.f32.mrb[18].mxu0  ;;  %v485_v19 = vpop.f32.mrb[18].mxu1 }
 0x119   :  { %v1368_v20 = vadd.f32 %v485_v19, %v312_v12  ;;  %v242_v21 = vpop.f32.mrb[19].mxu0  ;;  %v487_v22 = vpop.f32.mrb[19].mxu1 }
 0x11a   :  { %v1370_v23 = vadd.f32 %v487_v22, %v313_v16  ;;  %v730_v9 = vpop.permute.xlu1 %729  ;;  %v725_v10 = vpop.permute.xlu0 %724 }
 0x11e   :  { %v245_v28 = vpop.f32.mrb[20].mxu0  ;;  %v491_v29 = vpop.f32.mrb[20].mxu1 }
 0x11f   :  { %v246_v31 = vpop.f32.mrb[21].mxu0  ;;  %v492_v32 = vpop.f32.mrb[21].mxu1 }
 0x120   :  { %v247_v35 = vpop.f32.mrb[22].mxu0  ;;  %v493_v36 = vpop.f32.mrb[22].mxu1 }
 0x121   :  { %v248_v37 = vpop.f32.mrb[23].mxu0  ;;  %v494_v38 = vpop.f32.mrb[23].mxu1 }
 0x122   :  { %v740_v38 = vpop.permute.xlu1 %739  ;;  %v735_v39 = vpop.permute.xlu0 %734 }
 0x126   :  { %v643_v46 = vpop.f32.mrb[24].mxu0  ;;  %v665_v48 = vpop.f32.mrb[24].mxu1 }
 0x127   :  { %v746_v49 = vmul.f32 %v715_v45, %v665_v48  ;;  %v644_v52 = vpop.f32.mrb[25].mxu0  ;;  %v667_v53 = vpop.f32.mrb[25].mxu1 }
 0x128   :  { %v747_v54 = vmul.f32 %v715_v45, %v667_v53  ;;  %v645_v56 = vpop.f32.mrb[26].mxu0  ;;  %v669_v57 = vpop.f32.mrb[26].mxu1 }
 0x129   :  { %v762_v59 = vadd.f32 %v746_v49, %v1348_v40  ;;  %v748_v60 = vmul.f32 %v720_v43, %v669_v57  ;;  %v646_v61 = vpop.f32.mrb[27].mxu0  ;;  %v671_v63 = vpop.f32.mrb[27].mxu1 }
 0x12a   :  { %v763_v0 = vadd.f32 %v747_v54, %v1350_v44  ;;  %v749_v3 = vmul.f32 %v720_v43, %v671_v63 }
 0x12b   :  { %v790_v4 = vadd.f32 %v1379_v50, %v762_v59  ;;  %v764_v5 = vadd.f32 %v748_v60, %v1352_v47 }
 0x12c   :  { %v791_v7 = vadd.f32 %v1381_v55, %v763_v0  ;;  %v765_v8 = vadd.f32 %v749_v3, %v1354_v51 }
 0x12d   :  { %v792_v11 = vadd.f32 %v1379_v50, %v764_v5 }
 0x12e   :  { %v961_v44 = vpack.c.bf16 %v791_v7, %v790_v4  ;;  %v793_v12 = vadd.f32 %v1381_v55, %v765_v8  ;;  %v649_v14 = vpop.f32.mrb[28].mxu0  ;;  %v675_v15 = vpop.f32.mrb[28].mxu1 }
 0x12f   :  { %v750_v16 = vmul.f32 %v725_v10, %v675_v15  ;;  %v650_v18 = vpop.f32.mrb[29].mxu0  ;;  %v677_v47 = vpop.f32.mrb[29].mxu1 }
 0x130   :  { %855 = vst.msk [vmem:[%s1468_s5 + $0x10] sm:$0xff] %vm1389_vm2, %v961_v44  ;;  %v962_v51 = vpack.c.bf16 %v793_v12, %v792_v11  ;;  %v751_v19 = vmul.f32 %v725_v10, %v677_v47  ;;  %v651_v21 = vpop.f32.mrb[30].mxu0  ;;  %v679_v22 = vpop.f32.mrb[30].mxu1 }
 0x131   :  { %v766_v24 = vadd.f32 %v750_v16, %v1356_v58  ;;  %v752_v28 = vmul.f32 %v730_v9, %v679_v22  ;;  %v652_v29 = vpop.f32.mrb[31].mxu0  ;;  %v681_v31 = vpop.f32.mrb[31].mxu1 }
 0x132   :  { %856 = vst.msk [vmem:[%s1468_s5 + $0x18] sm:$0xff] %vm1389_vm2, %v962_v51  ;;  %v767_v32 = vadd.f32 %v751_v19, %v1358_v62  ;;  %v753_v34 = vmul.f32 %v730_v9, %v681_v31 }
 0x133   :  { %v794_v35 = vadd.f32 %v1379_v50, %v766_v24  ;;  %v768_v36 = vadd.f32 %v752_v28, %v1360_v2 }
 0x134   :  { %v795_v37 = vadd.f32 %v1381_v55, %v767_v32  ;;  %v769_v58 = vadd.f32 %v753_v34, %v1362_v6 }
 0x135   :  { %v796_v41 = vadd.f32 %v1379_v50, %v768_v36 }
 0x136   :  { %v963_v42 = vpack.c.bf16 %v795_v37, %v794_v35  ;;  %v797_v43 = vadd.f32 %v1381_v55, %v769_v58  ;;  %v655_v45 = vpop.f32.mrb[32].mxu0  ;;  %v685_v46 = vpop.f32.mrb[32].mxu1 }
 0x137   :  { %v742_v62 = vmul.f32 %v1374_v26, %v655_v45  ;;  %v754_v48 = vmul.f32 %v735_v39, %v685_v46  ;;  %v657_v49 = vpop.f32.mrb[33].mxu0  ;;  %v687_v52 = vpop.f32.mrb[33].mxu1 }
 0x138   :  { %857 = vst.msk [vmem:[%s1468_s5 + $0x20] sm:$0xff] %vm1389_vm2, %v963_v42  ;;  %v964_v2 = vpack.c.bf16 %v797_v43, %v796_v41  ;;  %v743_v6 = vmul.f32 %v1374_v26, %v657_v49  ;;  %v755_v53 = vmul.f32 %v735_v39, %v687_v52  ;;  %v659_v54 = vpop.f32.mrb[34].mxu0  ;;  %v689_v56 = vpop.f32.mrb[34].mxu1 }
 0x139   :  { %v758_v57 = vadd.f32 %v742_v62, %v1340_v1  ;;  %v770_v59 = vadd.f32 %v754_v48, %v1364_v13  ;;  %v744_v60 = vmul.f32 %v1372_v25, %v659_v54  ;;  %v756_v61 = vmul.f32 %v740_v38, %v689_v56  ;;  %v661_v63 = vpop.f32.mrb[35].mxu0  ;;  %v691_v0 = vpop.f32.mrb[35].mxu1 }
 0x13a   :  { %858 = vst.msk [vmem:[%s1468_s5 + $0x28] sm:$0xff] %vm1389_vm2, %v964_v2  ;;  %v759_v26 = vadd.f32 %v743_v6, %v1342_v27  ;;  %v771_v3 = vadd.f32 %v755_v53, %v1366_v17  ;;  %v745_v4 = vmul.f32 %v1372_v25, %v661_v63  ;;  %v757_v1 = vmul.f32 %v740_v38, %v691_v0 }
 0x13b   :  { %v786_v13 = vadd.f32 %v1379_v50, %v758_v57  ;;  %v798_v5 = vadd.f32 %v1379_v50, %v770_v59  ;;  %v760_v7 = vadd.f32 %v744_v60, %v1344_v30  ;;  %v772_v8 = vadd.f32 %v756_v61, %v1368_v20 }
 0x13c   :  { %v787_v9 = vadd.f32 %v1381_v55, %v759_v26  ;;  %v799_v10 = vadd.f32 %v1381_v55, %v771_v3  ;;  %v761_v11 = vadd.f32 %v745_v4, %v1346_v33  ;;  %v773_v27 = vadd.f32 %v757_v1, %v1370_v23 }
 0x13d   :  { %v788_v17 = vadd.f32 %v1379_v50, %v760_v7  ;;  %v800_v25 = vadd.f32 %v1379_v50, %v772_v8 }
 0x13e   :  { %v959_v44 = vpack.c.bf16 %v787_v9, %v786_v13  ;;  %v965_v12 = vpack.c.bf16 %v799_v10, %v798_v5  ;;  %v789_v14 = vadd.f32 %v1381_v55, %v761_v11  ;;  %v801_v30 = vadd.f32 %v1381_v55, %v773_v27 }
 0x140   :  { %853 = vst.msk [vmem:[%s1468_s5] sm:$0xff] %vm1389_vm2, %v959_v44  ;;  %859 = vst.msk [vmem:[%s1468_s5 + $0x30] sm:$0xff] %vm1389_vm2, %v965_v12  ;;  %v960_v33 = vpack.c.bf16 %v789_v14, %v788_v17  ;;  %v966_v20 = vpack.c.bf16 %v801_v30, %v800_v25 }
 0x142   :  { %854 = vst.msk [vmem:[%s1468_s5 + $0x8] sm:$0xff] %vm1389_vm2, %v960_v33  ;;  %860 = vst.msk [vmem:[%s1468_s5 + $0x38] sm:$0xff] %vm1389_vm2, %v966_v20 }

// kernel: inception_c.7
= control target key start
LH: loop header
LB: loop body
LE: loop exit
PB: predicated region body
PF: predicated region fallthrough
CT: control target
= control target key end

     0   :  { %v1390_v1 = vmov 0   ;;  %vm216_vm0 = vcmask 523264   ;;  %vm619_vm1 = vcmask 1043456   ;;  %vm1066_vm2 = vcmask 785412   ;;  %s1904_s1 = inlined_call_operand.vmem [shape: bf16[3,192,224], index: 1, kind: input, shape index: {}]   ;;  %s1905_s0 = inlined_call_operand.vmem [shape: bf16[1,72,192], index: 0, kind: input, shape index: {}]   ;;  %s1906_s3 = inlined_call_operand.vmem [shape: f32[64,1], index: 3, kind: input, shape index: {}]   ;;  %s1907_s4 = inlined_call_operand.vmem [shape: f32[64,1], index: 4, kind: input, shape index: {}]   ;;  %s1908_s2 = inlined_call_operand.vmem [shape: f32[1,224], index: 2, kind: input, shape index: {}]   ;;  %s1909_s5 = inlined_call_operand.vmem [shape: bf16[1,64,224], index: 5, kind: output, shape index: {}]  }
   0x1   :  { %v1268_v0 = vld [vmem:[%s1904_s1 + $0x4] ss:$8 sps:$4 sm:$0xff]   ;;  %1266 = vset.pattern.permute.xlu0 %v1390_v1  ;;  %1267 = vset.pattern.permute.xlu1 %v1390_v1  ;;  %v1272_v3 = vld [vmem:[%s1904_s1] ss:$8 sps:$4 sm:$0xff]   ;;  %v1274_v5 = vld [vmem:[%s1904_s1 + $0x14] ss:$8 sps:$4 sm:$0xff]  }
   0x2   :  { %v1270_v2 = vld [vmem:[%s1904_s1 + $0xc4] ss:$8 sps:$4 sm:$0xff]   ;;  %232 = vmatprep.subr.bf16.mxu0 %v1268_v0  ;;  %v1273_v4 = vld [vmem:[%s1904_s1 + $0xc0] ss:$8 sps:$4 sm:$0xff]   ;;  %v1276_v6 = vld [vmem:[%s1904_s1 + $0xd4] ss:$8 sps:$4 sm:$0xff]  }
   0x3   :  { %520 = vmatprep.subr.bf16.mxu1 %v1270_v2  ;;  %233 = vmatpush1.bf16.msra.mxu0 %v1272_v3  ;;  %v1278_v7 = vld [vmem:[%s1904_s1 + $0x10] ss:$8 sps:$4 sm:$0xff]   ;;  %v1280_v9 = vld [vmem:[%s1904_s1 + $0x24] ss:$8 sps:$4 sm:$0xff]   ;;  %v1284_v11 = vld [vmem:[%s1904_s1 + $0x20] ss:$8 sps:$4 sm:$0xff]  }
   0x4   :  { %521 = vmatpush1.bf16.msra.mxu1 %v1273_v4  ;;  %234 = vmatprep.subr.bf16.mxu0 %v1274_v5  ;;  %v1279_v8 = vld [vmem:[%s1904_s1 + $0xd0] ss:$8 sps:$4 sm:$0xff]   ;;  %v1282_v10 = vld [vmem:[%s1904_s1 + $0xe4] ss:$8 sps:$4 sm:$0xff]   ;;  %v1285_v12 = vld [vmem:[%s1904_s1 + $0xe0] ss:$8 sps:$4 sm:$0xff]  }
   0x5   :  { %522 = vmatprep.subr.bf16.mxu1 %v1276_v6  ;;  %v1286_v13 = vld [vmem:[%s1904_s1 + $0x34] ss:$8 sps:$4 sm:$0xff]   ;;  %v1290_v15 = vld [vmem:[%s1904_s1 + $0x30] ss:$8 sps:$4 sm:$0xff]   ;;  %v1292_v17 = vld [vmem:[%s1904_s1 + $0x44] ss:$8 sps:$4 sm:$0xff]  }
   0x6   :  { %v1288_v14 = vld [vmem:[%s1904_s1 + $0xf4] ss:$8 sps:$4 sm:$0xff]   ;;  %v1291_v16 = vld [vmem:[%s1904_s1 + $0xf0] ss:$8 sps:$4 sm:$0xff]   ;;  %v1294_v18 = vld [vmem:[%s1904_s1 + $0x104] ss:$8 sps:$4 sm:$0xff]  }
   0x7   :  { %235 = vmatpush1.bf16.msra.mxu0 %v1278_v7  ;;  %v1296_v19 = vld [vmem:[%s1904_s1 + $0x40] ss:$8 sps:$4 sm:$0xff]   ;;  %v1298_v21 = vld [vmem:[%s1904_s1 + $0x54] ss:$8 sps:$4 sm:$0xff]   ;;  %v1302_v23 = vld [vmem:[%s1904_s1 + $0x50] ss:$8 sps:$4 sm:$0xff]  }
   0x8   :  { %523 = vmatpush1.bf16.msra.mxu1 %v1279_v8  ;;  %236 = vmatprep.subr.bf16.mxu0 %v1280_v9  ;;  %v1297_v20 = vld [vmem:[%s1904_s1 + $0x100] ss:$8 sps:$4 sm:$0xff]   ;;  %v1300_v22 = vld [vmem:[%s1904_s1 + $0x114] ss:$8 sps:$4 sm:$0xff]   ;;  %v1303_v24 = vld [vmem:[%s1904_s1 + $0x110] ss:$8 sps:$4 sm:$0xff]  }
   0x9   :  { %524 = vmatprep.subr.bf16.mxu1 %v1282_v10  ;;  %v1304_v25 = vld [vmem:[%s1904_s1 + $0x64] ss:$8 sps:$4 sm:$0xff]   ;;  %v1308_v27 = vld [vmem:[%s1904_s1 + $0x60] ss:$8 sps:$4 sm:$0xff]   ;;  %v1310_v29 = vld [vmem:[%s1904_s1 + $0x74] ss:$8 sps:$4 sm:$0xff]  }
   0xa   :  { %v1306_v26 = vld [vmem:[%s1904_s1 + $0x124] ss:$8 sps:$4 sm:$0xff]   ;;  %v1309_v28 = vld [vmem:[%s1904_s1 + $0x120] ss:$8 sps:$4 sm:$0xff]   ;;  %v1312_v30 = vld [vmem:[%s1904_s1 + $0x134] ss:$8 sps:$4 sm:$0xff]  }
   0xb   :  { %237 = vmatpush1.bf16.msra.mxu0 %v1284_v11  ;;  %v1314_v31 = vld [vmem:[%s1904_s1 + $0x70] ss:$8 sps:$4 sm:$0xff]   ;;  %v1316_v33 = vld [vmem:[%s1904_s1 + $0x84] ss:$8 sps:$4 sm:$0xff]   ;;  %v1320_v35 = vld [vmem:[%s1904_s1 + $0x80] ss:$8 sps:$4 sm:$0xff]  }
   0xc   :  { %525 = vmatpush1.bf16.msra.mxu1 %v1285_v12  ;;  %238 = vmatprep.subr.bf16.mxu0 %v1286_v13  ;;  %v1315_v32 = vld [vmem:[%s1904_s1 + $0x130] ss:$8 sps:$4 sm:$0xff]   ;;  %v1318_v34 = vld [vmem:[%s1904_s1 + $0x144] ss:$8 sps:$4 sm:$0xff]   ;;  %v1321_v36 = vld [vmem:[%s1904_s1 + $0x140] ss:$8 sps:$4 sm:$0xff]  }
   0xd   :  { %526 = vmatprep.subr.bf16.mxu1 %v1288_v14  ;;  %v1322_v37 = vld [vmem:[%s1904_s1 + $0x94] ss:$8 sps:$4 sm:$0xff]   ;;  %v1535_v38 = vld [vmem:[%s1905_s0 + $0x4] ss:$8 sps:$4 sm:$0xff]   ;;  %v1326_v40 = vld [vmem:[%s1904_s1 + $0x90] ss:$8 sps:$4 sm:$0xff]  }
   0xe   :  { %v1324_v39 = vld [vmem:[%s1904_s1 + $0x154] ss:$8 sps:$4 sm:$0xff]   ;;  %1114 = vmatprep.mubr.msk.bf16.mxu0 %vm216_vm0, %v1535_v38  ;;  %1167 = vmatprep.mubr.msk.bf16.mxu1 %vm216_vm0, %v1535_v38  ;;  %v1327_v41 = vld [vmem:[%s1904_s1 + $0x150] ss:$8 sps:$4 sm:$0xff]   ;;  %v1328_v42 = vld [vmem:[%s1904_s1 + $0xa4] ss:$8 sps:$4 sm:$0xff]  }
   0xf   :  { %239 = vmatpush1.bf16.msra.mxu0 %v1290_v15  ;;  %v1330_v43 = vld [vmem:[%s1904_s1 + $0x164] ss:$8 sps:$4 sm:$0xff]   ;;  %v1332_v44 = vld [vmem:[%s1904_s1 + $0xa0] ss:$8 sps:$4 sm:$0xff]   ;;  %v1334_v46 = vld [vmem:[%s1904_s1 + $0xb4] ss:$8 sps:$4 sm:$0xff]  }
  0x10   :  { %527 = vmatpush1.bf16.msra.mxu1 %v1291_v16  ;;  %240 = vmatprep.subr.bf16.mxu0 %v1292_v17  ;;  %v1333_v45 = vld [vmem:[%s1904_s1 + $0x160] ss:$8 sps:$4 sm:$0xff]   ;;  %v1336_v47 = vld [vmem:[%s1904_s1 + $0x174] ss:$8 sps:$4 sm:$0xff]   ;;  %v1338_v48 = vld [vmem:[%s1904_s1 + $0xb0] ss:$8 sps:$4 sm:$0xff]  }
  0x11   :  { %528 = vmatprep.subr.bf16.mxu1 %v1294_v18  ;;  %v1339_v49 = vld [vmem:[%s1904_s1 + $0x170] ss:$8 sps:$4 sm:$0xff]   ;;  %v1345_v50 = vld [vmem:[%s1904_s1 + $0x184] ss:$8 sps:$4 sm:$0xff]   ;;  %v1580_v51 = vld [vmem:[%s1905_s0] ss:$8 sps:$4 sm:$0xff]  }
  0x12   :  { %v1343_v52 = vld [vmem:[%s1904_s1 + $0x180] ss:$8 sps:$4 sm:$0xff]   ;;  %v1348_v53 = vld [vmem:[%s1904_s1 + $0x194] ss:$8 sps:$4 sm:$0xff]   ;;  %v1346_v55 = vld [vmem:[%s1904_s1 + $0x190] ss:$8 sps:$4 sm:$0xff]  }
  0x13   :  { %241 = vmatpush1.bf16.msra.mxu0 %v1296_v19  ;;  %v1591_v54 = vld [vmem:[%s1905_s0 + $0x14] ss:$8 sps:$4 sm:$0xff]   ;;  %v1354_v56 = vld [vmem:[%s1904_s1 + $0x1a4] ss:$8 sps:$4 sm:$0xff]   ;;  %v1614_v59 = vld [vmem:[%s1905_s0 + $0x10] ss:$8 sps:$4 sm:$0xff]  }
  0x14   :  { %529 = vmatpush1.bf16.msra.mxu1 %v1297_v20  ;;  %242 = vmatprep.subr.bf16.mxu0 %v1298_v21  ;;  %v311_v57 = vld [vmem:[%s1906_s3] sm:$0xff]  ;;  %v313_v58 = vld [vmem:[%s1906_s3 + $0x10] sm:$0xff]  ;;  %v312_v0 = vld [vmem:[%s1906_s3 + $0x8] sm:$0xff] }
  0x15   :  { %530 = vmatprep.subr.bf16.mxu1 %v1300_v22  ;;  %321 = vperm.xlu0 %1266, %v311_v57   ;;  %v1352_v60 = vld [vmem:[%s1904_s1 + $0x1a0] ss:$8 sps:$4 sm:$0xff]   ;;  %v1357_v61 = vld [vmem:[%s1904_s1 + $0x1b4] ss:$8 sps:$4 sm:$0xff]   ;;  %v1625_v62 = vld [vmem:[%s1905_s0 + $0x24] ss:$8 sps:$4 sm:$0xff]  }
  0x16   :  { %331 = vperm.xlu1 %1267, %v313_v58   ;;  %v1355_v63 = vld [vmem:[%s1904_s1 + $0x1b0] ss:$8 sps:$4 sm:$0xff]   ;;  %v1363_v2 = vld [vmem:[%s1904_s1 + $0x1c4] ss:$8 sps:$4 sm:$0xff]   ;;  %v1648_v3 = vld [vmem:[%s1905_s0 + $0x20] ss:$8 sps:$4 sm:$0xff]  }
  0x17   :  { %243 = vmatpush1.bf16.msra.mxu0 %v1302_v23  ;;  %v314_v1 = vld [vmem:[%s1906_s3 + $0x18] sm:$0xff]  ;;  %v1361_v4 = vld [vmem:[%s1904_s1 + $0x1c0] ss:$8 sps:$4 sm:$0xff]   ;;  %v1372_v10 = vld [vmem:[%s1904_s1 + $0x1e4] ss:$8 sps:$4 sm:$0xff]  }
  0x18   :  { %531 = vmatpush1.bf16.msra.mxu1 %v1303_v24  ;;  %244 = vmatprep.subr.bf16.mxu0 %v1304_v25  ;;  %v1366_v5 = vld [vmem:[%s1904_s1 + $0x1d4] ss:$8 sps:$4 sm:$0xff]   ;;  %v1364_v7 = vld [vmem:[%s1904_s1 + $0x1d0] ss:$8 sps:$4 sm:$0xff]   ;;  %v316_v8 = vld [vmem:[%s1906_s3 + $0x28] sm:$0xff] }
  0x19   :  { %532 = vmatprep.subr.bf16.mxu1 %v1306_v26  ;;  %326 = vperm.xlu0 %1266, %v312_v0   ;;  %v1367_v6 = vld [vmem:[%s1905_s0 + $0x34] ss:$8 sps:$4 sm:$0xff]   ;;  %v315_v9 = vld [vmem:[%s1906_s3 + $0x20] sm:$0xff]  ;;  %v1678_v11 = vld [vmem:[%s1905_s0 + $0x30] ss:$8 sps:$4 sm:$0xff]  }
  0x1a   :  { %336 = vperm.xlu1 %1267, %v314_v1   ;;  %v29_v12 = vld [vmem:[%s1905_s0 + $0x40] sm:$0xff]  ;;  %v1375_v14 = vld [vmem:[%s1904_s1 + $0x1f4] ss:$8 sps:$4 sm:$0xff]   ;;  %v1373_v16 = vld [vmem:[%s1904_s1 + $0x1f0] ss:$8 sps:$4 sm:$0xff]  }
  0x1b   :  { %245 = vmatpush1.bf16.msra.mxu0 %v1308_v27  ;;  %v1370_v13 = vld [vmem:[%s1904_s1 + $0x1e0] ss:$8 sps:$4 sm:$0xff]   ;;  %v1689_v15 = vcombine.high %v29_v12, %v29_v12  ;;  %v318_v17 = vld [vmem:[%s1906_s3 + $0x38] sm:$0xff]  ;;  %v317_v18 = vld [vmem:[%s1906_s3 + $0x30] sm:$0xff]  ;;  %v1088_v20 = vcombine.low %v29_v12, %v29_v12 }
  0x1c   :  { %533 = vmatpush1.bf16.msra.mxu1 %v1309_v28  ;;  %246 = vmatprep.subr.bf16.mxu0 %v1310_v29  ;;  %v1380_v19 = vld [vmem:[%s1904_s1 + $0x204] ss:$8 sps:$4 sm:$0xff]   ;;  %v1378_v21 = vld [vmem:[%s1904_s1 + $0x200] ss:$8 sps:$4 sm:$0xff]   ;;  %v1383_v22 = vld [vmem:[%s1904_s1 + $0x214] ss:$8 sps:$4 sm:$0xff]  }
  0x1d   :  { %534 = vmatprep.subr.bf16.mxu1 %v1312_v30  ;;  %341 = vperm.xlu0 %1266, %v315_v9   ;;  %v1381_v23 = vld [vmem:[%s1904_s1 + $0x210] ss:$8 sps:$4 sm:$0xff]   ;;  %v911_v24 = vld [vmem:[%s1907_s4 + $0x8] sm:$0xff]  ;;  %v910_v25 = vld [vmem:[%s1907_s4] sm:$0xff] }
  0x1e   :  { %346 = vperm.xlu1 %1267, %v316_v8   ;;  %v1386_v26 = vld [vmem:[%s1904_s1 + $0x224] ss:$8 sps:$4 sm:$0xff]   ;;  %v1384_v27 = vld [vmem:[%s1904_s1 + $0x220] ss:$8 sps:$4 sm:$0xff]   ;;  %v913_v28 = vld [vmem:[%s1907_s4 + $0x18] sm:$0xff] }
  0x1f   :  { %247 = vmatpush1.bf16.msra.mxu0 %v1314_v31  ;;  %v912_v29 = vld [vmem:[%s1907_s4 + $0x10] sm:$0xff]  ;;  %vm1829_vm3 = vmor %vm1066_vm2, %vm619_vm1 }
  0x20   :  { %535 = vmatpush1.bf16.msra.mxu1 %v1315_v32  ;;  %248 = vmatprep.subr.bf16.mxu0 %v1316_v33  ;;  %v1389_v30 = vld [vmem:[%s1904_s1 + $0x234] ss:$8 sps:$4 sm:$0xff]   ;;  %v1387_v31 = vld [vmem:[%s1904_s1 + $0x230] ss:$8 sps:$4 sm:$0xff]   ;;  %v915_v32 = vld [vmem:[%s1907_s4 + $0x28] sm:$0xff] }
  0x21   :  { %536 = vmatprep.subr.bf16.mxu1 %v1318_v34  ;;  %351 = vperm.xlu0 %1266, %v317_v18   ;;  %v914_v33 = vld [vmem:[%s1907_s4 + $0x20] sm:$0xff]  ;;  %v917_v34 = vld [vmem:[%s1907_s4 + $0x38] sm:$0xff] }
  0x22   :  { %356 = vperm.xlu1 %1267, %v318_v17  }
  0x23   :  { %249 = vmatpush1.bf16.msra.mxu0 %v1320_v35  ;;  %v916_v35 = vld [vmem:[%s1907_s4 + $0x30] sm:$0xff] }
  0x24   :  { %537 = vmatpush1.bf16.msra.mxu1 %v1321_v36  ;;  %250 = vmatprep.subr.bf16.mxu0 %v1322_v37 }
  0x25   :  { %538 = vmatprep.subr.bf16.mxu1 %v1324_v39  ;;  %920 = vperm.xlu0 %1266, %v910_v25  }
  0x26   :  { %925 = vperm.xlu1 %1267, %v911_v24  }
  0x27   :  { %251 = vmatpush1.bf16.msra.mxu0 %v1326_v40 }
  0x28   :  { %539 = vmatpush1.bf16.msra.mxu1 %v1327_v41  ;;  %252 = vmatprep.subr.bf16.mxu0 %v1328_v42 }
  0x29   :  { %540 = vmatprep.subr.bf16.mxu1 %v1330_v43  ;;  %930 = vperm.xlu0 %1266, %v912_v29  }
  0x2a   :  { %935 = vperm.xlu1 %1267, %v913_v28  }
  0x2b   :  { %253 = vmatpush1.bf16.msra.mxu0 %v1332_v44 }
  0x2c   :  { %541 = vmatpush1.bf16.msra.mxu1 %v1333_v45  ;;  %254 = vmatprep.subr.bf16.mxu0 %v1334_v46 }
  0x2d   :  { %542 = vmatprep.subr.bf16.mxu1 %v1336_v47  ;;  %940 = vperm.xlu0 %1266, %v914_v33  }
  0x2e   :  { %945 = vperm.xlu1 %1267, %v915_v32  }
  0x2f   :  { %255 = vmatpush1.bf16.msra.mxu0 %v1338_v48 }
  0x30   :  { %543 = vmatpush1.bf16.msra.mxu1 %v1339_v49  ;;  %831 = vmatprep.subr.bf16.mxu0 %v1345_v50 }
  0x31   :  { %1241 = vmatprep.subr.bf16.mxu1 %v1345_v50  ;;  %950 = vperm.xlu0 %1266, %v916_v35  }
  0x32   :  { %265 = vmatmul.mubr.bf16.vlgmr.msra.gmra.mrb[0].mxu0 %v1580_v51  ;;  %955 = vperm.xlu1 %1267, %v917_v34  }
  0x33   :  { %553 = vmatmul.mubr.bf16.vlgmr.msra.gmra.mrb[0].mxu1 %v1580_v51  ;;  %832 = vmatpush1.bf16.msra.mxu0 %v1343_v52 }
  0x34   :  { %1253 = vmatpush1.bf16.msra.mxu1 %v1343_v52  ;;  %833 = vmatprep.subr.bf16.mxu0 %v1348_v53 }
  0x35   :  { %1242 = vmatprep.subr.bf16.mxu1 %v1348_v53  ;;  %1168 = vmatprep.mubr.msk.bf16.mxu1 %vm216_vm0, %v1591_v54 }
  0x36   :  { %1115 = vmatprep.mubr.msk.bf16.mxu0 %vm216_vm0, %v1591_v54 }
  0x37   :  { %834 = vmatpush1.bf16.msra.mxu0 %v1346_v55 }
  0x38   :  { %1254 = vmatpush1.bf16.msra.mxu1 %v1346_v55  ;;  %835 = vmatprep.subr.bf16.mxu0 %v1354_v56 }
  0x39   :  { %1243 = vmatprep.subr.bf16.mxu1 %v1354_v56 }
  0x3a   :  { %275 = vmatmul.mubr.bf16.gmra.mrb[4].mxu0 %v1614_v59 }
  0x3b   :  { %563 = vmatmul.mubr.bf16.gmra.mrb[4].mxu1 %v1614_v59  ;;  %836 = vmatpush1.bf16.msra.mxu0 %v1352_v60 }
  0x3c   :  { %1255 = vmatpush1.bf16.msra.mxu1 %v1352_v60  ;;  %837 = vmatprep.subr.bf16.mxu0 %v1357_v61 }
  0x3d   :  { %1244 = vmatprep.subr.bf16.mxu1 %v1357_v61  ;;  %1169 = vmatprep.mubr.msk.bf16.mxu1 %vm216_vm0, %v1625_v62 }
  0x3e   :  { %1116 = vmatprep.mubr.msk.bf16.mxu0 %vm216_vm0, %v1625_v62 }
  0x3f   :  { %838 = vmatpush1.bf16.msra.mxu0 %v1355_v63 }
  0x40   :  { %1256 = vmatpush1.bf16.msra.mxu1 %v1355_v63  ;;  %839 = vmatprep.subr.bf16.mxu0 %v1363_v2 }
  0x41   :  { %1245 = vmatprep.subr.bf16.mxu1 %v1363_v2 }
  0x42   :  { %285 = vmatmul.mubr.bf16.gmra.mrb[8].mxu0 %v1648_v3 }
  0x43   :  { %573 = vmatmul.mubr.bf16.gmra.mrb[8].mxu1 %v1648_v3  ;;  %840 = vmatpush1.bf16.msra.mxu0 %v1361_v4 }
  0x44   :  { %1257 = vmatpush1.bf16.msra.mxu1 %v1361_v4  ;;  %841 = vmatprep.subr.bf16.mxu0 %v1366_v5 }
  0x45   :  { %1246 = vmatprep.subr.bf16.mxu1 %v1366_v5  ;;  %1170 = vmatprep.mubr.msk.bf16.mxu1 %vm216_vm0, %v1367_v6 }
  0x46   :  { %1117 = vmatprep.mubr.msk.bf16.mxu0 %vm216_vm0, %v1367_v6 }
  0x47   :  { %842 = vmatpush1.bf16.msra.mxu0 %v1364_v7 }
  0x48   :  { %1258 = vmatpush1.bf16.msra.mxu1 %v1364_v7  ;;  %843 = vmatprep.subr.bf16.mxu0 %v1372_v10 }
  0x49   :  { %1247 = vmatprep.subr.bf16.mxu1 %v1372_v10 }
  0x4a   :  { %295 = vmatmul.mubr.bf16.gmra.mrb[12].mxu0 %v1678_v11 }
  0x4b   :  { %583 = vmatmul.mubr.bf16.gmra.mrb[12].mxu1 %v1678_v11  ;;  %844 = vmatpush1.bf16.msra.mxu0 %v1370_v13 }
  0x4c   :  { %1259 = vmatpush1.bf16.msra.mxu1 %v1370_v13  ;;  %845 = vmatprep.subr.bf16.mxu0 %v1375_v14 }
  0x4d   :  { %1248 = vmatprep.subr.bf16.mxu1 %v1375_v14  ;;  %1171 = vmatprep.mubr.msk.bf16.mxu1 %vm216_vm0, %v1689_v15 }
  0x4e   :  { %1118 = vmatprep.mubr.msk.bf16.mxu0 %vm216_vm0, %v1689_v15 }
  0x4f   :  { %846 = vmatpush1.bf16.msra.mxu0 %v1373_v16 }
  0x50   :  { %1260 = vmatpush1.bf16.msra.mxu1 %v1373_v16  ;;  %847 = vmatprep.subr.bf16.mxu0 %v1380_v19 }
  0x51   :  { %1249 = vmatprep.subr.bf16.mxu1 %v1380_v19 }
  0x52   :  { %305 = vmatmul.mubr.bf16.gmra.mrb[16].mxu0 %v1088_v20 }
  0x53   :  { %593 = vmatmul.mubr.bf16.gmra.mrb[16].mxu1 %v1088_v20  ;;  %848 = vmatpush1.bf16.msra.mxu0 %v1378_v21 }
  0x54   :  { %1261 = vmatpush1.bf16.msra.mxu1 %v1378_v21  ;;  %849 = vmatprep.subr.bf16.mxu0 %v1383_v22 }
  0x55   :  { %1250 = vmatprep.subr.bf16.mxu1 %v1383_v22  ;;  %1220 = vmatprep.mubr.msk.bf16.mxu0 %vm216_vm0, %v1535_v38 }
  0x56   :  { %1223 = vmatprep.mubr.msk.bf16.mxu1 %vm216_vm0, %v1367_v6 }
  0x57   :  { %850 = vmatpush1.bf16.msra.mxu0 %v1381_v23 }
  0x58   :  { %1262 = vmatpush1.bf16.msra.mxu1 %v1381_v23  ;;  %851 = vmatprep.subr.bf16.mxu0 %v1386_v26 }
  0x59   :  { %1251 = vmatprep.subr.bf16.mxu1 %v1386_v26 }
  0x5b   :  { %852 = vmatpush1.bf16.msra.mxu0 %v1384_v27 }
  0x5c   :  { %1263 = vmatpush1.bf16.msra.mxu1 %v1384_v27  ;;  %853 = vmatprep.subr.bf16.mxu0 %v1389_v30 }
  0x5d   :  { %1252 = vmatprep.subr.bf16.mxu1 %v1389_v30 }
  0x5f   :  { %854 = vmatpush1.bf16.msra.mxu0 %v1387_v31 }
  0x60   :  { %1264 = vmatpush1.bf16.msra.mxu1 %v1387_v31 }
  0x62   :  { %864 = vmatmul.mubr.bf16.vlgmr.msra.gmra.mrb[20].mxu0 %v1580_v51 }
  0x63   :  { %892 = vmatmul.mubr.bf16.vlgmr.msra.gmra.mrb[20].mxu1 %v1678_v11  ;;  %1221 = vmatprep.mubr.msk.bf16.mxu0 %vm216_vm0, %v1591_v54 }
  0x64   :  { %1224 = vmatprep.mubr.msk.bf16.mxu1 %vm216_vm0, %v1689_v15 }
  0x6a   :  { %872 = vmatmul.mubr.bf16.gmra.mrb[24].mxu0 %v1614_v59 }
  0x6b   :  { %902 = vmatmul.mubr.bf16.gmra.mrb[24].mxu1 %v1088_v20  ;;  %1222 = vmatprep.mubr.msk.bf16.mxu0 %vm216_vm0, %v1625_v62 }
  0x72   :  { %882 = vmatmul.mubr.bf16.gmra.mrb[28].mxu0 %v1648_v3 }
  0x94   :  { %v322_v36 = vpop.permute.xlu0 %321 }
  0x95   :  { %v332_v38 = vpop.permute.xlu1 %331 }
  0x98   :  { %v327_v37 = vpop.permute.xlu0 %326 }
  0x99   :  { %v337_v56 = vpop.permute.xlu1 %336 }
  0x9c   :  { %v342_v57 = vpop.permute.xlu0 %341 }
  0x9d   :  { %v347_v18 = vpop.permute.xlu1 %346 }
  0xa0   :  { %v352_v19 = vpop.permute.xlu0 %351 }
 0x105   :  { %v266_v39 = vpop.f32.mrb[0].mxu0 }
 0x106   :  { %v554_v40 = vpop.f32.mrb[0].mxu1  ;;  %v268_v42 = vpop.f32.mrb[1].mxu0  ;;  %v359_v50 = vmul.f32 %v322_v36, %v266_v39 }
 0x107   :  { %v620_v41 = vrot.slane %v554_v40, 4  ;;  %v556_v43 = vpop.f32.mrb[1].mxu1  ;;  %v270_v45 = vpop.f32.mrb[2].mxu0  ;;  %v360_v52 = vmul.f32 %v322_v36, %v268_v42 }
 0x108   :  { %v623_v44 = vrot.slane %v556_v43, 4  ;;  %v558_v46 = vpop.f32.mrb[2].mxu1  ;;  %v272_v48 = vpop.f32.mrb[3].mxu0  ;;  %v361_v0 = vmul.f32 %v327_v37, %v270_v45 }
 0x109   :  { %v621_v47 = vrot.slane %v558_v46, 4  ;;  %v560_v49 = vpop.f32.mrb[3].mxu1  ;;  %v362_v5 = vmul.f32 %v327_v37, %v272_v48  ;;  %v1795_v45 = vpop.permute.xlu0 %920 }
 0x10a   :  { %v624_v51 = vrot.slane %v560_v49, 4 }
 0x10b   :  { %v622_v53 = vsel %vm619_vm1, %v620_v41, %v621_v47 }
 0x10c   :  { %v625_v54 = vsel %vm619_vm1, %v623_v44, %v624_v51  ;;  %v1769_v55 = vadd.f32 %v622_v53, %v359_v50  ;;  %v357_v44 = vpop.permute.xlu1 %356 }
 0x10d   :  { %v1771_v58 = vadd.f32 %v625_v54, %v360_v52  ;;  %v276_v60 = vpop.f32.mrb[4].mxu0 }
 0x10e   :  { %v564_v59 = vpop.f32.mrb[4].mxu1  ;;  %v278_v63 = vpop.f32.mrb[5].mxu0  ;;  %v363_v2 = vmul.f32 %v332_v38, %v276_v60 }
 0x10f   :  { %v626_v61 = vrot.slane %v564_v59, 4  ;;  %v566_v62 = vpop.f32.mrb[5].mxu1  ;;  %v280_v4 = vpop.f32.mrb[6].mxu0  ;;  %v364_v7 = vmul.f32 %v332_v38, %v278_v63 }
 0x110   :  { %v628_v1 = vrot.slane %v566_v62, 4  ;;  %v568_v3 = vpop.f32.mrb[6].mxu1  ;;  %v282_v10 = vpop.f32.mrb[7].mxu0  ;;  %v365_v21 = vmul.f32 %v337_v56, %v280_v4 }
 0x111   :  { %v627_v6 = vsel %vm619_vm1, %v621_v47, %v626_v61  ;;  %v630_v8 = vrot.slane %v568_v3, 4  ;;  %v570_v9 = vpop.f32.mrb[7].mxu1  ;;  %v366_v31 = vmul.f32 %v337_v56, %v282_v10 }
 0x112   :  { %v629_v11 = vsel %vm619_vm1, %v624_v51, %v628_v1  ;;  %v632_v12 = vrot.slane %v570_v9, 4  ;;  %v1775_v13 = vadd.f32 %v627_v6, %v361_v0  ;;  %v1805_v9 = vpop.permute.xlu0 %930 }
 0x113   :  { %v631_v14 = vsel %vm619_vm1, %v626_v61, %v630_v8  ;;  %v1778_v15 = vadd.f32 %v629_v11, %v362_v5 }
 0x114   :  { %v633_v16 = vsel %vm619_vm1, %v628_v1, %v632_v12  ;;  %v1781_v17 = vadd.f32 %v631_v14, %v363_v2 }
 0x115   :  { %v1783_v20 = vadd.f32 %v633_v16, %v364_v7  ;;  %v286_v23 = vpop.f32.mrb[8].mxu0 }
 0x116   :  { %v574_v22 = vpop.f32.mrb[8].mxu1  ;;  %v288_v26 = vpop.f32.mrb[9].mxu0  ;;  %v367_v28 = vmul.f32 %v342_v57, %v286_v23 }
 0x117   :  { %v634_v24 = vrot.slane %v574_v22, 4  ;;  %v576_v25 = vpop.f32.mrb[9].mxu1  ;;  %v290_v30 = vpop.f32.mrb[10].mxu0  ;;  %v368_v33 = vmul.f32 %v342_v57, %v288_v26 }
 0x118   :  { %v636_v27 = vrot.slane %v576_v25, 4  ;;  %v578_v29 = vpop.f32.mrb[10].mxu1  ;;  %v292_v36 = vpop.f32.mrb[11].mxu0  ;;  %v369_v47 = vmul.f32 %v347_v18, %v290_v30  ;;  %v992_v30 = vlaneseq }
 0x119   :  { %v635_v32 = vsel %vm619_vm1, %v630_v8, %v634_v24  ;;  %v638_v34 = vrot.slane %v578_v29, 4  ;;  %v580_v35 = vpop.f32.mrb[11].mxu1  ;;  %v370_v59 = vmul.f32 %v347_v18, %v292_v36  ;;  %v1803_v8 = vpop.permute.xlu1 %925  ;;  %v990_v36 = vld [vmem:[%s1908_s2] sm:$0x3] }
 0x11a   :  { %v637_v37 = vsel %vm619_vm1, %v632_v12, %v636_v27  ;;  %v640_v38 = vrot.slane %v580_v35, 4  ;;  %v1787_v39 = vadd.f32 %v635_v32, %v365_v21 }
 0x11b   :  { %v639_v40 = vsel %vm619_vm1, %v634_v24, %v638_v34  ;;  %v1790_v41 = vadd.f32 %v637_v37, %v366_v31 }
 0x11c   :  { %v641_v42 = vsel %vm619_vm1, %v636_v27, %v640_v38  ;;  %v1793_v43 = vadd.f32 %v639_v40, %v367_v28 }
 0x11d   :  { %v1797_v46 = vadd.f32 %v641_v42, %v368_v33  ;;  %v296_v49 = vpop.f32.mrb[12].mxu0  ;;  %v1811_v32 = vpop.permute.xlu1 %935 }
 0x11e   :  { %v584_v48 = vpop.f32.mrb[12].mxu1  ;;  %v298_v52 = vpop.f32.mrb[13].mxu0  ;;  %v371_v54 = vmul.f32 %v352_v19, %v296_v49 }
 0x11f   :  { %v642_v50 = vrot.slane %v584_v48, 4  ;;  %v586_v51 = vpop.f32.mrb[13].mxu1  ;;  %v300_v57 = vpop.f32.mrb[14].mxu0  ;;  %v372_v61 = vmul.f32 %v352_v19, %v298_v52 }
 0x120   :  { %v644_v53 = vrot.slane %v586_v51, 4  ;;  %v588_v56 = vpop.f32.mrb[14].mxu1  ;;  %v302_v0 = vpop.f32.mrb[15].mxu0  ;;  %v373_v11 = vmul.f32 %v357_v44, %v300_v57 }
 0x121   :  { %v643_v60 = vsel %vm619_vm1, %v638_v34, %v642_v50  ;;  %v646_v62 = vrot.slane %v588_v56, 4  ;;  %v590_v63 = vpop.f32.mrb[15].mxu1  ;;  %v374_v24 = vmul.f32 %v357_v44, %v302_v0  ;;  %v1813_v33 = vpop.permute.xlu0 %940  ;;  %v993_v34 = vshrl.u32 %v992_v30, 7 }
 0x122   :  { %v645_v1 = vsel %vm619_vm1, %v640_v38, %v644_v53  ;;  %v648_v2 = vrot.slane %v590_v63, 4  ;;  %v680_v3 = vadd.f32 %v643_v60, %v369_v47  ;;  %v946_v38 = vpop.permute.xlu1 %945 }
 0x123   :  { %v647_v4 = vsel %vm619_vm1, %v642_v50, %v646_v62  ;;  %v681_v5 = vadd.f32 %v645_v1, %v370_v59  ;;  %v994_v35 = vsub.s32 0, %v993_v34  ;;  %v998_v37 = vsub.s32 1, %v993_v34 }
 0x124   :  { %v649_v6 = vsel %vm619_vm1, %v644_v53, %v648_v2  ;;  %v682_v7 = vadd.f32 %v647_v4, %v371_v54 }
 0x125   :  { %v683_v10 = vadd.f32 %v649_v6, %v372_v61  ;;  %v306_v14 = vpop.f32.mrb[16].mxu0  ;;  %v951_v40 = vpop.permute.xlu0 %950  ;;  %v1818_v48 = vrot.slane %v990_v36, %v994_v35  ;;  %v1820_v52 = vrot.slane %v990_v36, %v998_v37 }
 0x126   :  { %v594_v12 = vpop.f32.mrb[16].mxu1  ;;  %v307_v19 = vpop.f32.mrb[17].mxu0 }
 0x127   :  { %v650_v16 = vrot.slane %v594_v12, 4  ;;  %v596_v18 = vpop.f32.mrb[17].mxu1  ;;  %v308_v22 = vpop.f32.mrb[18].mxu0 }
 0x128   :  { %v652_v21 = vrot.slane %v596_v18, 4  ;;  %v598_v23 = vpop.f32.mrb[18].mxu1  ;;  %v309_v26 = vpop.f32.mrb[19].mxu0 }
 0x129   :  { %v651_v25 = vsel %vm619_vm1, %v646_v62, %v650_v16  ;;  %v599_v27 = vpop.f32.mrb[19].mxu1  ;;  %v956_v12 = vpop.permute.xlu1 %955 }
 0x12a   :  { %v653_v28 = vsel %vm619_vm1, %v648_v2, %v652_v21  ;;  %v684_v29 = vadd.f32 %v651_v25, %v373_v11 }
 0x12b   :  { %v1809_v31 = vadd.f32 %v653_v28, %v374_v24 }
 0x135   :  { %v865_v42 = vpop.f32.mrb[20].mxu0 }
 0x136   :  { %v893_v44 = vpop.f32.mrb[20].mxu1  ;;  %v866_v49 = vpop.f32.mrb[21].mxu0 }
 0x137   :  { %v968_v47 = vmul.f32 %v946_v38, %v893_v44  ;;  %v895_v50 = vpop.f32.mrb[21].mxu1  ;;  %v867_v53 = vpop.f32.mrb[22].mxu0 }
 0x138   :  { %v969_v51 = vmul.f32 %v946_v38, %v895_v50  ;;  %v897_v54 = vpop.f32.mrb[22].mxu1  ;;  %v958_v57 = vmul.f32 %v1795_v45, %v867_v53  ;;  %v869_v60 = vpop.f32.mrb[23].mxu0 }
 0x139   :  { %v984_v56 = vadd.f32 %v968_v47, %v680_v3  ;;  %v970_v59 = vmul.f32 %v951_v40, %v897_v54  ;;  %v899_v61 = vpop.f32.mrb[23].mxu1  ;;  %v959_v63 = vmul.f32 %v1795_v45, %v869_v60 }
 0x13a   :  { %v985_v62 = vadd.f32 %v969_v51, %v681_v5  ;;  %v971_v0 = vmul.f32 %v951_v40, %v899_v61  ;;  %v974_v2 = vadd.f32 %v958_v57, %v1769_v55 }
 0x13b   :  { %v1012_v1 = vadd.f32 %v1818_v48, %v984_v56  ;;  %v986_v4 = vadd.f32 %v970_v59, %v682_v7  ;;  %v975_v11 = vadd.f32 %v959_v63, %v1771_v58 }
 0x13c   :  { %v1013_v6 = vadd.f32 %v1820_v52, %v985_v62  ;;  %v987_v3 = vadd.f32 %v971_v0, %v683_v10  ;;  %v1002_v5 = vadd.f32 %v1818_v48, %v974_v2 }
 0x13d   :  { %v1014_v45 = vadd.f32 %v1818_v48, %v986_v4  ;;  %v1003_v18 = vadd.f32 %v1820_v52, %v975_v11  ;;  %v873_v7 = vpop.f32.mrb[24].mxu0 }
 0x13e   :  { %v1238_v16 = vpack.c.bf16 %v1013_v6, %v1012_v1  ;;  %v1015_v55 = vadd.f32 %v1820_v52, %v987_v3  ;;  %v903_v19 = vpop.f32.mrb[24].mxu1  ;;  %v960_v58 = vmul.f32 %v1803_v8, %v873_v7  ;;  %v875_v21 = vpop.f32.mrb[25].mxu0 }
 0x13f   :  { %v972_v10 = vmul.f32 %v956_v12, %v903_v19  ;;  %v905_v22 = vpop.f32.mrb[25].mxu1  ;;  %v1233_v23 = vpack.c.bf16 %v1003_v18, %v1002_v5  ;;  %v961_v25 = vmul.f32 %v1803_v8, %v875_v21  ;;  %v877_v27 = vpop.f32.mrb[26].mxu0 }
 0x140   :  { %1073 = vst.msk [vmem:[%s1909_s5 + $0x28] sm:$0xff] %vm1829_vm3, %v1238_v16  ;;  %v1239_v24 = vpack.c.bf16 %v1015_v55, %v1014_v45  ;;  %v973_v26 = vmul.f32 %v956_v12, %v905_v22  ;;  %v907_v28 = vpop.f32.mrb[26].mxu1  ;;  %v976_v30 = vadd.f32 %v960_v58, %v1775_v13  ;;  %v962_v35 = vmul.f32 %v1805_v9, %v877_v27  ;;  %v879_v36 = vpop.f32.mrb[27].mxu0 }
 0x141   :  { %v988_v34 = vadd.f32 %v972_v10, %v684_v29  ;;  %v908_v37 = vpop.f32.mrb[27].mxu1  ;;  %1068 = vst.msk [vmem:[%s1909_s5] sm:$0xff] %vm1829_vm3, %v1233_v23  ;;  %v977_v8 = vadd.f32 %v961_v25, %v1778_v15  ;;  %v963_v29 = vmul.f32 %v1805_v9, %v879_v36 }
 0x142   :  { %1074 = vst.msk [vmem:[%s1909_s5 + $0x30] sm:$0xff] %vm1829_vm3, %v1239_v24  ;;  %v989_v13 = vadd.f32 %v973_v26, %v1809_v31  ;;  %v1004_v38 = vadd.f32 %v1818_v48, %v976_v30  ;;  %v978_v42 = vadd.f32 %v962_v35, %v1781_v17 }
 0x143   :  { %v1016_v40 = vadd.f32 %v1818_v48, %v988_v34  ;;  %v1005_v44 = vadd.f32 %v1820_v52, %v977_v8  ;;  %v979_v49 = vadd.f32 %v963_v29, %v1783_v20 }
 0x144   :  { %v1017_v47 = vadd.f32 %v1820_v52, %v989_v13  ;;  %v1006_v50 = vadd.f32 %v1818_v48, %v978_v42 }
 0x145   :  { %v1234_v51 = vpack.c.bf16 %v1005_v44, %v1004_v38  ;;  %v1007_v31 = vadd.f32 %v1820_v52, %v979_v49  ;;  %v883_v53 = vpop.f32.mrb[28].mxu0 }
 0x146   :  { %v1240_v15 = vpack.c.bf16 %v1017_v47, %v1016_v40  ;;  %v964_v9 = vmul.f32 %v1811_v32, %v883_v53  ;;  %v885_v54 = vpop.f32.mrb[29].mxu0 }
 0x147   :  { %1069 = vst.msk [vmem:[%s1909_s5 + $0x8] sm:$0xff] %vm1829_vm3, %v1234_v51  ;;  %v1235_v17 = vpack.c.bf16 %v1007_v31, %v1006_v50  ;;  %v965_v20 = vmul.f32 %v1811_v32, %v885_v54  ;;  %v887_v56 = vpop.f32.mrb[30].mxu0 }
 0x148   :  { %1075 = vst.msk [vmem:[%s1909_s5 + $0x38] sm:$0xff] %vm1829_vm3, %v1240_v15  ;;  %v980_v57 = vadd.f32 %v964_v9, %v1787_v39  ;;  %v966_v59 = vmul.f32 %v1813_v33, %v887_v56  ;;  %v889_v60 = vpop.f32.mrb[31].mxu0 }
 0x149   :  { %1070 = vst.msk [vmem:[%s1909_s5 + $0x10] sm:$0xff] %vm1829_vm3, %v1235_v17  ;;  %v981_v61 = vadd.f32 %v965_v20, %v1790_v41  ;;  %v967_v62 = vmul.f32 %v1813_v33, %v889_v60 }
 0x14a   :  { %v1008_v63 = vadd.f32 %v1818_v48, %v980_v57  ;;  %v982_v32 = vadd.f32 %v966_v59, %v1793_v43 }
 0x14b   :  { %v1009_v0 = vadd.f32 %v1820_v52, %v981_v61  ;;  %v983_v39 = vadd.f32 %v967_v62, %v1797_v46 }
 0x14c   :  { %v1010_v1 = vadd.f32 %v1818_v48, %v982_v32 }
 0x14d   :  { %v1236_v2 = vpack.c.bf16 %v1009_v0, %v1008_v63  ;;  %v1011_v4 = vadd.f32 %v1820_v52, %v983_v39 }
 0x14f   :  { %1071 = vst.msk [vmem:[%s1909_s5 + $0x18] sm:$0xff] %vm1829_vm3, %v1236_v2  ;;  %v1237_v41 = vpack.c.bf16 %v1011_v4, %v1010_v1 }
 0x151   :  { %1072 = vst.msk [vmem:[%s1909_s5 + $0x20] sm:$0xff] %vm1829_vm3, %v1237_v41 }

// kernel: inception_c.8
= control target key start
LH: loop header
LB: loop body
LE: loop exit
PB: predicated region body
PF: predicated region fallthrough
CT: control target
= control target key end

     0   :  { %v1592_v1 = vmov 0   ;;  %vm240_vm0 = vcmask 785408   ;;  %vm667_vm1 = vcmask 1046528   ;;  %vm1024_vm2 = vcmask 1041408   ;;  %s2190_s1 = inlined_call_operand.vmem [shape: bf16[3,224,256], index: 1, kind: input, shape index: {}]   ;;  %s2191_s0 = inlined_call_operand.vmem [shape: bf16[1,66,224], index: 0, kind: input, shape index: {}]   ;;  %s2192_s4 = inlined_call_operand.vmem [shape: f32[64,1], index: 4, kind: input, shape index: {}]   ;;  %s2193_s3 = inlined_call_operand.vmem [shape: f32[64,1], index: 3, kind: input, shape index: {}]   ;;  %s2194_s2 = inlined_call_operand.vmem [shape: f32[1,256], index: 2, kind: input, shape index: {}]   ;;  %s2195_s5 = inlined_call_operand.vmem [shape: bf16[1,64,256], index: 5, kind: output, shape index: {}]  }
   0x1   :  { %v1452_v0 = vld [vmem:[%s2190_s1 + $0x4] ss:$8 sps:$4 sm:$0xff]   ;;  %1450 = vset.pattern.permute.xlu0 %v1592_v1  ;;  %1451 = vset.pattern.permute.xlu1 %v1592_v1  ;;  %v1456_v3 = vld [vmem:[%s2190_s1] ss:$8 sps:$4 sm:$0xff]   ;;  %v1458_v5 = vld [vmem:[%s2190_s1 + $0x14] ss:$8 sps:$4 sm:$0xff]  }
   0x2   :  { %v1454_v2 = vld [vmem:[%s2190_s1 + $0xe4] ss:$8 sps:$4 sm:$0xff]   ;;  %256 = vmatprep.subr.bf16.mxu0 %v1452_v0  ;;  %v1457_v4 = vld [vmem:[%s2190_s1 + $0xe0] ss:$8 sps:$4 sm:$0xff]   ;;  %v1460_v6 = vld [vmem:[%s2190_s1 + $0xf4] ss:$8 sps:$4 sm:$0xff]  }
   0x3   :  { %568 = vmatprep.subr.bf16.mxu1 %v1454_v2  ;;  %257 = vmatpush1.bf16.msra.mxu0 %v1456_v3  ;;  %v1462_v7 = vld [vmem:[%s2190_s1 + $0x10] ss:$8 sps:$4 sm:$0xff]   ;;  %v1464_v9 = vld [vmem:[%s2190_s1 + $0x24] ss:$8 sps:$4 sm:$0xff]   ;;  %v1468_v11 = vld [vmem:[%s2190_s1 + $0x20] ss:$8 sps:$4 sm:$0xff]  }
   0x4   :  { %569 = vmatpush1.bf16.msra.mxu1 %v1457_v4  ;;  %258 = vmatprep.subr.bf16.mxu0 %v1458_v5  ;;  %v1463_v8 = vld [vmem:[%s2190_s1 + $0xf0] ss:$8 sps:$4 sm:$0xff]   ;;  %v1466_v10 = vld [vmem:[%s2190_s1 + $0x104] ss:$8 sps:$4 sm:$0xff]   ;;  %v1469_v12 = vld [vmem:[%s2190_s1 + $0x100] ss:$8 sps:$4 sm:$0xff]  }
   0x5   :  { %570 = vmatprep.subr.bf16.mxu1 %v1460_v6  ;;  %v1470_v13 = vld [vmem:[%s2190_s1 + $0x34] ss:$8 sps:$4 sm:$0xff]   ;;  %v1474_v15 = vld [vmem:[%s2190_s1 + $0x30] ss:$8 sps:$4 sm:$0xff]   ;;  %v1476_v17 = vld [vmem:[%s2190_s1 + $0x44] ss:$8 sps:$4 sm:$0xff]  }
   0x6   :  { %v1472_v14 = vld [vmem:[%s2190_s1 + $0x114] ss:$8 sps:$4 sm:$0xff]   ;;  %v1475_v16 = vld [vmem:[%s2190_s1 + $0x110] ss:$8 sps:$4 sm:$0xff]   ;;  %v1478_v18 = vld [vmem:[%s2190_s1 + $0x124] ss:$8 sps:$4 sm:$0xff]  }
   0x7   :  { %259 = vmatpush1.bf16.msra.mxu0 %v1462_v7  ;;  %v1480_v19 = vld [vmem:[%s2190_s1 + $0x40] ss:$8 sps:$4 sm:$0xff]   ;;  %v1482_v21 = vld [vmem:[%s2190_s1 + $0x54] ss:$8 sps:$4 sm:$0xff]   ;;  %v1486_v23 = vld [vmem:[%s2190_s1 + $0x50] ss:$8 sps:$4 sm:$0xff]  }
   0x8   :  { %571 = vmatpush1.bf16.msra.mxu1 %v1463_v8  ;;  %260 = vmatprep.subr.bf16.mxu0 %v1464_v9  ;;  %v1481_v20 = vld [vmem:[%s2190_s1 + $0x120] ss:$8 sps:$4 sm:$0xff]   ;;  %v1484_v22 = vld [vmem:[%s2190_s1 + $0x134] ss:$8 sps:$4 sm:$0xff]   ;;  %v1487_v24 = vld [vmem:[%s2190_s1 + $0x130] ss:$8 sps:$4 sm:$0xff]  }
   0x9   :  { %572 = vmatprep.subr.bf16.mxu1 %v1466_v10  ;;  %v1488_v25 = vld [vmem:[%s2190_s1 + $0x64] ss:$8 sps:$4 sm:$0xff]   ;;  %v1492_v27 = vld [vmem:[%s2190_s1 + $0x60] ss:$8 sps:$4 sm:$0xff]   ;;  %v1494_v29 = vld [vmem:[%s2190_s1 + $0x74] ss:$8 sps:$4 sm:$0xff]  }
   0xa   :  { %v1490_v26 = vld [vmem:[%s2190_s1 + $0x144] ss:$8 sps:$4 sm:$0xff]   ;;  %v1493_v28 = vld [vmem:[%s2190_s1 + $0x140] ss:$8 sps:$4 sm:$0xff]   ;;  %v1496_v30 = vld [vmem:[%s2190_s1 + $0x154] ss:$8 sps:$4 sm:$0xff]  }
   0xb   :  { %261 = vmatpush1.bf16.msra.mxu0 %v1468_v11  ;;  %v1498_v31 = vld [vmem:[%s2190_s1 + $0x70] ss:$8 sps:$4 sm:$0xff]   ;;  %v1500_v33 = vld [vmem:[%s2190_s1 + $0x84] ss:$8 sps:$4 sm:$0xff]   ;;  %v1504_v35 = vld [vmem:[%s2190_s1 + $0x80] ss:$8 sps:$4 sm:$0xff]  }
   0xc   :  { %573 = vmatpush1.bf16.msra.mxu1 %v1469_v12  ;;  %262 = vmatprep.subr.bf16.mxu0 %v1470_v13  ;;  %v1499_v32 = vld [vmem:[%s2190_s1 + $0x150] ss:$8 sps:$4 sm:$0xff]   ;;  %v1502_v34 = vld [vmem:[%s2190_s1 + $0x164] ss:$8 sps:$4 sm:$0xff]   ;;  %v1505_v36 = vld [vmem:[%s2190_s1 + $0x160] ss:$8 sps:$4 sm:$0xff]  }
   0xd   :  { %574 = vmatprep.subr.bf16.mxu1 %v1472_v14  ;;  %v1506_v37 = vld [vmem:[%s2190_s1 + $0x94] ss:$8 sps:$4 sm:$0xff]   ;;  %v1510_v39 = vld [vmem:[%s2190_s1 + $0x90] ss:$8 sps:$4 sm:$0xff]   ;;  %v1512_v41 = vld [vmem:[%s2190_s1 + $0xa4] ss:$8 sps:$4 sm:$0xff]  }
   0xe   :  { %v1508_v38 = vld [vmem:[%s2190_s1 + $0x174] ss:$8 sps:$4 sm:$0xff]   ;;  %v1511_v40 = vld [vmem:[%s2190_s1 + $0x170] ss:$8 sps:$4 sm:$0xff]   ;;  %v1514_v42 = vld [vmem:[%s2190_s1 + $0x184] ss:$8 sps:$4 sm:$0xff]  }
   0xf   :  { %263 = vmatpush1.bf16.msra.mxu0 %v1474_v15  ;;  %v1752_v43 = vld [vmem:[%s2191_s0 + $0x4] ss:$8 sps:$4 sm:$0xff]   ;;  %v1516_v44 = vld [vmem:[%s2190_s1 + $0xa0] ss:$8 sps:$4 sm:$0xff]   ;;  %v1518_v46 = vld [vmem:[%s2190_s1 + $0xb4] ss:$8 sps:$4 sm:$0xff]  }
  0x10   :  { %575 = vmatpush1.bf16.msra.mxu1 %v1475_v16  ;;  %264 = vmatprep.subr.bf16.mxu0 %v1476_v17  ;;  %v1517_v45 = vld [vmem:[%s2190_s1 + $0x180] ss:$8 sps:$4 sm:$0xff]   ;;  %v1520_v47 = vld [vmem:[%s2190_s1 + $0x194] ss:$8 sps:$4 sm:$0xff]   ;;  %v1522_v48 = vld [vmem:[%s2190_s1 + $0xb0] ss:$8 sps:$4 sm:$0xff]  }
  0x11   :  { %576 = vmatprep.subr.bf16.mxu1 %v1478_v18  ;;  %1278 = vmatprep.mubr.msk.bf16.mxu0 %vm240_vm0, %v1752_v43  ;;  %v1523_v49 = vld [vmem:[%s2190_s1 + $0x190] ss:$8 sps:$4 sm:$0xff]   ;;  %v1524_v50 = vld [vmem:[%s2190_s1 + $0xc4] ss:$8 sps:$4 sm:$0xff]   ;;  %v1528_v52 = vld [vmem:[%s2190_s1 + $0xc0] ss:$8 sps:$4 sm:$0xff]  }
  0x12   :  { %1339 = vmatprep.mubr.msk.bf16.mxu1 %vm240_vm0, %v1752_v43  ;;  %v1526_v51 = vld [vmem:[%s2190_s1 + $0x1a4] ss:$8 sps:$4 sm:$0xff]   ;;  %v1529_v53 = vld [vmem:[%s2190_s1 + $0x1a0] ss:$8 sps:$4 sm:$0xff]   ;;  %v1530_v54 = vld [vmem:[%s2190_s1 + $0xd4] ss:$8 sps:$4 sm:$0xff]  }
  0x13   :  { %265 = vmatpush1.bf16.msra.mxu0 %v1480_v19  ;;  %v1532_v55 = vld [vmem:[%s2190_s1 + $0x1b4] ss:$8 sps:$4 sm:$0xff]   ;;  %v1534_v56 = vld [vmem:[%s2190_s1 + $0xd0] ss:$8 sps:$4 sm:$0xff]   ;;  %v1541_v58 = vld [vmem:[%s2190_s1 + $0x1c4] ss:$8 sps:$4 sm:$0xff]  }
  0x14   :  { %577 = vmatpush1.bf16.msra.mxu1 %v1481_v20  ;;  %266 = vmatprep.subr.bf16.mxu0 %v1482_v21  ;;  %v1535_v57 = vld [vmem:[%s2190_s1 + $0x1b0] ss:$8 sps:$4 sm:$0xff]   ;;  %v1806_v59 = vld [vmem:[%s2191_s0] ss:$8 sps:$4 sm:$0xff]   ;;  %v1544_v61 = vld [vmem:[%s2190_s1 + $0x1d4] ss:$8 sps:$4 sm:$0xff]  }
  0x15   :  { %578 = vmatprep.subr.bf16.mxu1 %v1484_v22  ;;  %v1539_v60 = vld [vmem:[%s2190_s1 + $0x1c0] ss:$8 sps:$4 sm:$0xff]   ;;  %v1817_v62 = vld [vmem:[%s2191_s0 + $0x14] ss:$8 sps:$4 sm:$0xff]   ;;  %v1542_v63 = vld [vmem:[%s2190_s1 + $0x1d0] ss:$8 sps:$4 sm:$0xff]  }
  0x16   :  { %v1550_v0 = vld [vmem:[%s2190_s1 + $0x1e4] ss:$8 sps:$4 sm:$0xff]   ;;  %v986_v2 = vld [vmem:[%s2192_s4 + $0x10] sm:$0xff]  ;;  %v1548_v4 = vld [vmem:[%s2190_s1 + $0x1e0] ss:$8 sps:$4 sm:$0xff]   ;;  %vm1085_vm3 = vcmask 1045504  }
  0x17   :  { %267 = vmatpush1.bf16.msra.mxu0 %v1486_v23  ;;  %v984_v1 = vld [vmem:[%s2192_s4] sm:$0xff]  ;;  %v1840_v3 = vld [vmem:[%s2191_s0 + $0x10] ss:$8 sps:$4 sm:$0xff]   ;;  %1002 = vperm.xlu1 %1451, %v986_v2   ;;  %v1553_v5 = vld [vmem:[%s2190_s1 + $0x1f4] ss:$8 sps:$4 sm:$0xff]  }
  0x18   :  { %579 = vmatpush1.bf16.msra.mxu1 %v1487_v24  ;;  %268 = vmatprep.subr.bf16.mxu0 %v1488_v25  ;;  %v1851_v6 = vld [vmem:[%s2191_s0 + $0x24] ss:$8 sps:$4 sm:$0xff]   ;;  %v1551_v7 = vld [vmem:[%s2190_s1 + $0x1f0] ss:$8 sps:$4 sm:$0xff]   ;;  %v1874_v11 = vld [vmem:[%s2191_s0 + $0x20] ss:$8 sps:$4 sm:$0xff]  }
  0x19   :  { %580 = vmatprep.subr.bf16.mxu1 %v1490_v26  ;;  %994 = vperm.xlu0 %1450, %v984_v1   ;;  %v985_v8 = vld [vmem:[%s2192_s4 + $0x8] sm:$0xff]  ;;  %v987_v9 = vld [vmem:[%s2192_s4 + $0x18] sm:$0xff]  ;;  %v988_v16 = vld [vmem:[%s2192_s4 + $0x20] sm:$0xff] }
  0x1a   :  { %v1556_v10 = vld [vmem:[%s2190_s1 + $0x204] ss:$8 sps:$4 sm:$0xff]   ;;  %v1554_v12 = vld [vmem:[%s2190_s1 + $0x200] ss:$8 sps:$4 sm:$0xff]   ;;  %v1559_v13 = vld [vmem:[%s2190_s1 + $0x214] ss:$8 sps:$4 sm:$0xff]  }
  0x1b   :  { %269 = vmatpush1.bf16.msra.mxu0 %v1492_v27  ;;  %1006 = vperm.xlu1 %1451, %v987_v9   ;;  %v1569_v14 = vld [vmem:[%s2191_s0 + $0x34] ss:$8 sps:$4 sm:$0xff]   ;;  %v1557_v15 = vld [vmem:[%s2190_s1 + $0x210] ss:$8 sps:$4 sm:$0xff]   ;;  %v989_v17 = vld [vmem:[%s2192_s4 + $0x28] sm:$0xff] }
  0x1c   :  { %581 = vmatpush1.bf16.msra.mxu1 %v1493_v28  ;;  %270 = vmatprep.subr.bf16.mxu0 %v1494_v29  ;;  %v1565_v18 = vld [vmem:[%s2190_s1 + $0x224] ss:$8 sps:$4 sm:$0xff]   ;;  %v1904_v19 = vld [vmem:[%s2191_s0 + $0x30] ss:$8 sps:$4 sm:$0xff]   ;;  %v1563_v21 = vld [vmem:[%s2190_s1 + $0x220] ss:$8 sps:$4 sm:$0xff]  }
  0x1d   :  { %582 = vmatprep.subr.bf16.mxu1 %v1496_v30  ;;  %998 = vperm.xlu0 %1450, %v985_v8   ;;  %v29_v20 = vld [vmem:[%s2191_s0 + $0x40] sm:$0x11]  ;;  %v1568_v22 = vld [vmem:[%s2190_s1 + $0x234] ss:$8 sps:$4 sm:$0xff]   ;;  %v1566_v24 = vld [vmem:[%s2190_s1 + $0x230] ss:$8 sps:$4 sm:$0xff]  }
  0x1e   :  { %v1915_v23 = vcombine.high %v29_v20, %v29_v20  ;;  %v990_v25 = vld [vmem:[%s2192_s4 + $0x30] sm:$0xff]  ;;  %v991_v26 = vld [vmem:[%s2192_s4 + $0x38] sm:$0xff]  ;;  %v1574_v27 = vld [vmem:[%s2190_s1 + $0x244] ss:$8 sps:$4 sm:$0xff]   ;;  %v1935_v28 = vcombine.low %v29_v20, %v29_v20 }
  0x1f   :  { %271 = vmatpush1.bf16.msra.mxu0 %v1498_v31  ;;  %1014 = vperm.xlu1 %1451, %v989_v17   ;;  %v1572_v29 = vld [vmem:[%s2190_s1 + $0x240] ss:$8 sps:$4 sm:$0xff]   ;;  %v1577_v30 = vld [vmem:[%s2190_s1 + $0x254] ss:$8 sps:$4 sm:$0xff]   ;;  %v1575_v31 = vld [vmem:[%s2190_s1 + $0x250] ss:$8 sps:$4 sm:$0xff]  }
  0x20   :  { %583 = vmatpush1.bf16.msra.mxu1 %v1499_v32  ;;  %272 = vmatprep.subr.bf16.mxu0 %v1500_v33  ;;  %v335_v32 = vld [vmem:[%s2193_s3] sm:$0xff]  ;;  %v336_v33 = vld [vmem:[%s2193_s3 + $0x8] sm:$0xff] }
  0x21   :  { %584 = vmatprep.subr.bf16.mxu1 %v1502_v34  ;;  %1010 = vperm.xlu0 %1450, %v988_v16   ;;  %v1582_v34 = vld [vmem:[%s2190_s1 + $0x264] ss:$8 sps:$4 sm:$0xff]  }
  0x23   :  { %273 = vmatpush1.bf16.msra.mxu0 %v1504_v35  ;;  %1022 = vperm.xlu1 %1451, %v991_v26   ;;  %v1580_v35 = vld [vmem:[%s2190_s1 + $0x260] ss:$8 sps:$4 sm:$0xff]  }
  0x24   :  { %585 = vmatpush1.bf16.msra.mxu1 %v1505_v36  ;;  %274 = vmatprep.subr.bf16.mxu0 %v1506_v37  ;;  %v338_v36 = vld [vmem:[%s2193_s3 + $0x18] sm:$0xff]  ;;  %v337_v37 = vld [vmem:[%s2193_s3 + $0x10] sm:$0xff] }
  0x25   :  { %586 = vmatprep.subr.bf16.mxu1 %v1508_v38  ;;  %1018 = vperm.xlu0 %1450, %v990_v25   ;;  %v1585_v38 = vld [vmem:[%s2190_s1 + $0x274] ss:$8 sps:$4 sm:$0xff]  }
  0x27   :  { %275 = vmatpush1.bf16.msra.mxu0 %v1510_v39  ;;  %350 = vperm.xlu1 %1451, %v336_v33   ;;  %v1583_v39 = vld [vmem:[%s2190_s1 + $0x270] ss:$8 sps:$4 sm:$0xff]  }
  0x28   :  { %587 = vmatpush1.bf16.msra.mxu1 %v1511_v40  ;;  %276 = vmatprep.subr.bf16.mxu0 %v1512_v41  ;;  %v340_v40 = vld [vmem:[%s2193_s3 + $0x28] sm:$0xff]  ;;  %v339_v41 = vld [vmem:[%s2193_s3 + $0x20] sm:$0xff] }
  0x29   :  { %588 = vmatprep.subr.bf16.mxu1 %v1514_v42  ;;  %345 = vperm.xlu0 %1450, %v335_v32   ;;  %v1588_v42 = vld [vmem:[%s2190_s1 + $0x284] ss:$8 sps:$4 sm:$0xff]  }
  0x2b   :  { %277 = vmatpush1.bf16.msra.mxu0 %v1516_v44  ;;  %360 = vperm.xlu1 %1451, %v338_v36   ;;  %v342_v44 = vld [vmem:[%s2193_s3 + $0x38] sm:$0xff] }
  0x2c   :  { %589 = vmatpush1.bf16.msra.mxu1 %v1517_v45  ;;  %278 = vmatprep.subr.bf16.mxu0 %v1518_v46  ;;  %v341_v45 = vld [vmem:[%s2193_s3 + $0x30] sm:$0xff] }
  0x2d   :  { %590 = vmatprep.subr.bf16.mxu1 %v1520_v47  ;;  %355 = vperm.xlu0 %1450, %v337_v37   ;;  %v1591_v46 = vld [vmem:[%s2190_s1 + $0x294] ss:$8 sps:$4 sm:$0xff]   ;;  %v1589_v47 = vld [vmem:[%s2190_s1 + $0x290] ss:$8 sps:$4 sm:$0xff]  }
  0x2f   :  { %279 = vmatpush1.bf16.msra.mxu0 %v1522_v48  ;;  %370 = vperm.xlu1 %1451, %v340_v40  }
  0x30   :  { %591 = vmatpush1.bf16.msra.mxu1 %v1523_v49  ;;  %280 = vmatprep.subr.bf16.mxu0 %v1524_v50 }
  0x31   :  { %592 = vmatprep.subr.bf16.mxu1 %v1526_v51  ;;  %365 = vperm.xlu0 %1450, %v339_v41  }
  0x33   :  { %281 = vmatpush1.bf16.msra.mxu0 %v1528_v52  ;;  %380 = vperm.xlu1 %1451, %v342_v44  }
  0x34   :  { %593 = vmatpush1.bf16.msra.mxu1 %v1529_v53  ;;  %282 = vmatprep.subr.bf16.mxu0 %v1530_v54 }
  0x35   :  { %594 = vmatprep.subr.bf16.mxu1 %v1532_v55  ;;  %375 = vperm.xlu0 %1450, %v341_v45  }
  0x37   :  { %283 = vmatpush1.bf16.msra.mxu0 %v1534_v56 }
  0x38   :  { %595 = vmatpush1.bf16.msra.mxu1 %v1535_v57  ;;  %903 = vmatprep.subr.bf16.mxu0 %v1541_v58 }
  0x39   :  { %1421 = vmatprep.subr.bf16.mxu1 %v1541_v58 }
  0x3a   :  { %289 = vmatmul.mubr.bf16.vlgmr.msra.gmra.mrb[0].mxu0 %v1806_v59 }
  0x3b   :  { %601 = vmatmul.mubr.bf16.vlgmr.msra.gmra.mrb[0].mxu1 %v1806_v59  ;;  %904 = vmatpush1.bf16.msra.mxu0 %v1539_v60 }
  0x3c   :  { %1435 = vmatpush1.bf16.msra.mxu1 %v1539_v60  ;;  %905 = vmatprep.subr.bf16.mxu0 %v1544_v61 }
  0x3d   :  { %1422 = vmatprep.subr.bf16.mxu1 %v1544_v61  ;;  %1340 = vmatprep.mubr.msk.bf16.mxu1 %vm240_vm0, %v1817_v62 }
  0x3e   :  { %1279 = vmatprep.mubr.msk.bf16.mxu0 %vm240_vm0, %v1817_v62 }
  0x3f   :  { %906 = vmatpush1.bf16.msra.mxu0 %v1542_v63 }
  0x40   :  { %1436 = vmatpush1.bf16.msra.mxu1 %v1542_v63  ;;  %907 = vmatprep.subr.bf16.mxu0 %v1550_v0 }
  0x41   :  { %1423 = vmatprep.subr.bf16.mxu1 %v1550_v0 }
  0x42   :  { %299 = vmatmul.mubr.bf16.gmra.mrb[4].mxu0 %v1840_v3 }
  0x43   :  { %611 = vmatmul.mubr.bf16.gmra.mrb[4].mxu1 %v1840_v3  ;;  %908 = vmatpush1.bf16.msra.mxu0 %v1548_v4 }
  0x44   :  { %1437 = vmatpush1.bf16.msra.mxu1 %v1548_v4  ;;  %909 = vmatprep.subr.bf16.mxu0 %v1553_v5 }
  0x45   :  { %1424 = vmatprep.subr.bf16.mxu1 %v1553_v5  ;;  %1341 = vmatprep.mubr.msk.bf16.mxu1 %vm240_vm0, %v1851_v6 }
  0x46   :  { %1280 = vmatprep.mubr.msk.bf16.mxu0 %vm240_vm0, %v1851_v6 }
  0x47   :  { %910 = vmatpush1.bf16.msra.mxu0 %v1551_v7 }
  0x48   :  { %1438 = vmatpush1.bf16.msra.mxu1 %v1551_v7  ;;  %911 = vmatprep.subr.bf16.mxu0 %v1556_v10 }
  0x49   :  { %1425 = vmatprep.subr.bf16.mxu1 %v1556_v10 }
  0x4a   :  { %309 = vmatmul.mubr.bf16.gmra.mrb[8].mxu0 %v1874_v11 }
  0x4b   :  { %621 = vmatmul.mubr.bf16.gmra.mrb[8].mxu1 %v1874_v11  ;;  %912 = vmatpush1.bf16.msra.mxu0 %v1554_v12 }
  0x4c   :  { %1439 = vmatpush1.bf16.msra.mxu1 %v1554_v12  ;;  %913 = vmatprep.subr.bf16.mxu0 %v1559_v13 }
  0x4d   :  { %1426 = vmatprep.subr.bf16.mxu1 %v1559_v13  ;;  %1342 = vmatprep.mubr.msk.bf16.mxu1 %vm240_vm0, %v1569_v14 }
  0x4e   :  { %1281 = vmatprep.mubr.msk.bf16.mxu0 %vm240_vm0, %v1569_v14 }
  0x4f   :  { %914 = vmatpush1.bf16.msra.mxu0 %v1557_v15 }
  0x50   :  { %1440 = vmatpush1.bf16.msra.mxu1 %v1557_v15  ;;  %915 = vmatprep.subr.bf16.mxu0 %v1565_v18 }
  0x51   :  { %1427 = vmatprep.subr.bf16.mxu1 %v1565_v18 }
  0x52   :  { %319 = vmatmul.mubr.bf16.gmra.mrb[12].mxu0 %v1904_v19 }
  0x53   :  { %631 = vmatmul.mubr.bf16.gmra.mrb[12].mxu1 %v1904_v19  ;;  %916 = vmatpush1.bf16.msra.mxu0 %v1563_v21 }
  0x54   :  { %1441 = vmatpush1.bf16.msra.mxu1 %v1563_v21  ;;  %917 = vmatprep.subr.bf16.mxu0 %v1568_v22 }
  0x55   :  { %1428 = vmatprep.subr.bf16.mxu1 %v1568_v22  ;;  %1343 = vmatprep.mubr.msk.bf16.mxu1 %vm240_vm0, %v1915_v23 }
  0x56   :  { %1282 = vmatprep.mubr.msk.bf16.mxu0 %vm240_vm0, %v1915_v23 }
  0x57   :  { %918 = vmatpush1.bf16.msra.mxu0 %v1566_v24 }
  0x58   :  { %1442 = vmatpush1.bf16.msra.mxu1 %v1566_v24  ;;  %919 = vmatprep.subr.bf16.mxu0 %v1574_v27 }
  0x59   :  { %1429 = vmatprep.subr.bf16.mxu1 %v1574_v27 }
  0x5a   :  { %329 = vmatmul.mubr.bf16.gmra.mrb[16].mxu0 %v1935_v28 }
  0x5b   :  { %641 = vmatmul.mubr.bf16.gmra.mrb[16].mxu1 %v1935_v28  ;;  %920 = vmatpush1.bf16.msra.mxu0 %v1572_v29 }
  0x5c   :  { %1443 = vmatpush1.bf16.msra.mxu1 %v1572_v29  ;;  %921 = vmatprep.subr.bf16.mxu0 %v1577_v30 }
  0x5d   :  { %1430 = vmatprep.subr.bf16.mxu1 %v1577_v30  ;;  %1400 = vmatprep.mubr.msk.bf16.mxu0 %vm240_vm0, %v1752_v43  ;;  %v1586_v43 = vld [vmem:[%s2190_s1 + $0x280] ss:$8 sps:$4 sm:$0xff]  }
  0x5e   :  { %1403 = vmatprep.mubr.msk.bf16.mxu1 %vm240_vm0, %v1569_v14 }
  0x5f   :  { %922 = vmatpush1.bf16.msra.mxu0 %v1575_v31 }
  0x60   :  { %1444 = vmatpush1.bf16.msra.mxu1 %v1575_v31  ;;  %923 = vmatprep.subr.bf16.mxu0 %v1582_v34 }
  0x61   :  { %1431 = vmatprep.subr.bf16.mxu1 %v1582_v34 }
  0x63   :  { %924 = vmatpush1.bf16.msra.mxu0 %v1580_v35 }
  0x64   :  { %1445 = vmatpush1.bf16.msra.mxu1 %v1580_v35  ;;  %925 = vmatprep.subr.bf16.mxu0 %v1585_v38 }
  0x65   :  { %1432 = vmatprep.subr.bf16.mxu1 %v1585_v38 }
  0x67   :  { %926 = vmatpush1.bf16.msra.mxu0 %v1583_v39 }
  0x68   :  { %1446 = vmatpush1.bf16.msra.mxu1 %v1583_v39  ;;  %927 = vmatprep.subr.bf16.mxu0 %v1588_v42 }
  0x69   :  { %1433 = vmatprep.subr.bf16.mxu1 %v1588_v42 }
  0x6b   :  { %928 = vmatpush1.bf16.msra.mxu0 %v1586_v43 }
  0x6c   :  { %1447 = vmatpush1.bf16.msra.mxu1 %v1586_v43  ;;  %929 = vmatprep.subr.bf16.mxu0 %v1591_v46 }
  0x6d   :  { %1434 = vmatprep.subr.bf16.mxu1 %v1591_v46 }
  0x6f   :  { %930 = vmatpush1.bf16.msra.mxu0 %v1589_v47 }
  0x70   :  { %1448 = vmatpush1.bf16.msra.mxu1 %v1589_v47 }
  0x72   :  { %936 = vmatmul.mubr.bf16.vlgmr.msra.gmra.mrb[20].mxu0 %v1806_v59 }
  0x73   :  { %966 = vmatmul.mubr.bf16.vlgmr.msra.gmra.mrb[20].mxu1 %v1904_v19  ;;  %1401 = vmatprep.mubr.msk.bf16.mxu0 %vm240_vm0, %v1817_v62 }
  0x74   :  { %1404 = vmatprep.mubr.msk.bf16.mxu1 %vm240_vm0, %v1915_v23 }
  0x7a   :  { %946 = vmatmul.mubr.bf16.gmra.mrb[24].mxu0 %v1840_v3 }
  0x7b   :  { %976 = vmatmul.mubr.bf16.gmra.mrb[24].mxu1 %v1935_v28  ;;  %1402 = vmatprep.mubr.msk.bf16.mxu0 %vm240_vm0, %v1851_v6 }
  0x82   :  { %956 = vmatmul.mubr.bf16.gmra.mrb[28].mxu0 %v1874_v11 }
  0x96   :  { %v2012_v49 = vpop.permute.xlu1 %1002 }
  0x98   :  { %v2010_v48 = vpop.permute.xlu0 %994 }
  0x9a   :  { %v2016_v51 = vpop.permute.xlu1 %1006 }
  0x9c   :  { %v2014_v50 = vpop.permute.xlu0 %998 }
  0x9e   :  { %v2020_v53 = vpop.permute.xlu1 %1014 }
  0xa0   :  { %v2018_v52 = vpop.permute.xlu0 %1010 }
  0xa2   :  { %v2024_v55 = vpop.permute.xlu1 %1022 }
  0xa4   :  { %v2022_v54 = vpop.permute.xlu0 %1018 }
  0xa6   :  { %v351_v10 = vpop.permute.xlu1 %350 }
  0xa8   :  { %v346_v56 = vpop.permute.xlu0 %345 }
  0xaa   :  { %v361_v33 = vpop.permute.xlu1 %360 }
  0xac   :  { %v356_v12 = vpop.permute.xlu0 %355 }
  0xb0   :  { %v366_v38 = vpop.permute.xlu0 %365 }
 0x10d   :  { %v290_v57 = vpop.f32.mrb[0].mxu0 }
 0x10e   :  { %v602_v58 = vpop.f32.mrb[0].mxu1  ;;  %v292_v60 = vpop.f32.mrb[1].mxu0  ;;  %v383_v4 = vmul.f32 %v346_v56, %v290_v57 }
 0x10f   :  { %v668_v59 = vrot.slane %v602_v58, 1  ;;  %v604_v61 = vpop.f32.mrb[1].mxu1  ;;  %v294_v63 = vpop.f32.mrb[2].mxu0  ;;  %v384_v6 = vmul.f32 %v346_v56, %v292_v60 }
 0x110   :  { %v671_v62 = vrot.slane %v604_v61, 1  ;;  %v606_v0 = vpop.f32.mrb[2].mxu1  ;;  %v296_v2 = vpop.f32.mrb[3].mxu0  ;;  %v385_v18 = vmul.f32 %v351_v10, %v294_v63 }
 0x111   :  { %v669_v1 = vrot.slane %v606_v0, 1  ;;  %v608_v3 = vpop.f32.mrb[3].mxu1  ;;  %v386_v23 = vmul.f32 %v351_v10, %v296_v2 }
 0x112   :  { %v672_v5 = vrot.slane %v608_v3, 1  ;;  %v371_v3 = vpop.permute.xlu1 %370 }
 0x113   :  { %v670_v7 = vsel %vm667_vm1, %v668_v59, %v669_v1 }
 0x114   :  { %v2027_v8 = vadd.f32 %v670_v7, %v383_v4  ;;  %v673_v9 = vsel %vm667_vm1, %v671_v62, %v672_v5 }
 0x115   :  { %v2030_v11 = vadd.f32 %v673_v9, %v384_v6  ;;  %v300_v14 = vpop.f32.mrb[4].mxu0  ;;  %v376_v9 = vpop.permute.xlu0 %375 }
 0x116   :  { %v612_v13 = vpop.f32.mrb[4].mxu1  ;;  %v302_v17 = vpop.f32.mrb[5].mxu0  ;;  %v387_v22 = vmul.f32 %v356_v12, %v300_v14 }
 0x117   :  { %v674_v15 = vrot.slane %v612_v13, 1  ;;  %v614_v16 = vpop.f32.mrb[5].mxu1  ;;  %v304_v21 = vpop.f32.mrb[6].mxu0  ;;  %v388_v27 = vmul.f32 %v356_v12, %v302_v17 }
 0x118   :  { %v676_v19 = vrot.slane %v614_v16, 1  ;;  %v616_v20 = vpop.f32.mrb[6].mxu1  ;;  %v306_v28 = vpop.f32.mrb[7].mxu0  ;;  %v389_v40 = vmul.f32 %v361_v33, %v304_v21 }
 0x119   :  { %v675_v24 = vsel %vm667_vm1, %v669_v1, %v674_v15  ;;  %v678_v25 = vrot.slane %v616_v20, 1  ;;  %v618_v26 = vpop.f32.mrb[7].mxu1  ;;  %v390_v44 = vmul.f32 %v361_v33, %v306_v28  ;;  %v381_v33 = vpop.permute.xlu1 %380 }
 0x11a   :  { %v2033_v29 = vadd.f32 %v675_v24, %v385_v18  ;;  %v677_v30 = vsel %vm667_vm1, %v672_v5, %v676_v19  ;;  %v680_v31 = vrot.slane %v618_v26, 1 }
 0x11b   :  { %v2036_v32 = vadd.f32 %v677_v30, %v386_v23  ;;  %v679_v34 = vsel %vm667_vm1, %v674_v15, %v678_v25 }
 0x11c   :  { %v681_v35 = vsel %vm667_vm1, %v676_v19, %v680_v31  ;;  %v2040_v36 = vadd.f32 %v679_v34, %v387_v22 }
 0x11d   :  { %v2042_v37 = vadd.f32 %v681_v35, %v388_v27  ;;  %v310_v41 = vpop.f32.mrb[8].mxu0 }
 0x11e   :  { %v622_v39 = vpop.f32.mrb[8].mxu1  ;;  %v312_v45 = vpop.f32.mrb[9].mxu0  ;;  %v391_v57 = vmul.f32 %v366_v38, %v310_v41 }
 0x11f   :  { %v682_v42 = vrot.slane %v622_v39, 1  ;;  %v624_v43 = vpop.f32.mrb[9].mxu1  ;;  %v314_v56 = vpop.f32.mrb[10].mxu0  ;;  %v392_v61 = vmul.f32 %v366_v38, %v312_v45 }
 0x120   :  { %v684_v46 = vrot.slane %v624_v43, 1  ;;  %v626_v47 = vpop.f32.mrb[10].mxu1  ;;  %v316_v62 = vpop.f32.mrb[11].mxu0  ;;  %v393_v12 = vmul.f32 %v371_v3, %v314_v56 }
 0x121   :  { %v683_v58 = vsel %vm667_vm1, %v678_v25, %v682_v42  ;;  %v686_v59 = vrot.slane %v626_v47, 1  ;;  %v628_v60 = vpop.f32.mrb[11].mxu1  ;;  %v394_v16 = vmul.f32 %v371_v3, %v316_v62  ;;  %v1034_v3 = vrot.slane %v2020_v53, 6 }
 0x122   :  { %v2045_v63 = vadd.f32 %v683_v58, %v389_v40  ;;  %v685_v0 = vsel %vm667_vm1, %v680_v31, %v684_v46  ;;  %v688_v1 = vrot.slane %v628_v60, 1 }
 0x123   :  { %v2048_v2 = vadd.f32 %v685_v0, %v390_v44  ;;  %v687_v4 = vsel %vm667_vm1, %v682_v42, %v686_v59 }
 0x124   :  { %v689_v5 = vsel %vm667_vm1, %v684_v46, %v688_v1  ;;  %v2052_v6 = vadd.f32 %v687_v4, %v391_v57  ;;  %v1036_v4 = vrot.slane %v2022_v54, 6 }
 0x125   :  { %v2054_v7 = vadd.f32 %v689_v5, %v392_v61  ;;  %v320_v13 = vpop.f32.mrb[12].mxu0 }
 0x126   :  { %v632_v10 = vpop.f32.mrb[12].mxu1  ;;  %v322_v17 = vpop.f32.mrb[13].mxu0  ;;  %v395_v21 = vmul.f32 %v376_v9, %v320_v13  ;;  %v1038_v13 = vrot.slane %v2024_v55, 6 }
 0x127   :  { %v690_v14 = vrot.slane %v632_v10, 1  ;;  %v634_v15 = vpop.f32.mrb[13].mxu1  ;;  %v324_v20 = vpop.f32.mrb[14].mxu0  ;;  %v396_v25 = vmul.f32 %v376_v9, %v322_v17  ;;  %v1025_v9 = vrot.slane %v2010_v48, 6  ;;  %v1026_v10 = vrot.slane %v2014_v50, 6 }
 0x128   :  { %v692_v18 = vrot.slane %v634_v15, 1  ;;  %v636_v19 = vpop.f32.mrb[14].mxu1  ;;  %v326_v26 = vpop.f32.mrb[15].mxu0  ;;  %v397_v41 = vmul.f32 %v381_v33, %v324_v20  ;;  %v1037_v17 = vsel %vm1024_vm2, %v1034_v3, %v1036_v4 }
 0x129   :  { %v691_v22 = vsel %vm667_vm1, %v686_v59, %v690_v14  ;;  %v694_v23 = vrot.slane %v636_v19, 1  ;;  %v638_v24 = vpop.f32.mrb[15].mxu1  ;;  %v398_v45 = vmul.f32 %v381_v33, %v326_v26  ;;  %v1027_v50 = vsel %vm1024_vm2, %v1025_v9, %v1026_v10 }
 0x12a   :  { %v2057_v27 = vadd.f32 %v691_v22, %v393_v12  ;;  %v693_v28 = vsel %vm667_vm1, %v688_v1, %v692_v18  ;;  %v696_v30 = vrot.slane %v638_v24, 1  ;;  %v1154_v1 = vlaneseq }
 0x12b   :  { %v2060_v31 = vadd.f32 %v693_v28, %v394_v16  ;;  %v695_v34 = vsel %vm667_vm1, %v690_v14, %v694_v23  ;;  %v1028_v12 = vrot.slane %v2012_v49, 6  ;;  %v1030_v14 = vrot.slane %v2016_v51, 6  ;;  %v1152_v49 = vld [vmem:[%s2194_s2] sm:$0x3] }
 0x12c   :  { %v697_v35 = vsel %vm667_vm1, %v692_v18, %v696_v30  ;;  %v2064_v38 = vadd.f32 %v695_v34, %v395_v21  ;;  %v1155_v5 = vshrl.u32 %v1154_v1, 7  ;;  %v1039_v24 = vsel %vm1024_vm2, %v1036_v4, %v1038_v13 }
 0x12d   :  { %v2066_v39 = vadd.f32 %v697_v35, %v396_v25  ;;  %v330_v42 = vpop.f32.mrb[16].mxu0  ;;  %v1029_v25 = vsel %vm1024_vm2, %v1026_v10, %v1028_v12  ;;  %v1031_v35 = vsel %vm1024_vm2, %v1028_v12, %v1030_v14 }
 0x12e   :  { %v642_v40 = vpop.f32.mrb[16].mxu1  ;;  %v331_v46 = vpop.f32.mrb[17].mxu0  ;;  %v1156_v18 = vsub.s32 0, %v1155_v5  ;;  %v1160_v33 = vsub.s32 1, %v1155_v5 }
 0x12f   :  { %v698_v43 = vrot.slane %v642_v40, 1  ;;  %v644_v44 = vpop.f32.mrb[17].mxu1  ;;  %v332_v56 = vpop.f32.mrb[18].mxu0 }
 0x130   :  { %v700_v47 = vrot.slane %v644_v44, 1  ;;  %v646_v57 = vpop.f32.mrb[18].mxu1  ;;  %v333_v59 = vpop.f32.mrb[19].mxu0  ;;  %v2097_v40 = vrot.slane %v1152_v49, %v1156_v18  ;;  %v2106_v1 = vrot.slane %v1152_v49, %v1160_v33 }
 0x131   :  { %v699_v58 = vsel %vm667_vm1, %v694_v23, %v698_v43  ;;  %v647_v60 = vpop.f32.mrb[19].mxu1  ;;  %v1032_v59 = vrot.slane %v2018_v52, 6 }
 0x132   :  { %v2069_v61 = vadd.f32 %v699_v58, %v397_v41  ;;  %v701_v62 = vsel %vm667_vm1, %v696_v30, %v700_v47 }
 0x133   :  { %v2072_v0 = vadd.f32 %v701_v62, %v398_v45 }
 0x145   :  { %v937_v15 = vpop.f32.mrb[20].mxu0 }
 0x146   :  { %v967_v16 = vpop.f32.mrb[20].mxu1  ;;  %v1049_v54 = vmul.f32 %v1025_v9, %v937_v15  ;;  %v939_v48 = vpop.f32.mrb[21].mxu0 }
 0x147   :  { %v2084_v19 = vmul.f32 %v1037_v17, %v967_v16  ;;  %v969_v20 = vpop.f32.mrb[21].mxu1  ;;  %v1050_v55 = vmul.f32 %v1025_v9, %v939_v48  ;;  %v941_v22 = vpop.f32.mrb[22].mxu0 }
 0x148   :  { %v2090_v21 = vmul.f32 %v1037_v17, %v969_v20  ;;  %v971_v23 = vpop.f32.mrb[22].mxu1  ;;  %v1051_v26 = vmul.f32 %v1027_v50, %v941_v22  ;;  %v943_v30 = vpop.f32.mrb[23].mxu0  ;;  %v1086_v43 = vrot.slane %v1049_v54, 2 }
 0x149   :  { %v1063_v28 = vmul.f32 %v1039_v24, %v971_v23  ;;  %v973_v34 = vpop.f32.mrb[23].mxu1  ;;  %v1052_v41 = vmul.f32 %v1027_v50, %v943_v30  ;;  %v1108_v44 = vrot.slane %v2084_v19, 2  ;;  %v1089_v47 = vrot.slane %v1050_v55, 2 }
 0x14a   :  { %v1064_v42 = vmul.f32 %v1039_v24, %v973_v34  ;;  %v1087_v45 = vrot.slane %v1051_v26, 2  ;;  %v1110_v56 = vrot.slane %v2090_v21, 2 }
 0x14b   :  { %v1112_v46 = vrot.slane %v1063_v28, 2  ;;  %v1090_v57 = vrot.slane %v1052_v41, 2 }
 0x14c   :  { %v1114_v58 = vrot.slane %v1064_v42, 2  ;;  %v1088_v60 = vsel %vm1085_vm3, %v1086_v43, %v1087_v45 }
 0x14d   :  { %v1113_v62 = vsel %vm1085_vm3, %v1108_v44, %v1112_v46  ;;  %v1136_v4 = vadd.f32 %v1088_v60, %v2027_v8  ;;  %v1091_v9 = vsel %vm1085_vm3, %v1089_v47, %v1090_v57  ;;  %v947_v12 = vpop.f32.mrb[24].mxu0 }
 0x14e   :  { %v1148_v5 = vadd.f32 %v1113_v62, %v2064_v38  ;;  %v1115_v10 = vsel %vm1085_vm3, %v1110_v56, %v1114_v58  ;;  %v977_v52 = vpop.f32.mrb[24].mxu1  ;;  %v1137_v15 = vadd.f32 %v1091_v9, %v2030_v11  ;;  %v1053_v17 = vmul.f32 %v1029_v25, %v947_v12  ;;  %v949_v54 = vpop.f32.mrb[25].mxu0 }
 0x14f   :  { %v1149_v16 = vadd.f32 %v1115_v10, %v2066_v39  ;;  %v1065_v18 = vmul.f32 %v1038_v13, %v977_v52  ;;  %v979_v48 = vpop.f32.mrb[25].mxu1  ;;  %v1164_v8 = vadd.f32 %v2097_v40, %v1136_v4  ;;  %v1054_v20 = vmul.f32 %v1029_v25, %v949_v54  ;;  %v951_v49 = vpop.f32.mrb[26].mxu0 }
 0x150   :  { %v1176_v38 = vadd.f32 %v2097_v40, %v1148_v5  ;;  %v1066_v50 = vmul.f32 %v1038_v13, %v979_v48  ;;  %v981_v55 = vpop.f32.mrb[26].mxu1  ;;  %v1165_v22 = vadd.f32 %v2106_v1, %v1137_v15  ;;  %v1092_v24 = vrot.slane %v1053_v17, 2  ;;  %v953_v26 = vpop.f32.mrb[27].mxu0 }
 0x151   :  { %v1177_v23 = vadd.f32 %v2106_v1, %v1149_v16  ;;  %v1116_v11 = vrot.slane %v1065_v18, 2  ;;  %v982_v39 = vpop.f32.mrb[27].mxu1  ;;  %v1094_v28 = vrot.slane %v1054_v20, 2  ;;  %v1055_v33 = vmul.f32 %v1031_v35, %v951_v49 }
 0x152   :  { %v1118_v30 = vrot.slane %v1066_v50, 2  ;;  %v1056_v34 = vmul.f32 %v1031_v35, %v953_v26  ;;  %v1413_v41 = vpack.c.bf16 %v1165_v22, %v1164_v8  ;;  %v1093_v43 = vsel %vm1085_vm3, %v1087_v45, %v1092_v24 }
 0x153   :  { %v1419_v42 = vpack.c.bf16 %v1177_v23, %v1176_v38  ;;  %v1117_v13 = vsel %vm1085_vm3, %v1112_v46, %v1116_v11  ;;  %v1138_v25 = vadd.f32 %v1093_v43, %v2033_v29  ;;  %v1095_v60 = vsel %vm1085_vm3, %v1090_v57, %v1094_v28 }
 0x154   :  { %v1150_v47 = vadd.f32 %v1117_v13, %v2069_v61  ;;  %v1119_v62 = vsel %vm1085_vm3, %v1114_v58, %v1118_v30  ;;  %1228 = vst [vmem:[%s2195_s5] sm:$0xff] %v1413_v41  ;;  %v1139_v35 = vadd.f32 %v1095_v60, %v2036_v32  ;;  %v1096_v46 = vrot.slane %v1055_v33, 2 }
 0x155   :  { %1234 = vst [vmem:[%s2195_s5 + $0x30] sm:$0xff] %v1419_v42  ;;  %v1151_v45 = vadd.f32 %v1119_v62, %v2072_v0  ;;  %v1098_v29 = vrot.slane %v1056_v34, 2  ;;  %v1166_v61 = vadd.f32 %v2097_v40, %v1138_v25  ;;  %v957_v4 = vpop.f32.mrb[28].mxu0  ;;  %v1033_v58 = vsel %vm1024_vm2, %v1030_v14, %v1032_v59 }
 0x156   :  { %v1178_v57 = vadd.f32 %v2097_v40, %v1150_v47  ;;  %v1035_v5 = vsel %vm1024_vm2, %v1032_v59, %v1034_v3  ;;  %v1167_v9 = vadd.f32 %v2106_v1, %v1139_v35  ;;  %v1097_v0 = vsel %vm1085_vm3, %v1092_v24, %v1096_v46  ;;  %v959_v12 = vpop.f32.mrb[29].mxu0 }
 0x157   :  { %v1179_v32 = vadd.f32 %v2106_v1, %v1151_v45  ;;  %v1099_v10 = vsel %vm1085_vm3, %v1094_v28, %v1098_v29  ;;  %v1140_v52 = vadd.f32 %v1097_v0, %v2040_v36  ;;  %v1057_v51 = vmul.f32 %v1033_v58, %v957_v4  ;;  %v961_v14 = vpop.f32.mrb[30].mxu0 }
 0x158   :  { %v1141_v15 = vadd.f32 %v1099_v10, %v2042_v37  ;;  %v1058_v16 = vmul.f32 %v1033_v58, %v959_v12  ;;  %v1414_v17 = vpack.c.bf16 %v1167_v9, %v1166_v61  ;;  %v1059_v18 = vmul.f32 %v1035_v5, %v961_v14  ;;  %v963_v3 = vpop.f32.mrb[31].mxu0 }
 0x159   :  { %v1420_v53 = vpack.c.bf16 %v1179_v32, %v1178_v57  ;;  %v1168_v59 = vadd.f32 %v2097_v40, %v1140_v52  ;;  %v1100_v48 = vrot.slane %v1057_v51, 2  ;;  %v1060_v37 = vmul.f32 %v1035_v5, %v963_v3 }
 0x15a   :  { %v1169_v54 = vadd.f32 %v2106_v1, %v1141_v15  ;;  %v1102_v8 = vrot.slane %v1058_v16, 2  ;;  %1229 = vst [vmem:[%s2195_s5 + $0x8] sm:$0xff] %v1414_v17  ;;  %v1104_v36 = vrot.slane %v1059_v18, 2 }
 0x15b   :  { %1235 = vst [vmem:[%s2195_s5 + $0x38] sm:$0xff] %v1420_v53  ;;  %v1101_v20 = vsel %vm1085_vm3, %v1096_v46, %v1100_v48  ;;  %v1106_v26 = vrot.slane %v1060_v37, 2 }
 0x15c   :  { %v1415_v38 = vpack.c.bf16 %v1169_v54, %v1168_v59  ;;  %v1103_v50 = vsel %vm1085_vm3, %v1098_v29, %v1102_v8  ;;  %v1142_v49 = vadd.f32 %v1101_v20, %v2045_v63  ;;  %v1105_v22 = vsel %vm1085_vm3, %v1100_v48, %v1104_v36 }
 0x15d   :  { %v1143_v55 = vadd.f32 %v1103_v50, %v2048_v2  ;;  %v1109_v23 = vsel %vm1085_vm3, %v1104_v36, %v1108_v44  ;;  %v1144_v24 = vadd.f32 %v1105_v22, %v2052_v6  ;;  %v1107_v28 = vsel %vm1085_vm3, %v1102_v8, %v1106_v26 }
 0x15e   :  { %1230 = vst [vmem:[%s2195_s5 + $0x10] sm:$0xff] %v1415_v38  ;;  %v1146_v11 = vadd.f32 %v1109_v23, %v2057_v27  ;;  %v1170_v39 = vadd.f32 %v2097_v40, %v1142_v49  ;;  %v1111_v19 = vsel %vm1085_vm3, %v1106_v26, %v1110_v56  ;;  %v1145_v6 = vadd.f32 %v1107_v28, %v2054_v7 }
 0x15f   :  { %v1171_v63 = vadd.f32 %v2106_v1, %v1143_v55  ;;  %v1172_v2 = vadd.f32 %v2097_v40, %v1144_v24  ;;  %v1147_v27 = vadd.f32 %v1111_v19, %v2060_v31 }
 0x160   :  { %v1174_v30 = vadd.f32 %v2097_v40, %v1146_v11  ;;  %v1173_v33 = vadd.f32 %v2106_v1, %v1145_v6 }
 0x161   :  { %v1416_v44 = vpack.c.bf16 %v1171_v63, %v1170_v39  ;;  %v1175_v34 = vadd.f32 %v2106_v1, %v1147_v27 }
 0x162   :  { %v1417_v41 = vpack.c.bf16 %v1173_v33, %v1172_v2 }
 0x163   :  { %1231 = vst [vmem:[%s2195_s5 + $0x18] sm:$0xff] %v1416_v44  ;;  %v1418_v42 = vpack.c.bf16 %v1175_v34, %v1174_v30 }
 0x164   :  { %1232 = vst [vmem:[%s2195_s5 + $0x20] sm:$0xff] %v1417_v41 }
 0x165   :  { %1233 = vst [vmem:[%s2195_s5 + $0x28] sm:$0xff] %v1418_v42 }

// kernel: inception_c.5
= control target key start
LH: loop header
LB: loop body
LE: loop exit
PB: predicated region body
PF: predicated region fallthrough
CT: control target
= control target key end

     0   :  { %vm2475_vm0 = vcmask 1043456   ;;  %vm2476_vm1 = vcmask 523268   ;;  %s7208_s1 = inlined_call_operand.vmem [shape: bf16[1920,192], index: 1, kind: input, shape index: {}]   ;;  %s7209_s0 = inlined_call_operand.vmem [shape: bf16[64,1920], index: 0, kind: input, shape index: {}]   ;;  %s7210_s3 = inlined_call_operand.vmem [shape: bf16[1920,128], index: 3, kind: input, shape index: {}]   ;;  %s7211_s4 = inlined_call_operand.vmem [shape: f32[1,128], index: 4, kind: input, shape index: {}]   ;;  %s7212_s2 = inlined_call_operand.vmem [shape: f32[1,192], index: 2, kind: input, shape index: {}]   ;;  %s7213_s5 = inlined_call_operand.vmem [shape: bf16[64,192], index: 5, kind: output, shape index: {0}]   ;;  %s7214_s6 = inlined_call_operand.vmem [shape: bf16[64,128], index: 6, kind: output, shape index: {1}]  }
   0x1   :  { %v4958_v0 = vld [vmem:[%s7208_s1 + $0x4] ss:$8 sps:$4 sm:$0xff]   ;;  %v4962_v2 = vld [vmem:[%s7208_s1] ss:$8 sps:$4 sm:$0xff]   ;;  %v4964_v4 = vld [vmem:[%s7208_s1 + $0x14] ss:$8 sps:$4 sm:$0xff]  }
   0x2   :  { %v4960_v1 = vld [vmem:[%s7208_s1 + $0x204] ss:$8 sps:$4 sm:$0xff]   ;;  %1843 = vmatprep.subr.bf16.mxu1 %v4958_v0  ;;  %v4963_v3 = vld [vmem:[%s7208_s1 + $0x200] ss:$8 sps:$4 sm:$0xff]   ;;  %v4966_v5 = vld [vmem:[%s7208_s1 + $0x214] ss:$8 sps:$4 sm:$0xff]  }
   0x3   :  { %1989 = vmatprep.subr.bf16.mxu0 %v4960_v1  ;;  %1844 = vmatpush1.bf16.msra.mxu1 %v4962_v2  ;;  %v4968_v6 = vld [vmem:[%s7208_s1 + $0x10] ss:$8 sps:$4 sm:$0xff]   ;;  %v4970_v8 = vld [vmem:[%s7208_s1 + $0x24] ss:$8 sps:$4 sm:$0xff]   ;;  %v4974_v10 = vld [vmem:[%s7208_s1 + $0x20] ss:$8 sps:$4 sm:$0xff]  }
   0x4   :  { %1990 = vmatpush1.bf16.msra.mxu0 %v4963_v3  ;;  %1845 = vmatprep.subr.bf16.mxu1 %v4964_v4  ;;  %v4969_v7 = vld [vmem:[%s7208_s1 + $0x210] ss:$8 sps:$4 sm:$0xff]   ;;  %v4972_v9 = vld [vmem:[%s7208_s1 + $0x224] ss:$8 sps:$4 sm:$0xff]   ;;  %v4975_v11 = vld [vmem:[%s7208_s1 + $0x220] ss:$8 sps:$4 sm:$0xff]  }
   0x5   :  { %1991 = vmatprep.subr.bf16.mxu0 %v4966_v5  ;;  %v4976_v12 = vld [vmem:[%s7208_s1 + $0x34] ss:$8 sps:$4 sm:$0xff]   ;;  %v4980_v14 = vld [vmem:[%s7208_s1 + $0x30] ss:$8 sps:$4 sm:$0xff]   ;;  %v4982_v16 = vld [vmem:[%s7208_s1 + $0x44] ss:$8 sps:$4 sm:$0xff]  }
   0x6   :  { %v4978_v13 = vld [vmem:[%s7208_s1 + $0x234] ss:$8 sps:$4 sm:$0xff]   ;;  %v4981_v15 = vld [vmem:[%s7208_s1 + $0x230] ss:$8 sps:$4 sm:$0xff]   ;;  %v4984_v17 = vld [vmem:[%s7208_s1 + $0x244] ss:$8 sps:$4 sm:$0xff]  }
   0x7   :  { %1846 = vmatpush1.bf16.msra.mxu1 %v4968_v6  ;;  %v4986_v18 = vld [vmem:[%s7208_s1 + $0x40] ss:$8 sps:$4 sm:$0xff]   ;;  %v4988_v20 = vld [vmem:[%s7208_s1 + $0x54] ss:$8 sps:$4 sm:$0xff]   ;;  %v4992_v22 = vld [vmem:[%s7208_s1 + $0x50] ss:$8 sps:$4 sm:$0xff]  }
   0x8   :  { %1992 = vmatpush1.bf16.msra.mxu0 %v4969_v7  ;;  %1847 = vmatprep.subr.bf16.mxu1 %v4970_v8  ;;  %v4987_v19 = vld [vmem:[%s7208_s1 + $0x240] ss:$8 sps:$4 sm:$0xff]   ;;  %v4990_v21 = vld [vmem:[%s7208_s1 + $0x254] ss:$8 sps:$4 sm:$0xff]   ;;  %v4993_v23 = vld [vmem:[%s7208_s1 + $0x250] ss:$8 sps:$4 sm:$0xff]  }
   0x9   :  { %1993 = vmatprep.subr.bf16.mxu0 %v4972_v9  ;;  %v4994_v24 = vld [vmem:[%s7208_s1 + $0x64] ss:$8 sps:$4 sm:$0xff]   ;;  %v4998_v26 = vld [vmem:[%s7208_s1 + $0x60] ss:$8 sps:$4 sm:$0xff]   ;;  %v5000_v28 = vld [vmem:[%s7208_s1 + $0x74] ss:$8 sps:$4 sm:$0xff]  }
   0xa   :  { %v4996_v25 = vld [vmem:[%s7208_s1 + $0x264] ss:$8 sps:$4 sm:$0xff]   ;;  %v4999_v27 = vld [vmem:[%s7208_s1 + $0x260] ss:$8 sps:$4 sm:$0xff]   ;;  %v5002_v29 = vld [vmem:[%s7208_s1 + $0x274] ss:$8 sps:$4 sm:$0xff]  }
   0xb   :  { %1848 = vmatpush1.bf16.msra.mxu1 %v4974_v10  ;;  %v5004_v30 = vld [vmem:[%s7208_s1 + $0x70] ss:$8 sps:$4 sm:$0xff]   ;;  %v5006_v32 = vld [vmem:[%s7208_s1 + $0x84] ss:$8 sps:$4 sm:$0xff]   ;;  %v5010_v34 = vld [vmem:[%s7208_s1 + $0x80] ss:$8 sps:$4 sm:$0xff]  }
   0xc   :  { %1994 = vmatpush1.bf16.msra.mxu0 %v4975_v11  ;;  %1849 = vmatprep.subr.bf16.mxu1 %v4976_v12  ;;  %v5005_v31 = vld [vmem:[%s7208_s1 + $0x270] ss:$8 sps:$4 sm:$0xff]   ;;  %v5008_v33 = vld [vmem:[%s7208_s1 + $0x284] ss:$8 sps:$4 sm:$0xff]   ;;  %v5011_v35 = vld [vmem:[%s7208_s1 + $0x280] ss:$8 sps:$4 sm:$0xff]  }
   0xd   :  { %1995 = vmatprep.subr.bf16.mxu0 %v4978_v13  ;;  %v5012_v36 = vld [vmem:[%s7208_s1 + $0x94] ss:$8 sps:$4 sm:$0xff]   ;;  %v5016_v38 = vld [vmem:[%s7208_s1 + $0x90] ss:$8 sps:$4 sm:$0xff]   ;;  %v5018_v40 = vld [vmem:[%s7208_s1 + $0xa4] ss:$8 sps:$4 sm:$0xff]  }
   0xe   :  { %v5014_v37 = vld [vmem:[%s7208_s1 + $0x294] ss:$8 sps:$4 sm:$0xff]   ;;  %v5017_v39 = vld [vmem:[%s7208_s1 + $0x290] ss:$8 sps:$4 sm:$0xff]   ;;  %v5020_v41 = vld [vmem:[%s7208_s1 + $0x2a4] ss:$8 sps:$4 sm:$0xff]  }
   0xf   :  { %1850 = vmatpush1.bf16.msra.mxu1 %v4980_v14  ;;  %v5022_v42 = vld [vmem:[%s7208_s1 + $0xa0] ss:$8 sps:$4 sm:$0xff]   ;;  %v5024_v44 = vld [vmem:[%s7208_s1 + $0xb4] ss:$8 sps:$4 sm:$0xff]   ;;  %v5028_v46 = vld [vmem:[%s7208_s1 + $0xb0] ss:$8 sps:$4 sm:$0xff]  }
  0x10   :  { %1996 = vmatpush1.bf16.msra.mxu0 %v4981_v15  ;;  %1851 = vmatprep.subr.bf16.mxu1 %v4982_v16  ;;  %v5023_v43 = vld [vmem:[%s7208_s1 + $0x2a0] ss:$8 sps:$4 sm:$0xff]   ;;  %v5026_v45 = vld [vmem:[%s7208_s1 + $0x2b4] ss:$8 sps:$4 sm:$0xff]   ;;  %v5029_v47 = vld [vmem:[%s7208_s1 + $0x2b0] ss:$8 sps:$4 sm:$0xff]  }
  0x11   :  { %1997 = vmatprep.subr.bf16.mxu0 %v4984_v17  ;;  %v5726_v48 = vld [vmem:[%s7209_s0 + $0x4] ss:$60 sps:$4 sm:$0xff]   ;;  %v5062_v51 = vld [vmem:[%s7209_s0 + $0x14] ss:$60 sps:$4 sm:$0xff]   ;;  %vm7116_vm2 = vmor %vm2476_vm1, %vm2475_vm0 }
  0x12   :  { %v5030_v49 = vld [vmem:[%s7208_s1 + $0xc4] ss:$8 sps:$4 sm:$0xff]   ;;  %1875 = vmatprep.mubr.bf16.mxu1 %v5726_v48  ;;  %v5034_v52 = vld [vmem:[%s7208_s1 + $0xc0] ss:$8 sps:$4 sm:$0xff]   ;;  %v5036_v54 = vld [vmem:[%s7208_s1 + $0xd4] ss:$8 sps:$4 sm:$0xff]   ;;  %2021 = vmatprep.mubr.bf16.mxu0 %v5062_v51 }
  0x13   :  { %1852 = vmatpush1.bf16.msra.mxu1 %v4986_v18  ;;  %v5032_v50 = vld [vmem:[%s7208_s1 + $0x2c4] ss:$8 sps:$4 sm:$0xff]   ;;  %v5035_v53 = vld [vmem:[%s7208_s1 + $0x2c0] ss:$8 sps:$4 sm:$0xff]   ;;  %v5038_v55 = vld [vmem:[%s7208_s1 + $0x2d4] ss:$8 sps:$4 sm:$0xff]  }
  0x14   :  { %1998 = vmatpush1.bf16.msra.mxu0 %v4987_v19  ;;  %1853 = vmatprep.subr.bf16.mxu1 %v4988_v20  ;;  %v5040_v56 = vld [vmem:[%s7208_s1 + $0xd0] ss:$8 sps:$4 sm:$0xff]   ;;  %v5042_v58 = vld [vmem:[%s7208_s1 + $0xe4] ss:$8 sps:$4 sm:$0xff]   ;;  %v5046_v60 = vld [vmem:[%s7208_s1 + $0xe0] ss:$8 sps:$4 sm:$0xff]  }
  0x15   :  { %1999 = vmatprep.subr.bf16.mxu0 %v4990_v21  ;;  %v5041_v57 = vld [vmem:[%s7208_s1 + $0x2d0] ss:$8 sps:$4 sm:$0xff]   ;;  %v5044_v59 = vld [vmem:[%s7208_s1 + $0x2e4] ss:$8 sps:$4 sm:$0xff]   ;;  %v5047_v61 = vld [vmem:[%s7208_s1 + $0x2e0] ss:$8 sps:$4 sm:$0xff]  }
  0x16   :  { %v5048_v62 = vld [vmem:[%s7208_s1 + $0xf4] ss:$8 sps:$4 sm:$0xff]   ;;  %v5052_v0 = vld [vmem:[%s7208_s1 + $0xf0] ss:$8 sps:$4 sm:$0xff]   ;;  %v5059_v2 = vld [vmem:[%s7208_s1 + $0x104] ss:$8 sps:$4 sm:$0xff]  }
  0x17   :  { %1854 = vmatpush1.bf16.msra.mxu1 %v4992_v22  ;;  %v5050_v63 = vld [vmem:[%s7208_s1 + $0x2f4] ss:$8 sps:$4 sm:$0xff]   ;;  %v5053_v1 = vld [vmem:[%s7208_s1 + $0x2f0] ss:$8 sps:$4 sm:$0xff]   ;;  %v5065_v3 = vld [vmem:[%s7208_s1 + $0x304] ss:$8 sps:$4 sm:$0xff]  }
  0x18   :  { %2000 = vmatpush1.bf16.msra.mxu0 %v4993_v23  ;;  %1855 = vmatprep.subr.bf16.mxu1 %v4994_v24  ;;  %v5789_v4 = vld [vmem:[%s7209_s0] ss:$60 sps:$4 sm:$0xff]   ;;  %v5060_v6 = vld [vmem:[%s7209_s0 + $0x10] ss:$60 sps:$4 sm:$0xff]   ;;  %v5839_v19 = vld [vmem:[%s7209_s0 + $0x78] ss:$60 sps:$4 sm:$0xff]  }
  0x19   :  { %2001 = vmatprep.subr.bf16.mxu0 %v4996_v25  ;;  %v5057_v5 = vld [vmem:[%s7208_s1 + $0x100] ss:$8 sps:$4 sm:$0xff]   ;;  %v5068_v8 = vld [vmem:[%s7208_s1 + $0x114] ss:$8 sps:$4 sm:$0xff]   ;;  %v5066_v10 = vld [vmem:[%s7208_s1 + $0x110] ss:$8 sps:$4 sm:$0xff]  }
  0x1a   :  { %v5063_v7 = vld [vmem:[%s7208_s1 + $0x300] ss:$8 sps:$4 sm:$0xff]   ;;  %v5071_v9 = vld [vmem:[%s7208_s1 + $0x314] ss:$8 sps:$4 sm:$0xff]   ;;  %v5069_v11 = vld [vmem:[%s7208_s1 + $0x310] ss:$8 sps:$4 sm:$0xff]  }
  0x1b   :  { %1856 = vmatpush1.bf16.msra.mxu1 %v4998_v26  ;;  %v5074_v12 = vld [vmem:[%s7208_s1 + $0x124] ss:$8 sps:$4 sm:$0xff]   ;;  %v5072_v14 = vld [vmem:[%s7208_s1 + $0x120] ss:$8 sps:$4 sm:$0xff]   ;;  %v5080_v16 = vld [vmem:[%s7208_s1 + $0x134] ss:$8 sps:$4 sm:$0xff]  }
  0x1c   :  { %2002 = vmatpush1.bf16.msra.mxu0 %v4999_v27  ;;  %1857 = vmatprep.subr.bf16.mxu1 %v5000_v28  ;;  %v5077_v13 = vld [vmem:[%s7208_s1 + $0x324] ss:$8 sps:$4 sm:$0xff]   ;;  %v5075_v15 = vld [vmem:[%s7208_s1 + $0x320] ss:$8 sps:$4 sm:$0xff]   ;;  %v5083_v17 = vld [vmem:[%s7208_s1 + $0x334] ss:$8 sps:$4 sm:$0xff]  }
  0x1d   :  { %2003 = vmatprep.subr.bf16.mxu0 %v5002_v29  ;;  %v5834_v18 = vld [vmem:[%s7209_s0 + $0x7c] ss:$60 sps:$4 sm:$0xff]   ;;  %v5126_v22 = vld [vmem:[%s7209_s0 + $0x8c] ss:$60 sps:$4 sm:$0xff]  }
  0x1e   :  { %v5078_v20 = vld [vmem:[%s7208_s1 + $0x130] ss:$8 sps:$4 sm:$0xff]   ;;  %v5086_v23 = vld [vmem:[%s7208_s1 + $0x144] ss:$8 sps:$4 sm:$0xff]   ;;  %v5084_v26 = vld [vmem:[%s7208_s1 + $0x140] ss:$8 sps:$4 sm:$0xff]  }
  0x1f   :  { %1858 = vmatpush1.bf16.msra.mxu1 %v5004_v30  ;;  %v5081_v21 = vld [vmem:[%s7208_s1 + $0x330] ss:$8 sps:$4 sm:$0xff]   ;;  %v5089_v24 = vld [vmem:[%s7208_s1 + $0x344] ss:$8 sps:$4 sm:$0xff]   ;;  %v5087_v27 = vld [vmem:[%s7208_s1 + $0x340] ss:$8 sps:$4 sm:$0xff]  }
  0x20   :  { %2004 = vmatpush1.bf16.msra.mxu0 %v5005_v31  ;;  %1859 = vmatprep.subr.bf16.mxu1 %v5006_v32  ;;  %v5131_v25 = vld [vmem:[%s7209_s0 + $0x88] ss:$60 sps:$4 sm:$0xff]   ;;  %v5092_v28 = vld [vmem:[%s7208_s1 + $0x154] ss:$8 sps:$4 sm:$0xff]   ;;  %v5881_v31 = vld [vmem:[%s7209_s0 + $0xf0] ss:$60 sps:$4 sm:$0xff]  }
  0x21   :  { %2005 = vmatprep.subr.bf16.mxu0 %v5008_v33  ;;  %v5095_v29 = vld [vmem:[%s7208_s1 + $0x354] ss:$8 sps:$4 sm:$0xff]   ;;  %v5090_v32 = vld [vmem:[%s7208_s1 + $0x150] ss:$8 sps:$4 sm:$0xff]   ;;  %v5108_v51 = vld [vmem:[%s7208_s1 + $0x180] ss:$8 sps:$4 sm:$0xff]  }
  0x22   :  { %v5876_v30 = vld [vmem:[%s7209_s0 + $0xf4] ss:$60 sps:$4 sm:$0xff]  }
  0x23   :  { %1860 = vmatpush1.bf16.msra.mxu1 %v5010_v34  ;;  %v5093_v33 = vld [vmem:[%s7208_s1 + $0x350] ss:$8 sps:$4 sm:$0xff]   ;;  %v5144_v34 = vld [vmem:[%s7209_s0 + $0x104] ss:$60 sps:$4 sm:$0xff]  }
  0x24   :  { %2006 = vmatpush1.bf16.msra.mxu0 %v5011_v35  ;;  %1861 = vmatprep.subr.bf16.mxu1 %v5012_v36  ;;  %v5098_v35 = vld [vmem:[%s7208_s1 + $0x164] ss:$8 sps:$4 sm:$0xff]  }
  0x25   :  { %2007 = vmatprep.subr.bf16.mxu0 %v5014_v37  ;;  %v5101_v36 = vld [vmem:[%s7208_s1 + $0x364] ss:$8 sps:$4 sm:$0xff]   ;;  %v5149_v37 = vld [vmem:[%s7209_s0 + $0x100] ss:$60 sps:$4 sm:$0xff]  }
  0x27   :  { %1862 = vmatpush1.bf16.msra.mxu1 %v5016_v38  ;;  %v5096_v38 = vld [vmem:[%s7208_s1 + $0x160] ss:$8 sps:$4 sm:$0xff]  }
  0x28   :  { %2008 = vmatpush1.bf16.msra.mxu0 %v5017_v39  ;;  %1863 = vmatprep.subr.bf16.mxu1 %v5018_v40  ;;  %v5099_v39 = vld [vmem:[%s7208_s1 + $0x360] ss:$8 sps:$4 sm:$0xff]   ;;  %v5104_v40 = vld [vmem:[%s7208_s1 + $0x174] ss:$8 sps:$4 sm:$0xff]  }
  0x29   :  { %2009 = vmatprep.subr.bf16.mxu0 %v5020_v41  ;;  %v5107_v41 = vld [vmem:[%s7208_s1 + $0x374] ss:$8 sps:$4 sm:$0xff]  }
  0x2b   :  { %1864 = vmatpush1.bf16.msra.mxu1 %v5022_v42  ;;  %v5918_v42 = vld [vmem:[%s7209_s0 + $0x16c] ss:$60 sps:$4 sm:$0xff]  }
  0x2c   :  { %2010 = vmatpush1.bf16.msra.mxu0 %v5023_v43  ;;  %1865 = vmatprep.subr.bf16.mxu1 %v5024_v44  ;;  %v5923_v43 = vld [vmem:[%s7209_s0 + $0x168] ss:$60 sps:$4 sm:$0xff]   ;;  %v5102_v44 = vld [vmem:[%s7208_s1 + $0x170] ss:$8 sps:$4 sm:$0xff]  }
  0x2d   :  { %2011 = vmatprep.subr.bf16.mxu0 %v5026_v45  ;;  %v5105_v45 = vld [vmem:[%s7208_s1 + $0x370] ss:$8 sps:$4 sm:$0xff]  }
  0x2f   :  { %1866 = vmatpush1.bf16.msra.mxu1 %v5028_v46  ;;  %v5162_v46 = vld [vmem:[%s7209_s0 + $0x17c] ss:$60 sps:$4 sm:$0xff]  }
  0x30   :  { %2012 = vmatpush1.bf16.msra.mxu0 %v5029_v47  ;;  %1867 = vmatprep.subr.bf16.mxu1 %v5030_v49  ;;  %v5110_v47 = vld [vmem:[%s7208_s1 + $0x184] ss:$8 sps:$4 sm:$0xff]  }
  0x31   :  { %2013 = vmatprep.subr.bf16.mxu0 %v5032_v50  ;;  %v5113_v49 = vld [vmem:[%s7208_s1 + $0x384] ss:$8 sps:$4 sm:$0xff]   ;;  %v5167_v50 = vld [vmem:[%s7209_s0 + $0x178] ss:$60 sps:$4 sm:$0xff]  }
  0x33   :  { %1868 = vmatpush1.bf16.msra.mxu1 %v5034_v52  ;;  %v5111_v52 = vld [vmem:[%s7208_s1 + $0x380] ss:$8 sps:$4 sm:$0xff]  }
  0x34   :  { %2014 = vmatpush1.bf16.msra.mxu0 %v5035_v53  ;;  %1869 = vmatprep.subr.bf16.mxu1 %v5036_v54  ;;  %v5116_v53 = vld [vmem:[%s7208_s1 + $0x194] ss:$8 sps:$4 sm:$0xff]  }
  0x35   :  { %2015 = vmatprep.subr.bf16.mxu0 %v5038_v55  ;;  %v5119_v54 = vld [vmem:[%s7208_s1 + $0x394] ss:$8 sps:$4 sm:$0xff]   ;;  %v5960_v55 = vld [vmem:[%s7209_s0 + $0xc] ss:$60 sps:$4 sm:$0xff]  }
  0x37   :  { %1870 = vmatpush1.bf16.msra.mxu1 %v5040_v56  ;;  %v5179_v56 = vld [vmem:[%s7209_s0 + $0x1c] ss:$60 sps:$4 sm:$0xff]  }
  0x38   :  { %2016 = vmatpush1.bf16.msra.mxu0 %v5041_v57  ;;  %1871 = vmatprep.subr.bf16.mxu1 %v5042_v58  ;;  %v5114_v57 = vld [vmem:[%s7208_s1 + $0x190] ss:$8 sps:$4 sm:$0xff]  }
  0x39   :  { %2017 = vmatprep.subr.bf16.mxu0 %v5044_v59  ;;  %v5117_v58 = vld [vmem:[%s7208_s1 + $0x390] ss:$8 sps:$4 sm:$0xff]   ;;  %v5125_v59 = vld [vmem:[%s7208_s1 + $0x1a4] ss:$8 sps:$4 sm:$0xff]  }
  0x3b   :  { %1872 = vmatpush1.bf16.msra.mxu1 %v5046_v60  ;;  %v5130_v60 = vld [vmem:[%s7208_s1 + $0x3a4] ss:$8 sps:$4 sm:$0xff]  }
  0x3c   :  { %2018 = vmatpush1.bf16.msra.mxu0 %v5047_v61  ;;  %1873 = vmatprep.subr.bf16.mxu1 %v5048_v62  ;;  %v5123_v61 = vld [vmem:[%s7208_s1 + $0x1a0] ss:$8 sps:$4 sm:$0xff]  }
  0x3d   :  { %2019 = vmatprep.subr.bf16.mxu0 %v5050_v63  ;;  %v5128_v62 = vld [vmem:[%s7208_s1 + $0x3a0] ss:$8 sps:$4 sm:$0xff]   ;;  %v5134_v63 = vld [vmem:[%s7208_s1 + $0x1b4] ss:$8 sps:$4 sm:$0xff]  }
  0x3f   :  { %1874 = vmatpush1.bf16.msra.mxu1 %v5052_v0  ;;  %v5137_v0 = vld [vmem:[%s7208_s1 + $0x3b4] ss:$8 sps:$4 sm:$0xff]  }
  0x40   :  { %2020 = vmatpush1.bf16.msra.mxu0 %v5053_v1  ;;  %1916 = vmatprep.subr.bf16.mxu1 %v5059_v2  ;;  %v5132_v1 = vld [vmem:[%s7208_s1 + $0x1b0] ss:$8 sps:$4 sm:$0xff]  }
  0x41   :  { %2062 = vmatprep.subr.bf16.mxu0 %v5065_v3  ;;  %v5135_v2 = vld [vmem:[%s7208_s1 + $0x3b0] ss:$8 sps:$4 sm:$0xff]   ;;  %v5143_v3 = vld [vmem:[%s7208_s1 + $0x1c4] ss:$8 sps:$4 sm:$0xff]  }
  0x42   :  { %1876 = vmatmul.mubr.bf16.vlgmr.msra.gmra.mrb[0].mxu1 %v5789_v4 }
  0x43   :  { %2022 = vmatmul.mubr.bf16.vlgmr.msra.gmra.mrb[0].mxu0 %v5060_v6  ;;  %1917 = vmatpush1.bf16.msra.mxu1 %v5057_v5  ;;  %v5148_v5 = vld [vmem:[%s7208_s1 + $0x3c4] ss:$8 sps:$4 sm:$0xff]   ;;  %v5141_v6 = vld [vmem:[%s7208_s1 + $0x1c0] ss:$8 sps:$4 sm:$0xff]  }
  0x44   :  { %2063 = vmatpush1.bf16.msra.mxu0 %v5063_v7  ;;  %1918 = vmatprep.subr.bf16.mxu1 %v5068_v8  ;;  %v5146_v7 = vld [vmem:[%s7208_s1 + $0x3c0] ss:$8 sps:$4 sm:$0xff]   ;;  %v5152_v8 = vld [vmem:[%s7208_s1 + $0x1d4] ss:$8 sps:$4 sm:$0xff]  }
  0x45   :  { %2064 = vmatprep.subr.bf16.mxu0 %v5071_v9  ;;  %1885 = vmatprep.mubr.bf16.mxu1 %v5834_v18  ;;  %v5155_v9 = vld [vmem:[%s7208_s1 + $0x3d4] ss:$8 sps:$4 sm:$0xff]  }
  0x46   :  { %2031 = vmatprep.mubr.bf16.mxu0 %v5126_v22  ;;  %v5182_v22 = vld [vmem:[%s7208_s1 + $0x404] ss:$8 sps:$4 sm:$0xff]  }
  0x47   :  { %1919 = vmatpush1.bf16.msra.mxu1 %v5066_v10  ;;  %v5150_v10 = vld [vmem:[%s7208_s1 + $0x1d0] ss:$8 sps:$4 sm:$0xff]  }
  0x48   :  { %2065 = vmatpush1.bf16.msra.mxu0 %v5069_v11  ;;  %1920 = vmatprep.subr.bf16.mxu1 %v5074_v12  ;;  %v5153_v11 = vld [vmem:[%s7208_s1 + $0x3d0] ss:$8 sps:$4 sm:$0xff]   ;;  %v5161_v12 = vld [vmem:[%s7208_s1 + $0x1e4] ss:$8 sps:$4 sm:$0xff]  }
  0x49   :  { %2066 = vmatprep.subr.bf16.mxu0 %v5077_v13  ;;  %v5166_v13 = vld [vmem:[%s7208_s1 + $0x3e4] ss:$8 sps:$4 sm:$0xff]  }
  0x4a   :  { %1886 = vmatmul.mubr.bf16.gmra.mrb[4].mxu1 %v5839_v19 }
  0x4b   :  { %1921 = vmatpush1.bf16.msra.mxu1 %v5072_v14  ;;  %2032 = vmatmul.mubr.bf16.gmra.mrb[4].mxu0 %v5131_v25  ;;  %v5159_v14 = vld [vmem:[%s7208_s1 + $0x1e0] ss:$8 sps:$4 sm:$0xff]  }
  0x4c   :  { %2067 = vmatpush1.bf16.msra.mxu0 %v5075_v15  ;;  %1922 = vmatprep.subr.bf16.mxu1 %v5080_v16  ;;  %v5164_v15 = vld [vmem:[%s7208_s1 + $0x3e0] ss:$8 sps:$4 sm:$0xff]   ;;  %v5170_v16 = vld [vmem:[%s7208_s1 + $0x1f4] ss:$8 sps:$4 sm:$0xff]  }
  0x4d   :  { %2068 = vmatprep.subr.bf16.mxu0 %v5083_v17  ;;  %1895 = vmatprep.mubr.bf16.mxu1 %v5876_v30  ;;  %v5173_v17 = vld [vmem:[%s7208_s1 + $0x3f4] ss:$8 sps:$4 sm:$0xff]   ;;  %v5183_v25 = vld [vmem:[%s7210_s3 + $0x40] sm:$0xff]  }
  0x4e   :  { %2041 = vmatprep.mubr.bf16.mxu0 %v5144_v34  ;;  %v5189_v34 = vld [vmem:[%s7210_s3 + $0x8] sm:$0xff]  }
  0x4f   :  { %1923 = vmatpush1.bf16.msra.mxu1 %v5078_v20  ;;  %v5168_v20 = vld [vmem:[%s7208_s1 + $0x1f0] ss:$8 sps:$4 sm:$0xff]  }
  0x50   :  { %2069 = vmatpush1.bf16.msra.mxu0 %v5081_v21  ;;  %1924 = vmatprep.subr.bf16.mxu1 %v5086_v23  ;;  %v5171_v21 = vld [vmem:[%s7208_s1 + $0x3f0] ss:$8 sps:$4 sm:$0xff]   ;;  %v6050_v23 = vld [vmem:[%s7209_s0 + $0x8] ss:$60 sps:$4 sm:$0xff]  }
  0x51   :  { %2070 = vmatprep.subr.bf16.mxu0 %v5089_v24  ;;  %v5177_v24 = vld [vmem:[%s7209_s0 + $0x18] ss:$60 sps:$4 sm:$0xff]  }
  0x52   :  { %1896 = vmatmul.mubr.bf16.gmra.mrb[8].mxu1 %v5881_v31 }
  0x53   :  { %1925 = vmatpush1.bf16.msra.mxu1 %v5084_v26  ;;  %2042 = vmatmul.mubr.bf16.gmra.mrb[8].mxu0 %v5149_v37  ;;  %v5180_v26 = vld [vmem:[%s7208_s1 + $0x400] ss:$8 sps:$4 sm:$0xff]   ;;  %v5196_v37 = vld [vmem:[%s7210_s3 + $0x50] sm:$0xff]  }
  0x54   :  { %2071 = vmatpush1.bf16.msra.mxu0 %v5087_v27  ;;  %1926 = vmatprep.subr.bf16.mxu1 %v5092_v28  ;;  %v5184_v27 = vld [vmem:[%s7210_s3] sm:$0xff]   ;;  %v5187_v28 = vld [vmem:[%s7208_s1 + $0x414] ss:$8 sps:$4 sm:$0xff]  }
  0x55   :  { %2072 = vmatprep.subr.bf16.mxu0 %v5095_v29  ;;  %1905 = vmatprep.mubr.bf16.mxu1 %v5918_v42  ;;  %v5188_v29 = vld [vmem:[%s7210_s3 + $0x48] sm:$0xff]  }
  0x56   :  { %2051 = vmatprep.mubr.bf16.mxu0 %v5162_v46  ;;  %v5198_v46 = vld [vmem:[%s7208_s1 + $0x430] ss:$8 sps:$4 sm:$0xff]  }
  0x57   :  { %1927 = vmatpush1.bf16.msra.mxu1 %v5090_v32  ;;  %v6073_v32 = vld [vmem:[%s7209_s0 + $0x84] ss:$60 sps:$4 sm:$0xff]  }
  0x58   :  { %2073 = vmatpush1.bf16.msra.mxu0 %v5093_v33  ;;  %1928 = vmatprep.subr.bf16.mxu1 %v5098_v35  ;;  %v5185_v33 = vld [vmem:[%s7208_s1 + $0x410] ss:$8 sps:$4 sm:$0xff]   ;;  %v6085_v35 = vld [vmem:[%s7209_s0 + $0x80] ss:$60 sps:$4 sm:$0xff]  }
  0x59   :  { %2074 = vmatprep.subr.bf16.mxu0 %v5101_v36  ;;  %v5195_v36 = vld [vmem:[%s7208_s1 + $0x424] ss:$8 sps:$4 sm:$0xff]  }
  0x5a   :  { %1906 = vmatmul.mubr.bf16.gmra.mrb[12].mxu1 %v5923_v43 }
  0x5b   :  { %1929 = vmatpush1.bf16.msra.mxu1 %v5096_v38  ;;  %2052 = vmatmul.mubr.bf16.gmra.mrb[12].mxu0 %v5167_v50  ;;  %v5193_v38 = vld [vmem:[%s7208_s1 + $0x420] ss:$8 sps:$4 sm:$0xff]   ;;  %v6127_v50 = vld [vmem:[%s7209_s0 + $0xf8] ss:$60 sps:$4 sm:$0xff]  }
  0x5c   :  { %2075 = vmatpush1.bf16.msra.mxu0 %v5099_v39  ;;  %1930 = vmatprep.subr.bf16.mxu1 %v5104_v40  ;;  %v5197_v39 = vld [vmem:[%s7210_s3 + $0x10] sm:$0xff]  }
  0x5d   :  { %2076 = vmatprep.subr.bf16.mxu0 %v5107_v41  ;;  %1948 = vmatprep.mubr.bf16.mxu1 %v5960_v55  ;;  %v5200_v40 = vld [vmem:[%s7208_s1 + $0x434] ss:$8 sps:$4 sm:$0xff]  }
  0x5e   :  { %2094 = vmatprep.mubr.bf16.mxu0 %v5179_v56  ;;  %v5239_v41 = vld [vmem:[%s7209_s0 + $0x94] ss:$60 sps:$4 sm:$0xff]  }
  0x5f   :  { %1931 = vmatpush1.bf16.msra.mxu1 %v5102_v44  ;;  %v5201_v44 = vld [vmem:[%s7210_s3 + $0x58] sm:$0xff]  }
  0x60   :  { %2077 = vmatpush1.bf16.msra.mxu0 %v5105_v45  ;;  %1932 = vmatprep.subr.bf16.mxu1 %v5110_v47  ;;  %v6112_v45 = vld [vmem:[%s7209_s0 + $0xfc] ss:$60 sps:$4 sm:$0xff]   ;;  %v5245_v47 = vld [vmem:[%s7209_s0 + $0x90] ss:$60 sps:$4 sm:$0xff]  }
  0x61   :  { %2078 = vmatprep.subr.bf16.mxu0 %v5113_v49  ;;  %v5202_v49 = vld [vmem:[%s7210_s3 + $0x18] sm:$0xff]  }
  0x62   :  { %v5213_v56 = vld [vmem:[%s7208_s1 + $0x454] ss:$8 sps:$4 sm:$0xff]  }
  0x63   :  { %1933 = vmatpush1.bf16.msra.mxu1 %v5108_v51  ;;  %v5208_v51 = vld [vmem:[%s7208_s1 + $0x444] ss:$8 sps:$4 sm:$0xff]  }
  0x64   :  { %2079 = vmatpush1.bf16.msra.mxu0 %v5111_v52  ;;  %1934 = vmatprep.subr.bf16.mxu1 %v5116_v53  ;;  %v5209_v52 = vld [vmem:[%s7210_s3 + $0x60] sm:$0xff]  }
  0x65   :  { %2080 = vmatprep.subr.bf16.mxu0 %v5119_v54  ;;  %v5206_v53 = vld [vmem:[%s7208_s1 + $0x440] ss:$8 sps:$4 sm:$0xff]  }
  0x66   :  { %v5210_v54 = vld [vmem:[%s7210_s3 + $0x20] sm:$0xff]  }
  0x67   :  { %1935 = vmatpush1.bf16.msra.mxu1 %v5114_v57  ;;  %v5252_v57 = vld [vmem:[%s7209_s0 + $0x10c] ss:$60 sps:$4 sm:$0xff]  }
  0x68   :  { %2081 = vmatpush1.bf16.msra.mxu0 %v5117_v58  ;;  %1936 = vmatprep.subr.bf16.mxu1 %v5125_v59  ;;  %v5214_v58 = vld [vmem:[%s7210_s3 + $0x68] sm:$0xff]   ;;  %v6154_v59 = vld [vmem:[%s7209_s0 + $0x174] ss:$60 sps:$4 sm:$0xff]  }
  0x69   :  { %2082 = vmatprep.subr.bf16.mxu0 %v5130_v60  ;;  %v5211_v60 = vld [vmem:[%s7208_s1 + $0x450] ss:$8 sps:$4 sm:$0xff]  }
  0x6b   :  { %1937 = vmatpush1.bf16.msra.mxu1 %v5123_v61  ;;  %v5258_v61 = vld [vmem:[%s7209_s0 + $0x108] ss:$60 sps:$4 sm:$0xff]  }
  0x6c   :  { %2083 = vmatpush1.bf16.msra.mxu0 %v5128_v62  ;;  %1938 = vmatprep.subr.bf16.mxu1 %v5134_v63  ;;  %v5215_v62 = vld [vmem:[%s7210_s3 + $0x28] sm:$0xff]  }
  0x6d   :  { %2084 = vmatprep.subr.bf16.mxu0 %v5137_v0  ;;  %v6169_v63 = vld [vmem:[%s7209_s0 + $0x170] ss:$60 sps:$4 sm:$0xff]  }
  0x6e   :  { %v5221_v0 = vld [vmem:[%s7208_s1 + $0x464] ss:$8 sps:$4 sm:$0xff]  }
  0x6f   :  { %1939 = vmatpush1.bf16.msra.mxu1 %v5132_v1  ;;  %v5222_v1 = vld [vmem:[%s7210_s3 + $0x70] sm:$0xff]  }
  0x70   :  { %2085 = vmatpush1.bf16.msra.mxu0 %v5135_v2  ;;  %1940 = vmatprep.subr.bf16.mxu1 %v5143_v3  ;;  %v5219_v2 = vld [vmem:[%s7208_s1 + $0x460] ss:$8 sps:$4 sm:$0xff]   ;;  %v5223_v3 = vld [vmem:[%s7210_s3 + $0x30] sm:$0xff]  }
  0x71   :  { %2086 = vmatprep.subr.bf16.mxu0 %v5148_v5  ;;  %v5226_v5 = vld [vmem:[%s7208_s1 + $0x474] ss:$8 sps:$4 sm:$0xff]  }
  0x73   :  { %1941 = vmatpush1.bf16.msra.mxu1 %v5141_v6  ;;  %v5265_v6 = vld [vmem:[%s7209_s0 + $0x184] ss:$60 sps:$4 sm:$0xff]  }
  0x74   :  { %2087 = vmatpush1.bf16.msra.mxu0 %v5146_v7  ;;  %1942 = vmatprep.subr.bf16.mxu1 %v5152_v8  ;;  %v5227_v7 = vld [vmem:[%s7210_s3 + $0x78] sm:$0xff]  }
  0x75   :  { %2088 = vmatprep.subr.bf16.mxu0 %v5155_v9  ;;  %v5224_v8 = vld [vmem:[%s7208_s1 + $0x470] ss:$8 sps:$4 sm:$0xff]   ;;  %v5271_v9 = vld [vmem:[%s7209_s0 + $0x180] ss:$60 sps:$4 sm:$0xff]  }
  0x77   :  { %1943 = vmatpush1.bf16.msra.mxu1 %v5150_v10  ;;  %v5228_v10 = vld [vmem:[%s7210_s3 + $0x38] sm:$0xff]  }
  0x78   :  { %2089 = vmatpush1.bf16.msra.mxu0 %v5153_v11  ;;  %1944 = vmatprep.subr.bf16.mxu1 %v5161_v12  ;;  %v5231_v11 = vld [vmem:[%s7208_s1 + $0x484] ss:$8 sps:$4 sm:$0xff]  }
  0x79   :  { %2090 = vmatprep.subr.bf16.mxu0 %v5166_v13  ;;  %v5232_v12 = vld [vmem:[%s7210_s3 + $0xc0] sm:$0xff]  }
  0x7a   :  { %v5229_v13 = vld [vmem:[%s7208_s1 + $0x480] ss:$8 sps:$4 sm:$0xff]  }
  0x7b   :  { %1945 = vmatpush1.bf16.msra.mxu1 %v5159_v14  ;;  %v5233_v14 = vld [vmem:[%s7210_s3 + $0x80] sm:$0xff]  }
  0x7c   :  { %2091 = vmatpush1.bf16.msra.mxu0 %v5164_v15  ;;  %1946 = vmatprep.subr.bf16.mxu1 %v5170_v16  ;;  %v5236_v15 = vld [vmem:[%s7208_s1 + $0x494] ss:$8 sps:$4 sm:$0xff]   ;;  %v5237_v16 = vld [vmem:[%s7210_s3 + $0xc8] sm:$0xff]  }
  0x7d   :  { %2092 = vmatprep.subr.bf16.mxu0 %v5173_v17  ;;  %v5234_v17 = vld [vmem:[%s7208_s1 + $0x490] ss:$8 sps:$4 sm:$0xff]  }
  0x7f   :  { %1947 = vmatpush1.bf16.msra.mxu1 %v5168_v20  ;;  %v5238_v20 = vld [vmem:[%s7210_s3 + $0x88] sm:$0xff]  }
  0x80   :  { %2093 = vmatpush1.bf16.msra.mxu0 %v5171_v21  ;;  %4497 = vmatprep.subr.bf16.mxu1 %v5183_v25  ;;  %v5243_v21 = vld [vmem:[%s7208_s1 + $0x4a4] ss:$8 sps:$4 sm:$0xff]   ;;  %v5249_v25 = vld [vmem:[%s7208_s1 + $0x4b4] ss:$8 sps:$4 sm:$0xff]  }
  0x81   :  { %2135 = vmatprep.subr.bf16.mxu0 %v5182_v22  ;;  %v5241_v22 = vld [vmem:[%s7208_s1 + $0x4a0] ss:$8 sps:$4 sm:$0xff]  }
  0x82   :  { %1949 = vmatmul.mubr.bf16.vlgmr.msra.gmra.mrb[0].mxu1 %v6050_v23 }
  0x83   :  { %2095 = vmatmul.mubr.bf16.vlgmr.msra.gmra.mrb[0].mxu0 %v5177_v24  ;;  %4498 = vmatpush3.bf16.msra.mxu1 %v5184_v27  ;;  %v5246_v24 = vld [vmem:[%s7210_s3 + $0x90] sm:$0xff]   ;;  %v5251_v27 = vld [vmem:[%s7210_s3 + $0x98] sm:$0xff]  }
  0x84   :  { %2136 = vmatpush1.bf16.msra.mxu0 %v5180_v26  ;;  %4499 = vmatprep.subr.bf16.mxu1 %v5188_v29  ;;  %v5247_v26 = vld [vmem:[%s7208_s1 + $0x4b0] ss:$8 sps:$4 sm:$0xff]   ;;  %v5254_v29 = vld [vmem:[%s7208_s1 + $0x4c0] ss:$8 sps:$4 sm:$0xff]  }
  0x85   :  { %2137 = vmatprep.subr.bf16.mxu0 %v5187_v28  ;;  %1958 = vmatprep.mubr.bf16.mxu1 %v6073_v32  ;;  %v5256_v28 = vld [vmem:[%s7208_s1 + $0x4c4] ss:$8 sps:$4 sm:$0xff]  }
  0x86   :  { %2104 = vmatprep.mubr.bf16.mxu0 %v5239_v41  ;;  %v5275_v41 = vld [vmem:[%s7208_s1 + $0x4f4] ss:$8 sps:$4 sm:$0xff]  }
  0x87   :  { %4500 = vmatpush3.bf16.msra.mxu1 %v5189_v34  ;;  %v5262_v34 = vld [vmem:[%s7208_s1 + $0x4d4] ss:$8 sps:$4 sm:$0xff]  }
  0x88   :  { %2138 = vmatpush1.bf16.msra.mxu0 %v5185_v33  ;;  %4501 = vmatprep.subr.bf16.mxu1 %v5196_v37  ;;  %v5259_v33 = vld [vmem:[%s7210_s3 + $0xa0] sm:$0xff]   ;;  %v5264_v37 = vld [vmem:[%s7210_s3 + $0xa8] sm:$0xff]  }
  0x89   :  { %2139 = vmatprep.subr.bf16.mxu0 %v5195_v36  ;;  %v5260_v36 = vld [vmem:[%s7208_s1 + $0x4d0] ss:$8 sps:$4 sm:$0xff]  }
  0x8a   :  { %1959 = vmatmul.mubr.bf16.gmra.mrb[4].mxu1 %v6085_v35 }
  0x8b   :  { %4502 = vmatpush3.bf16.msra.mxu1 %v5197_v39  ;;  %1968 = vmatprep.mubr.bf16.mxu1 %v6112_v45  ;;  %v5270_v39 = vld [vmem:[%s7210_s3 + $0xf0] sm:$0xff]  }
  0x8c   :  { %2140 = vmatpush1.bf16.msra.mxu0 %v5193_v38  ;;  %4503 = vmatprep.subr.bf16.mxu1 %v5201_v44  ;;  %v5269_v38 = vld [vmem:[%s7208_s1 + $0x4e4] ss:$8 sps:$4 sm:$0xff]   ;;  %v5273_v44 = vld [vmem:[%s7208_s1 + $0x4f0] ss:$8 sps:$4 sm:$0xff]  }
  0x8d   :  { %2141 = vmatprep.subr.bf16.mxu0 %v5200_v40  ;;  %2105 = vmatmul.mubr.bf16.gmra.mrb[4].mxu0 %v5245_v47  ;;  %v5272_v40 = vld [vmem:[%s7210_s3 + $0xb0] sm:$0xff]   ;;  %v5283_v47 = vld [vmem:[%s7208_s1 + $0x504] ss:$8 sps:$4 sm:$0xff]  }
  0x8e   :  { %2114 = vmatprep.mubr.bf16.mxu0 %v5252_v57  ;;  %v5290_v57 = vld [vmem:[%s7210_s3 + $0x108] sm:$0xff]  }
  0x8f   :  { %4504 = vmatpush3.bf16.msra.mxu1 %v5202_v49  ;;  %v5284_v49 = vld [vmem:[%s7210_s3 + $0x140] sm:$0xff]  }
  0x90   :  { %2142 = vmatpush1.bf16.msra.mxu0 %v5198_v46  ;;  %4505 = vmatprep.subr.bf16.mxu1 %v5209_v52  ;;  %v5277_v46 = vld [vmem:[%s7210_s3 + $0xb8] sm:$0xff]   ;;  %v5285_v52 = vld [vmem:[%s7210_s3 + $0x100] sm:$0xff]  }
  0x91   :  { %2143 = vmatprep.subr.bf16.mxu0 %v5208_v51  ;;  %v5281_v51 = vld [vmem:[%s7208_s1 + $0x500] ss:$8 sps:$4 sm:$0xff]  }
  0x92   :  { %1969 = vmatmul.mubr.bf16.gmra.mrb[8].mxu1 %v6127_v50 }
  0x93   :  { %4506 = vmatpush3.bf16.msra.mxu1 %v5210_v54  ;;  %1978 = vmatprep.mubr.bf16.mxu1 %v6154_v59  ;;  %v5286_v54 = vld [vmem:[%s7208_s1 + $0x510] ss:$8 sps:$4 sm:$0xff]  }
  0x94   :  { %2144 = vmatpush1.bf16.msra.mxu0 %v5206_v53  ;;  %4507 = vmatprep.subr.bf16.mxu1 %v5214_v58  ;;  %v5288_v53 = vld [vmem:[%s7208_s1 + $0x514] ss:$8 sps:$4 sm:$0xff]   ;;  %v5293_v58 = vld [vmem:[%s7208_s1 + $0x524] ss:$8 sps:$4 sm:$0xff]  }
  0x95   :  { %2145 = vmatprep.subr.bf16.mxu0 %v5213_v56  ;;  %2115 = vmatmul.mubr.bf16.gmra.mrb[8].mxu0 %v5258_v61  ;;  %v6342_v56 = vld [vmem:[%s7209_s0 + $0x9c] ss:$60 sps:$4 sm:$0xff]  }
  0x96   :  { %2124 = vmatprep.mubr.bf16.mxu0 %v5265_v6  ;;  %v6361_v61 = vld [vmem:[%s7209_s0 + $0x98] ss:$60 sps:$4 sm:$0xff]   ;;  %v5301_v6 = vld [vmem:[%s7208_s1 + $0x540] ss:$8 sps:$4 sm:$0xff]  }
  0x97   :  { %4508 = vmatpush3.bf16.msra.mxu1 %v5215_v62  ;;  %v5295_v62 = vld [vmem:[%s7210_s3 + $0x110] sm:$0xff]  }
  0x98   :  { %2146 = vmatpush1.bf16.msra.mxu0 %v5211_v60  ;;  %4509 = vmatprep.subr.bf16.mxu1 %v5222_v1  ;;  %v5291_v60 = vld [vmem:[%s7208_s1 + $0x520] ss:$8 sps:$4 sm:$0xff]   ;;  %v5296_v1 = vld [vmem:[%s7208_s1 + $0x530] ss:$8 sps:$4 sm:$0xff]  }
  0x99   :  { %2147 = vmatprep.subr.bf16.mxu0 %v5221_v0  ;;  %v5299_v0 = vld [vmem:[%s7210_s3 + $0x158] sm:$0xff]  }
  0x9a   :  { %1979 = vmatmul.mubr.bf16.gmra.mrb[12].mxu1 %v6169_v63 }
  0x9b   :  { %4510 = vmatpush3.bf16.msra.mxu1 %v5223_v3  ;;  %3485 = vmatprep.mubr.bf16.mxu1 %v5726_v48  ;;  %v5280_v48 = vld [vmem:[%s7209_s0 + $0x24] ss:$60 sps:$4 sm:$0xff]   ;;  %v5300_v3 = vld [vmem:[%s7210_s3 + $0x118] sm:$0xff]  }
  0x9c   :  { %2148 = vmatpush1.bf16.msra.mxu0 %v5219_v2  ;;  %4511 = vmatprep.subr.bf16.mxu1 %v5227_v7  ;;  %v6380_v2 = vld [vmem:[%s7209_s0 + $0x114] ss:$60 sps:$4 sm:$0xff]  }
  0x9d   :  { %2149 = vmatprep.subr.bf16.mxu0 %v5226_v5  ;;  %2125 = vmatmul.mubr.bf16.gmra.mrb[12].mxu0 %v5271_v9  ;;  %v5303_v5 = vld [vmem:[%s7208_s1 + $0x544] ss:$8 sps:$4 sm:$0xff]  }
  0x9e   :  { %2167 = vmatprep.mubr.bf16.mxu0 %v5280_v48  ;;  %v6399_v7 = vld [vmem:[%s7209_s0 + $0x110] ss:$60 sps:$4 sm:$0xff]   ;;  %v5319_v48 = vld [vmem:[%s7210_s3 + $0x178] sm:$0xff]  }
  0x9f   :  { %4512 = vmatpush3.bf16.msra.mxu1 %v5228_v10  ;;  %v5309_v9 = vld [vmem:[%s7210_s3 + $0x168] sm:$0xff]   ;;  %v5306_v10 = vld [vmem:[%s7208_s1 + $0x550] ss:$8 sps:$4 sm:$0xff]  }
  0xa0   :  { %2150 = vmatpush1.bf16.msra.mxu0 %v5224_v8  ;;  %4537 = vmatprep.subr.bf16.mxu1 %v5232_v12  ;;  %v5305_v8 = vld [vmem:[%s7210_s3 + $0x120] sm:$0xff]   ;;  %v5310_v12 = vld [vmem:[%s7210_s3 + $0x128] sm:$0xff]  }
  0xa1   :  { %2151 = vmatprep.subr.bf16.mxu0 %v5231_v11  ;;  %v6418_v11 = vld [vmem:[%s7209_s0 + $0x18c] ss:$60 sps:$4 sm:$0xff]  }
  0xa2   :  { %3486 = vmatmul.mubr.bf16.vlgmr.msra.gmra.mrb[16].mxu1 %v5789_v4  ;;  %v5244_v4 = vld [vmem:[%s7210_s3 + $0xd0] sm:$0xff]  }
  0xa3   :  { %4538 = vmatpush3.bf16.msra.mxu1 %v5233_v14  ;;  %3493 = vmatprep.mubr.bf16.mxu1 %v5834_v18  ;;  %v5250_v18 = vld [vmem:[%s7210_s3 + $0xd8] sm:$0xff]   ;;  %v5311_v14 = vld [vmem:[%s7208_s1 + $0x560] ss:$8 sps:$4 sm:$0xff]  }
  0xa4   :  { %2152 = vmatpush1.bf16.msra.mxu0 %v5229_v13  ;;  %4539 = vmatprep.subr.bf16.mxu1 %v5237_v16  ;;  %v5313_v13 = vld [vmem:[%s7208_s1 + $0x564] ss:$8 sps:$4 sm:$0xff]   ;;  %v5315_v16 = vld [vmem:[%s7210_s3 + $0x130] sm:$0xff]  }
  0xa5   :  { %2153 = vmatprep.subr.bf16.mxu0 %v5236_v15  ;;  %v6437_v15 = vld [vmem:[%s7209_s0 + $0x188] ss:$60 sps:$4 sm:$0xff]  }
  0xa7   :  { %4540 = vmatpush3.bf16.msra.mxu1 %v5238_v20  ;;  %v5320_v20 = vld [vmem:[%s7210_s3 + $0x138] sm:$0xff]  }
  0xa8   :  { %2154 = vmatpush1.bf16.msra.mxu0 %v5234_v17  ;;  %4541 = vmatprep.subr.bf16.mxu1 %v5244_v4  ;;  %v5316_v17 = vld [vmem:[%s7208_s1 + $0x570] ss:$8 sps:$4 sm:$0xff]   ;;  %v5323_v4 = vld [vmem:[%s7208_s1 + $0x584] ss:$8 sps:$4 sm:$0xff]  }
  0xa9   :  { %2155 = vmatprep.subr.bf16.mxu0 %v5243_v21  ;;  %v6459_v21 = vld [vmem:[%s7209_s0 + $0x2c] ss:$60 sps:$4 sm:$0xff]  }
  0xaa   :  { %3494 = vmatmul.mubr.bf16.gmra.mrb[20].mxu1 %v5839_v19  ;;  %v5257_v19 = vld [vmem:[%s7210_s3 + $0xe0] sm:$0xff]  }
  0xab   :  { %4542 = vmatpush3.bf16.msra.mxu1 %v5246_v24  ;;  %3501 = vmatprep.mubr.bf16.mxu1 %v5876_v30  ;;  %v5263_v30 = vld [vmem:[%s7210_s3 + $0xe8] sm:$0xff]  }
  0xac   :  { %2156 = vmatpush1.bf16.msra.mxu0 %v5241_v22  ;;  %4543 = vmatprep.subr.bf16.mxu1 %v5250_v18  ;;  %v5526_v22 = vld [vmem:[%s7209_s0 + $0x14] ss:$60 sps:$4 sm:$0xff]   ;;  %v5321_v24 = vld [vmem:[%s7208_s1 + $0x580] ss:$8 sps:$4 sm:$0xff]  }
  0xad   :  { %2157 = vmatprep.subr.bf16.mxu0 %v5249_v25  ;;  %v5325_v25 = vld [vmem:[%s7210_s3 + $0x180] sm:$0xff]   ;;  %v5328_v18 = vld [vmem:[%s7208_s1 + $0x594] ss:$8 sps:$4 sm:$0xff]  }
  0xaf   :  { %4544 = vmatpush3.bf16.msra.mxu1 %v5251_v27  ;;  %v5527_v27 = vld [vmem:[%s7209_s0 + $0x10] ss:$60 sps:$4 sm:$0xff]  }
  0xb0   :  { %2158 = vmatpush1.bf16.msra.mxu0 %v5247_v26  ;;  %4545 = vmatprep.subr.bf16.mxu1 %v5257_v19  ;;  %v5329_v26 = vld [vmem:[%s7210_s3 + $0x1c8] sm:$0xff]  }
  0xb1   :  { %2159 = vmatprep.subr.bf16.mxu0 %v5256_v28  ;;  %v5326_v28 = vld [vmem:[%s7208_s1 + $0x590] ss:$8 sps:$4 sm:$0xff]   ;;  %v5330_v19 = vld [vmem:[%s7210_s3 + $0x188] sm:$0xff]  }
  0xb2   :  { %3502 = vmatmul.mubr.bf16.gmra.mrb[24].mxu1 %v5881_v31  ;;  %v5267_v31 = vld [vmem:[%s7208_s1 + $0x4e0] ss:$8 sps:$4 sm:$0xff]  }
  0xb3   :  { %4546 = vmatpush3.bf16.msra.mxu1 %v5259_v33  ;;  %3509 = vmatprep.mubr.bf16.mxu1 %v5918_v42  ;;  %v5276_v42 = vld [vmem:[%s7210_s3 + $0xf8] sm:$0xff]   ;;  %v5336_v33 = vld [vmem:[%s7210_s3 + $0x1d0] sm:$0xff]  }
  0xb4   :  { %2160 = vmatpush1.bf16.msra.mxu0 %v5254_v29  ;;  %4547 = vmatprep.subr.bf16.mxu1 %v5263_v30  ;;  %v5335_v29 = vld [vmem:[%s7208_s1 + $0x5a4] ss:$8 sps:$4 sm:$0xff]   ;;  %v5333_v30 = vld [vmem:[%s7208_s1 + $0x5a0] ss:$8 sps:$4 sm:$0xff]  }
  0xb5   :  { %2161 = vmatprep.subr.bf16.mxu0 %v5262_v34  ;;  %v5528_v34 = vld [vmem:[%s7209_s0 + $0x8c] ss:$60 sps:$4 sm:$0xff]  }
  0xb7   :  { %4548 = vmatpush3.bf16.msra.mxu1 %v5264_v37  ;;  %v5341_v37 = vld [vmem:[%s7208_s1 + $0x5b4] ss:$8 sps:$4 sm:$0xff]  }
  0xb8   :  { %2162 = vmatpush1.bf16.msra.mxu0 %v5260_v36  ;;  %4549 = vmatprep.subr.bf16.mxu1 %v5270_v39  ;;  %v5338_v36 = vld [vmem:[%s7210_s3 + $0x190] sm:$0xff]   ;;  %v5529_v39 = vld [vmem:[%s7209_s0 + $0x88] ss:$60 sps:$4 sm:$0xff]  }
  0xb9   :  { %2163 = vmatprep.subr.bf16.mxu0 %v5269_v38  ;;  %v5342_v38 = vld [vmem:[%s7210_s3 + $0x1d8] sm:$0xff]  }
  0xba   :  { %3510 = vmatmul.mubr.bf16.gmra.mrb[28].mxu1 %v5923_v43  ;;  %v6320_v43 = vld [vmem:[%s7209_s0 + $0x20] ss:$60 sps:$4 sm:$0xff]  }
  0xbb   :  { %4550 = vmatpush3.bf16.msra.mxu1 %v5272_v40  ;;  %3550 = vmatprep.mubr.bf16.mxu1 %v5960_v55  ;;  %v5289_v55 = vld [vmem:[%s7210_s3 + $0x148] sm:$0xff]   ;;  %v5343_v40 = vld [vmem:[%s7210_s3 + $0x198] sm:$0xff]  }
  0xbc   :  { %2164 = vmatpush1.bf16.msra.mxu0 %v5267_v31  ;;  %4551 = vmatprep.subr.bf16.mxu1 %v5276_v42  ;;  %v5339_v31 = vld [vmem:[%s7208_s1 + $0x5b0] ss:$8 sps:$4 sm:$0xff]   ;;  %v5349_v42 = vld [vmem:[%s7210_s3 + $0x1e0] sm:$0xff]  }
  0xbd   :  { %2165 = vmatprep.subr.bf16.mxu0 %v5275_v41  ;;  %v5348_v41 = vld [vmem:[%s7208_s1 + $0x5c4] ss:$8 sps:$4 sm:$0xff]  }
  0xbf   :  { %4552 = vmatpush3.bf16.msra.mxu1 %v5277_v46  ;;  %v5346_v46 = vld [vmem:[%s7208_s1 + $0x5c0] ss:$8 sps:$4 sm:$0xff]  }
  0xc0   :  { %2166 = vmatpush1.bf16.msra.mxu0 %v5273_v44  ;;  %4577 = vmatprep.subr.bf16.mxu1 %v5284_v49  ;;  %v5530_v44 = vld [vmem:[%s7209_s0 + $0x104] ss:$60 sps:$4 sm:$0xff]   ;;  %v5354_v49 = vld [vmem:[%s7208_s1 + $0x5d4] ss:$8 sps:$4 sm:$0xff]  }
  0xc1   :  { %2208 = vmatprep.subr.bf16.mxu0 %v5283_v47  ;;  %v5351_v47 = vld [vmem:[%s7210_s3 + $0x1a0] sm:$0xff]  }
  0xc2   :  { %3551 = vmatmul.mubr.bf16.vlgmr.msra.gmra.mrb[32].mxu1 %v6050_v23  ;;  %v5294_v23 = vld [vmem:[%s7210_s3 + $0x150] sm:$0xff]  }
  0xc3   :  { %2168 = vmatmul.mubr.bf16.vlgmr.msra.gmra.mrb[0].mxu0 %v6320_v43  ;;  %4578 = vmatpush3.bf16.msra.mxu1 %v5285_v52  ;;  %v5531_v52 = vld [vmem:[%s7209_s0 + $0x100] ss:$60 sps:$4 sm:$0xff]  }
  0xc4   :  { %2209 = vmatpush1.bf16.msra.mxu0 %v5281_v51  ;;  %4579 = vmatprep.subr.bf16.mxu1 %v5289_v55  ;;  %v5355_v51 = vld [vmem:[%s7210_s3 + $0x1e8] sm:$0xff]  }
  0xc5   :  { %2210 = vmatprep.subr.bf16.mxu0 %v5288_v53  ;;  %3558 = vmatprep.mubr.bf16.mxu1 %v6073_v32  ;;  %v5298_v32 = vld [vmem:[%s7208_s1 + $0x534] ss:$8 sps:$4 sm:$0xff]   ;;  %v5352_v53 = vld [vmem:[%s7208_s1 + $0x5d0] ss:$8 sps:$4 sm:$0xff]   ;;  %v5356_v55 = vld [vmem:[%s7210_s3 + $0x1a8] sm:$0xff]  }
  0xc6   :  { %2177 = vmatprep.mubr.bf16.mxu0 %v6342_v56 }
  0xc7   :  { %4580 = vmatpush3.bf16.msra.mxu1 %v5290_v57  ;;  %v5362_v57 = vld [vmem:[%s7210_s3 + $0x1f0] sm:$0xff]  }
  0xc8   :  { %2211 = vmatpush1.bf16.msra.mxu0 %v5286_v54  ;;  %4581 = vmatprep.subr.bf16.mxu1 %v5294_v23  ;;  %v5361_v54 = vld [vmem:[%s7208_s1 + $0x5e4] ss:$8 sps:$4 sm:$0xff]   ;;  %v5359_v23 = vld [vmem:[%s7208_s1 + $0x5e0] ss:$8 sps:$4 sm:$0xff]  }
  0xc9   :  { %2212 = vmatprep.subr.bf16.mxu0 %v5293_v58  ;;  %v5532_v58 = vld [vmem:[%s7209_s0 + $0x17c] ss:$60 sps:$4 sm:$0xff]  }
  0xca   :  { %3559 = vmatmul.mubr.bf16.gmra.mrb[36].mxu1 %v6085_v35  ;;  %v5304_v35 = vld [vmem:[%s7210_s3 + $0x160] sm:$0xff]  }
  0xcb   :  { %2178 = vmatmul.mubr.bf16.gmra.mrb[4].mxu0 %v6361_v61  ;;  %4582 = vmatpush3.bf16.msra.mxu1 %v5295_v62  ;;  %v5367_v62 = vld [vmem:[%s7208_s1 + $0x5f4] ss:$8 sps:$4 sm:$0xff]  }
  0xcc   :  { %2213 = vmatpush1.bf16.msra.mxu0 %v5291_v60  ;;  %4583 = vmatprep.subr.bf16.mxu1 %v5299_v0  ;;  %v5364_v60 = vld [vmem:[%s7210_s3 + $0x1b0] sm:$0xff]  }
  0xcd   :  { %2214 = vmatprep.subr.bf16.mxu0 %v5298_v32  ;;  %3566 = vmatprep.mubr.bf16.mxu1 %v6112_v45  ;;  %v5308_v45 = vld [vmem:[%s7208_s1 + $0x554] ss:$8 sps:$4 sm:$0xff]   ;;  %v5365_v0 = vld [vmem:[%s7208_s1 + $0x5f0] ss:$8 sps:$4 sm:$0xff]  }
  0xce   :  { %2187 = vmatprep.mubr.bf16.mxu0 %v6380_v2  ;;  %v5368_v32 = vld [vmem:[%s7210_s3 + $0x1f8] sm:$0xff]  }
  0xcf   :  { %4584 = vmatpush3.bf16.msra.mxu1 %v5300_v3  ;;  %v5369_v3 = vld [vmem:[%s7210_s3 + $0x1b8] sm:$0xff]  }
  0xd0   :  { %2215 = vmatpush1.bf16.msra.mxu0 %v5296_v1  ;;  %4585 = vmatprep.subr.bf16.mxu1 %v5304_v35  ;;  %v5533_v1 = vld [vmem:[%s7209_s0 + $0x178] ss:$60 sps:$4 sm:$0xff]   ;;  %v5376_v35 = vld [vmem:[%s7210_s3 + $0x240] sm:$0xff]  }
  0xd1   :  { %2216 = vmatprep.subr.bf16.mxu0 %v5303_v5  ;;  %v5375_v5 = vld [vmem:[%s7208_s1 + $0x604] ss:$8 sps:$4 sm:$0xff]  }
  0xd2   :  { %3567 = vmatmul.mubr.bf16.gmra.mrb[40].mxu1 %v6127_v50  ;;  %v5314_v50 = vld [vmem:[%s7210_s3 + $0x170] sm:$0xff]  }
  0xd3   :  { %2188 = vmatmul.mubr.bf16.gmra.mrb[8].mxu0 %v6399_v7  ;;  %4586 = vmatpush3.bf16.msra.mxu1 %v5305_v8  ;;  %v6594_v8 = vld [vmem:[%s7209_s0 + $0x28] ss:$60 sps:$4 sm:$0xff]  }
  0xd4   :  { %2217 = vmatpush1.bf16.msra.mxu0 %v5301_v6  ;;  %4587 = vmatprep.subr.bf16.mxu1 %v5309_v9  ;;  %v5534_v6 = vld [vmem:[%s7209_s0 + $0x1c] ss:$60 sps:$4 sm:$0xff]   ;;  %v5377_v9 = vld [vmem:[%s7210_s3 + $0x200] sm:$0xff]  }
  0xd5   :  { %2218 = vmatprep.subr.bf16.mxu0 %v5308_v45  ;;  %3574 = vmatprep.mubr.bf16.mxu1 %v6154_v59  ;;  %v5318_v59 = vld [vmem:[%s7208_s1 + $0x574] ss:$8 sps:$4 sm:$0xff]   ;;  %v5373_v45 = vld [vmem:[%s7208_s1 + $0x600] ss:$8 sps:$4 sm:$0xff]  }
  0xd6   :  { %2197 = vmatprep.mubr.bf16.mxu0 %v6418_v11 }
  0xd7   :  { %4588 = vmatpush3.bf16.msra.mxu1 %v5310_v12  ;;  %v5381_v12 = vld [vmem:[%s7210_s3 + $0x248] sm:$0xff]  }
  0xd8   :  { %2219 = vmatpush1.bf16.msra.mxu0 %v5306_v10  ;;  %4589 = vmatprep.subr.bf16.mxu1 %v5314_v50  ;;  %v5380_v10 = vld [vmem:[%s7208_s1 + $0x614] ss:$8 sps:$4 sm:$0xff]   ;;  %v6614_v50 = vld [vmem:[%s7209_s0 + $0xa4] ss:$60 sps:$4 sm:$0xff]  }
  0xd9   :  { %2220 = vmatprep.subr.bf16.mxu0 %v5313_v13  ;;  %v5378_v13 = vld [vmem:[%s7208_s1 + $0x610] ss:$8 sps:$4 sm:$0xff]  }
  0xda   :  { %3575 = vmatmul.mubr.bf16.gmra.mrb[44].mxu1 %v6169_v63  ;;  %v5324_v63 = vld [vmem:[%s7210_s3 + $0x1c0] sm:$0xff]  }
  0xdb   :  { %2198 = vmatmul.mubr.bf16.gmra.mrb[12].mxu0 %v6437_v15  ;;  %4590 = vmatpush3.bf16.msra.mxu1 %v5315_v16  ;;  %v5382_v16 = vld [vmem:[%s7210_s3 + $0x208] sm:$0xff]  }
  0xdc   :  { %2221 = vmatpush1.bf16.msra.mxu0 %v5311_v14  ;;  %4591 = vmatprep.subr.bf16.mxu1 %v5319_v48  ;;  %v5535_v14 = vld [vmem:[%s7209_s0 + $0x18] ss:$60 sps:$4 sm:$0xff]  }
  0xdd   :  { %2222 = vmatprep.subr.bf16.mxu0 %v5318_v59  ;;  %3615 = vmatprep.mubr.bf16.mxu1 %v5526_v22  ;;  %v5385_v59 = vld [vmem:[%s7208_s1 + $0x624] ss:$8 sps:$4 sm:$0xff]   ;;  %v5386_v48 = vld [vmem:[%s7210_s3 + $0x250] sm:$0xff]  }
  0xde   :  { %2240 = vmatprep.mubr.bf16.mxu0 %v6459_v21  ;;  %v5390_v22 = vld [vmem:[%s7208_s1 + $0x634] ss:$8 sps:$4 sm:$0xff]  }
  0xdf   :  { %4592 = vmatpush3.bf16.msra.mxu1 %v5320_v20  ;;  %v5383_v20 = vld [vmem:[%s7208_s1 + $0x620] ss:$8 sps:$4 sm:$0xff]  }
  0xe0   :  { %2223 = vmatpush1.bf16.msra.mxu0 %v5316_v17  ;;  %4617 = vmatprep.subr.bf16.mxu1 %v5324_v63  ;;  %v5536_v17 = vld [vmem:[%s7209_s0 + $0x94] ss:$60 sps:$4 sm:$0xff]   ;;  %v6642_v63 = vld [vmem:[%s7209_s0 + $0xa0] ss:$60 sps:$4 sm:$0xff]  }
  0xe1   :  { %2224 = vmatprep.subr.bf16.mxu0 %v5323_v4  ;;  %v5387_v4 = vld [vmem:[%s7210_s3 + $0x210] sm:$0xff]  }
  0xe2   :  { %3616 = vmatmul.mubr.bf16.vlgmr.msra.gmra.mrb[48].mxu1 %v5527_v27  ;;  %v5392_v27 = vld [vmem:[%s7210_s3 + $0x218] sm:$0xff]  }
  0xe3   :  { %4618 = vmatpush3.bf16.msra.mxu1 %v5325_v25  ;;  %3623 = vmatprep.mubr.bf16.mxu1 %v5528_v34  ;;  %v5388_v25 = vld [vmem:[%s7208_s1 + $0x630] ss:$8 sps:$4 sm:$0xff]   ;;  %v5397_v34 = vld [vmem:[%s7210_s3 + $0x220] sm:$0xff]  }
  0xe4   :  { %2225 = vmatpush1.bf16.msra.mxu0 %v5321_v24  ;;  %4619 = vmatprep.subr.bf16.mxu1 %v5329_v26  ;;  %v5391_v24 = vld [vmem:[%s7210_s3 + $0x258] sm:$0xff]   ;;  %v5537_v26 = vld [vmem:[%s7209_s0 + $0x90] ss:$60 sps:$4 sm:$0xff]  }
  0xe5   :  { %2226 = vmatprep.subr.bf16.mxu0 %v5328_v18  ;;  %v6656_v18 = vld [vmem:[%s7209_s0 + $0x11c] ss:$60 sps:$4 sm:$0xff]  }
  0xe7   :  { %4620 = vmatpush3.bf16.msra.mxu1 %v5330_v19  ;;  %v5396_v19 = vld [vmem:[%s7210_s3 + $0x260] sm:$0xff]  }
  0xe8   :  { %2227 = vmatpush1.bf16.msra.mxu0 %v5326_v28  ;;  %4621 = vmatprep.subr.bf16.mxu1 %v5336_v33  ;;  %v5395_v28 = vld [vmem:[%s7208_s1 + $0x644] ss:$8 sps:$4 sm:$0xff]   ;;  %v5393_v33 = vld [vmem:[%s7208_s1 + $0x640] ss:$8 sps:$4 sm:$0xff]  }
  0xe9   :  { %2228 = vmatprep.subr.bf16.mxu0 %v5335_v29  ;;  %v5538_v29 = vld [vmem:[%s7209_s0 + $0x10c] ss:$60 sps:$4 sm:$0xff]  }
  0xea   :  { %3624 = vmatmul.mubr.bf16.gmra.mrb[52].mxu1 %v5529_v39  ;;  %v6698_v39 = vld [vmem:[%s7209_s0 + $0x194] ss:$60 sps:$4 sm:$0xff]  }
  0xeb   :  { %4622 = vmatpush3.bf16.msra.mxu1 %v5338_v36  ;;  %3631 = vmatprep.mubr.bf16.mxu1 %v5530_v44  ;;  %v5400_v36 = vld [vmem:[%s7208_s1 + $0x654] ss:$8 sps:$4 sm:$0xff]   ;;  %v5540_v44 = vld [vmem:[%s7209_s0 + $0x184] ss:$60 sps:$4 sm:$0xff]  }
  0xec   :  { %2229 = vmatpush1.bf16.msra.mxu0 %v5333_v30  ;;  %4623 = vmatprep.subr.bf16.mxu1 %v5342_v38  ;;  %v6684_v30 = vld [vmem:[%s7209_s0 + $0x118] ss:$60 sps:$4 sm:$0xff]  }
  0xed   :  { %2230 = vmatprep.subr.bf16.mxu0 %v5341_v37  ;;  %v5401_v37 = vld [vmem:[%s7210_s3 + $0x268] sm:$0xff]   ;;  %v5398_v38 = vld [vmem:[%s7208_s1 + $0x650] ss:$8 sps:$4 sm:$0xff]  }
  0xef   :  { %4624 = vmatpush3.bf16.msra.mxu1 %v5343_v40  ;;  %v5402_v40 = vld [vmem:[%s7210_s3 + $0x228] sm:$0xff]  }
  0xf0   :  { %2231 = vmatpush1.bf16.msra.mxu0 %v5339_v31  ;;  %4625 = vmatprep.subr.bf16.mxu1 %v5349_v42  ;;  %v5539_v31 = vld [vmem:[%s7209_s0 + $0x108] ss:$60 sps:$4 sm:$0xff]   ;;  %v5406_v42 = vld [vmem:[%s7210_s3 + $0x270] sm:$0xff]  }
  0xf1   :  { %2232 = vmatprep.subr.bf16.mxu0 %v5348_v41  ;;  %v5405_v41 = vld [vmem:[%s7208_s1 + $0x664] ss:$8 sps:$4 sm:$0xff]  }
  0xf2   :  { %3632 = vmatmul.mubr.bf16.gmra.mrb[56].mxu1 %v5531_v52  ;;  %v5411_v52 = vld [vmem:[%s7210_s3 + $0x278] sm:$0xff]  }
  0xf3   :  { %4626 = vmatpush3.bf16.msra.mxu1 %v5351_v47  ;;  %3639 = vmatprep.mubr.bf16.mxu1 %v5532_v58  ;;  %v5407_v47 = vld [vmem:[%s7210_s3 + $0x230] sm:$0xff]   ;;  %v5415_v58 = vld [vmem:[%s7208_s1 + $0x684] ss:$8 sps:$4 sm:$0xff]  }
  0xf4   :  { %2233 = vmatpush1.bf16.msra.mxu0 %v5346_v46  ;;  %4627 = vmatprep.subr.bf16.mxu1 %v5355_v51  ;;  %v5403_v46 = vld [vmem:[%s7208_s1 + $0x660] ss:$8 sps:$4 sm:$0xff]   ;;  %v5410_v51 = vld [vmem:[%s7208_s1 + $0x674] ss:$8 sps:$4 sm:$0xff]  }
  0xf5   :  { %2234 = vmatprep.subr.bf16.mxu0 %v5354_v49  ;;  %v6726_v49 = vld [vmem:[%s7209_s0 + $0x190] ss:$60 sps:$4 sm:$0xff]  }
  0xf7   :  { %4628 = vmatpush3.bf16.msra.mxu1 %v5356_v55  ;;  %v6740_v55 = vld [vmem:[%s7209_s0 + $0x34] ss:$60 sps:$4 sm:$0xff]  }
  0xf8   :  { %2235 = vmatpush1.bf16.msra.mxu0 %v5352_v53  ;;  %4629 = vmatprep.subr.bf16.mxu1 %v5362_v57  ;;  %v5408_v53 = vld [vmem:[%s7208_s1 + $0x670] ss:$8 sps:$4 sm:$0xff]  }
  0xf9   :  { %2236 = vmatprep.subr.bf16.mxu0 %v5361_v54  ;;  %v5541_v54 = vld [vmem:[%s7209_s0 + $0x180] ss:$60 sps:$4 sm:$0xff]  }
  0xfa   :  { %3640 = vmatmul.mubr.bf16.gmra.mrb[60].mxu1 %v5533_v1  ;;  %v5412_v57 = vld [vmem:[%s7210_s3 + $0x238] sm:$0xff]   ;;  %v5421_v1 = vld [vmem:[%s7210_s3 + $0x2c8] sm:$0xff]  }
  0xfb   :  { %4630 = vmatpush3.bf16.msra.mxu1 %v5364_v60  ;;  %3680 = vmatprep.mubr.bf16.mxu1 %v5534_v6  ;;  %v5542_v60 = vld [vmem:[%s7209_s0 + $0x24] ss:$60 sps:$4 sm:$0xff]   ;;  %v5429_v6 = vld [vmem:[%s7210_s3 + $0x2d0] sm:$0xff]  }
  0xfc   :  { %2237 = vmatpush1.bf16.msra.mxu0 %v5359_v23  ;;  %4631 = vmatprep.subr.bf16.mxu1 %v5368_v32  ;;  %v5416_v23 = vld [vmem:[%s7210_s3 + $0x2c0] sm:$0xff]  }
  0xfd   :  { %2238 = vmatprep.subr.bf16.mxu0 %v5367_v62  ;;  %v5413_v62 = vld [vmem:[%s7208_s1 + $0x680] ss:$8 sps:$4 sm:$0xff]  }
  0xfe   :  { %v5417_v32 = vld [vmem:[%s7210_s3 + $0x280] sm:$0xff]  }
  0xff   :  { %4632 = vmatpush3.bf16.msra.mxu1 %v5369_v3  ;;  %v5418_v3 = vld [vmem:[%s7208_s1 + $0x690] ss:$8 sps:$4 sm:$0xff]  }
 0x100   :  { %2239 = vmatpush1.bf16.msra.mxu0 %v5365_v0  ;;  %4657 = vmatprep.subr.bf16.mxu1 %v5376_v35  ;;  %v5420_v0 = vld [vmem:[%s7208_s1 + $0x694] ss:$8 sps:$4 sm:$0xff]   ;;  %v5428_v35 = vld [vmem:[%s7208_s1 + $0x6a4] ss:$8 sps:$4 sm:$0xff]  }
 0x101   :  { %2281 = vmatprep.subr.bf16.mxu0 %v5375_v5  ;;  %v5422_v5 = vld [vmem:[%s7210_s3 + $0x288] sm:$0xff]  }
 0x102   :  { %3681 = vmatmul.mubr.bf16.vlgmr.msra.gmra.mrb[64].mxu1 %v5535_v14  ;;  %v5439_v14 = vld [vmem:[%s7208_s1 + $0x6c0] ss:$8 sps:$4 sm:$0xff]  }
 0x103   :  { %2241 = vmatmul.mubr.bf16.vlgmr.msra.gmra.mrb[0].mxu0 %v6594_v8  ;;  %4658 = vmatpush3.bf16.msra.mxu1 %v5377_v9  ;;  %v5433_v9 = vld [vmem:[%s7208_s1 + $0x6b4] ss:$8 sps:$4 sm:$0xff]  }
 0x104   :  { %2282 = vmatpush1.bf16.msra.mxu0 %v5373_v45  ;;  %4659 = vmatprep.subr.bf16.mxu1 %v5381_v12  ;;  %v5430_v45 = vld [vmem:[%s7210_s3 + $0x290] sm:$0xff]   ;;  %v5435_v12 = vld [vmem:[%s7210_s3 + $0x298] sm:$0xff]  }
 0x105   :  { %2283 = vmatprep.subr.bf16.mxu0 %v5380_v10  ;;  %3688 = vmatprep.mubr.bf16.mxu1 %v5536_v17  ;;  %v5431_v10 = vld [vmem:[%s7208_s1 + $0x6b0] ss:$8 sps:$4 sm:$0xff]   ;;  %v5448_v17 = vld [vmem:[%s7210_s3 + $0x2a8] sm:$0xff]  }
 0x106   :  { %2250 = vmatprep.mubr.bf16.mxu0 %v6614_v50 }
 0x107   :  { %4660 = vmatpush3.bf16.msra.mxu1 %v5382_v16  ;;  %v5443_v16 = vld [vmem:[%s7210_s3 + $0x2a0] sm:$0xff]  }
 0x108   :  { %2284 = vmatpush1.bf16.msra.mxu0 %v5378_v13  ;;  %4661 = vmatprep.subr.bf16.mxu1 %v5386_v48  ;;  %v5441_v13 = vld [vmem:[%s7208_s1 + $0x6c4] ss:$8 sps:$4 sm:$0xff]   ;;  %v5444_v48 = vld [vmem:[%s7208_s1 + $0x6d0] ss:$8 sps:$4 sm:$0xff]  }
 0x109   :  { %2285 = vmatprep.subr.bf16.mxu0 %v5385_v59  ;;  %v5446_v59 = vld [vmem:[%s7208_s1 + $0x6d4] ss:$8 sps:$4 sm:$0xff]  }
 0x10a   :  { %3689 = vmatmul.mubr.bf16.gmra.mrb[68].mxu1 %v5537_v26  ;;  %v5461_v26 = vld [vmem:[%s7210_s3 + $0x2b8] sm:$0xff]  }
 0x10b   :  { %2251 = vmatmul.mubr.bf16.gmra.mrb[4].mxu0 %v6642_v63  ;;  %4662 = vmatpush3.bf16.msra.mxu1 %v5387_v4  ;;  %v5452_v4 = vld [vmem:[%s7208_s1 + $0x6e0] ss:$8 sps:$4 sm:$0xff]  }
 0x10c   :  { %2286 = vmatpush1.bf16.msra.mxu0 %v5383_v20  ;;  %4663 = vmatprep.subr.bf16.mxu1 %v5391_v24  ;;  %v5454_v20 = vld [vmem:[%s7208_s1 + $0x6e4] ss:$8 sps:$4 sm:$0xff]   ;;  %v5459_v24 = vld [vmem:[%s7208_s1 + $0x6f4] ss:$8 sps:$4 sm:$0xff]  }
 0x10d   :  { %2287 = vmatprep.subr.bf16.mxu0 %v5390_v22  ;;  %3696 = vmatprep.mubr.bf16.mxu1 %v5538_v29  ;;  %v5456_v22 = vld [vmem:[%s7210_s3 + $0x2b0] sm:$0xff]   ;;  %v5469_v29 = vld [vmem:[%s7210_s3 + $0x300] sm:$0xff]  }
 0x10e   :  { %2260 = vmatprep.mubr.bf16.mxu0 %v6656_v18 }
 0x10f   :  { %4664 = vmatpush3.bf16.msra.mxu1 %v5392_v27  ;;  %v6859_v27 = vld [vmem:[%s7209_s0 + $0x30] ss:$60 sps:$4 sm:$0xff]  }
 0x110   :  { %2288 = vmatpush1.bf16.msra.mxu0 %v5388_v25  ;;  %4665 = vmatprep.subr.bf16.mxu1 %v5396_v19  ;;  %v5457_v25 = vld [vmem:[%s7208_s1 + $0x6f0] ss:$8 sps:$4 sm:$0xff]   ;;  %v5465_v19 = vld [vmem:[%s7208_s1 + $0x700] ss:$8 sps:$4 sm:$0xff]  }
 0x111   :  { %2289 = vmatprep.subr.bf16.mxu0 %v5395_v28  ;;  %v5468_v28 = vld [vmem:[%s7210_s3 + $0x340] sm:$0xff]  }
 0x112   :  { %3697 = vmatmul.mubr.bf16.gmra.mrb[72].mxu1 %v5539_v31  ;;  %v6904_v31 = vld [vmem:[%s7209_s0 + $0xa8] ss:$60 sps:$4 sm:$0xff]  }
 0x113   :  { %2261 = vmatmul.mubr.bf16.gmra.mrb[8].mxu0 %v6684_v30  ;;  %4666 = vmatpush3.bf16.msra.mxu1 %v5397_v34  ;;  %v6883_v34 = vld [vmem:[%s7209_s0 + $0xac] ss:$60 sps:$4 sm:$0xff]  }
 0x114   :  { %2290 = vmatpush1.bf16.msra.mxu0 %v5393_v33  ;;  %4667 = vmatprep.subr.bf16.mxu1 %v5401_v37  ;;  %v5472_v33 = vld [vmem:[%s7208_s1 + $0x714] ss:$8 sps:$4 sm:$0xff]   ;;  %v5474_v37 = vld [vmem:[%s7210_s3 + $0x308] sm:$0xff]  }
 0x115   :  { %2291 = vmatprep.subr.bf16.mxu0 %v5400_v36  ;;  %3704 = vmatprep.mubr.bf16.mxu1 %v5540_v44  ;;  %v5470_v36 = vld [vmem:[%s7208_s1 + $0x710] ss:$8 sps:$4 sm:$0xff]   ;;  %v6921_v44 = vld [vmem:[%s7209_s0 + $0x124] ss:$60 sps:$4 sm:$0xff]  }
 0x116   :  { %2270 = vmatprep.mubr.bf16.mxu0 %v6698_v39 }
 0x117   :  { %4668 = vmatpush3.bf16.msra.mxu1 %v5402_v40  ;;  %v5478_v40 = vld [vmem:[%s7208_s1 + $0x720] ss:$8 sps:$4 sm:$0xff]  }
 0x118   :  { %2292 = vmatpush1.bf16.msra.mxu0 %v5398_v38  ;;  %4669 = vmatprep.subr.bf16.mxu1 %v5406_v42  ;;  %v5480_v38 = vld [vmem:[%s7208_s1 + $0x724] ss:$8 sps:$4 sm:$0xff]   ;;  %v5486_v42 = vld [vmem:[%s7210_s3 + $0x358] sm:$0xff]  }
 0x119   :  { %2293 = vmatprep.subr.bf16.mxu0 %v5405_v41  ;;  %v5482_v41 = vld [vmem:[%s7210_s3 + $0x310] sm:$0xff]  }
 0x11a   :  { %3705 = vmatmul.mubr.bf16.gmra.mrb[76].mxu1 %v5541_v54  ;;  %v5495_v54 = vld [vmem:[%s7210_s3 + $0x320] sm:$0xff]  }
 0x11b   :  { %2271 = vmatmul.mubr.bf16.gmra.mrb[12].mxu0 %v6726_v49  ;;  %4670 = vmatpush3.bf16.msra.mxu1 %v5407_v47  ;;  %v5487_v47 = vld [vmem:[%s7210_s3 + $0x318] sm:$0xff]  }
 0x11c   :  { %2294 = vmatpush1.bf16.msra.mxu0 %v5403_v46  ;;  %4671 = vmatprep.subr.bf16.mxu1 %v5411_v52  ;;  %v5483_v46 = vld [vmem:[%s7208_s1 + $0x730] ss:$8 sps:$4 sm:$0xff]   ;;  %v6942_v52 = vld [vmem:[%s7209_s0 + $0x120] ss:$60 sps:$4 sm:$0xff]  }
 0x11d   :  { %2295 = vmatprep.subr.bf16.mxu0 %v5410_v51  ;;  %3745 = vmatprep.mubr.bf16.mxu1 %v5542_v60  ;;  %v5493_v51 = vld [vmem:[%s7208_s1 + $0x744] ss:$8 sps:$4 sm:$0xff]  }
 0x11e   :  { %2313 = vmatprep.mubr.bf16.mxu0 %v6740_v55  ;;  %v5500_v60 = vld [vmem:[%s7210_s3 + $0x328] sm:$0xff]  }
 0x11f   :  { %4672 = vmatpush3.bf16.msra.mxu1 %v5412_v57  ;;  %v5499_v57 = vld [vmem:[%s7210_s3 + $0x368] sm:$0xff]  }
 0x120   :  { %2296 = vmatpush1.bf16.msra.mxu0 %v5408_v53  ;;  %4697 = vmatprep.subr.bf16.mxu1 %v5416_v23  ;;  %v5491_v53 = vld [vmem:[%s7208_s1 + $0x740] ss:$8 sps:$4 sm:$0xff]   ;;  %v5496_v23 = vld [vmem:[%s7208_s1 + $0x750] ss:$8 sps:$4 sm:$0xff]  }
 0x121   :  { %2297 = vmatprep.subr.bf16.mxu0 %v5415_v58  ;;  %v6959_v58 = vld [vmem:[%s7209_s0 + $0x19c] ss:$60 sps:$4 sm:$0xff]  }
 0x122   :  { %3746 = vmatmul.mubr.bf16.vlgmr.msra.gmra.mrb[80].mxu1 %v6320_v43  ;;  %v5426_v43 = vld [vmem:[%s7208_s1 + $0x6a0] ss:$8 sps:$4 sm:$0xff]  }
 0x123   :  { %4698 = vmatpush3.bf16.msra.mxu1 %v5417_v32  ;;  %3753 = vmatprep.mubr.bf16.mxu1 %v6342_v56  ;;  %v5434_v56 = vld [vmem:[%s7210_s3 + $0x2d8] sm:$0xff]  }
 0x124   :  { %2298 = vmatpush1.bf16.msra.mxu0 %v5413_v62  ;;  %4699 = vmatprep.subr.bf16.mxu1 %v5421_v1  ;;  %v5506_v62 = vld [vmem:[%s7208_s1 + $0x764] ss:$8 sps:$4 sm:$0xff]   ;;  %v6984_v1 = vld [vmem:[%s7209_s0 + $0x198] ss:$60 sps:$4 sm:$0xff]  }
 0x125   :  { %2299 = vmatprep.subr.bf16.mxu0 %v5420_v0 }
 0x127   :  { %4700 = vmatpush3.bf16.msra.mxu1 %v5422_v5  ;;  %v5504_v5 = vld [vmem:[%s7208_s1 + $0x760] ss:$8 sps:$4 sm:$0xff]  }
 0x128   :  { %2300 = vmatpush1.bf16.msra.mxu0 %v5418_v3  ;;  %4701 = vmatprep.subr.bf16.mxu1 %v5429_v6  ;;  %v5511_v6 = vld [vmem:[%s7208_s1 + $0x774] ss:$8 sps:$4 sm:$0xff]  }
 0x129   :  { %2301 = vmatprep.subr.bf16.mxu0 %v5428_v35  ;;  %v5508_v35 = vld [vmem:[%s7210_s3 + $0x330] sm:$0xff]  }
 0x12a   :  { %3754 = vmatmul.mubr.bf16.gmra.mrb[84].mxu1 %v6361_v61  ;;  %v5442_v61 = vld [vmem:[%s7210_s3 + $0x2e0] sm:$0xff]  }
 0x12b   :  { %4702 = vmatpush3.bf16.msra.mxu1 %v5430_v45  ;;  %3761 = vmatprep.mubr.bf16.mxu1 %v6380_v2  ;;  %v5447_v2 = vld [vmem:[%s7210_s3 + $0x2e8] sm:$0xff]   ;;  %v5509_v45 = vld [vmem:[%s7208_s1 + $0x770] ss:$8 sps:$4 sm:$0xff]  }
 0x12c   :  { %2302 = vmatpush1.bf16.msra.mxu0 %v5426_v43  ;;  %4703 = vmatprep.subr.bf16.mxu1 %v5434_v56  ;;  %v5512_v43 = vld [vmem:[%s7210_s3 + $0x378] sm:$0xff]   ;;  %v5515_v56 = vld [vmem:[%s7210_s3 + $0x380] sm:$0xff]  }
 0x12d   :  { %2303 = vmatprep.subr.bf16.mxu0 %v5433_v9  ;;  %v5513_v9 = vld [vmem:[%s7210_s3 + $0x338] sm:$0xff]  }
 0x12f   :  { %4704 = vmatpush3.bf16.msra.mxu1 %v5435_v12  ;;  %v5543_v12 = vmov 0  }
 0x130   :  { %2304 = vmatpush1.bf16.msra.mxu0 %v5431_v10  ;;  %4705 = vmatprep.subr.bf16.mxu1 %v5442_v61 }
 0x131   :  { %2305 = vmatprep.subr.bf16.mxu0 %v5441_v13  ;;  %v7021_v13 = vld [vmem:[%s7209_s0 + $0x38] ss:$60 sps:$4 sm:$0xff]  }
 0x132   :  { %3762 = vmatmul.mubr.bf16.gmra.mrb[88].mxu1 %v6399_v7  ;;  %v5455_v7 = vld [vmem:[%s7210_s3 + $0x2f0] sm:$0xff]  }
 0x133   :  { %4706 = vmatpush3.bf16.msra.mxu1 %v5443_v16  ;;  %3769 = vmatprep.mubr.bf16.mxu1 %v6418_v11  ;;  %v5460_v11 = vld [vmem:[%s7210_s3 + $0x2f8] sm:$0xff]   ;;  %v5516_v16 = vld [vmem:[%s7210_s3 + $0x388] sm:$0xff]  }
 0x134   :  { %2306 = vmatpush1.bf16.msra.mxu0 %v5439_v14  ;;  %4707 = vmatprep.subr.bf16.mxu1 %v5447_v2 }
 0x135   :  { %2307 = vmatprep.subr.bf16.mxu0 %v5446_v59 }
 0x137   :  { %4708 = vmatpush3.bf16.msra.mxu1 %v5448_v17 }
 0x138   :  { %2308 = vmatpush1.bf16.msra.mxu0 %v5444_v48  ;;  %4709 = vmatprep.subr.bf16.mxu1 %v5455_v7  ;;  %v7043_v48 = vld [vmem:[%s7209_s0 + $0xb0] ss:$60 sps:$4 sm:$0xff]   ;;  %v5519_v7 = vld [vmem:[%s7210_s3 + $0x398] sm:$0xff]  }
 0x139   :  { %2309 = vmatprep.subr.bf16.mxu0 %v5454_v20 }
 0x13a   :  { %3770 = vmatmul.mubr.bf16.gmra.mrb[92].mxu1 %v6437_v15  ;;  %v5467_v15 = vld [vmem:[%s7208_s1 + $0x704] ss:$8 sps:$4 sm:$0xff]  }
 0x13b   :  { %4710 = vmatpush3.bf16.msra.mxu1 %v5456_v22  ;;  %3810 = vmatprep.mubr.bf16.mxu1 %v6459_v21  ;;  %v5473_v21 = vld [vmem:[%s7210_s3 + $0x348] sm:$0xff]  }
 0x13c   :  { %2310 = vmatpush1.bf16.msra.mxu0 %v5452_v4  ;;  %4711 = vmatprep.subr.bf16.mxu1 %v5460_v11  ;;  %v5521_v4 = vld [vmem:[%s7210_s3 + $0x3a0] sm:$0xff]  }
 0x13d   :  { %2311 = vmatprep.subr.bf16.mxu0 %v5459_v24  ;;  %v5520_v11 = vld [vmem:[%s7209_s0 + $0x128] ss:$60 sps:$4 sm:$0xff]  }
 0x13f   :  { %4712 = vmatpush3.bf16.msra.mxu1 %v5461_v26 }
 0x140   :  { %2312 = vmatpush1.bf16.msra.mxu0 %v5457_v25  ;;  %4737 = vmatprep.subr.bf16.mxu1 %v5468_v28 }
 0x141   :  { %2354 = vmatprep.subr.bf16.mxu0 %v5467_v15  ;;  %v5524_v15 = vld [vmem:[%s7210_s3 + $0x3b0] sm:$0xff]  }
 0x142   :  { %3811 = vmatmul.mubr.bf16.vlgmr.msra.gmra.mrb[96].mxu1 %v6594_v8  ;;  %v5481_v8 = vld [vmem:[%s7210_s3 + $0x350] sm:$0xff]  }
 0x143   :  { %2314 = vmatmul.mubr.bf16.vlgmr.msra.gmra.mrb[0].mxu0 %v6859_v27  ;;  %4738 = vmatpush3.bf16.msra.mxu1 %v5469_v29  ;;  %v5523_v29 = vld [vmem:[%s7209_s0 + $0x1a0] ss:$60 sps:$4 sm:$0xff]  }
 0x144   :  { %2355 = vmatpush1.bf16.msra.mxu0 %v5465_v19  ;;  %4739 = vmatprep.subr.bf16.mxu1 %v5473_v21 }
 0x145   :  { %2356 = vmatprep.subr.bf16.mxu0 %v5472_v33  ;;  %2323 = vmatprep.mubr.bf16.mxu0 %v6883_v34 }
 0x146   :  { %3818 = vmatprep.mubr.bf16.mxu1 %v6614_v50  ;;  %v5485_v50 = vld [vmem:[%s7208_s1 + $0x734] ss:$8 sps:$4 sm:$0xff]  }
 0x147   :  { %4740 = vmatpush3.bf16.msra.mxu1 %v5474_v37 }
 0x148   :  { %2357 = vmatpush1.bf16.msra.mxu0 %v5470_v36  ;;  %4741 = vmatprep.subr.bf16.mxu1 %v5481_v8  ;;  %v5525_v36 = vld [vmem:[%s7210_s3 + $0x3b8] sm:$0xff]  }
 0x149   :  { %2358 = vmatprep.subr.bf16.mxu0 %v5480_v38 }
 0x14a   :  { %3819 = vmatmul.mubr.bf16.gmra.mrb[100].mxu1 %v6642_v63  ;;  %v5494_v63 = vld [vmem:[%s7210_s3 + $0x360] sm:$0xff]  }
 0x14b   :  { %2324 = vmatmul.mubr.bf16.gmra.mrb[4].mxu0 %v6904_v31  ;;  %4742 = vmatpush3.bf16.msra.mxu1 %v5482_v41 }
 0x14c   :  { %2359 = vmatpush1.bf16.msra.mxu0 %v5478_v40  ;;  %4743 = vmatprep.subr.bf16.mxu1 %v5486_v42 }
 0x14d   :  { %2360 = vmatprep.subr.bf16.mxu0 %v5485_v50  ;;  %2333 = vmatprep.mubr.bf16.mxu0 %v6921_v44 }
 0x14e   :  { %3826 = vmatprep.mubr.bf16.mxu1 %v6656_v18  ;;  %v5498_v18 = vld [vmem:[%s7208_s1 + $0x754] ss:$8 sps:$4 sm:$0xff]  }
 0x14f   :  { %4744 = vmatpush3.bf16.msra.mxu1 %v5487_v47 }
 0x150   :  { %2361 = vmatpush1.bf16.msra.mxu0 %v5483_v46  ;;  %4745 = vmatprep.subr.bf16.mxu1 %v5494_v63 }
 0x151   :  { %2362 = vmatprep.subr.bf16.mxu0 %v5493_v51 }
 0x152   :  { %3827 = vmatmul.mubr.bf16.gmra.mrb[104].mxu1 %v6684_v30  ;;  %v5507_v30 = vld [vmem:[%s7210_s3 + $0x370] sm:$0xff]  }
 0x153   :  { %2334 = vmatmul.mubr.bf16.gmra.mrb[8].mxu0 %v6942_v52  ;;  %4746 = vmatpush3.bf16.msra.mxu1 %v5495_v54 }
 0x154   :  { %2363 = vmatpush1.bf16.msra.mxu0 %v5491_v53  ;;  %4747 = vmatprep.subr.bf16.mxu1 %v5499_v57 }
 0x155   :  { %2364 = vmatprep.subr.bf16.mxu0 %v5498_v18  ;;  %v6975_v32 = vpop.f32.mrb[0].mxu1  ;;  %2343 = vmatprep.mubr.bf16.mxu0 %v6959_v58 }
 0x156   :  { %3834 = vmatprep.mubr.bf16.mxu1 %v6698_v39  ;;  %v6979_v0 = vpop.f32.mrb[1].mxu1 }
 0x157   :  { %v6986_v3 = vpop.f32.mrb[2].mxu1  ;;  %4748 = vmatpush3.bf16.msra.mxu1 %v5500_v60 }
 0x158   :  { %2365 = vmatpush1.bf16.msra.mxu0 %v5496_v23  ;;  %v6994_v39 = vpop.f32.mrb[3].mxu1  ;;  %4749 = vmatprep.subr.bf16.mxu1 %v5507_v30  ;;  %v4329_v23 = vld [vmem:[%s7211_s4] ss:$0 sm:$0xff] }
 0x159   :  { %2366 = vmatprep.subr.bf16.mxu0 %v5506_v62 }
 0x15a   :  { %3835 = vmatmul.mubr.bf16.gmra.mrb[108].mxu1 %v6726_v49 }
 0x15b   :  { %2344 = vmatmul.mubr.bf16.gmra.mrb[12].mxu0 %v6984_v1  ;;  %4750 = vmatpush3.bf16.msra.mxu1 %v5508_v35 }
 0x15c   :  { %2367 = vmatpush1.bf16.msra.mxu0 %v5504_v5  ;;  %4751 = vmatprep.subr.bf16.mxu1 %v5512_v43 }
 0x15d   :  { %2368 = vmatprep.subr.bf16.mxu0 %v5511_v6  ;;  %v7013_v10 = vpop.f32.mrb[4].mxu1  ;;  %2386 = vmatprep.mubr.bf16.mxu0 %v5543_v12 }
 0x15e   :  { %3875 = vmatprep.mubr.bf16.mxu1 %v6740_v55  ;;  %v7016_v49 = vpop.f32.mrb[5].mxu1  ;;  %v5518_v55 = vld [vmem:[%s7210_s3 + $0x390] sm:$0xff]  }
 0x15f   :  { %v7023_v61 = vpop.f32.mrb[6].mxu1  ;;  %4752 = vmatpush3.bf16.msra.mxu1 %v5513_v9 }
 0x160   :  { %2369 = vmatpush1.bf16.msra.mxu0 %v5509_v45  ;;  %v7025_v14 = vpop.f32.mrb[7].mxu1  ;;  %4813 = vmatprep.subr.bf16.mxu1 %v5515_v56 }
 0x161   :  { %4789 = vmatprep.subr.bf16.mxu0 %v5515_v56 }
 0x162   :  { %3876 = vmatmul.mubr.bf16.vlgmr.msra.gmra.mrb[112].mxu1 %v6859_v27  ;;  %v5522_v27 = vld [vmem:[%s7210_s3 + $0x3a8] sm:$0xff]  }
 0x163   :  { %2387 = vmatmul.mubr.bf16.vlgmr.msra.gmra.mrb[0].mxu0 %v7021_v13  ;;  %4821 = vmatpush3.bf16.msra.mxu1 %v5515_v56 }
 0x164   :  { %4790 = vmatpush3.bf16.msra.mxu0 %v5515_v56  ;;  %4814 = vmatprep.subr.bf16.mxu1 %v5516_v16 }
 0x165   :  { %4791 = vmatprep.subr.bf16.mxu0 %v5516_v16  ;;  %v7035_v59 = vpop.f32.mrb[8].mxu1  ;;  %2396 = vmatprep.mubr.bf16.mxu0 %v5543_v12 }
 0x166   :  { %3883 = vmatprep.mubr.bf16.mxu1 %v6883_v34  ;;  %v7038_v2 = vpop.f32.mrb[9].mxu1 }
 0x167   :  { %v7045_v17 = vpop.f32.mrb[10].mxu1  ;;  %4822 = vmatpush3.bf16.msra.mxu1 %v5516_v16 }
 0x168   :  { %4792 = vmatpush3.bf16.msra.mxu0 %v5516_v16  ;;  %v7047_v20 = vpop.f32.mrb[11].mxu1  ;;  %4815 = vmatprep.subr.bf16.mxu1 %v5518_v55 }
 0x169   :  { %4793 = vmatprep.subr.bf16.mxu0 %v5518_v55 }
 0x16a   :  { %3884 = vmatmul.mubr.bf16.gmra.mrb[116].mxu1 %v6904_v31 }
 0x16b   :  { %2397 = vmatmul.mubr.bf16.gmra.mrb[4].mxu0 %v7043_v48  ;;  %4823 = vmatpush3.bf16.msra.mxu1 %v5518_v55 }
 0x16c   :  { %4794 = vmatpush3.bf16.msra.mxu0 %v5518_v55  ;;  %4816 = vmatprep.subr.bf16.mxu1 %v5519_v7 }
 0x16d   :  { %4795 = vmatprep.subr.bf16.mxu0 %v5519_v7  ;;  %v7057_v22 = vpop.f32.mrb[12].mxu1  ;;  %2406 = vmatprep.mubr.bf16.mxu0 %v5543_v12 }
 0x16e   :  { %3891 = vmatprep.mubr.bf16.mxu1 %v6921_v44  ;;  %v7060_v24 = vpop.f32.mrb[13].mxu1 }
 0x16f   :  { %v7065_v25 = vpop.f32.mrb[14].mxu1  ;;  %4824 = vmatpush3.bf16.msra.mxu1 %v5519_v7 }
 0x170   :  { %4796 = vmatpush3.bf16.msra.mxu0 %v5519_v7  ;;  %v7067_v26 = vpop.f32.mrb[15].mxu1  ;;  %4817 = vmatprep.subr.bf16.mxu1 %v5521_v4 }
 0x171   :  { %4797 = vmatprep.subr.bf16.mxu0 %v5521_v4 }
 0x172   :  { %3892 = vmatmul.mubr.bf16.gmra.mrb[120].mxu1 %v6942_v52 }
 0x173   :  { %2407 = vmatmul.mubr.bf16.gmra.mrb[8].mxu0 %v5520_v11  ;;  %4825 = vmatpush3.bf16.msra.mxu1 %v5521_v4 }
 0x174   :  { %4798 = vmatpush3.bf16.msra.mxu0 %v5521_v4  ;;  %4818 = vmatprep.subr.bf16.mxu1 %v5522_v27 }
 0x175   :  { %4799 = vmatprep.subr.bf16.mxu0 %v5522_v27  ;;  %v4513_v28 = vpop.f32.mrb[16].mxu1  ;;  %2416 = vmatprep.mubr.bf16.mxu0 %v5543_v12 }
 0x176   :  { %3899 = vmatprep.mubr.bf16.mxu1 %v6959_v58  ;;  %v4514_v19 = vpop.f32.mrb[17].mxu1 }
 0x177   :  { %v4515_v33 = vadd.f32 %v4514_v19, %v4513_v28  ;;  %v4516_v21 = vpop.f32.mrb[18].mxu1  ;;  %4826 = vmatpush3.bf16.msra.mxu1 %v5522_v27 }
 0x178   :  { %4800 = vmatpush3.bf16.msra.mxu0 %v5522_v27  ;;  %v4517_v34 = vpop.f32.mrb[19].mxu1  ;;  %4819 = vmatprep.subr.bf16.mxu1 %v5524_v15 }
 0x179   :  { %4801 = vmatprep.subr.bf16.mxu0 %v5524_v15  ;;  %v4518_v37 = vadd.f32 %v4517_v34, %v4516_v21  ;;  %v3488_v30 = vadd.f32 %v4515_v33, %v4329_v23 }
 0x17a   :  { %3900 = vmatmul.mubr.bf16.gmra.mrb[124].mxu1 %v6984_v1 }
 0x17b   :  { %2417 = vmatmul.mubr.bf16.gmra.mrb[12].mxu0 %v5523_v29  ;;  %4827 = vmatpush3.bf16.msra.mxu1 %v5524_v15  ;;  %v3491_v6 = vadd.f32 %v4518_v37, %v4329_v23 }
 0x17c   :  { %4802 = vmatpush3.bf16.msra.mxu0 %v5524_v15  ;;  %4820 = vmatprep.subr.bf16.mxu1 %v5525_v36 }
 0x17d   :  { %4803 = vmatprep.subr.bf16.mxu0 %v5525_v36  ;;  %v4519_v38 = vpop.f32.mrb[20].mxu1  ;;  %4805 = vmatprep.mubr.bf16.mxu0 %v7021_v13 }
 0x17e   :  { %4809 = vmatprep.mubr.bf16.mxu1 %v5520_v11  ;;  %v4520_v8 = vpop.f32.mrb[21].mxu1 }
 0x17f   :  { %v4521_v31 = vadd.f32 %v4520_v8, %v4519_v38  ;;  %v4522_v40 = vpop.f32.mrb[22].mxu1  ;;  %4828 = vmatpush3.bf16.msra.mxu1 %v5525_v36 }
 0x180   :  { %4804 = vmatpush3.bf16.msra.mxu0 %v5525_v36  ;;  %v4523_v41 = vpop.f32.mrb[23].mxu1 }
 0x181   :  { %v4524_v50 = vadd.f32 %v4523_v41, %v4522_v40  ;;  %v3496_v13 = vadd.f32 %v4521_v31, %v4329_v23 }
 0x182   :  { %4810 = vmatmul.mubr.bf16.vlgmr.msra.gmra.mrb[128].mxu1 %v5523_v29 }
 0x183   :  { %4806 = vmatmul.mubr.bf16.vlgmr.msra.gmra.mrb[16].mxu0 %v7043_v48  ;;  %v3499_v7 = vadd.f32 %v4524_v50, %v4329_v23 }
 0x185   :  { %v4525_v42 = vpop.f32.mrb[24].mxu1 }
 0x186   :  { %v4526_v44 = vpop.f32.mrb[25].mxu1 }
 0x187   :  { %v4527_v46 = vadd.f32 %v4526_v44, %v4525_v42  ;;  %v4528_v47 = vpop.f32.mrb[26].mxu1 }
 0x188   :  { %v4529_v51 = vpop.f32.mrb[27].mxu1 }
 0x189   :  { %v4530_v63 = vadd.f32 %v4529_v51, %v4528_v47  ;;  %v3504_v19 = vadd.f32 %v4527_v46, %v4329_v23 }
 0x18b   :  { %v3507_v34 = vadd.f32 %v4530_v63, %v4329_v23 }
 0x18d   :  { %v4531_v52 = vpop.f32.mrb[28].mxu1 }
 0x18e   :  { %v4532_v53 = vpop.f32.mrb[29].mxu1 }
 0x18f   :  { %v4533_v54 = vadd.f32 %v4532_v53, %v4531_v52  ;;  %v4534_v18 = vpop.f32.mrb[30].mxu1 }
 0x190   :  { %v4535_v57 = vpop.f32.mrb[31].mxu1 }
 0x191   :  { %v4536_v58 = vadd.f32 %v4535_v57, %v4534_v18  ;;  %v3512_v31 = vadd.f32 %v4533_v54, %v4329_v23 }
 0x193   :  { %v3515_v50 = vadd.f32 %v4536_v58, %v4329_v23 }
 0x195   :  { %v4553_v60 = vpop.f32.mrb[32].mxu1 }
 0x196   :  { %v4554_v62 = vpop.f32.mrb[33].mxu1 }
 0x197   :  { %v4555_v1 = vadd.f32 %v4554_v62, %v4553_v60  ;;  %v4556_v5 = vpop.f32.mrb[34].mxu1 }
 0x198   :  { %v4557_v35 = vpop.f32.mrb[35].mxu1 }
 0x199   :  { %v3553_v43 = vadd.f32 %v4555_v1, %v3488_v30  ;;  %v4558_v45 = vadd.f32 %v4557_v35, %v4556_v5 }
 0x19b   :  { %v3556_v9 = vadd.f32 %v4558_v45, %v3491_v6 }
 0x19d   :  { %v4559_v56 = vpop.f32.mrb[36].mxu1 }
 0x19e   :  { %v4560_v12 = vpop.f32.mrb[37].mxu1 }
 0x19f   :  { %v4561_v16 = vadd.f32 %v4560_v12, %v4559_v56  ;;  %v4562_v55 = vpop.f32.mrb[38].mxu1 }
 0x1a0   :  { %v4563_v48 = vpop.f32.mrb[39].mxu1 }
 0x1a1   :  { %v3561_v4 = vadd.f32 %v4561_v16, %v3496_v13  ;;  %v4564_v11 = vadd.f32 %v4563_v48, %v4562_v55 }
 0x1a3   :  { %v3564_v27 = vadd.f32 %v4564_v11, %v3499_v7 }
 0x1a5   :  { %v4565_v15 = vpop.f32.mrb[40].mxu1 }
 0x1a6   :  { %v4566_v28 = vpop.f32.mrb[41].mxu1 }
 0x1a7   :  { %v4567_v29 = vadd.f32 %v4566_v28, %v4565_v15  ;;  %v4568_v33 = vpop.f32.mrb[42].mxu1 }
 0x1a8   :  { %v4569_v21 = vpop.f32.mrb[43].mxu1 }
 0x1a9   :  { %v3569_v36 = vadd.f32 %v4567_v29, %v3504_v19  ;;  %v4570_v37 = vadd.f32 %v4569_v21, %v4568_v33 }
 0x1ab   :  { %v3572_v38 = vadd.f32 %v4570_v37, %v3507_v34 }
 0x1ad   :  { %v4571_v8 = vpop.f32.mrb[44].mxu1 }
 0x1ae   :  { %v4572_v40 = vpop.f32.mrb[45].mxu1 }
 0x1af   :  { %v4573_v41 = vadd.f32 %v4572_v40, %v4571_v8  ;;  %v4574_v42 = vpop.f32.mrb[46].mxu1 }
 0x1b0   :  { %v4575_v44 = vpop.f32.mrb[47].mxu1 }
 0x1b1   :  { %v3577_v47 = vadd.f32 %v4573_v41, %v3512_v31  ;;  %v4576_v51 = vadd.f32 %v4575_v44, %v4574_v42 }
 0x1b3   :  { %v3580_v52 = vadd.f32 %v4576_v51, %v3515_v50 }
 0x1b5   :  { %v4593_v53 = vpop.f32.mrb[48].mxu1 }
 0x1b6   :  { %v4594_v18 = vpop.f32.mrb[49].mxu1 }
 0x1b7   :  { %v4595_v46 = vadd.f32 %v4594_v18, %v4593_v53  ;;  %v4596_v57 = vpop.f32.mrb[50].mxu1 }
 0x1b8   :  { %v4597_v60 = vpop.f32.mrb[51].mxu1 }
 0x1b9   :  { %v3618_v62 = vadd.f32 %v4595_v46, %v3553_v43  ;;  %v4598_v63 = vadd.f32 %v4597_v60, %v4596_v57 }
 0x1bb   :  { %v3621_v30 = vadd.f32 %v4598_v63, %v3556_v9 }
 0x1bd   :  { %v4599_v1 = vpop.f32.mrb[52].mxu1 }
 0x1be   :  { %v4600_v5 = vpop.f32.mrb[53].mxu1 }
 0x1bf   :  { %v4601_v35 = vadd.f32 %v4600_v5, %v4599_v1  ;;  %v4602_v6 = vpop.f32.mrb[54].mxu1 }
 0x1c0   :  { %v4603_v54 = vpop.f32.mrb[55].mxu1 }
 0x1c1   :  { %v3626_v45 = vadd.f32 %v4601_v35, %v3561_v4  ;;  %v4604_v56 = vadd.f32 %v4603_v54, %v4602_v6 }
 0x1c3   :  { %v3629_v12 = vadd.f32 %v4604_v56, %v3564_v27 }
 0x1c5   :  { %v4605_v58 = vpop.f32.mrb[56].mxu1 }
 0x1c6   :  { %v4606_v23 = vpop.f32.mrb[57].mxu1 }
 0x1c7   :  { %v4607_v13 = vadd.f32 %v4606_v23, %v4605_v58  ;;  %v4608_v16 = vpop.f32.mrb[58].mxu1 }
 0x1c8   :  { %v4609_v55 = vpop.f32.mrb[59].mxu1 }
 0x1c9   :  { %v3634_v48 = vadd.f32 %v4607_v13, %v3569_v36  ;;  %v4610_v7 = vadd.f32 %v4609_v55, %v4608_v16 }
 0x1cb   :  { %v3637_v11 = vadd.f32 %v4610_v7, %v3572_v38 }
 0x1cd   :  { %v4611_v15 = vpop.f32.mrb[60].mxu1 }
 0x1ce   :  { %v4612_v43 = vpop.f32.mrb[61].mxu1 }
 0x1cf   :  { %v4613_v28 = vadd.f32 %v4612_v43, %v4611_v15  ;;  %v4614_v9 = vpop.f32.mrb[62].mxu1 }
 0x1d0   :  { %v4615_v19 = vpop.f32.mrb[63].mxu1 }
 0x1d1   :  { %v3642_v29 = vadd.f32 %v4613_v28, %v3577_v47  ;;  %v4616_v33 = vadd.f32 %v4615_v19, %v4614_v9 }
 0x1d3   :  { %v3645_v21 = vadd.f32 %v4616_v33, %v3580_v52 }
 0x1d5   :  { %v4633_v34 = vpop.f32.mrb[64].mxu1 }
 0x1d6   :  { %v4634_v4 = vpop.f32.mrb[65].mxu1 }
 0x1d7   :  { %v4635_v37 = vadd.f32 %v4634_v4, %v4633_v34  ;;  %v4636_v27 = vpop.f32.mrb[66].mxu1 }
 0x1d8   :  { %v4637_v8 = vpop.f32.mrb[67].mxu1 }
 0x1d9   :  { %v3683_v40 = vadd.f32 %v4635_v37, %v3618_v62  ;;  %v4638_v31 = vadd.f32 %v4637_v8, %v4636_v27 }
 0x1db   :  { %v3686_v41 = vadd.f32 %v4638_v31, %v3621_v30 }
 0x1dd   :  { %v4639_v42 = vpop.f32.mrb[68].mxu1 }
 0x1de   :  { %v4640_v36 = vpop.f32.mrb[69].mxu1 }
 0x1df   :  { %v4641_v44 = vadd.f32 %v4640_v36, %v4639_v42  ;;  %v4642_v38 = vpop.f32.mrb[70].mxu1 }
 0x1e0   :  { %v4643_v50 = vpop.f32.mrb[71].mxu1 }
 0x1e1   :  { %v3691_v51 = vadd.f32 %v4641_v44, %v3626_v45  ;;  %v4644_v53 = vadd.f32 %v4643_v50, %v4642_v38 }
 0x1e3   :  { %v3694_v18 = vadd.f32 %v4644_v53, %v3629_v12 }
 0x1e5   :  { %v4645_v46 = vpop.f32.mrb[72].mxu1 }
 0x1e6   :  { %v4646_v47 = vpop.f32.mrb[73].mxu1 }
 0x1e7   :  { %v4647_v57 = vadd.f32 %v4646_v47, %v4645_v46  ;;  %v4648_v52 = vpop.f32.mrb[74].mxu1 }
 0x1e8   :  { %v4649_v60 = vpop.f32.mrb[75].mxu1 }
 0x1e9   :  { %v3699_v63 = vadd.f32 %v4647_v57, %v3634_v48  ;;  %v4650_v1 = vadd.f32 %v4649_v60, %v4648_v52 }
 0x1eb   :  { %v3702_v5 = vadd.f32 %v4650_v1, %v3637_v11 }
 0x1ed   :  { %v4651_v35 = vpop.f32.mrb[76].mxu1 }
 0x1ee   :  { %v4652_v62 = vpop.f32.mrb[77].mxu1 }
 0x1ef   :  { %v4653_v6 = vadd.f32 %v4652_v62, %v4651_v35  ;;  %v4654_v30 = vpop.f32.mrb[78].mxu1 }
 0x1f0   :  { %v4655_v54 = vpop.f32.mrb[79].mxu1 }
 0x1f1   :  { %v3707_v56 = vadd.f32 %v4653_v6, %v3642_v29  ;;  %v4656_v58 = vadd.f32 %v4655_v54, %v4654_v30 }
 0x1f3   :  { %v3710_v23 = vadd.f32 %v4656_v58, %v3645_v21 }
 0x1f5   :  { %v4673_v13 = vpop.f32.mrb[80].mxu1 }
 0x1f6   :  { %v4674_v45 = vpop.f32.mrb[81].mxu1 }
 0x1f7   :  { %v4675_v16 = vadd.f32 %v4674_v45, %v4673_v13  ;;  %v4676_v12 = vpop.f32.mrb[82].mxu1 }
 0x1f8   :  { %v4677_v55 = vpop.f32.mrb[83].mxu1 }
 0x1f9   :  { %v3748_v7 = vadd.f32 %v4675_v16, %v3683_v40  ;;  %v4678_v15 = vadd.f32 %v4677_v55, %v4676_v12 }
 0x1fb   :  { %v3751_v43 = vadd.f32 %v4678_v15, %v3686_v41 }
 0x1fd   :  { %v4679_v28 = vpop.f32.mrb[84].mxu1 }
 0x1fe   :  { %v4680_v48 = vpop.f32.mrb[85].mxu1 }
 0x1ff   :  { %v4681_v9 = vadd.f32 %v4680_v48, %v4679_v28  ;;  %v4682_v11 = vpop.f32.mrb[86].mxu1 }
 0x200   :  { %v4683_v19 = vpop.f32.mrb[87].mxu1 }
 0x201   :  { %v3756_v33 = vadd.f32 %v4681_v9, %v3691_v51  ;;  %v4684_v34 = vadd.f32 %v4683_v19, %v4682_v11  ;;  %v327_v11 = vld [vmem:[%s7212_s2] sm:$0x3] }
 0x203   :  { %v3759_v4 = vadd.f32 %v4684_v34, %v3694_v18 }
 0x205   :  { %v4685_v37 = vpop.f32.mrb[88].mxu1 }
 0x206   :  { %v4686_v29 = vpop.f32.mrb[89].mxu1 }
 0x207   :  { %v4687_v27 = vadd.f32 %v4686_v29, %v4685_v37  ;;  %v4688_v21 = vpop.f32.mrb[90].mxu1 }
 0x208   :  { %v4689_v8 = vpop.f32.mrb[91].mxu1 }
 0x209   :  { %v3764_v31 = vadd.f32 %v4687_v27, %v3699_v63  ;;  %v4690_v42 = vadd.f32 %v4689_v8, %v4688_v21 }
 0x20b   :  { %v3767_v36 = vadd.f32 %v4690_v42, %v3702_v5 }
 0x20d   :  { %v4691_v44 = vpop.f32.mrb[92].mxu1 }
 0x20e   :  { %v4692_v40 = vpop.f32.mrb[93].mxu1 }
 0x20f   :  { %v4693_v38 = vadd.f32 %v4692_v40, %v4691_v44  ;;  %v4694_v41 = vpop.f32.mrb[94].mxu1 }
 0x210   :  { %v4695_v50 = vpop.f32.mrb[95].mxu1 }
 0x211   :  { %v3772_v53 = vadd.f32 %v4693_v38, %v3707_v56  ;;  %v4696_v46 = vadd.f32 %v4695_v50, %v4694_v41  ;;  %v329_v56 = vlaneseq }
 0x213   :  { %v3775_v47 = vadd.f32 %v4696_v46, %v3710_v23  ;;  %v330_v15 = vshrl.u32 %v329_v56, 7 }
 0x215   :  { %v4713_v57 = vpop.f32.mrb[96].mxu1  ;;  %v331_v9 = vsub.s32 0, %v330_v15  ;;  %v335_v19 = vsub.s32 1, %v330_v15 }
 0x216   :  { %v4714_v51 = vpop.f32.mrb[97].mxu1 }
 0x217   :  { %v4715_v52 = vadd.f32 %v4714_v51, %v4713_v57  ;;  %v4716_v18 = vpop.f32.mrb[98].mxu1  ;;  %v7100_v29 = vrot.slane %v327_v11, %v331_v9  ;;  %v7102_v21 = vrot.slane %v327_v11, %v335_v19 }
 0x218   :  { %v4717_v60 = vpop.f32.mrb[99].mxu1 }
 0x219   :  { %v3813_v1 = vadd.f32 %v4715_v52, %v3748_v7  ;;  %v4718_v35 = vadd.f32 %v4717_v60, %v4716_v18  ;;  %v4831_v44 = vadd.f32 %v6979_v0, %v7102_v21  ;;  %v4833_v41 = vadd.f32 %v6986_v3, %v7100_v29 }
 0x21b   :  { %v3816_v62 = vadd.f32 %v4718_v35, %v3751_v43 }
 0x21d   :  { %v4719_v6 = vpop.f32.mrb[100].mxu1 }
 0x21e   :  { %v4720_v63 = vpop.f32.mrb[101].mxu1 }
 0x21f   :  { %v4721_v30 = vadd.f32 %v4720_v63, %v4719_v6  ;;  %v4722_v5 = vpop.f32.mrb[102].mxu1 }
 0x220   :  { %v4723_v54 = vpop.f32.mrb[103].mxu1 }
 0x221   :  { %v7089_v58 = vadd.f32 %v4721_v30, %v3756_v33  ;;  %v4724_v13 = vadd.f32 %v4723_v54, %v4722_v5  ;;  %v4837_v54 = vadd.f32 %v7013_v10, %v7100_v29  ;;  %v4843_v10 = vadd.f32 %v7025_v14, %v7102_v21 }
 0x223   :  { %v7091_v45 = vadd.f32 %v4724_v13, %v3759_v4  ;;  %v4839_v13 = vadd.f32 %v7016_v49, %v7102_v21 }
 0x225   :  { %v4725_v23 = vpop.f32.mrb[104].mxu1 }
 0x226   :  { %v4726_v16 = vpop.f32.mrb[105].mxu1 }
 0x227   :  { %v4727_v12 = vadd.f32 %v4726_v16, %v4725_v23  ;;  %v4728_v55 = vpop.f32.mrb[106].mxu1  ;;  %v4841_v23 = vadd.f32 %v7023_v61, %v7100_v29 }
 0x228   :  { %v4729_v28 = vpop.f32.mrb[107].mxu1 }
 0x229   :  { %v7093_v7 = vadd.f32 %v4727_v12, %v3764_v31  ;;  %v4730_v43 = vadd.f32 %v4729_v28, %v4728_v55 }
 0x22b   :  { %v7095_v48 = vadd.f32 %v4730_v43, %v3767_v36  ;;  %v4829_v36 = vadd.f32 %v6975_v32, %v7100_v29 }
 0x22d   :  { %v4731_v33 = vpop.f32.mrb[108].mxu1 }
 0x22e   :  { %v4732_v34 = vpop.f32.mrb[109].mxu1 }
 0x22f   :  { %v4733_v4 = vadd.f32 %v4732_v34, %v4731_v33  ;;  %v4734_v37 = vpop.f32.mrb[110].mxu1 }
 0x230   :  { %v4735_v27 = vpop.f32.mrb[111].mxu1 }
 0x231   :  { %v7104_v8 = vadd.f32 %v4733_v4, %v3772_v53  ;;  %v4736_v31 = vadd.f32 %v4735_v27, %v4734_v37  ;;  %v4845_v37 = vadd.f32 %v7035_v59, %v7100_v29  ;;  %v4847_v27 = vadd.f32 %v7038_v2, %v7102_v21 }
 0x232   :  { %v4851_v59 = vadd.f32 %v7047_v20, %v7102_v21 }
 0x233   :  { %v7106_v42 = vadd.f32 %v4736_v31, %v3775_v47  ;;  %v4835_v47 = vadd.f32 %v6994_v39, %v7102_v21 }
 0x235   :  { %v4753_v38 = vpop.f32.mrb[112].mxu1 }
 0x236   :  { %v2388_v40 = vpop.f32.mrb[0].mxu0  ;;  %v4754_v53 = vpop.f32.mrb[113].mxu1 }
 0x237   :  { %v4830_v50 = vadd.f32 %v4829_v36, %v2388_v40  ;;  %v2390_v46 = vpop.f32.mrb[1].mxu0  ;;  %v4755_v51 = vadd.f32 %v4754_v53, %v4753_v38  ;;  %v4756_v32 = vpop.f32.mrb[114].mxu1  ;;  %v4849_v36 = vadd.f32 %v7045_v17, %v7100_v29 }
 0x238   :  { %v4832_v57 = vadd.f32 %v4831_v44, %v2390_v46  ;;  %v2392_v52 = vpop.f32.mrb[2].mxu0  ;;  %v4757_v35 = vpop.f32.mrb[115].mxu1 }
 0x239   :  { %v4834_v0 = vadd.f32 %v4833_v41, %v2392_v52  ;;  %v2394_v60 = vpop.f32.mrb[3].mxu0  ;;  %v4758_v3 = vadd.f32 %v4757_v35, %v4756_v32  ;;  %v7120_v30 = vadd.f32 %v4755_v51, %v3813_v1 }
 0x23a   :  { %v4458_v6 = vpack.c.bf16 %v4832_v57, %v4830_v50  ;;  %v4836_v63 = vadd.f32 %v4835_v47, %v2394_v60  ;;  %v4855_v60 = vadd.f32 %v7060_v24, %v7102_v21 }
 0x23b   :  { %v7127_v5 = vadd.f32 %v4758_v3, %v3816_v62 }
 0x23c   :  { %2478 = vst.msk [vmem:[%s7213_s5] sm:$0xff] %vm7116_vm2, %v4458_v6  ;;  %v4459_v39 = vpack.c.bf16 %v4836_v63, %v4834_v0  ;;  %v4853_v0 = vadd.f32 %v7057_v22, %v7100_v29  ;;  %v4857_v6 = vadd.f32 %v7065_v25, %v7100_v29  ;;  %v4859_v22 = vadd.f32 %v7067_v26, %v7102_v21 }
 0x23d   :  { %v4759_v56 = vpop.f32.mrb[116].mxu1 }
 0x23e   :  { %2479 = vst.msk [vmem:[%s7213_s5 + $0x8] sm:$0xff] %vm7116_vm2, %v4459_v39  ;;  %v2398_v1 = vpop.f32.mrb[4].mxu0  ;;  %v4760_v12 = vpop.f32.mrb[117].mxu1 }
 0x23f   :  { %v4838_v16 = vadd.f32 %v4837_v54, %v2398_v1  ;;  %v2400_v62 = vpop.f32.mrb[5].mxu0  ;;  %v4761_v15 = vadd.f32 %v4760_v12, %v4759_v56  ;;  %v4762_v28 = vpop.f32.mrb[118].mxu1 }
 0x240   :  { %v4840_v55 = vadd.f32 %v4839_v13, %v2400_v62  ;;  %v2402_v49 = vpop.f32.mrb[6].mxu0  ;;  %v4763_v11 = vpop.f32.mrb[119].mxu1 }
 0x241   :  { %v4842_v43 = vadd.f32 %v4841_v23, %v2402_v49  ;;  %v2404_v9 = vpop.f32.mrb[7].mxu0  ;;  %v4764_v34 = vadd.f32 %v4763_v11, %v4762_v28  ;;  %v3886_v4 = vadd.f32 %v4761_v15, %v7089_v58 }
 0x242   :  { %v4460_v19 = vpack.c.bf16 %v4840_v55, %v4838_v16  ;;  %v4844_v33 = vadd.f32 %v4843_v10, %v2404_v9 }
 0x243   :  { %v3889_v14 = vadd.f32 %v4764_v34, %v7091_v45 }
 0x244   :  { %2480 = vst.msk [vmem:[%s7213_s5 + $0x10] sm:$0xff] %vm7116_vm2, %v4460_v19  ;;  %v4461_v61 = vpack.c.bf16 %v4844_v33, %v4842_v43 }
 0x245   :  { %v4765_v31 = vpop.f32.mrb[120].mxu1 }
 0x246   :  { %2481 = vst.msk [vmem:[%s7213_s5 + $0x18] sm:$0xff] %vm7116_vm2, %v4461_v61  ;;  %v2408_v58 = vpop.f32.mrb[8].mxu0  ;;  %v4766_v45 = vpop.f32.mrb[121].mxu1 }
 0x247   :  { %v4846_v44 = vadd.f32 %v4845_v37, %v2408_v58  ;;  %v2410_v40 = vpop.f32.mrb[9].mxu0  ;;  %v4767_v41 = vadd.f32 %v4766_v45, %v4765_v31  ;;  %v4768_v50 = vpop.f32.mrb[122].mxu1 }
 0x248   :  { %v4848_v38 = vadd.f32 %v4847_v27, %v2410_v40  ;;  %v2412_v2 = vpop.f32.mrb[10].mxu0  ;;  %v4769_v47 = vpop.f32.mrb[123].mxu1 }
 0x249   :  { %v4850_v46 = vadd.f32 %v4849_v36, %v2412_v2  ;;  %v2414_v53 = vpop.f32.mrb[11].mxu0  ;;  %v4770_v52 = vadd.f32 %v4769_v47, %v4768_v50  ;;  %v3894_v32 = vadd.f32 %v4767_v41, %v7093_v7 }
 0x24a   :  { %v4462_v57 = vpack.c.bf16 %v4848_v38, %v4846_v44  ;;  %v4852_v51 = vadd.f32 %v4851_v59, %v2414_v53 }
 0x24b   :  { %v3897_v20 = vadd.f32 %v4770_v52, %v7095_v48 }
 0x24c   :  { %2482 = vst.msk [vmem:[%s7213_s5 + $0x20] sm:$0xff] %vm7116_vm2, %v4462_v57  ;;  %v4463_v17 = vpack.c.bf16 %v4852_v51, %v4850_v46 }
 0x24d   :  { %v4771_v35 = vpop.f32.mrb[124].mxu1 }
 0x24e   :  { %2483 = vst.msk [vmem:[%s7213_s5 + $0x28] sm:$0xff] %vm7116_vm2, %v4463_v17  ;;  %v2418_v7 = vpop.f32.mrb[12].mxu0  ;;  %v4772_v48 = vpop.f32.mrb[125].mxu1 }
 0x24f   :  { %v4854_v63 = vadd.f32 %v4853_v0, %v2418_v7  ;;  %v2420_v3 = vpop.f32.mrb[13].mxu0  ;;  %v4773_v54 = vadd.f32 %v4772_v48, %v4771_v35  ;;  %v4774_v13 = vpop.f32.mrb[126].mxu1 }
 0x250   :  { %v4856_v39 = vadd.f32 %v4855_v60, %v2420_v3  ;;  %v2422_v24 = vpop.f32.mrb[14].mxu0  ;;  %v4775_v23 = vpop.f32.mrb[127].mxu1 }
 0x251   :  { %v4858_v1 = vadd.f32 %v4857_v6, %v2422_v24  ;;  %v2424_v56 = vpop.f32.mrb[15].mxu0  ;;  %v4776_v12 = vadd.f32 %v4775_v23, %v4774_v13  ;;  %v3902_v10 = vadd.f32 %v4773_v54, %v7104_v8 }
 0x252   :  { %v4464_v16 = vpack.c.bf16 %v4856_v39, %v4854_v63  ;;  %v4860_v62 = vadd.f32 %v4859_v22, %v2424_v56 }
 0x253   :  { %v3905_v26 = vadd.f32 %v4776_v12, %v7106_v42 }
 0x254   :  { %2484 = vst.msk [vmem:[%s7213_s5 + $0x30] sm:$0xff] %vm7116_vm2, %v4464_v16  ;;  %v4465_v25 = vpack.c.bf16 %v4860_v62, %v4858_v1 }
 0x255   :  { %v4811_v21 = vpop.f32.mrb[128].mxu1 }
 0x256   :  { %2485 = vst.msk [vmem:[%s7213_s5 + $0x38] sm:$0xff] %vm7116_vm2, %v4465_v25  ;;  %v4807_v29 = vpop.f32.mrb[16].mxu0  ;;  %v3967_v15 = vadd.f32 %v4811_v21, %v3902_v10  ;;  %v3958_v49 = vpop.f32.mrb[129].mxu1 }
 0x257   :  { %v3951_v55 = vadd.f32 %v4807_v29, %v3886_v4  ;;  %v3942_v8 = vpop.f32.mrb[17].mxu0  ;;  %v3959_v43 = vadd.f32 %v3958_v49, %v3894_v32  ;;  %v4812_v11 = vpop.f32.mrb[130].mxu1 }
 0x258   :  { %v3943_v28 = vadd.f32 %v3942_v8, %v7120_v30  ;;  %v4808_v9 = vpop.f32.mrb[18].mxu0  ;;  %v3970_v33 = vadd.f32 %v4812_v11, %v3905_v26  ;;  %v3961_v34 = vpop.f32.mrb[131].mxu1 }
 0x259   :  { %v3954_v19 = vadd.f32 %v4808_v9, %v3889_v14  ;;  %v3945_v42 = vpop.f32.mrb[19].mxu0  ;;  %v3962_v61 = vadd.f32 %v3961_v34, %v3897_v20 }
 0x25a   :  { %v3946_v18 = vadd.f32 %v3945_v42, %v7127_v5  ;;  %v4492_v27 = vpack.c.bf16 %v3970_v33, %v3967_v15 }
 0x25b   :  { %v4482_v37 = vpack.c.bf16 %v3954_v19, %v3951_v55  ;;  %v4487_v31 = vpack.c.bf16 %v3962_v61, %v3959_v43 }
 0x25c   :  { %v4477_v58 = vpack.c.bf16 %v3946_v18, %v3943_v28  ;;  %4496 = vst [vmem:[%s7214_s6 + $0x18] sm:$0xff] %v4492_v27  }
 0x25d   :  { %4494 = vst [vmem:[%s7214_s6 + $0x8] sm:$0xff] %v4482_v37   ;;  %4495 = vst [vmem:[%s7214_s6 + $0x10] sm:$0xff] %v4487_v31  }
 0x25e   :  { %4478 = vst [vmem:[%s7214_s6] sm:$0xff] %v4477_v58  }

// kernel: inception_c.9
= control target key start
LH: loop header
LB: loop body
LE: loop exit
PB: predicated region body
PF: predicated region fallthrough
CT: control target
= control target key end

     0   :  { %vm3268_vm0 = vcmask 523264   ;;  %s8230_s3 = inlined_call_operand.vmem [shape: bf16[256,1920], index: 3, kind: input, shape index: {}]   ;;  %s8231_s1 = inlined_call_operand.vmem [shape: bf16[64,256], index: 1, kind: input, shape index: {}]   ;;  %s8232_s2 = inlined_call_operand.vmem [shape: bf16[192,1920], index: 2, kind: input, shape index: {}]   ;;  %s8233_s0 = inlined_call_operand.vmem [shape: bf16[64,192], index: 0, kind: input, shape index: {}]   ;;  %s8234_s4 = inlined_call_operand.vmem [shape: f32[1,1920], index: 4, kind: input, shape index: {}]   ;;  %s8235_s5 = inlined_call_operand.vmem [shape: f32[64,1920], index: 5, kind: input, shape index: {}]   ;;  %s8236_s6 = inlined_call_operand.vmem [shape: f32[64,1920], index: 6, kind: output, shape index: {}]  }
   0x1   :  { %v5041_v0 = vld [vmem:[%s8230_s3 + $0x4] ss:$60 sps:$4 sm:$0xff]   ;;  %v5043_v1 = vld [vmem:[%s8230_s3 + $0xc] ss:$60 sps:$4 sm:$0xff]   ;;  %v5047_v4 = vld [vmem:[%s8230_s3 + $0x7c] ss:$60 sps:$4 sm:$0xff]  }
   0x2   :  { %1744 = vmatprep.subr.bf16.mxu0 %v5041_v0  ;;  %v5045_v2 = vld [vmem:[%s8230_s3] ss:$60 sps:$4 sm:$0xff]   ;;  %v5046_v3 = vld [vmem:[%s8230_s3 + $0x8] ss:$60 sps:$4 sm:$0xff]   ;;  %1817 = vmatprep.subr.bf16.mxu1 %v5043_v1  ;;  %v5051_v6 = vld [vmem:[%s8230_s3 + $0x78] ss:$60 sps:$4 sm:$0xff]  }
   0x3   :  { %1745 = vmatpush1.bf16.msra.mxu0 %v5045_v2  ;;  %1818 = vmatpush1.bf16.msra.mxu1 %v5046_v3  ;;  %v5049_v5 = vld [vmem:[%s8230_s3 + $0x84] ss:$60 sps:$4 sm:$0xff]   ;;  %v5053_v8 = vld [vmem:[%s8230_s3 + $0xf4] ss:$60 sps:$4 sm:$0xff]   ;;  %v5055_v9 = vld [vmem:[%s8230_s3 + $0xfc] ss:$60 sps:$4 sm:$0xff]  }
   0x4   :  { %1746 = vmatprep.subr.bf16.mxu0 %v5047_v4  ;;  %v5052_v7 = vld [vmem:[%s8230_s3 + $0x80] ss:$60 sps:$4 sm:$0xff]   ;;  %1819 = vmatprep.subr.bf16.mxu1 %v5049_v5  ;;  %v5057_v10 = vld [vmem:[%s8230_s3 + $0xf0] ss:$60 sps:$4 sm:$0xff]   ;;  %v5058_v11 = vld [vmem:[%s8230_s3 + $0xf8] ss:$60 sps:$4 sm:$0xff]  }
   0x5   :  { %v5059_v12 = vld [vmem:[%s8230_s3 + $0x16c] ss:$60 sps:$4 sm:$0xff]   ;;  %v5061_v13 = vld [vmem:[%s8230_s3 + $0x174] ss:$60 sps:$4 sm:$0xff]   ;;  %v5065_v16 = vld [vmem:[%s8230_s3 + $0x1e4] ss:$60 sps:$4 sm:$0xff]  }
   0x6   :  { %v5063_v14 = vld [vmem:[%s8230_s3 + $0x168] ss:$60 sps:$4 sm:$0xff]   ;;  %v5064_v15 = vld [vmem:[%s8230_s3 + $0x170] ss:$60 sps:$4 sm:$0xff]   ;;  %v5069_v18 = vld [vmem:[%s8230_s3 + $0x1e0] ss:$60 sps:$4 sm:$0xff]  }
   0x7   :  { %1747 = vmatpush1.bf16.msra.mxu0 %v5051_v6  ;;  %1820 = vmatpush1.bf16.msra.mxu1 %v5052_v7  ;;  %v5067_v17 = vld [vmem:[%s8230_s3 + $0x1ec] ss:$60 sps:$4 sm:$0xff]   ;;  %v5071_v20 = vld [vmem:[%s8230_s3 + $0x25c] ss:$60 sps:$4 sm:$0xff]   ;;  %v5073_v21 = vld [vmem:[%s8230_s3 + $0x264] ss:$60 sps:$4 sm:$0xff]  }
   0x8   :  { %1748 = vmatprep.subr.bf16.mxu0 %v5053_v8  ;;  %1821 = vmatprep.subr.bf16.mxu1 %v5055_v9  ;;  %v5070_v19 = vld [vmem:[%s8230_s3 + $0x1e8] ss:$60 sps:$4 sm:$0xff]   ;;  %v5075_v22 = vld [vmem:[%s8230_s3 + $0x258] ss:$60 sps:$4 sm:$0xff]   ;;  %v5076_v23 = vld [vmem:[%s8230_s3 + $0x260] ss:$60 sps:$4 sm:$0xff]  }
   0x9   :  { %v5077_v24 = vld [vmem:[%s8230_s3 + $0x2d4] ss:$60 sps:$4 sm:$0xff]   ;;  %v5079_v25 = vld [vmem:[%s8230_s3 + $0x2dc] ss:$60 sps:$4 sm:$0xff]   ;;  %v5083_v28 = vld [vmem:[%s8230_s3 + $0x34c] ss:$60 sps:$4 sm:$0xff]  }
   0xa   :  { %v5081_v26 = vld [vmem:[%s8230_s3 + $0x2d0] ss:$60 sps:$4 sm:$0xff]   ;;  %v5082_v27 = vld [vmem:[%s8230_s3 + $0x2d8] ss:$60 sps:$4 sm:$0xff]   ;;  %v5087_v30 = vld [vmem:[%s8230_s3 + $0x348] ss:$60 sps:$4 sm:$0xff]  }
   0xb   :  { %1749 = vmatpush1.bf16.msra.mxu0 %v5057_v10  ;;  %1822 = vmatpush1.bf16.msra.mxu1 %v5058_v11  ;;  %v5085_v29 = vld [vmem:[%s8230_s3 + $0x354] ss:$60 sps:$4 sm:$0xff]   ;;  %v5089_v32 = vld [vmem:[%s8230_s3 + $0x3c4] ss:$60 sps:$4 sm:$0xff]   ;;  %v5091_v33 = vld [vmem:[%s8230_s3 + $0x3cc] ss:$60 sps:$4 sm:$0xff]  }
   0xc   :  { %1750 = vmatprep.subr.bf16.mxu0 %v5059_v12  ;;  %1823 = vmatprep.subr.bf16.mxu1 %v5061_v13  ;;  %v5088_v31 = vld [vmem:[%s8230_s3 + $0x350] ss:$60 sps:$4 sm:$0xff]   ;;  %v5093_v34 = vld [vmem:[%s8230_s3 + $0x3c0] ss:$60 sps:$4 sm:$0xff]   ;;  %v5094_v35 = vld [vmem:[%s8230_s3 + $0x3c8] ss:$60 sps:$4 sm:$0xff]  }
   0xd   :  { %v5095_v36 = vld [vmem:[%s8230_s3 + $0x43c] ss:$60 sps:$4 sm:$0xff]   ;;  %v5097_v37 = vld [vmem:[%s8230_s3 + $0x444] ss:$60 sps:$4 sm:$0xff]   ;;  %v5101_v40 = vld [vmem:[%s8230_s3 + $0x4b4] ss:$60 sps:$4 sm:$0xff]  }
   0xe   :  { %v5099_v38 = vld [vmem:[%s8230_s3 + $0x438] ss:$60 sps:$4 sm:$0xff]   ;;  %v5100_v39 = vld [vmem:[%s8230_s3 + $0x440] ss:$60 sps:$4 sm:$0xff]   ;;  %v5105_v42 = vld [vmem:[%s8230_s3 + $0x4b0] ss:$60 sps:$4 sm:$0xff]  }
   0xf   :  { %1751 = vmatpush1.bf16.msra.mxu0 %v5063_v14  ;;  %1824 = vmatpush1.bf16.msra.mxu1 %v5064_v15  ;;  %v5103_v41 = vld [vmem:[%s8230_s3 + $0x4bc] ss:$60 sps:$4 sm:$0xff]   ;;  %v5107_v44 = vld [vmem:[%s8230_s3 + $0x52c] ss:$60 sps:$4 sm:$0xff]   ;;  %v5109_v45 = vld [vmem:[%s8230_s3 + $0x534] ss:$60 sps:$4 sm:$0xff]  }
  0x10   :  { %1752 = vmatprep.subr.bf16.mxu0 %v5065_v16  ;;  %1825 = vmatprep.subr.bf16.mxu1 %v5067_v17  ;;  %v5106_v43 = vld [vmem:[%s8230_s3 + $0x4b8] ss:$60 sps:$4 sm:$0xff]   ;;  %v5111_v46 = vld [vmem:[%s8230_s3 + $0x528] ss:$60 sps:$4 sm:$0xff]   ;;  %v5112_v48 = vld [vmem:[%s8230_s3 + $0x530] ss:$60 sps:$4 sm:$0xff]  }
  0x11   :  { %v5869_v47 = vld [vmem:[%s8231_s1 + $0x4] ss:$8 sps:$4 sm:$0xff]   ;;  %v5117_v51 = vld [vmem:[%s8230_s3 + $0x5a0] ss:$60 sps:$4 sm:$0xff]   ;;  %v5123_v55 = vld [vmem:[%s8230_s3 + $0x618] ss:$60 sps:$4 sm:$0xff]  }
  0x12   :  { %v5113_v49 = vld [vmem:[%s8230_s3 + $0x5a4] ss:$60 sps:$4 sm:$0xff]   ;;  %v5115_v50 = vld [vmem:[%s8230_s3 + $0x5ac] ss:$60 sps:$4 sm:$0xff]   ;;  %1776 = vmatprep.mubr.bf16.mxu0 %v5869_v47  ;;  %1849 = vmatprep.mubr.bf16.mxu1 %v5869_v47  ;;  %v5119_v53 = vld [vmem:[%s8230_s3 + $0x61c] ss:$60 sps:$4 sm:$0xff]  }
  0x13   :  { %1753 = vmatpush1.bf16.msra.mxu0 %v5069_v18  ;;  %1826 = vmatpush1.bf16.msra.mxu1 %v5070_v19  ;;  %v5118_v52 = vld [vmem:[%s8230_s3 + $0x5a8] ss:$60 sps:$4 sm:$0xff]   ;;  %v5124_v56 = vld [vmem:[%s8230_s3 + $0x620] ss:$60 sps:$4 sm:$0xff]   ;;  %v5125_v57 = vld [vmem:[%s8230_s3 + $0x694] ss:$60 sps:$4 sm:$0xff]  }
  0x14   :  { %1754 = vmatprep.subr.bf16.mxu0 %v5071_v20  ;;  %1827 = vmatprep.subr.bf16.mxu1 %v5073_v21  ;;  %v5121_v54 = vld [vmem:[%s8230_s3 + $0x624] ss:$60 sps:$4 sm:$0xff]   ;;  %v5127_v58 = vld [vmem:[%s8230_s3 + $0x69c] ss:$60 sps:$4 sm:$0xff]   ;;  %v5129_v59 = vld [vmem:[%s8230_s3 + $0x690] ss:$60 sps:$4 sm:$0xff]  }
  0x15   :  { %v5130_v60 = vld [vmem:[%s8230_s3 + $0x698] ss:$60 sps:$4 sm:$0xff]   ;;  %v5131_v61 = vld [vmem:[%s8230_s3 + $0x70c] ss:$60 sps:$4 sm:$0xff]   ;;  %v5154_v10 = vld [vmem:[%s8230_s3 + $0x104] ss:$60 sps:$4 sm:$0xff]  }
  0x16   :  { %v5133_v62 = vld [vmem:[%s8230_s3 + $0x714] ss:$60 sps:$4 sm:$0xff]   ;;  %v5135_v63 = vld [vmem:[%s8230_s3 + $0x708] ss:$60 sps:$4 sm:$0xff]   ;;  %v5144_v2 = vld [vmem:[%s8230_s3 + $0x1c] ss:$60 sps:$4 sm:$0xff]  }
  0x17   :  { %1755 = vmatpush1.bf16.msra.mxu0 %v5075_v22  ;;  %1828 = vmatpush1.bf16.msra.mxu1 %v5076_v23  ;;  %v5136_v0 = vld [vmem:[%s8230_s3 + $0x710] ss:$60 sps:$4 sm:$0xff]   ;;  %v5142_v4 = vld [vmem:[%s8230_s3 + $0x18] ss:$60 sps:$4 sm:$0xff]   ;;  %v5939_v5 = vld [vmem:[%s8231_s1] ss:$8 sps:$4 sm:$0xff]  }
  0x18   :  { %1756 = vmatprep.subr.bf16.mxu0 %v5077_v24  ;;  %1829 = vmatprep.subr.bf16.mxu1 %v5079_v25  ;;  %v5141_v1 = vld [vmem:[%s8230_s3 + $0x14] ss:$60 sps:$4 sm:$0xff]   ;;  %v5148_v6 = vld [vmem:[%s8230_s3 + $0x8c] ss:$60 sps:$4 sm:$0xff]   ;;  %v5152_v12 = vld [vmem:[%s8230_s3 + $0x100] ss:$60 sps:$4 sm:$0xff]  }
  0x19   :  { %v5139_v3 = vld [vmem:[%s8230_s3 + $0x10] ss:$60 sps:$4 sm:$0xff]   ;;  %v5146_v8 = vld [vmem:[%s8230_s3 + $0x88] ss:$60 sps:$4 sm:$0xff]   ;;  %v5967_v13 = vld [vmem:[%s8231_s1 + $0x14] ss:$8 sps:$4 sm:$0xff]  }
  0x1a   :  { %v5151_v7 = vld [vmem:[%s8230_s3 + $0x94] ss:$60 sps:$4 sm:$0xff]   ;;  %v5157_v11 = vld [vmem:[%s8230_s3 + $0x10c] ss:$60 sps:$4 sm:$0xff]   ;;  %v5160_v15 = vld [vmem:[%s8230_s3 + $0x17c] ss:$60 sps:$4 sm:$0xff]  }
  0x1b   :  { %1757 = vmatpush1.bf16.msra.mxu0 %v5081_v26  ;;  %1830 = vmatpush1.bf16.msra.mxu1 %v5082_v27  ;;  %v5149_v9 = vld [vmem:[%s8230_s3 + $0x90] ss:$60 sps:$4 sm:$0xff]   ;;  %v5155_v14 = vld [vmem:[%s8230_s3 + $0x108] ss:$60 sps:$4 sm:$0xff]   ;;  %v5158_v18 = vld [vmem:[%s8230_s3 + $0x178] ss:$60 sps:$4 sm:$0xff]  }
  0x1c   :  { %1758 = vmatprep.subr.bf16.mxu0 %v5083_v28  ;;  %1831 = vmatprep.subr.bf16.mxu1 %v5085_v29  ;;  %v5163_v16 = vld [vmem:[%s8230_s3 + $0x184] ss:$60 sps:$4 sm:$0xff]   ;;  %v5983_v17 = vld [vmem:[%s8231_s1 + $0x10] ss:$8 sps:$4 sm:$0xff]   ;;  %v5172_v25 = vld [vmem:[%s8230_s3 + $0x26c] ss:$60 sps:$4 sm:$0xff]  }
  0x1d   :  { %v5161_v19 = vld [vmem:[%s8230_s3 + $0x180] ss:$60 sps:$4 sm:$0xff]   ;;  %v5166_v20 = vld [vmem:[%s8230_s3 + $0x1f4] ss:$60 sps:$4 sm:$0xff]   ;;  %v6002_v22 = vld [vmem:[%s8231_s1 + $0x24] ss:$8 sps:$4 sm:$0xff]  }
  0x1e   :  { %v5169_v21 = vld [vmem:[%s8230_s3 + $0x1fc] ss:$60 sps:$4 sm:$0xff]   ;;  %v5164_v23 = vld [vmem:[%s8230_s3 + $0x1f0] ss:$60 sps:$4 sm:$0xff]   ;;  %v5170_v27 = vld [vmem:[%s8230_s3 + $0x268] ss:$60 sps:$4 sm:$0xff]  }
  0x1f   :  { %1759 = vmatpush1.bf16.msra.mxu0 %v5087_v30  ;;  %1832 = vmatpush1.bf16.msra.mxu1 %v5088_v31  ;;  %v5167_v24 = vld [vmem:[%s8230_s3 + $0x1f8] ss:$60 sps:$4 sm:$0xff]   ;;  %v6024_v28 = vld [vmem:[%s8231_s1 + $0x20] ss:$8 sps:$4 sm:$0xff]   ;;  %v5173_v29 = vld [vmem:[%s8230_s3 + $0x270] ss:$60 sps:$4 sm:$0xff]  }
  0x20   :  { %1760 = vmatprep.subr.bf16.mxu0 %v5089_v32  ;;  %1833 = vmatprep.subr.bf16.mxu1 %v5091_v33  ;;  %v5175_v26 = vld [vmem:[%s8230_s3 + $0x274] ss:$60 sps:$4 sm:$0xff]   ;;  %v5178_v30 = vld [vmem:[%s8230_s3 + $0x2e4] ss:$60 sps:$4 sm:$0xff]   ;;  %v5181_v32 = vld [vmem:[%s8230_s3 + $0x2ec] ss:$60 sps:$4 sm:$0xff]  }
  0x21   :  { %v6035_v31 = vld [vmem:[%s8231_s1 + $0x34] ss:$8 sps:$4 sm:$0xff]  }
  0x22   :  { %v5176_v33 = vld [vmem:[%s8230_s3 + $0x2e0] ss:$60 sps:$4 sm:$0xff]  }
  0x23   :  { %1761 = vmatpush1.bf16.msra.mxu0 %v5093_v34  ;;  %1834 = vmatpush1.bf16.msra.mxu1 %v5094_v35  ;;  %v5179_v34 = vld [vmem:[%s8230_s3 + $0x2e8] ss:$60 sps:$4 sm:$0xff]   ;;  %v5184_v35 = vld [vmem:[%s8230_s3 + $0x35c] ss:$60 sps:$4 sm:$0xff]  }
  0x24   :  { %1762 = vmatprep.subr.bf16.mxu0 %v5095_v36  ;;  %1835 = vmatprep.subr.bf16.mxu1 %v5097_v37  ;;  %v5187_v36 = vld [vmem:[%s8230_s3 + $0x364] ss:$60 sps:$4 sm:$0xff]   ;;  %v6059_v37 = vld [vmem:[%s8231_s1 + $0x30] ss:$8 sps:$4 sm:$0xff]  }
  0x27   :  { %1763 = vmatpush1.bf16.msra.mxu0 %v5099_v38  ;;  %1836 = vmatpush1.bf16.msra.mxu1 %v5100_v39  ;;  %v5182_v38 = vld [vmem:[%s8230_s3 + $0x358] ss:$60 sps:$4 sm:$0xff]   ;;  %v5185_v39 = vld [vmem:[%s8230_s3 + $0x360] ss:$60 sps:$4 sm:$0xff]  }
  0x28   :  { %1764 = vmatprep.subr.bf16.mxu0 %v5101_v40  ;;  %1837 = vmatprep.subr.bf16.mxu1 %v5103_v41  ;;  %v5190_v40 = vld [vmem:[%s8230_s3 + $0x3d4] ss:$60 sps:$4 sm:$0xff]   ;;  %v5193_v41 = vld [vmem:[%s8230_s3 + $0x3dc] ss:$60 sps:$4 sm:$0xff]  }
  0x2b   :  { %1765 = vmatpush1.bf16.msra.mxu0 %v5105_v42  ;;  %1838 = vmatpush1.bf16.msra.mxu1 %v5106_v43  ;;  %v5188_v42 = vld [vmem:[%s8230_s3 + $0x3d0] ss:$60 sps:$4 sm:$0xff]   ;;  %v5191_v43 = vld [vmem:[%s8230_s3 + $0x3d8] ss:$60 sps:$4 sm:$0xff]  }
  0x2c   :  { %1766 = vmatprep.subr.bf16.mxu0 %v5107_v44  ;;  %1839 = vmatprep.subr.bf16.mxu1 %v5109_v45  ;;  %v5196_v44 = vld [vmem:[%s8230_s3 + $0x44c] ss:$60 sps:$4 sm:$0xff]   ;;  %v5199_v45 = vld [vmem:[%s8230_s3 + $0x454] ss:$60 sps:$4 sm:$0xff]  }
  0x2f   :  { %1767 = vmatpush1.bf16.msra.mxu0 %v5111_v46  ;;  %1840 = vmatpush1.bf16.msra.mxu1 %v5112_v48  ;;  %v5194_v46 = vld [vmem:[%s8230_s3 + $0x448] ss:$60 sps:$4 sm:$0xff]   ;;  %v5197_v48 = vld [vmem:[%s8230_s3 + $0x450] ss:$60 sps:$4 sm:$0xff]  }
  0x30   :  { %1768 = vmatprep.subr.bf16.mxu0 %v5113_v49  ;;  %1841 = vmatprep.subr.bf16.mxu1 %v5115_v50  ;;  %v5204_v49 = vld [vmem:[%s8230_s3 + $0x4c4] ss:$60 sps:$4 sm:$0xff]   ;;  %v5207_v50 = vld [vmem:[%s8230_s3 + $0x4cc] ss:$60 sps:$4 sm:$0xff]  }
  0x33   :  { %1769 = vmatpush1.bf16.msra.mxu0 %v5117_v51  ;;  %1842 = vmatpush1.bf16.msra.mxu1 %v5118_v52  ;;  %v5202_v51 = vld [vmem:[%s8230_s3 + $0x4c0] ss:$60 sps:$4 sm:$0xff]   ;;  %v5205_v52 = vld [vmem:[%s8230_s3 + $0x4c8] ss:$60 sps:$4 sm:$0xff]  }
  0x34   :  { %1770 = vmatprep.subr.bf16.mxu0 %v5119_v53  ;;  %1843 = vmatprep.subr.bf16.mxu1 %v5121_v54  ;;  %v5211_v53 = vld [vmem:[%s8230_s3 + $0x53c] ss:$60 sps:$4 sm:$0xff]   ;;  %v5214_v54 = vld [vmem:[%s8230_s3 + $0x544] ss:$60 sps:$4 sm:$0xff]  }
  0x37   :  { %1771 = vmatpush1.bf16.msra.mxu0 %v5123_v55  ;;  %1844 = vmatpush1.bf16.msra.mxu1 %v5124_v56  ;;  %v5209_v55 = vld [vmem:[%s8230_s3 + $0x538] ss:$60 sps:$4 sm:$0xff]   ;;  %v5212_v56 = vld [vmem:[%s8230_s3 + $0x540] ss:$60 sps:$4 sm:$0xff]  }
  0x38   :  { %1772 = vmatprep.subr.bf16.mxu0 %v5125_v57  ;;  %1845 = vmatprep.subr.bf16.mxu1 %v5127_v58  ;;  %v5219_v57 = vld [vmem:[%s8230_s3 + $0x5b4] ss:$60 sps:$4 sm:$0xff]   ;;  %v5222_v58 = vld [vmem:[%s8230_s3 + $0x5bc] ss:$60 sps:$4 sm:$0xff]  }
  0x3b   :  { %1773 = vmatpush1.bf16.msra.mxu0 %v5129_v59  ;;  %1846 = vmatpush1.bf16.msra.mxu1 %v5130_v60  ;;  %v5217_v59 = vld [vmem:[%s8230_s3 + $0x5b0] ss:$60 sps:$4 sm:$0xff]   ;;  %v5220_v60 = vld [vmem:[%s8230_s3 + $0x5b8] ss:$60 sps:$4 sm:$0xff]  }
  0x3c   :  { %1774 = vmatprep.subr.bf16.mxu0 %v5131_v61  ;;  %1847 = vmatprep.subr.bf16.mxu1 %v5133_v62  ;;  %v5226_v61 = vld [vmem:[%s8230_s3 + $0x62c] ss:$60 sps:$4 sm:$0xff]   ;;  %v5229_v62 = vld [vmem:[%s8230_s3 + $0x634] ss:$60 sps:$4 sm:$0xff]  }
  0x3f   :  { %1775 = vmatpush1.bf16.msra.mxu0 %v5135_v63  ;;  %1848 = vmatpush1.bf16.msra.mxu1 %v5136_v0  ;;  %v5224_v63 = vld [vmem:[%s8230_s3 + $0x628] ss:$60 sps:$4 sm:$0xff]   ;;  %v5227_v0 = vld [vmem:[%s8230_s3 + $0x630] ss:$60 sps:$4 sm:$0xff]  }
  0x40   :  { %1890 = vmatprep.subr.bf16.mxu0 %v5141_v1  ;;  %1963 = vmatprep.subr.bf16.mxu1 %v5144_v2  ;;  %v5234_v1 = vld [vmem:[%s8230_s3 + $0x6a4] ss:$60 sps:$4 sm:$0xff]   ;;  %v5237_v2 = vld [vmem:[%s8230_s3 + $0x6ac] ss:$60 sps:$4 sm:$0xff]  }
  0x42   :  { %1777 = vmatmul.mubr.bf16.vlgmr.msra.gmra.mrb[0].mxu0 %v5939_v5  ;;  %1850 = vmatmul.mubr.bf16.vlgmr.msra.gmra.mrb[0].mxu1 %v5939_v5 }
  0x43   :  { %1891 = vmatpush1.bf16.msra.mxu0 %v5139_v3  ;;  %1964 = vmatpush1.bf16.msra.mxu1 %v5142_v4  ;;  %v5232_v3 = vld [vmem:[%s8230_s3 + $0x6a0] ss:$60 sps:$4 sm:$0xff]   ;;  %v5235_v4 = vld [vmem:[%s8230_s3 + $0x6a8] ss:$60 sps:$4 sm:$0xff]  }
  0x44   :  { %1892 = vmatprep.subr.bf16.mxu0 %v5148_v6  ;;  %1965 = vmatprep.subr.bf16.mxu1 %v5151_v7  ;;  %v5241_v6 = vld [vmem:[%s8230_s3 + $0x71c] ss:$60 sps:$4 sm:$0xff]   ;;  %v5244_v7 = vld [vmem:[%s8230_s3 + $0x724] ss:$60 sps:$4 sm:$0xff]  }
  0x45   :  { %1786 = vmatprep.mubr.bf16.mxu0 %v5967_v13  ;;  %1859 = vmatprep.mubr.bf16.mxu1 %v5967_v13 }
  0x47   :  { %1893 = vmatpush1.bf16.msra.mxu0 %v5146_v8  ;;  %1966 = vmatpush1.bf16.msra.mxu1 %v5149_v9  ;;  %v5239_v8 = vld [vmem:[%s8230_s3 + $0x718] ss:$60 sps:$4 sm:$0xff]   ;;  %v5242_v9 = vld [vmem:[%s8230_s3 + $0x720] ss:$60 sps:$4 sm:$0xff]  }
  0x48   :  { %1894 = vmatprep.subr.bf16.mxu0 %v5154_v10  ;;  %1967 = vmatprep.subr.bf16.mxu1 %v5157_v11  ;;  %v5247_v10 = vld [vmem:[%s8230_s3 + $0x24] ss:$60 sps:$4 sm:$0xff]   ;;  %v5250_v11 = vld [vmem:[%s8230_s3 + $0x2c] ss:$60 sps:$4 sm:$0xff]  }
  0x4a   :  { %1787 = vmatmul.mubr.bf16.gmra.mrb[4].mxu0 %v5983_v17  ;;  %1860 = vmatmul.mubr.bf16.gmra.mrb[4].mxu1 %v5983_v17 }
  0x4b   :  { %1895 = vmatpush1.bf16.msra.mxu0 %v5152_v12  ;;  %1968 = vmatpush1.bf16.msra.mxu1 %v5155_v14  ;;  %v5245_v12 = vld [vmem:[%s8230_s3 + $0x20] ss:$60 sps:$4 sm:$0xff]   ;;  %v5248_v14 = vld [vmem:[%s8230_s3 + $0x28] ss:$60 sps:$4 sm:$0xff]  }
  0x4c   :  { %1896 = vmatprep.subr.bf16.mxu0 %v5160_v15  ;;  %1969 = vmatprep.subr.bf16.mxu1 %v5163_v16  ;;  %v5253_v15 = vld [vmem:[%s8230_s3 + $0x9c] ss:$60 sps:$4 sm:$0xff]   ;;  %v5256_v16 = vld [vmem:[%s8230_s3 + $0xa4] ss:$60 sps:$4 sm:$0xff]  }
  0x4d   :  { %1796 = vmatprep.mubr.bf16.mxu0 %v6002_v22  ;;  %1869 = vmatprep.mubr.bf16.mxu1 %v6002_v22 }
  0x4f   :  { %1897 = vmatpush1.bf16.msra.mxu0 %v5158_v18  ;;  %1970 = vmatpush1.bf16.msra.mxu1 %v5161_v19  ;;  %v5251_v18 = vld [vmem:[%s8230_s3 + $0x98] ss:$60 sps:$4 sm:$0xff]   ;;  %v5254_v19 = vld [vmem:[%s8230_s3 + $0xa0] ss:$60 sps:$4 sm:$0xff]  }
  0x50   :  { %1898 = vmatprep.subr.bf16.mxu0 %v5166_v20  ;;  %1971 = vmatprep.subr.bf16.mxu1 %v5169_v21  ;;  %v5259_v20 = vld [vmem:[%s8230_s3 + $0x114] ss:$60 sps:$4 sm:$0xff]   ;;  %v5262_v21 = vld [vmem:[%s8230_s3 + $0x11c] ss:$60 sps:$4 sm:$0xff]  }
  0x52   :  { %1797 = vmatmul.mubr.bf16.gmra.mrb[8].mxu0 %v6024_v28  ;;  %1870 = vmatmul.mubr.bf16.gmra.mrb[8].mxu1 %v6024_v28 }
  0x53   :  { %1899 = vmatpush1.bf16.msra.mxu0 %v5164_v23  ;;  %1972 = vmatpush1.bf16.msra.mxu1 %v5167_v24  ;;  %v5257_v23 = vld [vmem:[%s8230_s3 + $0x110] ss:$60 sps:$4 sm:$0xff]   ;;  %v5260_v24 = vld [vmem:[%s8230_s3 + $0x118] ss:$60 sps:$4 sm:$0xff]  }
  0x54   :  { %1900 = vmatprep.subr.bf16.mxu0 %v5172_v25  ;;  %1973 = vmatprep.subr.bf16.mxu1 %v5175_v26  ;;  %v5265_v25 = vld [vmem:[%s8230_s3 + $0x18c] ss:$60 sps:$4 sm:$0xff]   ;;  %v5268_v26 = vld [vmem:[%s8230_s3 + $0x194] ss:$60 sps:$4 sm:$0xff]  }
  0x55   :  { %1806 = vmatprep.mubr.bf16.mxu0 %v6035_v31  ;;  %1879 = vmatprep.mubr.bf16.mxu1 %v6035_v31 }
  0x57   :  { %1901 = vmatpush1.bf16.msra.mxu0 %v5170_v27  ;;  %1974 = vmatpush1.bf16.msra.mxu1 %v5173_v29  ;;  %v5263_v27 = vld [vmem:[%s8230_s3 + $0x188] ss:$60 sps:$4 sm:$0xff]   ;;  %v5266_v29 = vld [vmem:[%s8230_s3 + $0x190] ss:$60 sps:$4 sm:$0xff]  }
  0x58   :  { %1902 = vmatprep.subr.bf16.mxu0 %v5178_v30  ;;  %1975 = vmatprep.subr.bf16.mxu1 %v5181_v32  ;;  %v5271_v30 = vld [vmem:[%s8230_s3 + $0x204] ss:$60 sps:$4 sm:$0xff]   ;;  %v5274_v32 = vld [vmem:[%s8230_s3 + $0x20c] ss:$60 sps:$4 sm:$0xff]  }
  0x5a   :  { %1807 = vmatmul.mubr.bf16.gmra.mrb[12].mxu0 %v6059_v37  ;;  %1880 = vmatmul.mubr.bf16.gmra.mrb[12].mxu1 %v6059_v37 }
  0x5b   :  { %1903 = vmatpush1.bf16.msra.mxu0 %v5176_v33  ;;  %1976 = vmatpush1.bf16.msra.mxu1 %v5179_v34  ;;  %v5269_v33 = vld [vmem:[%s8230_s3 + $0x200] ss:$60 sps:$4 sm:$0xff]   ;;  %v5272_v34 = vld [vmem:[%s8230_s3 + $0x208] ss:$60 sps:$4 sm:$0xff]  }
  0x5c   :  { %1904 = vmatprep.subr.bf16.mxu0 %v5184_v35  ;;  %1977 = vmatprep.subr.bf16.mxu1 %v5187_v36  ;;  %v5277_v35 = vld [vmem:[%s8230_s3 + $0x27c] ss:$60 sps:$4 sm:$0xff]   ;;  %v5280_v36 = vld [vmem:[%s8230_s3 + $0x284] ss:$60 sps:$4 sm:$0xff]  }
  0x5d   :  { %1922 = vmatprep.mubr.bf16.mxu0 %v5869_v47  ;;  %1995 = vmatprep.mubr.bf16.mxu1 %v5869_v47 }
  0x5f   :  { %1905 = vmatpush1.bf16.msra.mxu0 %v5182_v38  ;;  %1978 = vmatpush1.bf16.msra.mxu1 %v5185_v39  ;;  %v5275_v38 = vld [vmem:[%s8230_s3 + $0x278] ss:$60 sps:$4 sm:$0xff]   ;;  %v5278_v39 = vld [vmem:[%s8230_s3 + $0x280] ss:$60 sps:$4 sm:$0xff]  }
  0x60   :  { %1906 = vmatprep.subr.bf16.mxu0 %v5190_v40  ;;  %1979 = vmatprep.subr.bf16.mxu1 %v5193_v41  ;;  %v5283_v40 = vld [vmem:[%s8230_s3 + $0x2f4] ss:$60 sps:$4 sm:$0xff]   ;;  %v5286_v41 = vld [vmem:[%s8230_s3 + $0x2fc] ss:$60 sps:$4 sm:$0xff]  }
  0x63   :  { %1907 = vmatpush1.bf16.msra.mxu0 %v5188_v42  ;;  %1980 = vmatpush1.bf16.msra.mxu1 %v5191_v43  ;;  %v5281_v42 = vld [vmem:[%s8230_s3 + $0x2f0] ss:$60 sps:$4 sm:$0xff]   ;;  %v5284_v43 = vld [vmem:[%s8230_s3 + $0x2f8] ss:$60 sps:$4 sm:$0xff]  }
  0x64   :  { %1908 = vmatprep.subr.bf16.mxu0 %v5196_v44  ;;  %1981 = vmatprep.subr.bf16.mxu1 %v5199_v45  ;;  %v5289_v44 = vld [vmem:[%s8230_s3 + $0x36c] ss:$60 sps:$4 sm:$0xff]   ;;  %v5292_v45 = vld [vmem:[%s8230_s3 + $0x374] ss:$60 sps:$4 sm:$0xff]  }
  0x67   :  { %1909 = vmatpush1.bf16.msra.mxu0 %v5194_v46  ;;  %1982 = vmatpush1.bf16.msra.mxu1 %v5197_v48  ;;  %v5287_v46 = vld [vmem:[%s8230_s3 + $0x368] ss:$60 sps:$4 sm:$0xff]   ;;  %v5290_v48 = vld [vmem:[%s8230_s3 + $0x370] ss:$60 sps:$4 sm:$0xff]  }
  0x68   :  { %1910 = vmatprep.subr.bf16.mxu0 %v5204_v49  ;;  %1983 = vmatprep.subr.bf16.mxu1 %v5207_v50  ;;  %v5295_v49 = vld [vmem:[%s8230_s3 + $0x3e4] ss:$60 sps:$4 sm:$0xff]   ;;  %v5298_v50 = vld [vmem:[%s8230_s3 + $0x3ec] ss:$60 sps:$4 sm:$0xff]  }
  0x6b   :  { %1911 = vmatpush1.bf16.msra.mxu0 %v5202_v51  ;;  %1984 = vmatpush1.bf16.msra.mxu1 %v5205_v52  ;;  %v5293_v51 = vld [vmem:[%s8230_s3 + $0x3e0] ss:$60 sps:$4 sm:$0xff]   ;;  %v5296_v52 = vld [vmem:[%s8230_s3 + $0x3e8] ss:$60 sps:$4 sm:$0xff]  }
  0x6c   :  { %1912 = vmatprep.subr.bf16.mxu0 %v5211_v53  ;;  %1985 = vmatprep.subr.bf16.mxu1 %v5214_v54  ;;  %v5301_v53 = vld [vmem:[%s8230_s3 + $0x45c] ss:$60 sps:$4 sm:$0xff]   ;;  %v5304_v54 = vld [vmem:[%s8230_s3 + $0x464] ss:$60 sps:$4 sm:$0xff]  }
  0x6f   :  { %1913 = vmatpush1.bf16.msra.mxu0 %v5209_v55  ;;  %1986 = vmatpush1.bf16.msra.mxu1 %v5212_v56  ;;  %v5302_v55 = vld [vmem:[%s8230_s3 + $0x460] ss:$60 sps:$4 sm:$0xff]   ;;  %v5307_v56 = vld [vmem:[%s8230_s3 + $0x4d4] ss:$60 sps:$4 sm:$0xff]  }
  0x70   :  { %1914 = vmatprep.subr.bf16.mxu0 %v5219_v57  ;;  %1987 = vmatprep.subr.bf16.mxu1 %v5222_v58  ;;  %v5310_v57 = vld [vmem:[%s8230_s3 + $0x4dc] ss:$60 sps:$4 sm:$0xff]   ;;  %v5305_v58 = vld [vmem:[%s8230_s3 + $0x4d0] ss:$60 sps:$4 sm:$0xff]  }
  0x73   :  { %1915 = vmatpush1.bf16.msra.mxu0 %v5217_v59  ;;  %1988 = vmatpush1.bf16.msra.mxu1 %v5220_v60  ;;  %v5308_v59 = vld [vmem:[%s8230_s3 + $0x4d8] ss:$60 sps:$4 sm:$0xff]   ;;  %v5313_v60 = vld [vmem:[%s8230_s3 + $0x54c] ss:$60 sps:$4 sm:$0xff]  }
  0x74   :  { %1916 = vmatprep.subr.bf16.mxu0 %v5226_v61  ;;  %1989 = vmatprep.subr.bf16.mxu1 %v5229_v62  ;;  %v5316_v61 = vld [vmem:[%s8230_s3 + $0x554] ss:$60 sps:$4 sm:$0xff]   ;;  %v5311_v62 = vld [vmem:[%s8230_s3 + $0x548] ss:$60 sps:$4 sm:$0xff]  }
  0x77   :  { %1917 = vmatpush1.bf16.msra.mxu0 %v5224_v63  ;;  %1990 = vmatpush1.bf16.msra.mxu1 %v5227_v0  ;;  %v5314_v63 = vld [vmem:[%s8230_s3 + $0x550] ss:$60 sps:$4 sm:$0xff]   ;;  %v5319_v0 = vld [vmem:[%s8230_s3 + $0x5c4] ss:$60 sps:$4 sm:$0xff]  }
  0x78   :  { %1918 = vmatprep.subr.bf16.mxu0 %v5234_v1  ;;  %1991 = vmatprep.subr.bf16.mxu1 %v5237_v2  ;;  %v5322_v1 = vld [vmem:[%s8230_s3 + $0x5cc] ss:$60 sps:$4 sm:$0xff]   ;;  %v5317_v2 = vld [vmem:[%s8230_s3 + $0x5c0] ss:$60 sps:$4 sm:$0xff]  }
  0x7b   :  { %1919 = vmatpush1.bf16.msra.mxu0 %v5232_v3  ;;  %1992 = vmatpush1.bf16.msra.mxu1 %v5235_v4  ;;  %v5320_v3 = vld [vmem:[%s8230_s3 + $0x5c8] ss:$60 sps:$4 sm:$0xff]   ;;  %v5325_v4 = vld [vmem:[%s8230_s3 + $0x63c] ss:$60 sps:$4 sm:$0xff]  }
  0x7c   :  { %1920 = vmatprep.subr.bf16.mxu0 %v5241_v6  ;;  %1993 = vmatprep.subr.bf16.mxu1 %v5244_v7  ;;  %v5328_v6 = vld [vmem:[%s8230_s3 + $0x644] ss:$60 sps:$4 sm:$0xff]   ;;  %v5323_v7 = vld [vmem:[%s8230_s3 + $0x638] ss:$60 sps:$4 sm:$0xff]  }
  0x7f   :  { %1921 = vmatpush1.bf16.msra.mxu0 %v5239_v8  ;;  %1994 = vmatpush1.bf16.msra.mxu1 %v5242_v9  ;;  %v5326_v8 = vld [vmem:[%s8230_s3 + $0x640] ss:$60 sps:$4 sm:$0xff]   ;;  %v5331_v9 = vld [vmem:[%s8230_s3 + $0x6b4] ss:$60 sps:$4 sm:$0xff]  }
  0x80   :  { %2036 = vmatprep.subr.bf16.mxu0 %v5247_v10  ;;  %2109 = vmatprep.subr.bf16.mxu1 %v5250_v11  ;;  %v5334_v10 = vld [vmem:[%s8230_s3 + $0x6bc] ss:$60 sps:$4 sm:$0xff]   ;;  %v5329_v11 = vld [vmem:[%s8230_s3 + $0x6b0] ss:$60 sps:$4 sm:$0xff]  }
  0x82   :  { %1923 = vmatmul.mubr.bf16.vlgmr.msra.gmra.mrb[16].mxu0 %v5939_v5  ;;  %1996 = vmatmul.mubr.bf16.vlgmr.msra.gmra.mrb[16].mxu1 %v5939_v5 }
  0x83   :  { %2037 = vmatpush1.bf16.msra.mxu0 %v5245_v12  ;;  %2110 = vmatpush1.bf16.msra.mxu1 %v5248_v14  ;;  %v5332_v12 = vld [vmem:[%s8230_s3 + $0x6b8] ss:$60 sps:$4 sm:$0xff]   ;;  %v5337_v14 = vld [vmem:[%s8230_s3 + $0x72c] ss:$60 sps:$4 sm:$0xff]  }
  0x84   :  { %2038 = vmatprep.subr.bf16.mxu0 %v5253_v15  ;;  %2111 = vmatprep.subr.bf16.mxu1 %v5256_v16  ;;  %v5340_v15 = vld [vmem:[%s8230_s3 + $0x734] ss:$60 sps:$4 sm:$0xff]   ;;  %v5335_v16 = vld [vmem:[%s8230_s3 + $0x728] ss:$60 sps:$4 sm:$0xff]  }
  0x85   :  { %1932 = vmatprep.mubr.bf16.mxu0 %v5967_v13  ;;  %2005 = vmatprep.mubr.bf16.mxu1 %v5967_v13 }
  0x87   :  { %2039 = vmatpush1.bf16.msra.mxu0 %v5251_v18  ;;  %2112 = vmatpush1.bf16.msra.mxu1 %v5254_v19  ;;  %v5338_v18 = vld [vmem:[%s8230_s3 + $0x730] ss:$60 sps:$4 sm:$0xff]  }
  0x88   :  { %2040 = vmatprep.subr.bf16.mxu0 %v5259_v20  ;;  %2113 = vmatprep.subr.bf16.mxu1 %v5262_v21  ;;  %v5343_v19 = vld [vmem:[%s8230_s3 + $0x34] ss:$60 sps:$4 sm:$0xff]  }
  0x89   :  { %v5344_v20 = vld [vmem:[%s8230_s3 + $0x3f8] ss:$60 sps:$4 sm:$0xff]   ;;  %v5341_v21 = vld [vmem:[%s8230_s3 + $0x30] ss:$60 sps:$4 sm:$0xff]  }
  0x8a   :  { %1933 = vmatmul.mubr.bf16.gmra.mrb[20].mxu0 %v5983_v17  ;;  %2006 = vmatmul.mubr.bf16.gmra.mrb[20].mxu1 %v5983_v17 }
  0x8b   :  { %2041 = vmatpush1.bf16.msra.mxu0 %v5257_v23  ;;  %2114 = vmatpush1.bf16.msra.mxu1 %v5260_v24  ;;  %v5345_v23 = vld [vmem:[%s8230_s3 + $0x38] ss:$60 sps:$4 sm:$0xff]   ;;  %v5348_v24 = vld [vmem:[%s8230_s3 + $0xac] ss:$60 sps:$4 sm:$0xff]  }
  0x8c   :  { %2042 = vmatprep.subr.bf16.mxu0 %v5265_v25  ;;  %2115 = vmatprep.subr.bf16.mxu1 %v5268_v26  ;;  %v5349_v25 = vld [vmem:[%s8230_s3 + $0x470] ss:$60 sps:$4 sm:$0xff]   ;;  %v5346_v26 = vld [vmem:[%s8230_s3 + $0xa8] ss:$60 sps:$4 sm:$0xff]  }
  0x8d   :  { %1942 = vmatprep.mubr.bf16.mxu0 %v6002_v22  ;;  %2015 = vmatprep.mubr.bf16.mxu1 %v6002_v22 }
  0x8f   :  { %2043 = vmatpush1.bf16.msra.mxu0 %v5263_v27  ;;  %2116 = vmatpush1.bf16.msra.mxu1 %v5266_v29  ;;  %v5350_v27 = vld [vmem:[%s8230_s3 + $0xb0] ss:$60 sps:$4 sm:$0xff]   ;;  %v5353_v29 = vld [vmem:[%s8230_s3 + $0x124] ss:$60 sps:$4 sm:$0xff]  }
  0x90   :  { %2044 = vmatprep.subr.bf16.mxu0 %v5271_v30  ;;  %2117 = vmatprep.subr.bf16.mxu1 %v5274_v32  ;;  %v5351_v30 = vld [vmem:[%s8230_s3 + $0x120] ss:$60 sps:$4 sm:$0xff]   ;;  %v5355_v32 = vld [vmem:[%s8230_s3 + $0x128] ss:$60 sps:$4 sm:$0xff]  }
  0x92   :  { %1943 = vmatmul.mubr.bf16.gmra.mrb[24].mxu0 %v6024_v28  ;;  %2016 = vmatmul.mubr.bf16.gmra.mrb[24].mxu1 %v6024_v28 }
  0x93   :  { %2045 = vmatpush1.bf16.msra.mxu0 %v5269_v33  ;;  %2118 = vmatpush1.bf16.msra.mxu1 %v5272_v34  ;;  %v5358_v33 = vld [vmem:[%s8230_s3 + $0x19c] ss:$60 sps:$4 sm:$0xff]  }
  0x94   :  { %2046 = vmatprep.subr.bf16.mxu0 %v5277_v35  ;;  %2119 = vmatprep.subr.bf16.mxu1 %v5280_v36  ;;  %v5356_v34 = vld [vmem:[%s8230_s3 + $0x198] ss:$60 sps:$4 sm:$0xff]   ;;  %v5360_v35 = vld [vmem:[%s8230_s3 + $0x1a0] ss:$60 sps:$4 sm:$0xff]  }
  0x95   :  { %1952 = vmatprep.mubr.bf16.mxu0 %v6035_v31  ;;  %2025 = vmatprep.mubr.bf16.mxu1 %v6035_v31  ;;  %v5363_v36 = vld [vmem:[%s8230_s3 + $0x214] ss:$60 sps:$4 sm:$0xff]  }
  0x97   :  { %2047 = vmatpush1.bf16.msra.mxu0 %v5275_v38  ;;  %2120 = vmatpush1.bf16.msra.mxu1 %v5278_v39  ;;  %v5364_v38 = vld [vmem:[%s8230_s3 + $0x5d8] ss:$60 sps:$4 sm:$0xff]  }
  0x98   :  { %2048 = vmatprep.subr.bf16.mxu0 %v5283_v40  ;;  %2121 = vmatprep.subr.bf16.mxu1 %v5286_v41  ;;  %v5365_v39 = vld [vmem:[%s8230_s3 + $0x218] ss:$60 sps:$4 sm:$0xff]   ;;  %v5368_v40 = vld [vmem:[%s8230_s3 + $0x28c] ss:$60 sps:$4 sm:$0xff]  }
  0x99   :  { %v5366_v41 = vld [vmem:[%s8230_s3 + $0x288] ss:$60 sps:$4 sm:$0xff]  }
  0x9a   :  { %1953 = vmatmul.mubr.bf16.gmra.mrb[28].mxu0 %v6059_v37  ;;  %2026 = vmatmul.mubr.bf16.gmra.mrb[28].mxu1 %v6059_v37 }
  0x9b   :  { %2049 = vmatpush1.bf16.msra.mxu0 %v5281_v42  ;;  %2122 = vmatpush1.bf16.msra.mxu1 %v5284_v43  ;;  %v5370_v42 = vld [vmem:[%s8230_s3 + $0x290] ss:$60 sps:$4 sm:$0xff]   ;;  %v5373_v43 = vld [vmem:[%s8230_s3 + $0x304] ss:$60 sps:$4 sm:$0xff]  }
  0x9c   :  { %2050 = vmatprep.subr.bf16.mxu0 %v5289_v44  ;;  %2123 = vmatprep.subr.bf16.mxu1 %v5292_v45  ;;  %v5374_v44 = vld [vmem:[%s8230_s3 + $0x6c8] ss:$60 sps:$4 sm:$0xff]  }
  0x9d   :  { %2068 = vmatprep.mubr.bf16.mxu0 %v5869_v47  ;;  %2141 = vmatprep.mubr.bf16.mxu1 %v5869_v47  ;;  %v5299_v47 = vld [vmem:[%s8230_s3 + $0x458] ss:$60 sps:$4 sm:$0xff]   ;;  %v5375_v45 = vld [vmem:[%s8230_s3 + $0x308] ss:$60 sps:$4 sm:$0xff]  }
  0x9f   :  { %2051 = vmatpush1.bf16.msra.mxu0 %v5287_v46  ;;  %2124 = vmatpush1.bf16.msra.mxu1 %v5290_v48  ;;  %v5378_v46 = vld [vmem:[%s8230_s3 + $0x37c] ss:$60 sps:$4 sm:$0xff]  }
  0xa0   :  { %2052 = vmatprep.subr.bf16.mxu0 %v5295_v49  ;;  %2125 = vmatprep.subr.bf16.mxu1 %v5298_v50  ;;  %v5376_v48 = vld [vmem:[%s8230_s3 + $0x378] ss:$60 sps:$4 sm:$0xff]   ;;  %v5380_v49 = vld [vmem:[%s8230_s3 + $0x380] ss:$60 sps:$4 sm:$0xff]  }
  0xa1   :  { %v5383_v50 = vld [vmem:[%s8230_s3 + $0x3f4] ss:$60 sps:$4 sm:$0xff]  }
  0xa3   :  { %2053 = vmatpush1.bf16.msra.mxu0 %v5293_v51  ;;  %2126 = vmatpush1.bf16.msra.mxu1 %v5296_v52  ;;  %v5386_v51 = vld [vmem:[%s8232_s2 + $0xc] ss:$60 sps:$4 sm:$0xff]  }
  0xa4   :  { %2054 = vmatprep.subr.bf16.mxu0 %v5301_v53  ;;  %2127 = vmatprep.subr.bf16.mxu1 %v5304_v54  ;;  %v5681_v52 = vld [vmem:[%s8231_s1 + $0x4] ss:$8 sps:$4 sm:$0xff]  }
  0xa5   :  { %v5384_v53 = vld [vmem:[%s8232_s2 + $0x8] ss:$60 sps:$4 sm:$0xff]  }
  0xa6   :  { %v5389_v54 = vld [vmem:[%s8230_s3 + $0x46c] ss:$60 sps:$4 sm:$0xff]  }
  0xa7   :  { %2055 = vmatpush1.bf16.msra.mxu0 %v5299_v47  ;;  %2128 = vmatpush1.bf16.msra.mxu1 %v5302_v55  ;;  %v5392_v47 = vld [vmem:[%s8232_s2 + $0x84] ss:$60 sps:$4 sm:$0xff]  }
  0xa8   :  { %2056 = vmatprep.subr.bf16.mxu0 %v5307_v56  ;;  %2129 = vmatprep.subr.bf16.mxu1 %v5310_v57  ;;  %v6509_v55 = vld [vmem:[%s8231_s1] ss:$8 sps:$4 sm:$0xff]  }
  0xa9   :  { %v5387_v56 = vld [vmem:[%s8230_s3 + $0x468] ss:$60 sps:$4 sm:$0xff]   ;;  %v5390_v57 = vld [vmem:[%s8232_s2 + $0x80] ss:$60 sps:$4 sm:$0xff]  }
  0xab   :  { %2057 = vmatpush1.bf16.msra.mxu0 %v5305_v58  ;;  %2130 = vmatpush1.bf16.msra.mxu1 %v5308_v59  ;;  %v5395_v58 = vld [vmem:[%s8230_s3 + $0x4e4] ss:$60 sps:$4 sm:$0xff]   ;;  %v5398_v59 = vld [vmem:[%s8232_s2 + $0xfc] ss:$60 sps:$4 sm:$0xff]  }
  0xac   :  { %2058 = vmatprep.subr.bf16.mxu0 %v5313_v60  ;;  %2131 = vmatprep.subr.bf16.mxu1 %v5316_v61  ;;  %v6527_v60 = vld [vmem:[%s8231_s1 + $0x14] ss:$8 sps:$4 sm:$0xff]  }
  0xad   :  { %v5393_v61 = vld [vmem:[%s8230_s3 + $0x4e0] ss:$60 sps:$4 sm:$0xff]  }
  0xaf   :  { %2059 = vmatpush1.bf16.msra.mxu0 %v5311_v62  ;;  %2132 = vmatpush1.bf16.msra.mxu1 %v5314_v63  ;;  %v5396_v62 = vld [vmem:[%s8232_s2 + $0xf8] ss:$60 sps:$4 sm:$0xff]  }
  0xb0   :  { %2060 = vmatprep.subr.bf16.mxu0 %v5319_v0  ;;  %2133 = vmatprep.subr.bf16.mxu1 %v5322_v1  ;;  %v5401_v63 = vld [vmem:[%s8230_s3 + $0x55c] ss:$60 sps:$4 sm:$0xff]   ;;  %v5404_v0 = vld [vmem:[%s8232_s2 + $0x174] ss:$60 sps:$4 sm:$0xff]  }
  0xb1   :  { %v5399_v1 = vld [vmem:[%s8230_s3 + $0x558] ss:$60 sps:$4 sm:$0xff]  }
  0xb3   :  { %2061 = vmatpush1.bf16.msra.mxu0 %v5317_v2  ;;  %2134 = vmatpush1.bf16.msra.mxu1 %v5320_v3  ;;  %v5402_v2 = vld [vmem:[%s8232_s2 + $0x170] ss:$60 sps:$4 sm:$0xff]  }
  0xb4   :  { %2062 = vmatprep.subr.bf16.mxu0 %v5325_v4  ;;  %2135 = vmatprep.subr.bf16.mxu1 %v5328_v6  ;;  %v6551_v3 = vld [vmem:[%s8231_s1 + $0x10] ss:$8 sps:$4 sm:$0xff]   ;;  %v5410_v6 = vld [vmem:[%s8232_s2 + $0x1ec] ss:$60 sps:$4 sm:$0xff]  }
  0xb5   :  { %v5407_v4 = vld [vmem:[%s8230_s3 + $0x5d4] ss:$60 sps:$4 sm:$0xff]  }
  0xb7   :  { %2063 = vmatpush1.bf16.msra.mxu0 %v5323_v7  ;;  %2136 = vmatpush1.bf16.msra.mxu1 %v5326_v8  ;;  %v6563_v7 = vld [vmem:[%s8231_s1 + $0x24] ss:$8 sps:$4 sm:$0xff]  }
  0xb8   :  { %2064 = vmatprep.subr.bf16.mxu0 %v5331_v9  ;;  %2137 = vmatprep.subr.bf16.mxu1 %v5334_v10  ;;  %v5405_v8 = vld [vmem:[%s8230_s3 + $0x5d0] ss:$60 sps:$4 sm:$0xff]   ;;  %v5408_v9 = vld [vmem:[%s8232_s2 + $0x1e8] ss:$60 sps:$4 sm:$0xff]  }
  0xb9   :  { %v5413_v10 = vld [vmem:[%s8230_s3 + $0x64c] ss:$60 sps:$4 sm:$0xff]  }
  0xbb   :  { %2065 = vmatpush1.bf16.msra.mxu0 %v5329_v11  ;;  %2138 = vmatpush1.bf16.msra.mxu1 %v5332_v12  ;;  %v5416_v11 = vld [vmem:[%s8232_s2 + $0x264] ss:$60 sps:$4 sm:$0xff]  }
  0xbc   :  { %2066 = vmatprep.subr.bf16.mxu0 %v5337_v14  ;;  %2139 = vmatprep.subr.bf16.mxu1 %v5340_v15  ;;  %v5411_v12 = vld [vmem:[%s8230_s3 + $0x648] ss:$60 sps:$4 sm:$0xff]   ;;  %v5414_v14 = vld [vmem:[%s8232_s2 + $0x260] ss:$60 sps:$4 sm:$0xff]  }
  0xbd   :  { %v6587_v15 = vld [vmem:[%s8231_s1 + $0x20] ss:$8 sps:$4 sm:$0xff]  }
  0xbf   :  { %2067 = vmatpush1.bf16.msra.mxu0 %v5335_v16  ;;  %2140 = vmatpush1.bf16.msra.mxu1 %v5338_v18  ;;  %v5419_v16 = vld [vmem:[%s8230_s3 + $0x6c4] ss:$60 sps:$4 sm:$0xff]   ;;  %v5422_v18 = vld [vmem:[%s8232_s2 + $0x2dc] ss:$60 sps:$4 sm:$0xff]  }
  0xc0   :  { %2182 = vmatprep.subr.bf16.mxu0 %v5343_v19  ;;  %4888 = vmatprep.subr.bf16.mxu1 %v5344_v20  ;;  %v6599_v19 = vld [vmem:[%s8231_s1 + $0x34] ss:$8 sps:$4 sm:$0xff]  }
  0xc1   :  { %v5417_v20 = vld [vmem:[%s8230_s3 + $0x6c0] ss:$60 sps:$4 sm:$0xff]  }
  0xc2   :  { %2069 = vmatmul.mubr.bf16.vlgmr.msra.gmra.mrb[32].mxu0 %v5939_v5  ;;  %2142 = vmatmul.mubr.bf16.vlgmr.msra.gmra.mrb[32].mxu1 %v5939_v5  ;;  %v5354_v5 = vld [vmem:[%s8230_s3 + $0x4e8] ss:$60 sps:$4 sm:$0xff]  }
  0xc3   :  { %2183 = vmatpush1.bf16.msra.mxu0 %v5341_v21  ;;  %4889 = vmatpush3.bf16.msra.mxu1 %v5345_v23  ;;  %v5420_v21 = vld [vmem:[%s8232_s2 + $0x2d8] ss:$60 sps:$4 sm:$0xff]  }
  0xc4   :  { %2184 = vmatprep.subr.bf16.mxu0 %v5348_v24  ;;  %4890 = vmatprep.subr.bf16.mxu1 %v5349_v25  ;;  %v5425_v23 = vld [vmem:[%s8230_s3 + $0x73c] ss:$60 sps:$4 sm:$0xff]   ;;  %v5428_v24 = vld [vmem:[%s8232_s2 + $0x354] ss:$60 sps:$4 sm:$0xff]   ;;  %v6617_v25 = vld [vmem:[%s8233_s0 + $0x4] ss:$8 sps:$4 sm:$0xff]  }
  0xc5   :  { %2151 = vmatprep.mubr.bf16.mxu1 %v5967_v13  ;;  %2078 = vmatprep.mubr.bf16.mxu0 %v5967_v13  ;;  %v5359_v13 = vld [vmem:[%s8230_s3 + $0x560] ss:$60 sps:$4 sm:$0xff]  }
  0xc7   :  { %2185 = vmatpush1.bf16.msra.mxu0 %v5346_v26  ;;  %4891 = vmatpush3.bf16.msra.mxu1 %v5350_v27  ;;  %v5423_v26 = vld [vmem:[%s8230_s3 + $0x738] ss:$60 sps:$4 sm:$0xff]   ;;  %v5426_v27 = vld [vmem:[%s8232_s2 + $0x350] ss:$60 sps:$4 sm:$0xff]  }
  0xc8   :  { %2186 = vmatprep.subr.bf16.mxu0 %v5353_v29  ;;  %4892 = vmatprep.subr.bf16.mxu1 %v5354_v5  ;;  %v6628_v29 = vld [vmem:[%s8231_s1 + $0x30] ss:$8 sps:$4 sm:$0xff]   ;;  %v5431_v5 = vld [vmem:[%s8232_s2 + $0x4] ss:$60 sps:$4 sm:$0xff]  }
  0xca   :  { %2152 = vmatmul.mubr.bf16.gmra.mrb[36].mxu1 %v5983_v17  ;;  %2079 = vmatmul.mubr.bf16.gmra.mrb[36].mxu0 %v5983_v17  ;;  %v5361_v17 = vld [vmem:[%s8230_s3 + $0x210] ss:$60 sps:$4 sm:$0xff]  }
  0xcb   :  { %2187 = vmatpush1.bf16.msra.mxu0 %v5351_v30  ;;  %4893 = vmatpush3.bf16.msra.mxu1 %v5355_v32  ;;  %v5434_v30 = vld [vmem:[%s8232_s2 + $0x3cc] ss:$60 sps:$4 sm:$0xff]   ;;  %v5429_v32 = vld [vmem:[%s8232_s2] ss:$60 sps:$4 sm:$0xff]  }
  0xcc   :  { %2188 = vmatprep.subr.bf16.mxu0 %v5358_v33  ;;  %4894 = vmatprep.subr.bf16.mxu1 %v5359_v13  ;;  %v5432_v33 = vld [vmem:[%s8232_s2 + $0x3c8] ss:$60 sps:$4 sm:$0xff]   ;;  %v5437_v13 = vld [vmem:[%s8232_s2 + $0x7c] ss:$60 sps:$4 sm:$0xff]  }
  0xcd   :  { %2161 = vmatprep.mubr.bf16.mxu1 %v6002_v22  ;;  %2088 = vmatprep.mubr.bf16.mxu0 %v6002_v22  ;;  %v5369_v22 = vld [vmem:[%s8230_s3 + $0x650] ss:$60 sps:$4 sm:$0xff]  }
  0xcf   :  { %2189 = vmatpush1.bf16.msra.mxu0 %v5356_v34  ;;  %4895 = vmatpush3.bf16.msra.mxu1 %v5360_v35  ;;  %v5440_v34 = vld [vmem:[%s8232_s2 + $0x444] ss:$60 sps:$4 sm:$0xff]   ;;  %v5435_v35 = vld [vmem:[%s8232_s2 + $0x78] ss:$60 sps:$4 sm:$0xff]  }
  0xd0   :  { %2190 = vmatprep.subr.bf16.mxu0 %v5363_v36  ;;  %4896 = vmatprep.subr.bf16.mxu1 %v5364_v38  ;;  %v5438_v36 = vld [vmem:[%s8232_s2 + $0x440] ss:$60 sps:$4 sm:$0xff]   ;;  %v5443_v38 = vld [vmem:[%s8232_s2 + $0xf4] ss:$60 sps:$4 sm:$0xff]  }
  0xd2   :  { %2162 = vmatmul.mubr.bf16.gmra.mrb[40].mxu1 %v6024_v28  ;;  %2089 = vmatmul.mubr.bf16.gmra.mrb[40].mxu0 %v6024_v28  ;;  %v5371_v28 = vld [vmem:[%s8230_s3 + $0x300] ss:$60 sps:$4 sm:$0xff]  }
  0xd3   :  { %2191 = vmatpush1.bf16.msra.mxu0 %v5361_v17  ;;  %4897 = vmatpush3.bf16.msra.mxu1 %v5365_v39  ;;  %v5446_v17 = vld [vmem:[%s8232_s2 + $0x4bc] ss:$60 sps:$4 sm:$0xff]   ;;  %v5441_v39 = vld [vmem:[%s8232_s2 + $0xf0] ss:$60 sps:$4 sm:$0xff]  }
  0xd4   :  { %2192 = vmatprep.subr.bf16.mxu0 %v5368_v40  ;;  %4898 = vmatprep.subr.bf16.mxu1 %v5369_v22  ;;  %v5444_v40 = vld [vmem:[%s8232_s2 + $0x4b8] ss:$60 sps:$4 sm:$0xff]   ;;  %v5449_v22 = vld [vmem:[%s8232_s2 + $0x16c] ss:$60 sps:$4 sm:$0xff]  }
  0xd5   :  { %2171 = vmatprep.mubr.bf16.mxu1 %v6035_v31  ;;  %2098 = vmatprep.mubr.bf16.mxu0 %v6035_v31  ;;  %v5379_v31 = vld [vmem:[%s8230_s3 + $0x740] ss:$60 sps:$4 sm:$0xff]  }
  0xd7   :  { %2193 = vmatpush1.bf16.msra.mxu0 %v5366_v41  ;;  %4899 = vmatpush3.bf16.msra.mxu1 %v5370_v42  ;;  %v5452_v41 = vld [vmem:[%s8232_s2 + $0x534] ss:$60 sps:$4 sm:$0xff]   ;;  %v5447_v42 = vld [vmem:[%s8232_s2 + $0x168] ss:$60 sps:$4 sm:$0xff]  }
  0xd8   :  { %2194 = vmatprep.subr.bf16.mxu0 %v5373_v43  ;;  %4900 = vmatprep.subr.bf16.mxu1 %v5374_v44  ;;  %v5450_v43 = vld [vmem:[%s8232_s2 + $0x530] ss:$60 sps:$4 sm:$0xff]   ;;  %v5457_v44 = vld [vmem:[%s8232_s2 + $0x1e4] ss:$60 sps:$4 sm:$0xff]  }
  0xda   :  { %2172 = vmatmul.mubr.bf16.gmra.mrb[44].mxu1 %v6059_v37  ;;  %2099 = vmatmul.mubr.bf16.gmra.mrb[44].mxu0 %v6059_v37  ;;  %v5381_v37 = vld [vmem:[%s8230_s3 + $0x3f0] ss:$60 sps:$4 sm:$0xff]  }
  0xdb   :  { %2195 = vmatpush1.bf16.msra.mxu0 %v5371_v28  ;;  %4901 = vmatpush3.bf16.msra.mxu1 %v5375_v45  ;;  %v5461_v28 = vld [vmem:[%s8232_s2 + $0x1c] ss:$60 sps:$4 sm:$0xff]  }
  0xdc   :  { %2196 = vmatprep.subr.bf16.mxu0 %v5378_v46  ;;  %4902 = vmatprep.subr.bf16.mxu1 %v5379_v31  ;;  %v5455_v45 = vld [vmem:[%s8232_s2 + $0x1e0] ss:$60 sps:$4 sm:$0xff]   ;;  %v5459_v31 = vld [vmem:[%s8232_s2 + $0x18] ss:$60 sps:$4 sm:$0xff]  }
  0xdd   :  { %2287 = vmatprep.mubr.bf16.mxu1 %v5681_v52  ;;  %2214 = vmatprep.mubr.bf16.mxu0 %v5681_v52  ;;  %v6697_v46 = vld [vmem:[%s8233_s0] ss:$8 sps:$4 sm:$0xff]   ;;  %v5465_v52 = vld [vmem:[%s8232_s2 + $0x90] ss:$60 sps:$4 sm:$0xff]  }
  0xdf   :  { %2197 = vmatpush1.bf16.msra.mxu0 %v5376_v48  ;;  %4903 = vmatpush3.bf16.msra.mxu1 %v5380_v49  ;;  %v5464_v48 = vld [vmem:[%s8232_s2 + $0x25c] ss:$60 sps:$4 sm:$0xff]   ;;  %v5467_v49 = vld [vmem:[%s8232_s2 + $0x94] ss:$60 sps:$4 sm:$0xff]  }
  0xe0   :  { %2198 = vmatprep.subr.bf16.mxu0 %v5383_v50  ;;  %3354 = vmatprep.subr.bf16.mxu1 %v5386_v51  ;;  %v6711_v50 = vld [vmem:[%s8233_s0 + $0x14] ss:$8 sps:$4 sm:$0xff]  }
  0xe1   :  { %v5462_v51 = vld [vmem:[%s8232_s2 + $0x258] ss:$60 sps:$4 sm:$0xff]  }
  0xe2   :  { %2288 = vmatmul.mubr.bf16.vlgmr.msra.gmra.mrb[48].mxu1 %v6509_v55 }
  0xe3   :  { %2199 = vmatpush1.bf16.msra.mxu0 %v5381_v37  ;;  %3355 = vmatpush1.bf16.msra.mxu1 %v5384_v53  ;;  %v5472_v37 = vld [vmem:[%s8232_s2 + $0x2d4] ss:$60 sps:$4 sm:$0xff]   ;;  %v5476_v53 = vld [vmem:[%s8232_s2 + $0x10c] ss:$60 sps:$4 sm:$0xff]  }
  0xe4   :  { %2200 = vmatprep.subr.bf16.mxu0 %v5389_v54  ;;  %3356 = vmatprep.subr.bf16.mxu1 %v5392_v47  ;;  %v5470_v54 = vld [vmem:[%s8232_s2 + $0x2d0] ss:$60 sps:$4 sm:$0xff]  }
  0xe5   :  { %2295 = vmatprep.mubr.bf16.mxu1 %v6527_v60  ;;  %v6735_v47 = vld [vmem:[%s8233_s0 + $0x10] ss:$8 sps:$4 sm:$0xff]  }
  0xe7   :  { %2201 = vmatpush1.bf16.msra.mxu0 %v5387_v56  ;;  %3357 = vmatpush1.bf16.msra.mxu1 %v5390_v57  ;;  %v5479_v56 = vld [vmem:[%s8232_s2 + $0x34c] ss:$60 sps:$4 sm:$0xff]   ;;  %v5482_v57 = vld [vmem:[%s8232_s2 + $0x184] ss:$60 sps:$4 sm:$0xff]  }
  0xe8   :  { %2202 = vmatprep.subr.bf16.mxu0 %v5395_v58  ;;  %3358 = vmatprep.subr.bf16.mxu1 %v5398_v59  ;;  %v6750_v58 = vld [vmem:[%s8233_s0 + $0x24] ss:$8 sps:$4 sm:$0xff]  }
  0xe9   :  { %v5477_v59 = vld [vmem:[%s8232_s2 + $0x348] ss:$60 sps:$4 sm:$0xff]  }
  0xea   :  { %2296 = vmatmul.mubr.bf16.gmra.mrb[52].mxu1 %v6551_v3 }
  0xeb   :  { %2203 = vmatpush1.bf16.msra.mxu0 %v5393_v61  ;;  %3359 = vmatpush1.bf16.msra.mxu1 %v5396_v62  ;;  %v5487_v61 = vld [vmem:[%s8232_s2 + $0x3c4] ss:$60 sps:$4 sm:$0xff]   ;;  %v5491_v62 = vld [vmem:[%s8232_s2 + $0x1fc] ss:$60 sps:$4 sm:$0xff]  }
  0xec   :  { %2204 = vmatprep.subr.bf16.mxu0 %v5401_v63  ;;  %3360 = vmatprep.subr.bf16.mxu1 %v5404_v0  ;;  %v5485_v63 = vld [vmem:[%s8232_s2 + $0x3c0] ss:$60 sps:$4 sm:$0xff]  }
  0xed   :  { %2303 = vmatprep.mubr.bf16.mxu1 %v6563_v7  ;;  %v6774_v0 = vld [vmem:[%s8233_s0 + $0x20] ss:$8 sps:$4 sm:$0xff]  }
  0xef   :  { %2205 = vmatpush1.bf16.msra.mxu0 %v5399_v1  ;;  %3361 = vmatpush1.bf16.msra.mxu1 %v5402_v2  ;;  %v5489_v1 = vld [vmem:[%s8232_s2 + $0x1f8] ss:$60 sps:$4 sm:$0xff]  }
  0xf0   :  { %2206 = vmatprep.subr.bf16.mxu0 %v5407_v4  ;;  %3362 = vmatprep.subr.bf16.mxu1 %v5410_v6  ;;  %v5494_v2 = vld [vmem:[%s8232_s2 + $0x43c] ss:$60 sps:$4 sm:$0xff]   ;;  %v5495_v6 = vld [vmem:[%s8232_s2 + $0x270] ss:$60 sps:$4 sm:$0xff]  }
  0xf1   :  { %v5492_v4 = vld [vmem:[%s8232_s2 + $0x438] ss:$60 sps:$4 sm:$0xff]  }
  0xf2   :  { %2304 = vmatmul.mubr.bf16.gmra.mrb[56].mxu1 %v6587_v15 }
  0xf3   :  { %2207 = vmatpush1.bf16.msra.mxu0 %v5405_v8  ;;  %3363 = vmatpush1.bf16.msra.mxu1 %v5408_v9  ;;  %v5502_v8 = vld [vmem:[%s8232_s2 + $0x4b4] ss:$60 sps:$4 sm:$0xff]   ;;  %v5506_v9 = vld [vmem:[%s8232_s2 + $0x2ec] ss:$60 sps:$4 sm:$0xff]  }
  0xf4   :  { %2208 = vmatprep.subr.bf16.mxu0 %v5413_v10  ;;  %3364 = vmatprep.subr.bf16.mxu1 %v5416_v11  ;;  %v6808_v10 = vld [vmem:[%s8233_s0 + $0x30] ss:$8 sps:$4 sm:$0xff]  }
  0xf5   :  { %2311 = vmatprep.mubr.bf16.mxu1 %v6599_v19  ;;  %v5500_v11 = vld [vmem:[%s8232_s2 + $0x4b0] ss:$60 sps:$4 sm:$0xff]  }
  0xf7   :  { %2209 = vmatpush1.bf16.msra.mxu0 %v5411_v12  ;;  %3365 = vmatpush1.bf16.msra.mxu1 %v5414_v14  ;;  %v5504_v12 = vld [vmem:[%s8232_s2 + $0x2e8] ss:$60 sps:$4 sm:$0xff]  }
  0xf8   :  { %2210 = vmatprep.subr.bf16.mxu0 %v5419_v16  ;;  %3366 = vmatprep.subr.bf16.mxu1 %v5422_v18  ;;  %v5509_v14 = vld [vmem:[%s8232_s2 + $0x52c] ss:$60 sps:$4 sm:$0xff]   ;;  %v5510_v18 = vld [vmem:[%s8232_s2 + $0x360] ss:$60 sps:$4 sm:$0xff]  }
  0xf9   :  { %v5507_v16 = vld [vmem:[%s8232_s2 + $0x528] ss:$60 sps:$4 sm:$0xff]  }
  0xfa   :  { %2312 = vmatmul.mubr.bf16.gmra.mrb[60].mxu1 %v6628_v29 }
  0xfb   :  { %2211 = vmatpush1.bf16.msra.mxu0 %v5417_v20  ;;  %3367 = vmatpush1.bf16.msra.mxu1 %v5420_v21  ;;  %v5518_v20 = vld [vmem:[%s8232_s2 + $0x3dc] ss:$60 sps:$4 sm:$0xff]   ;;  %v5513_v21 = vld [vmem:[%s8232_s2 + $0x10] ss:$60 sps:$4 sm:$0xff]  }
  0xfc   :  { %2212 = vmatprep.subr.bf16.mxu0 %v5425_v23  ;;  %3368 = vmatprep.subr.bf16.mxu1 %v5428_v24  ;;  %v5516_v23 = vld [vmem:[%s8232_s2 + $0x3d8] ss:$60 sps:$4 sm:$0xff]   ;;  %v5521_v24 = vld [vmem:[%s8232_s2 + $0x8c] ss:$60 sps:$4 sm:$0xff]  }
  0xfd   :  { %4860 = vmatprep.mubr.msk.bf16.mxu1 %vm3268_vm0, %v6617_v25 }
  0xff   :  { %2213 = vmatpush1.bf16.msra.mxu0 %v5423_v26  ;;  %3369 = vmatpush1.bf16.msra.mxu1 %v5426_v27  ;;  %v5524_v26 = vld [vmem:[%s8232_s2 + $0x454] ss:$60 sps:$4 sm:$0xff]   ;;  %v5519_v27 = vld [vmem:[%s8232_s2 + $0x88] ss:$60 sps:$4 sm:$0xff]  }
 0x100   :  { %3281 = vmatprep.subr.bf16.mxu0 %v5431_v5  ;;  %3370 = vmatprep.subr.bf16.mxu1 %v5434_v30  ;;  %v5527_v5 = vld [vmem:[%s8232_s2 + $0x104] ss:$60 sps:$4 sm:$0xff]   ;;  %v5530_v30 = vld [vmem:[%s8232_s2 + $0x4cc] ss:$60 sps:$4 sm:$0xff]  }
 0x102   :  { %2215 = vmatmul.mubr.bf16.vlgmr.msra.gmra.mrb[48].mxu0 %v6509_v55  ;;  %v5474_v55 = vld [vmem:[%s8232_s2 + $0x108] ss:$60 sps:$4 sm:$0xff]  }
 0x103   :  { %3282 = vmatpush1.bf16.msra.mxu0 %v5429_v32  ;;  %3371 = vmatpush1.bf16.msra.mxu1 %v5432_v33  ;;  %v5525_v32 = vld [vmem:[%s8232_s2 + $0x100] ss:$60 sps:$4 sm:$0xff]   ;;  %v5528_v33 = vld [vmem:[%s8232_s2 + $0x4c8] ss:$60 sps:$4 sm:$0xff]  }
 0x104   :  { %3283 = vmatprep.subr.bf16.mxu0 %v5437_v13  ;;  %3372 = vmatprep.subr.bf16.mxu1 %v5440_v34  ;;  %v5533_v13 = vld [vmem:[%s8232_s2 + $0x17c] ss:$60 sps:$4 sm:$0xff]   ;;  %v5536_v34 = vld [vmem:[%s8232_s2 + $0x544] ss:$60 sps:$4 sm:$0xff]  }
 0x105   :  { %2224 = vmatprep.mubr.bf16.mxu0 %v6527_v60  ;;  %v5480_v60 = vld [vmem:[%s8232_s2 + $0x180] ss:$60 sps:$4 sm:$0xff]  }
 0x107   :  { %3284 = vmatpush1.bf16.msra.mxu0 %v5435_v35  ;;  %3373 = vmatpush1.bf16.msra.mxu1 %v5438_v36  ;;  %v5531_v35 = vld [vmem:[%s8232_s2 + $0x178] ss:$60 sps:$4 sm:$0xff]   ;;  %v5534_v36 = vld [vmem:[%s8232_s2 + $0x540] ss:$60 sps:$4 sm:$0xff]  }
 0x108   :  { %3285 = vmatprep.subr.bf16.mxu0 %v5443_v38  ;;  %3374 = vmatprep.subr.bf16.mxu1 %v5446_v17  ;;  %v5539_v38 = vld [vmem:[%s8232_s2 + $0x1f4] ss:$60 sps:$4 sm:$0xff]   ;;  %v5542_v17 = vld [vmem:[%s8232_s2 + $0x2c] ss:$60 sps:$4 sm:$0xff]  }
 0x10a   :  { %2225 = vmatmul.mubr.bf16.gmra.mrb[52].mxu0 %v6551_v3  ;;  %v5497_v3 = vld [vmem:[%s8232_s2 + $0x274] ss:$60 sps:$4 sm:$0xff]  }
 0x10b   :  { %3286 = vmatpush1.bf16.msra.mxu0 %v5441_v39  ;;  %3375 = vmatpush1.bf16.msra.mxu1 %v5444_v40  ;;  %v5537_v39 = vld [vmem:[%s8232_s2 + $0x1f0] ss:$60 sps:$4 sm:$0xff]   ;;  %v5540_v40 = vld [vmem:[%s8232_s2 + $0x28] ss:$60 sps:$4 sm:$0xff]  }
 0x10c   :  { %3287 = vmatprep.subr.bf16.mxu0 %v5449_v22  ;;  %3376 = vmatprep.subr.bf16.mxu1 %v5452_v41  ;;  %v5545_v22 = vld [vmem:[%s8232_s2 + $0x26c] ss:$60 sps:$4 sm:$0xff]   ;;  %v5548_v41 = vld [vmem:[%s8232_s2 + $0xa4] ss:$60 sps:$4 sm:$0xff]  }
 0x10d   :  { %2234 = vmatprep.mubr.bf16.mxu0 %v6563_v7  ;;  %v6796_v7 = vld [vmem:[%s8233_s0 + $0x34] ss:$8 sps:$4 sm:$0xff]  }
 0x10f   :  { %3288 = vmatpush1.bf16.msra.mxu0 %v5447_v42  ;;  %3377 = vmatpush1.bf16.msra.mxu1 %v5450_v43  ;;  %v5543_v42 = vld [vmem:[%s8232_s2 + $0x268] ss:$60 sps:$4 sm:$0xff]   ;;  %v5546_v43 = vld [vmem:[%s8232_s2 + $0xa0] ss:$60 sps:$4 sm:$0xff]  }
 0x110   :  { %3289 = vmatprep.subr.bf16.mxu0 %v5457_v44  ;;  %3500 = vmatprep.subr.bf16.mxu1 %v5461_v28  ;;  %v5551_v44 = vld [vmem:[%s8232_s2 + $0x2e4] ss:$60 sps:$4 sm:$0xff]   ;;  %v5554_v28 = vld [vmem:[%s8232_s2 + $0x11c] ss:$60 sps:$4 sm:$0xff]  }
 0x112   :  { %3387 = vmatmul.mubr.bf16.vlgmr.msra.gmra.mrb[0].mxu1 %v6697_v46  ;;  %2235 = vmatmul.mubr.bf16.gmra.mrb[56].mxu0 %v6587_v15  ;;  %v5512_v15 = vld [vmem:[%s8232_s2 + $0x364] ss:$60 sps:$4 sm:$0xff]  }
 0x113   :  { %3290 = vmatpush1.bf16.msra.mxu0 %v5455_v45  ;;  %3501 = vmatpush1.bf16.msra.mxu1 %v5459_v31  ;;  %v5549_v45 = vld [vmem:[%s8232_s2 + $0x2e0] ss:$60 sps:$4 sm:$0xff]   ;;  %v5552_v31 = vld [vmem:[%s8232_s2 + $0x118] ss:$60 sps:$4 sm:$0xff]  }
 0x114   :  { %3291 = vmatprep.subr.bf16.mxu0 %v5464_v48  ;;  %3502 = vmatprep.subr.bf16.mxu1 %v5467_v49  ;;  %v5557_v48 = vld [vmem:[%s8232_s2 + $0x35c] ss:$60 sps:$4 sm:$0xff]   ;;  %v5560_v49 = vld [vmem:[%s8232_s2 + $0x194] ss:$60 sps:$4 sm:$0xff]  }
 0x115   :  { %4861 = vmatprep.mubr.msk.bf16.mxu1 %vm3268_vm0, %v6711_v50  ;;  %2244 = vmatprep.mubr.bf16.mxu0 %v6599_v19  ;;  %v5515_v19 = vld [vmem:[%s8232_s2 + $0x14] ss:$60 sps:$4 sm:$0xff]  }
 0x117   :  { %3292 = vmatpush1.bf16.msra.mxu0 %v5462_v51  ;;  %3503 = vmatpush1.bf16.msra.mxu1 %v5465_v52  ;;  %v5555_v51 = vld [vmem:[%s8232_s2 + $0x358] ss:$60 sps:$4 sm:$0xff]   ;;  %v5558_v52 = vld [vmem:[%s8232_s2 + $0x190] ss:$60 sps:$4 sm:$0xff]  }
 0x118   :  { %3293 = vmatprep.subr.bf16.mxu0 %v5472_v37  ;;  %3504 = vmatprep.subr.bf16.mxu1 %v5476_v53  ;;  %v5563_v37 = vld [vmem:[%s8232_s2 + $0x3d4] ss:$60 sps:$4 sm:$0xff]   ;;  %v5566_v53 = vld [vmem:[%s8232_s2 + $0x20c] ss:$60 sps:$4 sm:$0xff]  }
 0x11a   :  { %3397 = vmatmul.mubr.bf16.gmra.mrb[4].mxu1 %v6735_v47  ;;  %2245 = vmatmul.mubr.bf16.gmra.mrb[60].mxu0 %v6628_v29  ;;  %v5522_v29 = vld [vmem:[%s8232_s2 + $0x450] ss:$60 sps:$4 sm:$0xff]  }
 0x11b   :  { %3294 = vmatpush1.bf16.msra.mxu0 %v5470_v54  ;;  %3505 = vmatpush1.bf16.msra.mxu1 %v5474_v55  ;;  %v5561_v54 = vld [vmem:[%s8232_s2 + $0x3d0] ss:$60 sps:$4 sm:$0xff]   ;;  %v5564_v55 = vld [vmem:[%s8232_s2 + $0x208] ss:$60 sps:$4 sm:$0xff]  }
 0x11c   :  { %3295 = vmatprep.subr.bf16.mxu0 %v5479_v56  ;;  %3506 = vmatprep.subr.bf16.mxu1 %v5482_v57  ;;  %v5569_v56 = vld [vmem:[%s8232_s2 + $0x44c] ss:$60 sps:$4 sm:$0xff]   ;;  %v5572_v57 = vld [vmem:[%s8232_s2 + $0x284] ss:$60 sps:$4 sm:$0xff]  }
 0x11d   :  { %4862 = vmatprep.mubr.msk.bf16.mxu1 %vm3268_vm0, %v6750_v58  ;;  %4856 = vmatprep.mubr.msk.bf16.mxu0 %vm3268_vm0, %v6617_v25 }
 0x11f   :  { %3296 = vmatpush1.bf16.msra.mxu0 %v5477_v59  ;;  %3507 = vmatpush1.bf16.msra.mxu1 %v5480_v60  ;;  %v5567_v59 = vld [vmem:[%s8232_s2 + $0x448] ss:$60 sps:$4 sm:$0xff]   ;;  %v5570_v60 = vld [vmem:[%s8232_s2 + $0x280] ss:$60 sps:$4 sm:$0xff]  }
 0x120   :  { %3297 = vmatprep.subr.bf16.mxu0 %v5487_v61  ;;  %3508 = vmatprep.subr.bf16.mxu1 %v5491_v62  ;;  %v5575_v61 = vld [vmem:[%s8232_s2 + $0x4c4] ss:$60 sps:$4 sm:$0xff]   ;;  %v5578_v62 = vld [vmem:[%s8232_s2 + $0x2fc] ss:$60 sps:$4 sm:$0xff]  }
 0x122   :  { %3407 = vmatmul.mubr.bf16.gmra.mrb[8].mxu1 %v6774_v0 }
 0x123   :  { %3298 = vmatpush1.bf16.msra.mxu0 %v5485_v63  ;;  %3509 = vmatpush1.bf16.msra.mxu1 %v5489_v1  ;;  %v5573_v63 = vld [vmem:[%s8232_s2 + $0x4c0] ss:$60 sps:$4 sm:$0xff]   ;;  %v5576_v1 = vld [vmem:[%s8232_s2 + $0x2f8] ss:$60 sps:$4 sm:$0xff]  }
 0x124   :  { %3299 = vmatprep.subr.bf16.mxu0 %v5494_v2  ;;  %3510 = vmatprep.subr.bf16.mxu1 %v5497_v3  ;;  %v5581_v2 = vld [vmem:[%s8232_s2 + $0x53c] ss:$60 sps:$4 sm:$0xff]   ;;  %v5584_v3 = vld [vmem:[%s8232_s2 + $0x374] ss:$60 sps:$4 sm:$0xff]  }
 0x125   :  { %4863 = vmatprep.mubr.msk.bf16.mxu1 %vm3268_vm0, %v6796_v7 }
 0x127   :  { %3300 = vmatpush1.bf16.msra.mxu0 %v5492_v4  ;;  %3511 = vmatpush1.bf16.msra.mxu1 %v5495_v6  ;;  %v5579_v4 = vld [vmem:[%s8232_s2 + $0x538] ss:$60 sps:$4 sm:$0xff]   ;;  %v5582_v6 = vld [vmem:[%s8232_s2 + $0x370] ss:$60 sps:$4 sm:$0xff]  }
 0x128   :  { %3301 = vmatprep.subr.bf16.mxu0 %v5502_v8  ;;  %3512 = vmatprep.subr.bf16.mxu1 %v5506_v9  ;;  %v5587_v8 = vld [vmem:[%s8232_s2 + $0x24] ss:$60 sps:$4 sm:$0xff]   ;;  %v5590_v9 = vld [vmem:[%s8232_s2 + $0x3ec] ss:$60 sps:$4 sm:$0xff]  }
 0x12a   :  { %3417 = vmatmul.mubr.bf16.gmra.mrb[12].mxu1 %v6808_v10 }
 0x12b   :  { %3302 = vmatpush1.bf16.msra.mxu0 %v5500_v11  ;;  %3513 = vmatpush1.bf16.msra.mxu1 %v5504_v12  ;;  %v5585_v11 = vld [vmem:[%s8232_s2 + $0x20] ss:$60 sps:$4 sm:$0xff]   ;;  %v5588_v12 = vld [vmem:[%s8232_s2 + $0x3e8] ss:$60 sps:$4 sm:$0xff]  }
 0x12c   :  { %3303 = vmatprep.subr.bf16.mxu0 %v5509_v14  ;;  %3514 = vmatprep.subr.bf16.mxu1 %v5512_v15  ;;  %v5593_v14 = vld [vmem:[%s8232_s2 + $0x9c] ss:$60 sps:$4 sm:$0xff]   ;;  %v5596_v15 = vld [vmem:[%s8232_s2 + $0x464] ss:$60 sps:$4 sm:$0xff]  }
 0x12d   :  { %4868 = vmatprep.mubr.msk.bf16.mxu1 %vm3268_vm0, %v6617_v25 }
 0x12f   :  { %3304 = vmatpush1.bf16.msra.mxu0 %v5507_v16  ;;  %3515 = vmatpush1.bf16.msra.mxu1 %v5510_v18  ;;  %v5591_v16 = vld [vmem:[%s8232_s2 + $0x98] ss:$60 sps:$4 sm:$0xff]   ;;  %v5594_v18 = vld [vmem:[%s8232_s2 + $0x460] ss:$60 sps:$4 sm:$0xff]  }
 0x130   :  { %3427 = vmatprep.subr.bf16.mxu0 %v5515_v19  ;;  %3516 = vmatprep.subr.bf16.mxu1 %v5518_v20  ;;  %v5599_v19 = vld [vmem:[%s8232_s2 + $0x114] ss:$60 sps:$4 sm:$0xff]   ;;  %v5602_v20 = vld [vmem:[%s8232_s2 + $0x4dc] ss:$60 sps:$4 sm:$0xff]  }
 0x132   :  { %3314 = vmatmul.mubr.bf16.vlgmr.msra.gmra.mrb[0].mxu0 %v6697_v46 }
 0x133   :  { %3428 = vmatpush1.bf16.msra.mxu0 %v5513_v21  ;;  %3517 = vmatpush1.bf16.msra.mxu1 %v5516_v23  ;;  %v5597_v21 = vld [vmem:[%s8232_s2 + $0x110] ss:$60 sps:$4 sm:$0xff]   ;;  %v5600_v23 = vld [vmem:[%s8232_s2 + $0x4d8] ss:$60 sps:$4 sm:$0xff]  }
 0x134   :  { %3429 = vmatprep.subr.bf16.mxu0 %v5521_v24  ;;  %3518 = vmatprep.subr.bf16.mxu1 %v5524_v26  ;;  %v5605_v24 = vld [vmem:[%s8232_s2 + $0x18c] ss:$60 sps:$4 sm:$0xff]   ;;  %v5608_v26 = vld [vmem:[%s8232_s2 + $0x554] ss:$60 sps:$4 sm:$0xff]  }
 0x135   :  { %4857 = vmatprep.mubr.msk.bf16.mxu0 %vm3268_vm0, %v6711_v50 }
 0x137   :  { %3430 = vmatpush1.bf16.msra.mxu0 %v5519_v27  ;;  %3519 = vmatpush1.bf16.msra.mxu1 %v5522_v29  ;;  %v5603_v27 = vld [vmem:[%s8232_s2 + $0x188] ss:$60 sps:$4 sm:$0xff]   ;;  %v5606_v29 = vld [vmem:[%s8232_s2 + $0x550] ss:$60 sps:$4 sm:$0xff]  }
 0x138   :  { %3431 = vmatprep.subr.bf16.mxu0 %v5527_v5  ;;  %3520 = vmatprep.subr.bf16.mxu1 %v5530_v30  ;;  %v5611_v5 = vld [vmem:[%s8232_s2 + $0x204] ss:$60 sps:$4 sm:$0xff]  }
 0x139   :  { %v5609_v30 = vld [vmem:[%s8232_s2 + $0x200] ss:$60 sps:$4 sm:$0xff]  }
 0x13a   :  { %3324 = vmatmul.mubr.bf16.gmra.mrb[4].mxu0 %v6735_v47 }
 0x13b   :  { %3432 = vmatpush1.bf16.msra.mxu0 %v5525_v32  ;;  %3521 = vmatpush1.bf16.msra.mxu1 %v5528_v33  ;;  %v5612_v32 = vld [vmem:[%s8232_s2 + $0x38] ss:$60 sps:$4 sm:$0xff]   ;;  %v5689_v33 = vmov 0  }
 0x13c   :  { %3433 = vmatprep.subr.bf16.mxu0 %v5533_v13  ;;  %3522 = vmatprep.subr.bf16.mxu1 %v5536_v34  ;;  %v5615_v13 = vld [vmem:[%s8232_s2 + $0x27c] ss:$60 sps:$4 sm:$0xff]  }
 0x13d   :  { %4858 = vmatprep.mubr.msk.bf16.mxu0 %vm3268_vm0, %v6750_v58  ;;  %v5613_v34 = vld [vmem:[%s8232_s2 + $0x278] ss:$60 sps:$4 sm:$0xff]  }
 0x13f   :  { %3434 = vmatpush1.bf16.msra.mxu0 %v5531_v35  ;;  %3523 = vmatpush1.bf16.msra.mxu1 %v5534_v36  ;;  %v5616_v35 = vld [vmem:[%s8232_s2 + $0xb0] ss:$60 sps:$4 sm:$0xff]  }
 0x140   :  { %3435 = vmatprep.subr.bf16.mxu0 %v5539_v38  ;;  %3646 = vmatprep.subr.bf16.mxu1 %v5542_v17  ;;  %v5619_v36 = vld [vmem:[%s8232_s2 + $0x2f4] ss:$60 sps:$4 sm:$0xff]   ;;  %v5620_v17 = vld [vmem:[%s8232_s2 + $0x128] ss:$60 sps:$4 sm:$0xff]  }
 0x141   :  { %v5617_v38 = vld [vmem:[%s8232_s2 + $0x2f0] ss:$60 sps:$4 sm:$0xff]  }
 0x142   :  { %3334 = vmatmul.mubr.bf16.gmra.mrb[8].mxu0 %v6774_v0  ;;  %3533 = vmatmul.mubr.bf16.vlgmr.msra.gmra.mrb[16].mxu1 %v6697_v46 }
 0x143   :  { %3436 = vmatpush1.bf16.msra.mxu0 %v5537_v39  ;;  %3647 = vmatpush1.bf16.msra.mxu1 %v5540_v40  ;;  %v5623_v39 = vld [vmem:[%s8232_s2 + $0x36c] ss:$60 sps:$4 sm:$0xff]  }
 0x144   :  { %3437 = vmatprep.subr.bf16.mxu0 %v5545_v22  ;;  %3648 = vmatprep.subr.bf16.mxu1 %v5548_v41  ;;  %v5621_v40 = vld [vmem:[%s8232_s2 + $0x368] ss:$60 sps:$4 sm:$0xff]   ;;  %v5624_v22 = vld [vmem:[%s8232_s2 + $0x1a0] ss:$60 sps:$4 sm:$0xff]  }
 0x145   :  { %4859 = vmatprep.mubr.msk.bf16.mxu0 %vm3268_vm0, %v6796_v7  ;;  %4869 = vmatprep.mubr.msk.bf16.mxu1 %vm3268_vm0, %v6711_v50  ;;  %v5627_v41 = vld [vmem:[%s8232_s2 + $0x3e4] ss:$60 sps:$4 sm:$0xff]  }
 0x147   :  { %3438 = vmatpush1.bf16.msra.mxu0 %v5543_v42  ;;  %3649 = vmatpush1.bf16.msra.mxu1 %v5546_v43  ;;  %v5625_v42 = vld [vmem:[%s8232_s2 + $0x3e0] ss:$60 sps:$4 sm:$0xff]   ;;  %v5628_v43 = vld [vmem:[%s8232_s2 + $0x218] ss:$60 sps:$4 sm:$0xff]  }
 0x148   :  { %3439 = vmatprep.subr.bf16.mxu0 %v5551_v44  ;;  %3650 = vmatprep.subr.bf16.mxu1 %v5554_v28  ;;  %v5631_v44 = vld [vmem:[%s8232_s2 + $0x45c] ss:$60 sps:$4 sm:$0xff]  }
 0x149   :  { %v5629_v28 = vld [vmem:[%s8232_s2 + $0x458] ss:$60 sps:$4 sm:$0xff]  }
 0x14a   :  { %3344 = vmatmul.mubr.bf16.gmra.mrb[12].mxu0 %v6808_v10  ;;  %3543 = vmatmul.mubr.bf16.gmra.mrb[20].mxu1 %v6735_v47 }
 0x14b   :  { %3440 = vmatpush1.bf16.msra.mxu0 %v5549_v45  ;;  %3651 = vmatpush1.bf16.msra.mxu1 %v5552_v31  ;;  %v5632_v45 = vld [vmem:[%s8232_s2 + $0x290] ss:$60 sps:$4 sm:$0xff]  }
 0x14c   :  { %3441 = vmatprep.subr.bf16.mxu0 %v5557_v48  ;;  %3652 = vmatprep.subr.bf16.mxu1 %v5560_v49  ;;  %v5635_v31 = vld [vmem:[%s8232_s2 + $0x4d4] ss:$60 sps:$4 sm:$0xff]   ;;  %v5636_v49 = vld [vmem:[%s8232_s2 + $0x308] ss:$60 sps:$4 sm:$0xff]  }
 0x14d   :  { %4870 = vmatprep.mubr.msk.bf16.mxu1 %vm3268_vm0, %v6750_v58  ;;  %4864 = vmatprep.mubr.msk.bf16.mxu0 %vm3268_vm0, %v6617_v25  ;;  %v5633_v48 = vld [vmem:[%s8232_s2 + $0x4d0] ss:$60 sps:$4 sm:$0xff]  }
 0x14f   :  { %3442 = vmatpush1.bf16.msra.mxu0 %v5555_v51  ;;  %3653 = vmatpush1.bf16.msra.mxu1 %v5558_v52  ;;  %v5639_v51 = vld [vmem:[%s8232_s2 + $0x54c] ss:$60 sps:$4 sm:$0xff]  }
 0x150   :  { %3443 = vmatprep.subr.bf16.mxu0 %v5563_v37  ;;  %3654 = vmatprep.subr.bf16.mxu1 %v5566_v53  ;;  %v5637_v52 = vld [vmem:[%s8232_s2 + $0x548] ss:$60 sps:$4 sm:$0xff]   ;;  %v5640_v37 = vld [vmem:[%s8232_s2 + $0x380] ss:$60 sps:$4 sm:$0xff]   ;;  %v5643_v53 = vld [vmem:[%s8232_s2 + $0x34] ss:$60 sps:$4 sm:$0xff]  }
 0x152   :  { %3553 = vmatmul.mubr.bf16.gmra.mrb[24].mxu1 %v6774_v0 }
 0x153   :  { %3444 = vmatpush1.bf16.msra.mxu0 %v5561_v54  ;;  %3655 = vmatpush1.bf16.msra.mxu1 %v5564_v55  ;;  %v5641_v54 = vld [vmem:[%s8232_s2 + $0x30] ss:$60 sps:$4 sm:$0xff]   ;;  %v5644_v55 = vld [vmem:[%s8232_s2 + $0x3f8] ss:$60 sps:$4 sm:$0xff]  }
 0x154   :  { %3445 = vmatprep.subr.bf16.mxu0 %v5569_v56  ;;  %3656 = vmatprep.subr.bf16.mxu1 %v5572_v57  ;;  %v5647_v56 = vld [vmem:[%s8232_s2 + $0xac] ss:$60 sps:$4 sm:$0xff]  }
 0x155   :  { %4871 = vmatprep.mubr.msk.bf16.mxu1 %vm3268_vm0, %v6796_v7  ;;  %v5645_v57 = vld [vmem:[%s8232_s2 + $0xa8] ss:$60 sps:$4 sm:$0xff]  }
 0x157   :  { %3446 = vmatpush1.bf16.msra.mxu0 %v5567_v59  ;;  %3657 = vmatpush1.bf16.msra.mxu1 %v5570_v60  ;;  %v5648_v59 = vld [vmem:[%s8232_s2 + $0x470] ss:$60 sps:$4 sm:$0xff]   ;;  %v5651_v60 = vld [vmem:[%s8232_s2 + $0x124] ss:$60 sps:$4 sm:$0xff]  }
 0x158   :  { %3447 = vmatprep.subr.bf16.mxu0 %v5575_v61  ;;  %3658 = vmatprep.subr.bf16.mxu1 %v5578_v62  ;;  %v5649_v61 = vld [vmem:[%s8232_s2 + $0x120] ss:$60 sps:$4 sm:$0xff]   ;;  %v5652_v62 = vld [vmem:[%s8232_s2 + $0x4e8] ss:$60 sps:$4 sm:$0xff]  }
 0x15a   :  { %3563 = vmatmul.mubr.bf16.gmra.mrb[28].mxu1 %v6808_v10 }
 0x15b   :  { %3448 = vmatpush1.bf16.msra.mxu0 %v5573_v63  ;;  %3659 = vmatpush1.bf16.msra.mxu1 %v5576_v1  ;;  %v5655_v63 = vld [vmem:[%s8232_s2 + $0x19c] ss:$60 sps:$4 sm:$0xff]  }
 0x15c   :  { %3449 = vmatprep.subr.bf16.mxu0 %v5581_v2  ;;  %3660 = vmatprep.subr.bf16.mxu1 %v5584_v3  ;;  %v5653_v1 = vld [vmem:[%s8232_s2 + $0x198] ss:$60 sps:$4 sm:$0xff]   ;;  %v5656_v2 = vld [vmem:[%s8232_s2 + $0x560] ss:$60 sps:$4 sm:$0xff]  }
 0x15d   :  { %4876 = vmatprep.mubr.msk.bf16.mxu1 %vm3268_vm0, %v6617_v25  ;;  %v5659_v3 = vld [vmem:[%s8232_s2 + $0x214] ss:$60 sps:$4 sm:$0xff]  }
 0x15f   :  { %3450 = vmatpush1.bf16.msra.mxu0 %v5579_v4  ;;  %3661 = vmatpush1.bf16.msra.mxu1 %v5582_v6  ;;  %v5657_v4 = vld [vmem:[%s8232_s2 + $0x210] ss:$60 sps:$4 sm:$0xff]  }
 0x160   :  { %3573 = vmatprep.subr.bf16.mxu0 %v5587_v8  ;;  %3662 = vmatprep.subr.bf16.mxu1 %v5590_v9  ;;  %v5662_v6 = vld [vmem:[%s8232_s2 + $0x28c] ss:$60 sps:$4 sm:$0xff]   ;;  %v5665_v9 = vld [vmem:[%s8232_s2 + $0x304] ss:$60 sps:$4 sm:$0xff]  }
 0x161   :  { %v5660_v8 = vld [vmem:[%s8232_s2 + $0x288] ss:$60 sps:$4 sm:$0xff]  }
 0x162   :  { %3460 = vmatmul.mubr.bf16.vlgmr.msra.gmra.mrb[16].mxu0 %v6697_v46 }
 0x163   :  { %3574 = vmatpush1.bf16.msra.mxu0 %v5585_v11  ;;  %3663 = vmatpush1.bf16.msra.mxu1 %v5588_v12  ;;  %v5663_v11 = vld [vmem:[%s8232_s2 + $0x300] ss:$60 sps:$4 sm:$0xff]  }
 0x164   :  { %3575 = vmatprep.subr.bf16.mxu0 %v5593_v14  ;;  %3664 = vmatprep.subr.bf16.mxu1 %v5596_v15  ;;  %v5668_v12 = vld [vmem:[%s8232_s2 + $0x37c] ss:$60 sps:$4 sm:$0xff]   ;;  %v5671_v15 = vld [vmem:[%s8232_s2 + $0x3f4] ss:$60 sps:$4 sm:$0xff]  }
 0x165   :  { %4865 = vmatprep.mubr.msk.bf16.mxu0 %vm3268_vm0, %v6711_v50  ;;  %v5666_v14 = vld [vmem:[%s8232_s2 + $0x378] ss:$60 sps:$4 sm:$0xff]  }
 0x167   :  { %3576 = vmatpush1.bf16.msra.mxu0 %v5591_v16  ;;  %3665 = vmatpush1.bf16.msra.mxu1 %v5594_v18  ;;  %v5669_v16 = vld [vmem:[%s8232_s2 + $0x3f0] ss:$60 sps:$4 sm:$0xff]  }
 0x168   :  { %3577 = vmatprep.subr.bf16.mxu0 %v5599_v19  ;;  %3666 = vmatprep.subr.bf16.mxu1 %v5602_v20  ;;  %v5674_v18 = vld [vmem:[%s8232_s2 + $0x46c] ss:$60 sps:$4 sm:$0xff]  }
 0x169   :  { %v5672_v19 = vld [vmem:[%s8232_s2 + $0x468] ss:$60 sps:$4 sm:$0xff]  }
 0x16a   :  { %3470 = vmatmul.mubr.bf16.gmra.mrb[20].mxu0 %v6735_v47 }
 0x16b   :  { %3578 = vmatpush1.bf16.msra.mxu0 %v5597_v21  ;;  %3667 = vmatpush1.bf16.msra.mxu1 %v5600_v23  ;;  %v5675_v23 = vld [vmem:[%s8232_s2 + $0x4e0] ss:$60 sps:$4 sm:$0xff]  }
 0x16c   :  { %3579 = vmatprep.subr.bf16.mxu0 %v5605_v24  ;;  %3668 = vmatprep.subr.bf16.mxu1 %v5608_v26 }
 0x16d   :  { %4866 = vmatprep.mubr.msk.bf16.mxu0 %vm3268_vm0, %v6750_v58 }
 0x16f   :  { %3580 = vmatpush1.bf16.msra.mxu0 %v5603_v27  ;;  %3669 = vmatpush1.bf16.msra.mxu1 %v5606_v29  ;;  %v5680_v27 = vld [vmem:[%s8232_s2 + $0x55c] ss:$60 sps:$4 sm:$0xff]  }
 0x170   :  { %3581 = vmatprep.subr.bf16.mxu0 %v5611_v5  ;;  %3792 = vmatprep.subr.bf16.mxu1 %v5689_v33 }
 0x172   :  { %3480 = vmatmul.mubr.bf16.gmra.mrb[24].mxu0 %v6774_v0  ;;  %3679 = vmatmul.mubr.bf16.vlgmr.msra.gmra.mrb[32].mxu1 %v6697_v46 }
 0x173   :  { %3582 = vmatpush1.bf16.msra.mxu0 %v5609_v30  ;;  %3793 = vmatpush1.bf16.msra.mxu1 %v5612_v32  ;;  %v5678_v30 = vld [vmem:[%s8232_s2 + $0x558] ss:$60 sps:$4 sm:$0xff]  }
 0x174   :  { %3583 = vmatprep.subr.bf16.mxu0 %v5615_v13  ;;  %3794 = vmatprep.subr.bf16.mxu1 %v5689_v33 }
 0x175   :  { %4867 = vmatprep.mubr.msk.bf16.mxu0 %vm3268_vm0, %v6796_v7  ;;  %4877 = vmatprep.mubr.msk.bf16.mxu1 %vm3268_vm0, %v6711_v50 }
 0x177   :  { %3584 = vmatpush1.bf16.msra.mxu0 %v5613_v34  ;;  %3795 = vmatpush1.bf16.msra.mxu1 %v5616_v35 }
 0x178   :  { %3585 = vmatprep.subr.bf16.mxu0 %v5619_v36  ;;  %3796 = vmatprep.subr.bf16.mxu1 %v5689_v33 }
 0x17a   :  { %3490 = vmatmul.mubr.bf16.gmra.mrb[28].mxu0 %v6808_v10  ;;  %3689 = vmatmul.mubr.bf16.gmra.mrb[36].mxu1 %v6735_v47 }
 0x17b   :  { %3586 = vmatpush1.bf16.msra.mxu0 %v5617_v38  ;;  %3797 = vmatpush1.bf16.msra.mxu1 %v5620_v17 }
 0x17c   :  { %3587 = vmatprep.subr.bf16.mxu0 %v5623_v39  ;;  %3798 = vmatprep.subr.bf16.mxu1 %v5689_v33 }
 0x17d   :  { %4878 = vmatprep.mubr.msk.bf16.mxu1 %vm3268_vm0, %v6750_v58  ;;  %4872 = vmatprep.mubr.msk.bf16.mxu0 %vm3268_vm0, %v6617_v25 }
 0x17f   :  { %3588 = vmatpush1.bf16.msra.mxu0 %v5621_v40  ;;  %3799 = vmatpush1.bf16.msra.mxu1 %v5624_v22 }
 0x180   :  { %3589 = vmatprep.subr.bf16.mxu0 %v5627_v41  ;;  %3800 = vmatprep.subr.bf16.mxu1 %v5689_v33 }
 0x182   :  { %3699 = vmatmul.mubr.bf16.gmra.mrb[40].mxu1 %v6774_v0 }
 0x183   :  { %3590 = vmatpush1.bf16.msra.mxu0 %v5625_v42  ;;  %3801 = vmatpush1.bf16.msra.mxu1 %v5628_v43 }
 0x184   :  { %3591 = vmatprep.subr.bf16.mxu0 %v5631_v44  ;;  %3802 = vmatprep.subr.bf16.mxu1 %v5689_v33 }
 0x185   :  { %4879 = vmatprep.mubr.msk.bf16.mxu1 %vm3268_vm0, %v6796_v7 }
 0x187   :  { %3592 = vmatpush1.bf16.msra.mxu0 %v5629_v28  ;;  %3803 = vmatpush1.bf16.msra.mxu1 %v5632_v45  ;;  %v3861_v45 = vlaneseq }
 0x188   :  { %3593 = vmatprep.subr.bf16.mxu0 %v5635_v31  ;;  %3804 = vmatprep.subr.bf16.mxu1 %v5689_v33  ;;  %v7295_v31 = vld [vmem:[%s8234_s4] sm:$0xff] }
 0x18a   :  { %3709 = vmatmul.mubr.bf16.gmra.mrb[44].mxu1 %v6808_v10 }
 0x18b   :  { %3594 = vmatpush1.bf16.msra.mxu0 %v5633_v48  ;;  %3805 = vmatpush1.bf16.msra.mxu1 %v5636_v49  ;;  %v4058_v49 = vld [vmem:[%s8235_s5 + $0x10] sm:$0xff] }
 0x18c   :  { %3595 = vmatprep.subr.bf16.mxu0 %v5639_v51  ;;  %3806 = vmatprep.subr.bf16.mxu1 %v5689_v33 }
 0x18d   :  { %4884 = vmatprep.mubr.msk.bf16.mxu1 %vm3268_vm0, %v6617_v25 }
 0x18f   :  { %3596 = vmatpush1.bf16.msra.mxu0 %v5637_v52  ;;  %3807 = vmatpush1.bf16.msra.mxu1 %v5640_v37  ;;  %v4059_v37 = vld [vmem:[%s8235_s5 + $0x18] sm:$0xff] }
 0x190   :  { %3719 = vmatprep.subr.bf16.mxu0 %v5643_v53  ;;  %3808 = vmatprep.subr.bf16.mxu1 %v5689_v33 }
 0x192   :  { %3606 = vmatmul.mubr.bf16.vlgmr.msra.gmra.mrb[32].mxu0 %v6697_v46 }
 0x193   :  { %3720 = vmatpush1.bf16.msra.mxu0 %v5641_v54  ;;  %3809 = vmatpush1.bf16.msra.mxu1 %v5644_v55  ;;  %v4073_v55 = vld [vmem:[%s8235_s5 + $0x88] sm:$0xff] }
 0x194   :  { %3721 = vmatprep.subr.bf16.mxu0 %v5647_v56  ;;  %3810 = vmatprep.subr.bf16.mxu1 %v5689_v33 }
 0x195   :  { %4873 = vmatprep.mubr.msk.bf16.mxu0 %vm3268_vm0, %v6711_v50 }
 0x197   :  { %3722 = vmatpush1.bf16.msra.mxu0 %v5645_v57  ;;  %3811 = vmatpush1.bf16.msra.mxu1 %v5648_v59 }
 0x198   :  { %3723 = vmatprep.subr.bf16.mxu0 %v5651_v60  ;;  %3812 = vmatprep.subr.bf16.mxu1 %v5689_v33  ;;  %v4074_v60 = vld [vmem:[%s8235_s5 + $0x90] sm:$0xff] }
 0x19a   :  { %3616 = vmatmul.mubr.bf16.gmra.mrb[36].mxu0 %v6735_v47 }
 0x19b   :  { %3724 = vmatpush1.bf16.msra.mxu0 %v5649_v61  ;;  %3813 = vmatpush1.bf16.msra.mxu1 %v5652_v62 }
 0x19c   :  { %3725 = vmatprep.subr.bf16.mxu0 %v5655_v63  ;;  %3814 = vmatprep.subr.bf16.mxu1 %v5689_v33 }
 0x19d   :  { %4874 = vmatprep.mubr.msk.bf16.mxu0 %vm3268_vm0, %v6750_v58 }
 0x19f   :  { %3726 = vmatpush1.bf16.msra.mxu0 %v5653_v1  ;;  %3815 = vmatpush1.bf16.msra.mxu1 %v5656_v2 }
 0x1a0   :  { %3727 = vmatprep.subr.bf16.mxu0 %v5659_v3  ;;  %v4088_v3 = vld [vmem:[%s8235_s5 + $0x100] sm:$0xff] }
 0x1a2   :  { %3626 = vmatmul.mubr.bf16.gmra.mrb[40].mxu0 %v6774_v0  ;;  %3825 = vmatmul.mubr.bf16.vlgmr.msra.gmra.mrb[64].mxu1 %v6697_v46 }
 0x1a3   :  { %3728 = vmatpush1.bf16.msra.mxu0 %v5657_v4  ;;  %4875 = vmatprep.mubr.msk.bf16.mxu0 %vm3268_vm0, %v6796_v7 }
 0x1a4   :  { %3729 = vmatprep.subr.bf16.mxu0 %v5662_v6  ;;  %4885 = vmatprep.mubr.msk.bf16.mxu1 %vm3268_vm0, %v6711_v50 }
 0x1a7   :  { %3730 = vmatpush1.bf16.msra.mxu0 %v5660_v8  ;;  %v4089_v8 = vld [vmem:[%s8235_s5 + $0x108] sm:$0xff] }
 0x1a8   :  { %3731 = vmatprep.subr.bf16.mxu0 %v5665_v9 }
 0x1aa   :  { %3636 = vmatmul.mubr.bf16.gmra.mrb[44].mxu0 %v6808_v10  ;;  %3833 = vmatmul.mubr.bf16.gmra.mrb[68].mxu1 %v6735_v47 }
 0x1ab   :  { %3732 = vmatpush1.bf16.msra.mxu0 %v5663_v11  ;;  %4886 = vmatprep.mubr.msk.bf16.mxu1 %vm3268_vm0, %v6750_v58 }
 0x1ac   :  { %3733 = vmatprep.subr.bf16.mxu0 %v5668_v12  ;;  %4880 = vmatprep.mubr.msk.bf16.mxu0 %vm3268_vm0, %v6617_v25  ;;  %v5677_v25 = vld [vmem:[%s8232_s2 + $0x4e4] ss:$60 sps:$4 sm:$0xff]   ;;  %v4103_v12 = vld [vmem:[%s8235_s5 + $0x178] sm:$0xff] }
 0x1af   :  { %3734 = vmatpush1.bf16.msra.mxu0 %v5666_v14 }
 0x1b0   :  { %3735 = vmatprep.subr.bf16.mxu0 %v5671_v15 }
 0x1b2   :  { %3841 = vmatmul.mubr.bf16.gmra.mrb[72].mxu1 %v6774_v0 }
 0x1b3   :  { %3736 = vmatpush1.bf16.msra.mxu0 %v5669_v16  ;;  %4887 = vmatprep.mubr.msk.bf16.mxu1 %vm3268_vm0, %v6796_v7 }
 0x1b4   :  { %3737 = vmatprep.subr.bf16.mxu0 %v5674_v18  ;;  %v4104_v18 = vld [vmem:[%s8235_s5 + $0x180] sm:$0xff] }
 0x1b5   :  { %v4904_v20 = vpop.f32.mrb[48].mxu1 }
 0x1b6   :  { %v4905_v21 = vpop.f32.mrb[49].mxu1 }
 0x1b7   :  { %3738 = vmatpush1.bf16.msra.mxu0 %v5672_v19  ;;  %v7256_v24 = vadd.f32 %v4905_v21, %v4904_v20  ;;  %v4907_v26 = vpop.f32.mrb[50].mxu1 }
 0x1b8   :  { %3739 = vmatprep.subr.bf16.mxu0 %v5677_v25  ;;  %v4908_v29 = vpop.f32.mrb[51].mxu1 }
 0x1b9   :  { %v7261_v5 = vadd.f32 %v4908_v29, %v4907_v26  ;;  %v4118_v26 = vld [vmem:[%s8235_s5 + $0x1f0] sm:$0xff] }
 0x1ba   :  { %3849 = vmatmul.mubr.bf16.gmra.mrb[76].mxu1 %v6808_v10 }
 0x1bb   :  { %3740 = vmatpush1.bf16.msra.mxu0 %v5675_v23 }
 0x1bc   :  { %3741 = vmatprep.subr.bf16.mxu0 %v5680_v27 }
 0x1bd   :  { %v4910_v32 = vpop.f32.mrb[52].mxu1 }
 0x1be   :  { %v4911_v33 = vpop.f32.mrb[53].mxu1 }
 0x1bf   :  { %3742 = vmatpush1.bf16.msra.mxu0 %v5678_v30  ;;  %v7267_v13 = vadd.f32 %v4911_v33, %v4910_v32  ;;  %v4913_v34 = vpop.f32.mrb[54].mxu1  ;;  %v4119_v30 = vld [vmem:[%s8235_s5 + $0x1f8] sm:$0xff] }
 0x1c0   :  { %v4914_v35 = vpop.f32.mrb[55].mxu1 }
 0x1c1   :  { %v7269_v36 = vadd.f32 %v4914_v35, %v4913_v34  ;;  %v4133_v34 = vld [vmem:[%s8235_s5 + $0x268] sm:$0xff] }
 0x1c2   :  { %3752 = vmatmul.mubr.bf16.vlgmr.msra.gmra.mrb[48].mxu0 %v6697_v46 }
 0x1c3   :  { %4881 = vmatprep.mubr.msk.bf16.mxu0 %vm3268_vm0, %v6711_v50 }
 0x1c5   :  { %v4916_v38 = vpop.f32.mrb[56].mxu1 }
 0x1c6   :  { %v4917_v17 = vpop.f32.mrb[57].mxu1 }
 0x1c7   :  { %v7274_v39 = vadd.f32 %v4917_v17, %v4916_v38  ;;  %v4919_v40 = vpop.f32.mrb[58].mxu1 }
 0x1c8   :  { %v4920_v22 = vpop.f32.mrb[59].mxu1 }
 0x1c9   :  { %v7276_v41 = vadd.f32 %v4920_v22, %v4919_v40  ;;  %v4134_v40 = vld [vmem:[%s8235_s5 + $0x270] sm:$0xff] }
 0x1ca   :  { %3762 = vmatmul.mubr.bf16.gmra.mrb[52].mxu0 %v6735_v47  ;;  %v7289_v47 = vshrl.u32 %v3861_v45, 7  ;;  %v4148_v45 = vld [vmem:[%s8235_s5 + $0x2e0] sm:$0xff] }
 0x1cb   :  { %4882 = vmatprep.mubr.msk.bf16.mxu0 %vm3268_vm0, %v6750_v58 }
 0x1cc   :  { %v3871_v58 = vsub.s32 2, %v7289_v47  ;;  %v3875_v48 = vsub.s32 3, %v7289_v47 }
 0x1cd   :  { %v4922_v42 = vpop.f32.mrb[60].mxu1 }
 0x1ce   :  { %v4923_v43 = vpop.f32.mrb[61].mxu1 }
 0x1cf   :  { %v7281_v44 = vadd.f32 %v4923_v43, %v4922_v42  ;;  %v4925_v46 = vpop.f32.mrb[62].mxu1 }
 0x1d0   :  { %v4926_v28 = vpop.f32.mrb[63].mxu1 }
 0x1d1   :  { %v7283_v50 = vadd.f32 %v4926_v28, %v4925_v46 }
 0x1d2   :  { %3772 = vmatmul.mubr.bf16.gmra.mrb[56].mxu0 %v6774_v0  ;;  %v7301_v0 = vrot.slane %v7295_v31, %v3871_v58 }
 0x1d3   :  { %4883 = vmatprep.mubr.msk.bf16.mxu0 %vm3268_vm0, %v6796_v7  ;;  %v7306_v7 = vrot.slane %v7295_v31, %v3875_v48 }
 0x1da   :  { %3782 = vmatmul.mubr.bf16.gmra.mrb[60].mxu0 %v6808_v10 }
 0x1e5   :  { %v3388_v10 = vpop.f32.mrb[0].mxu1 }
 0x1e6   :  { %v3938_v51 = vadd.f32 %v7301_v0, %v3388_v10  ;;  %v3390_v52 = vpop.f32.mrb[1].mxu1 }
 0x1e7   :  { %v3939_v53 = vadd.f32 %v7306_v7, %v3390_v52  ;;  %v3392_v54 = vpop.f32.mrb[2].mxu1  ;;  %v3863_v52 = vsub.s32 0, %v7289_v47 }
 0x1e8   :  { %v4178_v56 = vadd.f32 %v4058_v49, %v3938_v51  ;;  %v3953_v57 = vadd.f32 %v7301_v0, %v3392_v54  ;;  %v3394_v59 = vpop.f32.mrb[3].mxu1  ;;  %v4149_v51 = vld [vmem:[%s8235_s5 + $0x2e8] sm:$0xff]  ;;  %v4163_v54 = vld [vmem:[%s8235_s5 + $0x358] sm:$0xff] }
 0x1e9   :  { %v4179_v61 = vadd.f32 %v4059_v37, %v3939_v53  ;;  %v3954_v62 = vadd.f32 %v7306_v7, %v3394_v59 }
 0x1ea   :  { %4298 = vst [vmem:[%s8236_s6 + $0x10] sm:$0xff] %v4178_v56  ;;  %v4193_v63 = vadd.f32 %v4073_v55, %v3953_v57  ;;  %v3867_v55 = vsub.s32 1, %v7289_v47 }
 0x1eb   :  { %4299 = vst [vmem:[%s8236_s6 + $0x18] sm:$0xff] %v4179_v61  ;;  %v4194_v1 = vadd.f32 %v4074_v60, %v3954_v62  ;;  %v4164_v60 = vld [vmem:[%s8235_s5 + $0x360] sm:$0xff] }
 0x1ec   :  { %4313 = vst [vmem:[%s8236_s6 + $0x88] sm:$0xff] %v4193_v63 }
 0x1ed   :  { %4314 = vst [vmem:[%s8236_s6 + $0x90] sm:$0xff] %v4194_v1  ;;  %v3398_v2 = vpop.f32.mrb[4].mxu1  ;;  %v7416_v1 = vrot.slane %v7295_v31, %v3863_v52 }
 0x1ee   :  { %v3968_v4 = vadd.f32 %v7301_v0, %v3398_v2  ;;  %v3400_v6 = vpop.f32.mrb[5].mxu1  ;;  %v7424_v2 = vrot.slane %v7295_v31, %v3867_v55 }
 0x1ef   :  { %v3969_v9 = vadd.f32 %v7306_v7, %v3400_v6  ;;  %v3402_v11 = vpop.f32.mrb[6].mxu1 }
 0x1f0   :  { %v4208_v14 = vadd.f32 %v4088_v3, %v3968_v4  ;;  %v3983_v15 = vadd.f32 %v7301_v0, %v3402_v11  ;;  %v3404_v16 = vpop.f32.mrb[7].mxu1  ;;  %v4056_v3 = vld [vmem:[%s8235_s5] sm:$0xff] }
 0x1f1   :  { %v4209_v19 = vadd.f32 %v4089_v8, %v3969_v9  ;;  %v3984_v25 = vadd.f32 %v7306_v7, %v3404_v16  ;;  %v4057_v8 = vld [vmem:[%s8235_s5 + $0x8] sm:$0xff] }
 0x1f2   :  { %4328 = vst [vmem:[%s8236_s6 + $0x100] sm:$0xff] %v4208_v14  ;;  %v4223_v20 = vadd.f32 %v4103_v12, %v3983_v15  ;;  %v4071_v12 = vld [vmem:[%s8235_s5 + $0x78] sm:$0xff] }
 0x1f3   :  { %4329 = vst [vmem:[%s8236_s6 + $0x108] sm:$0xff] %v4209_v19  ;;  %v4224_v21 = vadd.f32 %v4104_v18, %v3984_v25  ;;  %v4072_v18 = vld [vmem:[%s8235_s5 + $0x80] sm:$0xff] }
 0x1f4   :  { %4343 = vst [vmem:[%s8236_s6 + $0x178] sm:$0xff] %v4223_v20 }
 0x1f5   :  { %4344 = vst [vmem:[%s8236_s6 + $0x180] sm:$0xff] %v4224_v21  ;;  %v3408_v23 = vpop.f32.mrb[8].mxu1 }
 0x1f6   :  { %v3998_v27 = vadd.f32 %v7301_v0, %v3408_v23  ;;  %v3410_v29 = vpop.f32.mrb[9].mxu1 }
 0x1f7   :  { %v3999_v32 = vadd.f32 %v7306_v7, %v3410_v29  ;;  %v3412_v33 = vpop.f32.mrb[10].mxu1 }
 0x1f8   :  { %v4238_v35 = vadd.f32 %v4118_v26, %v3998_v27  ;;  %v4013_v38 = vadd.f32 %v7301_v0, %v3412_v33  ;;  %v3414_v17 = vpop.f32.mrb[11].mxu1  ;;  %v4086_v26 = vld [vmem:[%s8235_s5 + $0xf0] sm:$0xff] }
 0x1f9   :  { %v4239_v22 = vadd.f32 %v4119_v30, %v3999_v32  ;;  %v4014_v42 = vadd.f32 %v7306_v7, %v3414_v17  ;;  %v4087_v30 = vld [vmem:[%s8235_s5 + $0xf8] sm:$0xff]  ;;  %v3887_v32 = vsub.s32 6, %v7289_v47 }
 0x1fa   :  { %4358 = vst [vmem:[%s8236_s6 + $0x1f0] sm:$0xff] %v4238_v35  ;;  %v4253_v43 = vadd.f32 %v4133_v34, %v4013_v38  ;;  %v4101_v35 = vld [vmem:[%s8235_s5 + $0x168] sm:$0xff]  ;;  %v3891_v38 = vsub.s32 7, %v7289_v47 }
 0x1fb   :  { %4359 = vst [vmem:[%s8236_s6 + $0x1f8] sm:$0xff] %v4239_v22  ;;  %v4254_v46 = vadd.f32 %v4134_v40, %v4014_v42  ;;  %v4102_v42 = vld [vmem:[%s8235_s5 + $0x170] sm:$0xff] }
 0x1fc   :  { %4373 = vst [vmem:[%s8236_s6 + $0x268] sm:$0xff] %v4253_v43 }
 0x1fd   :  { %4374 = vst [vmem:[%s8236_s6 + $0x270] sm:$0xff] %v4254_v46  ;;  %v3418_v28 = vpop.f32.mrb[12].mxu1 }
 0x1fe   :  { %v4028_v10 = vadd.f32 %v7301_v0, %v3418_v28  ;;  %v3420_v49 = vpop.f32.mrb[13].mxu1 }
 0x1ff   :  { %v4029_v37 = vadd.f32 %v7306_v7, %v3420_v49  ;;  %v3422_v53 = vpop.f32.mrb[14].mxu1  ;;  %v7490_v49 = vrot.slane %v7295_v31, %v3891_v38 }
 0x200   :  { %v4268_v56 = vadd.f32 %v4148_v45, %v4028_v10  ;;  %v4043_v57 = vadd.f32 %v7301_v0, %v3422_v53  ;;  %v3424_v59 = vpop.f32.mrb[15].mxu1  ;;  %v7484_v45 = vrot.slane %v7295_v31, %v3887_v32 }
 0x201   :  { %v4269_v61 = vadd.f32 %v4149_v51, %v4029_v37  ;;  %v4044_v62 = vadd.f32 %v7306_v7, %v3424_v59  ;;  %v4116_v37 = vld [vmem:[%s8235_s5 + $0x1e0] sm:$0xff] }
 0x202   :  { %4388 = vst [vmem:[%s8236_s6 + $0x2e0] sm:$0xff] %v4268_v56  ;;  %v4283_v63 = vadd.f32 %v4163_v54, %v4043_v57  ;;  %v4062_v54 = vld [vmem:[%s8235_s5 + $0x30] sm:$0xff] }
 0x203   :  { %4389 = vst [vmem:[%s8236_s6 + $0x2e8] sm:$0xff] %v4269_v61  ;;  %v4284_v0 = vadd.f32 %v4164_v60, %v4044_v62  ;;  %v4117_v60 = vld [vmem:[%s8235_s5 + $0x1e8] sm:$0xff]  ;;  %v4063_v62 = vld [vmem:[%s8235_s5 + $0x38] sm:$0xff] }
 0x204   :  { %4403 = vst [vmem:[%s8236_s6 + $0x358] sm:$0xff] %v4283_v63 }
 0x205   :  { %4404 = vst [vmem:[%s8236_s6 + $0x360] sm:$0xff] %v4284_v0  ;;  %v3315_v7 = vpop.f32.mrb[0].mxu0 }
 0x206   :  { %v3936_v4 = vadd.f32 %v7416_v1, %v3315_v7  ;;  %v3317_v6 = vpop.f32.mrb[1].mxu0 }
 0x207   :  { %v3937_v9 = vadd.f32 %v7424_v2, %v3317_v6  ;;  %v3319_v11 = vpop.f32.mrb[2].mxu0  ;;  %v4077_v6 = vld [vmem:[%s8235_s5 + $0xa8] sm:$0xff] }
 0x208   :  { %v4176_v14 = vadd.f32 %v4056_v3, %v3936_v4  ;;  %v3951_v15 = vadd.f32 %v7416_v1, %v3319_v11  ;;  %v3321_v16 = vpop.f32.mrb[3].mxu0  ;;  %v4131_v3 = vld [vmem:[%s8235_s5 + $0x258] sm:$0xff] }
 0x209   :  { %v4177_v19 = vadd.f32 %v4057_v8, %v3937_v9  ;;  %v3952_v25 = vadd.f32 %v7424_v2, %v3321_v16 }
 0x20a   :  { %4296 = vst [vmem:[%s8236_s6] sm:$0xff] %v4176_v14  ;;  %v4191_v20 = vadd.f32 %v4071_v12, %v3951_v15  ;;  %v4132_v15 = vld [vmem:[%s8235_s5 + $0x260] sm:$0xff] }
 0x20b   :  { %4297 = vst [vmem:[%s8236_s6 + $0x8] sm:$0xff] %v4177_v19  ;;  %v4192_v21 = vadd.f32 %v4072_v18, %v3952_v25  ;;  %v4078_v18 = vld [vmem:[%s8235_s5 + $0xb0] sm:$0xff] }
 0x20c   :  { %4311 = vst [vmem:[%s8236_s6 + $0x78] sm:$0xff] %v4191_v20 }
 0x20d   :  { %4312 = vst [vmem:[%s8236_s6 + $0x80] sm:$0xff] %v4192_v21  ;;  %v3325_v23 = vpop.f32.mrb[4].mxu0 }
 0x20e   :  { %v3966_v27 = vadd.f32 %v7416_v1, %v3325_v23  ;;  %v3327_v29 = vpop.f32.mrb[5].mxu0 }
 0x20f   :  { %v3967_v33 = vadd.f32 %v7424_v2, %v3327_v29  ;;  %v3329_v34 = vpop.f32.mrb[6].mxu0 }
 0x210   :  { %v4206_v17 = vadd.f32 %v4086_v26, %v3966_v27  ;;  %v3981_v40 = vadd.f32 %v7416_v1, %v3329_v34  ;;  %v3331_v22 = vpop.f32.mrb[7].mxu0 }
 0x211   :  { %v4207_v43 = vadd.f32 %v4087_v30, %v3967_v33  ;;  %v3982_v46 = vadd.f32 %v7424_v2, %v3331_v22  ;;  %v4146_v33 = vld [vmem:[%s8235_s5 + $0x2d0] sm:$0xff]  ;;  %v4147_v22 = vld [vmem:[%s8235_s5 + $0x2d8] sm:$0xff] }
 0x212   :  { %4326 = vst [vmem:[%s8236_s6 + $0xf0] sm:$0xff] %v4206_v17  ;;  %v4221_v28 = vadd.f32 %v4101_v35, %v3981_v40  ;;  %v4092_v35 = vld [vmem:[%s8235_s5 + $0x120] sm:$0xff] }
 0x213   :  { %4327 = vst [vmem:[%s8236_s6 + $0xf8] sm:$0xff] %v4207_v43  ;;  %v4222_v10 = vadd.f32 %v4102_v42, %v3982_v46  ;;  %v4093_v43 = vld [vmem:[%s8235_s5 + $0x128] sm:$0xff] }
 0x214   :  { %4341 = vst [vmem:[%s8236_s6 + $0x168] sm:$0xff] %v4221_v28 }
 0x215   :  { %4342 = vst [vmem:[%s8236_s6 + $0x170] sm:$0xff] %v4222_v10  ;;  %v3335_v51 = vpop.f32.mrb[8].mxu0  ;;  %v3534_v53 = vpop.f32.mrb[16].mxu1 }
 0x216   :  { %v3996_v56 = vadd.f32 %v7416_v1, %v3335_v51  ;;  %v3942_v57 = vadd.f32 %v7484_v45, %v3534_v53  ;;  %v3337_v59 = vpop.f32.mrb[9].mxu0  ;;  %v3536_v61 = vpop.f32.mrb[17].mxu1  ;;  %v4161_v51 = vld [vmem:[%s8235_s5 + $0x348] sm:$0xff]  ;;  %v4107_v53 = vld [vmem:[%s8235_s5 + $0x198] sm:$0xff] }
 0x217   :  { %v3997_v63 = vadd.f32 %v7424_v2, %v3337_v59  ;;  %v3943_v0 = vadd.f32 %v7490_v49, %v3536_v61  ;;  %v3339_v7 = vpop.f32.mrb[10].mxu0  ;;  %v3538_v4 = vpop.f32.mrb[18].mxu1  ;;  %v4162_v61 = vld [vmem:[%s8235_s5 + $0x350] sm:$0xff] }
 0x218   :  { %v4236_v8 = vadd.f32 %v4116_v37, %v3996_v56  ;;  %v4182_v9 = vadd.f32 %v4062_v54, %v3942_v57  ;;  %v4011_v11 = vadd.f32 %v7416_v1, %v3339_v7  ;;  %v3957_v12 = vadd.f32 %v7484_v45, %v3538_v4  ;;  %v3341_v14 = vpop.f32.mrb[11].mxu0  ;;  %v3540_v16 = vpop.f32.mrb[19].mxu1 }
 0x219   :  { %v4237_v19 = vadd.f32 %v4117_v60, %v3997_v63  ;;  %v4183_v25 = vadd.f32 %v4063_v62, %v3943_v0  ;;  %v4012_v20 = vadd.f32 %v7424_v2, %v3341_v14  ;;  %v3958_v21 = vadd.f32 %v7490_v49, %v3540_v16  ;;  %v4108_v63 = vld [vmem:[%s8235_s5 + $0x1a0] sm:$0xff] }
 0x21a   :  { %4356 = vst [vmem:[%s8236_s6 + $0x1e0] sm:$0xff] %v4236_v8  ;;  %4302 = vst [vmem:[%s8236_s6 + $0x30] sm:$0xff] %v4182_v9  ;;  %v4251_v23 = vadd.f32 %v4131_v3, %v4011_v11  ;;  %v4197_v26 = vadd.f32 %v4077_v6, %v3957_v12  ;;  %v4122_v11 = vld [vmem:[%s8235_s5 + $0x210] sm:$0xff] }
 0x21b   :  { %4357 = vst [vmem:[%s8236_s6 + $0x1e8] sm:$0xff] %v4237_v19  ;;  %4303 = vst [vmem:[%s8236_s6 + $0x38] sm:$0xff] %v4183_v25  ;;  %v4252_v27 = vadd.f32 %v4132_v15, %v4012_v20  ;;  %v4198_v29 = vadd.f32 %v4078_v18, %v3958_v21  ;;  %v4123_v15 = vld [vmem:[%s8235_s5 + $0x218] sm:$0xff]  ;;  %v4137_v19 = vld [vmem:[%s8235_s5 + $0x288] sm:$0xff] }
 0x21c   :  { %4371 = vst [vmem:[%s8236_s6 + $0x258] sm:$0xff] %v4251_v23  ;;  %4317 = vst [vmem:[%s8236_s6 + $0xa8] sm:$0xff] %v4197_v26  ;;  %v4138_v23 = vld [vmem:[%s8235_s5 + $0x290] sm:$0xff] }
 0x21d   :  { %4372 = vst [vmem:[%s8236_s6 + $0x260] sm:$0xff] %v4252_v27  ;;  %4318 = vst [vmem:[%s8236_s6 + $0xb0] sm:$0xff] %v4198_v29  ;;  %v3345_v30 = vpop.f32.mrb[12].mxu0  ;;  %v3544_v34 = vpop.f32.mrb[20].mxu1 }
 0x21e   :  { %v4026_v38 = vadd.f32 %v7416_v1, %v3345_v30  ;;  %v3972_v17 = vadd.f32 %v7484_v45, %v3544_v34  ;;  %v3347_v40 = vpop.f32.mrb[13].mxu0  ;;  %v3546_v42 = vpop.f32.mrb[21].mxu1  ;;  %v4152_v34 = vld [vmem:[%s8235_s5 + $0x300] sm:$0xff] }
 0x21f   :  { %v4027_v46 = vadd.f32 %v7424_v2, %v3347_v40  ;;  %v3973_v28 = vadd.f32 %v7490_v49, %v3546_v42  ;;  %v3349_v10 = vpop.f32.mrb[14].mxu0  ;;  %v3548_v37 = vpop.f32.mrb[22].mxu1  ;;  %v3879_v40 = vsub.s32 4, %v7289_v47 }
 0x220   :  { %v4266_v54 = vadd.f32 %v4146_v33, %v4026_v38  ;;  %v4212_v56 = vadd.f32 %v4092_v35, %v3972_v17  ;;  %v4041_v57 = vadd.f32 %v7416_v1, %v3349_v10  ;;  %v3987_v59 = vadd.f32 %v7484_v45, %v3548_v37  ;;  %v3351_v60 = vpop.f32.mrb[15].mxu0  ;;  %v3550_v62 = vpop.f32.mrb[23].mxu1  ;;  %v4153_v17 = vld [vmem:[%s8235_s5 + $0x308] sm:$0xff]  ;;  %v4168_v37 = vld [vmem:[%s8235_s5 + $0x380] sm:$0xff] }
 0x221   :  { %v4267_v0 = vadd.f32 %v4147_v22, %v4027_v46  ;;  %v4213_v7 = vadd.f32 %v4093_v43, %v3973_v28  ;;  %v4042_v3 = vadd.f32 %v7424_v2, %v3351_v60  ;;  %v3988_v4 = vadd.f32 %v7490_v49, %v3550_v62  ;;  %v4167_v43 = vld [vmem:[%s8235_s5 + $0x378] sm:$0xff]  ;;  %v4060_v60 = vld [vmem:[%s8235_s5 + $0x20] sm:$0xff] }
 0x222   :  { %4386 = vst [vmem:[%s8236_s6 + $0x2d0] sm:$0xff] %v4266_v54  ;;  %4332 = vst [vmem:[%s8236_s6 + $0x120] sm:$0xff] %v4212_v56  ;;  %v4281_v1 = vadd.f32 %v4161_v51, %v4041_v57  ;;  %v4227_v6 = vadd.f32 %v4107_v53, %v3987_v59  ;;  %v3883_v46 = vsub.s32 5, %v7289_v47  ;;  %v7662_v57 = vrot.slane %v7295_v31, %v3879_v40 }
 0x223   :  { %4387 = vst [vmem:[%s8236_s6 + $0x2d8] sm:$0xff] %v4267_v0  ;;  %4333 = vst [vmem:[%s8236_s6 + $0x128] sm:$0xff] %v4213_v7  ;;  %v4282_v2 = vadd.f32 %v4162_v61, %v4042_v3  ;;  %v4228_v8 = vadd.f32 %v4108_v63, %v3988_v4  ;;  %v4075_v7 = vld [vmem:[%s8235_s5 + $0x98] sm:$0xff] }
 0x224   :  { %4401 = vst [vmem:[%s8236_s6 + $0x348] sm:$0xff] %v4281_v1  ;;  %4347 = vst [vmem:[%s8236_s6 + $0x198] sm:$0xff] %v4227_v6  ;;  %v7670_v59 = vrot.slane %v7295_v31, %v3883_v46  ;;  %v4061_v31 = vld [vmem:[%s8235_s5 + $0x28] sm:$0xff]  ;;  %v4076_v6 = vld [vmem:[%s8235_s5 + $0xa0] sm:$0xff] }
 0x225   :  { %4402 = vst [vmem:[%s8236_s6 + $0x350] sm:$0xff] %v4282_v2  ;;  %4348 = vst [vmem:[%s8236_s6 + $0x1a0] sm:$0xff] %v4228_v8  ;;  %v3554_v9 = vpop.f32.mrb[24].mxu1 }
 0x226   :  { %v4002_v12 = vadd.f32 %v7484_v45, %v3554_v9  ;;  %v3556_v14 = vpop.f32.mrb[25].mxu1 }
 0x227   :  { %v4003_v16 = vadd.f32 %v7490_v49, %v3556_v14  ;;  %v3558_v18 = vpop.f32.mrb[26].mxu1  ;;  %v4090_v14 = vld [vmem:[%s8235_s5 + $0x110] sm:$0xff] }
 0x228   :  { %v4242_v25 = vadd.f32 %v4122_v11, %v4002_v12  ;;  %v4017_v20 = vadd.f32 %v7484_v45, %v3558_v18  ;;  %v3560_v21 = vpop.f32.mrb[27].mxu1  ;;  %v4091_v18 = vld [vmem:[%s8235_s5 + $0x118] sm:$0xff] }
 0x229   :  { %v4243_v26 = vadd.f32 %v4123_v15, %v4003_v16  ;;  %v4018_v27 = vadd.f32 %v7490_v49, %v3560_v21  ;;  %v7720_v21 = vld [vmem:[%s8234_s4 + $0x8] sm:$0xff] }
 0x22a   :  { %4362 = vst [vmem:[%s8236_s6 + $0x210] sm:$0xff] %v4242_v25  ;;  %v4257_v29 = vadd.f32 %v4137_v19, %v4017_v20  ;;  %v4105_v20 = vld [vmem:[%s8235_s5 + $0x188] sm:$0xff] }
 0x22b   :  { %4363 = vst [vmem:[%s8236_s6 + $0x218] sm:$0xff] %v4243_v26  ;;  %v4258_v30 = vadd.f32 %v4138_v23, %v4018_v27 }
 0x22c   :  { %4377 = vst [vmem:[%s8236_s6 + $0x288] sm:$0xff] %v4257_v29  ;;  %v4106_v29 = vld [vmem:[%s8235_s5 + $0x190] sm:$0xff] }
 0x22d   :  { %4378 = vst [vmem:[%s8236_s6 + $0x290] sm:$0xff] %v4258_v30  ;;  %v3564_v33 = vpop.f32.mrb[28].mxu1 }
 0x22e   :  { %v4032_v35 = vadd.f32 %v7484_v45, %v3564_v33  ;;  %v3566_v38 = vpop.f32.mrb[29].mxu1 }
 0x22f   :  { %v4033_v22 = vadd.f32 %v7490_v49, %v3566_v38  ;;  %v3568_v42 = vpop.f32.mrb[30].mxu1 }
 0x230   :  { %v4272_v28 = vadd.f32 %v4152_v34, %v4032_v35  ;;  %v4047_v10 = vadd.f32 %v7484_v45, %v3568_v42  ;;  %v3570_v51 = vpop.f32.mrb[31].mxu1  ;;  %v7733_v35 = vrot.slane %v7720_v21, %v3871_v58 }
 0x231   :  { %v4273_v53 = vadd.f32 %v4153_v17, %v4033_v22  ;;  %v4048_v54 = vadd.f32 %v7490_v49, %v3570_v51  ;;  %v7741_v17 = vrot.slane %v7720_v21, %v3875_v48  ;;  %v4120_v22 = vld [vmem:[%s8235_s5 + $0x200] sm:$0xff]  ;;  %v4121_v51 = vld [vmem:[%s8235_s5 + $0x208] sm:$0xff] }
 0x232   :  { %4392 = vst [vmem:[%s8236_s6 + $0x300] sm:$0xff] %v4272_v28  ;;  %v4287_v56 = vadd.f32 %v4167_v43, %v4047_v10  ;;  %v4066_v43 = vld [vmem:[%s8235_s5 + $0x50] sm:$0xff] }
 0x233   :  { %4393 = vst [vmem:[%s8236_s6 + $0x308] sm:$0xff] %v4273_v53  ;;  %v4288_v45 = vadd.f32 %v4168_v37, %v4048_v54  ;;  %v4067_v53 = vld [vmem:[%s8235_s5 + $0x58] sm:$0xff] }
 0x234   :  { %4407 = vst [vmem:[%s8236_s6 + $0x378] sm:$0xff] %v4287_v56 }
 0x235   :  { %4408 = vst [vmem:[%s8236_s6 + $0x380] sm:$0xff] %v4288_v45  ;;  %v3461_v49 = vpop.f32.mrb[16].mxu0 }
 0x236   :  { %v3940_v61 = vadd.f32 %v7662_v57, %v3461_v49  ;;  %v3463_v62 = vpop.f32.mrb[17].mxu0  ;;  %v4135_v49 = vld [vmem:[%s8235_s5 + $0x278] sm:$0xff] }
 0x237   :  { %v3941_v63 = vadd.f32 %v7670_v59, %v3463_v62  ;;  %v3465_v0 = vpop.f32.mrb[18].mxu0 }
 0x238   :  { %v4180_v3 = vadd.f32 %v4060_v60, %v3940_v61  ;;  %v3955_v4 = vadd.f32 %v7662_v57, %v3465_v0  ;;  %v3467_v1 = vpop.f32.mrb[19].mxu0  ;;  %v4081_v61 = vld [vmem:[%s8235_s5 + $0xc8] sm:$0xff] }
 0x239   :  { %v4181_v2 = vadd.f32 %v4061_v31, %v3941_v63  ;;  %v3956_v8 = vadd.f32 %v7670_v59, %v3467_v1  ;;  %v4082_v1 = vld [vmem:[%s8235_s5 + $0xd0] sm:$0xff] }
 0x23a   :  { %4300 = vst [vmem:[%s8236_s6 + $0x20] sm:$0xff] %v4180_v3  ;;  %v4195_v9 = vadd.f32 %v4075_v7, %v3955_v4  ;;  %v4136_v3 = vld [vmem:[%s8235_s5 + $0x280] sm:$0xff] }
 0x23b   :  { %4301 = vst [vmem:[%s8236_s6 + $0x28] sm:$0xff] %v4181_v2  ;;  %v4196_v11 = vadd.f32 %v4076_v6, %v3956_v8 }
 0x23c   :  { %4315 = vst [vmem:[%s8236_s6 + $0x98] sm:$0xff] %v4195_v9 }
 0x23d   :  { %4316 = vst [vmem:[%s8236_s6 + $0xa0] sm:$0xff] %v4196_v11  ;;  %v3471_v12 = vpop.f32.mrb[20].mxu0 }
 0x23e   :  { %v3970_v15 = vadd.f32 %v7662_v57, %v3471_v12  ;;  %v3473_v16 = vpop.f32.mrb[21].mxu0 }
 0x23f   :  { %v3971_v19 = vadd.f32 %v7670_v59, %v3473_v16  ;;  %v3475_v25 = vpop.f32.mrb[22].mxu0 }
 0x240   :  { %v4210_v23 = vadd.f32 %v4090_v14, %v3970_v15  ;;  %v3985_v26 = vadd.f32 %v7662_v57, %v3475_v25  ;;  %v3477_v27 = vpop.f32.mrb[23].mxu0  ;;  %v4096_v25 = vld [vmem:[%s8235_s5 + $0x140] sm:$0xff] }
 0x241   :  { %v4211_v30 = vadd.f32 %v4091_v18, %v3971_v19  ;;  %v3986_v33 = vadd.f32 %v7670_v59, %v3477_v27  ;;  %v4150_v18 = vld [vmem:[%s8235_s5 + $0x2f0] sm:$0xff]  ;;  %v4151_v27 = vld [vmem:[%s8235_s5 + $0x2f8] sm:$0xff] }
 0x242   :  { %4330 = vst [vmem:[%s8236_s6 + $0x110] sm:$0xff] %v4210_v23  ;;  %v4225_v34 = vadd.f32 %v4105_v20, %v3985_v26 }
 0x243   :  { %4331 = vst [vmem:[%s8236_s6 + $0x118] sm:$0xff] %v4211_v30  ;;  %v4226_v38 = vadd.f32 %v4106_v29, %v3986_v33  ;;  %v4097_v30 = vld [vmem:[%s8235_s5 + $0x148] sm:$0xff] }
 0x244   :  { %4345 = vst [vmem:[%s8236_s6 + $0x188] sm:$0xff] %v4225_v34 }
 0x245   :  { %4346 = vst [vmem:[%s8236_s6 + $0x190] sm:$0xff] %v4226_v38  ;;  %v3481_v58 = vpop.f32.mrb[24].mxu0  ;;  %v3680_v42 = vpop.f32.mrb[32].mxu1 }
 0x246   :  { %v4000_v48 = vadd.f32 %v7662_v57, %v3481_v58  ;;  %v3946_v28 = vadd.f32 %v7733_v35, %v3680_v42  ;;  %v3483_v10 = vpop.f32.mrb[25].mxu0  ;;  %v3682_v37 = vpop.f32.mrb[33].mxu1  ;;  %v4165_v58 = vld [vmem:[%s8235_s5 + $0x368] sm:$0xff]  ;;  %v4111_v42 = vld [vmem:[%s8235_s5 + $0x1b8] sm:$0xff] }
 0x247   :  { %v4001_v54 = vadd.f32 %v7670_v59, %v3483_v10  ;;  %v3947_v56 = vadd.f32 %v7741_v17, %v3682_v37  ;;  %v3485_v45 = vpop.f32.mrb[26].mxu0  ;;  %v3684_v60 = vpop.f32.mrb[34].mxu1  ;;  %v4166_v37 = vld [vmem:[%s8235_s5 + $0x370] sm:$0xff] }
 0x248   :  { %v4240_v62 = vadd.f32 %v4120_v22, %v4000_v48  ;;  %v4186_v31 = vadd.f32 %v4066_v43, %v3946_v28  ;;  %v4015_v63 = vadd.f32 %v7662_v57, %v3485_v45  ;;  %v3961_v0 = vadd.f32 %v7733_v35, %v3684_v60  ;;  %v3487_v7 = vpop.f32.mrb[27].mxu0  ;;  %v3686_v4 = vpop.f32.mrb[35].mxu1 }
 0x249   :  { %v4241_v6 = vadd.f32 %v4121_v51, %v4001_v54  ;;  %v4187_v2 = vadd.f32 %v4067_v53, %v3947_v56  ;;  %v4016_v8 = vadd.f32 %v7670_v59, %v3487_v7  ;;  %v3962_v9 = vadd.f32 %v7741_v17, %v3686_v4  ;;  %v4112_v54 = vld [vmem:[%s8235_s5 + $0x1c0] sm:$0xff] }
 0x24a   :  { %4360 = vst [vmem:[%s8236_s6 + $0x200] sm:$0xff] %v4240_v62  ;;  %4306 = vst [vmem:[%s8236_s6 + $0x50] sm:$0xff] %v4186_v31  ;;  %v4255_v11 = vadd.f32 %v4135_v49, %v4015_v63  ;;  %v4201_v12 = vadd.f32 %v4081_v61, %v3961_v0  ;;  %v4126_v63 = vld [vmem:[%s8235_s5 + $0x230] sm:$0xff] }
 0x24b   :  { %4361 = vst [vmem:[%s8236_s6 + $0x208] sm:$0xff] %v4241_v6  ;;  %4307 = vst [vmem:[%s8236_s6 + $0x58] sm:$0xff] %v4187_v2  ;;  %v4256_v14 = vadd.f32 %v4136_v3, %v4016_v8  ;;  %v4202_v15 = vadd.f32 %v4082_v1, %v3962_v9  ;;  %v4127_v3 = vld [vmem:[%s8235_s5 + $0x238] sm:$0xff]  ;;  %v4141_v6 = vld [vmem:[%s8235_s5 + $0x2a8] sm:$0xff] }
 0x24c   :  { %4375 = vst [vmem:[%s8236_s6 + $0x278] sm:$0xff] %v4255_v11  ;;  %4321 = vst [vmem:[%s8236_s6 + $0xc8] sm:$0xff] %v4201_v12  ;;  %v4142_v11 = vld [vmem:[%s8235_s5 + $0x2b0] sm:$0xff] }
 0x24d   :  { %4376 = vst [vmem:[%s8236_s6 + $0x280] sm:$0xff] %v4256_v14  ;;  %4322 = vst [vmem:[%s8236_s6 + $0xd0] sm:$0xff] %v4202_v15  ;;  %v3491_v16 = vpop.f32.mrb[28].mxu0  ;;  %v3690_v19 = vpop.f32.mrb[36].mxu1 }
 0x24e   :  { %v4030_v20 = vadd.f32 %v7662_v57, %v3491_v16  ;;  %v3976_v23 = vadd.f32 %v7733_v35, %v3690_v19  ;;  %v3493_v26 = vpop.f32.mrb[29].mxu0  ;;  %v3692_v29 = vpop.f32.mrb[37].mxu1  ;;  %v4156_v19 = vld [vmem:[%s8235_s5 + $0x320] sm:$0xff] }
 0x24f   :  { %v4031_v33 = vadd.f32 %v7670_v59, %v3493_v26  ;;  %v3977_v34 = vadd.f32 %v7741_v17, %v3692_v29  ;;  %v3495_v38 = vpop.f32.mrb[30].mxu0  ;;  %v3694_v22 = vpop.f32.mrb[38].mxu1  ;;  %v4171_v29 = vld [vmem:[%s8235_s5 + $0x398] sm:$0xff] }
 0x250   :  { %v4270_v43 = vadd.f32 %v4150_v18, %v4030_v20  ;;  %v4216_v48 = vadd.f32 %v4096_v25, %v3976_v23  ;;  %v4045_v28 = vadd.f32 %v7662_v57, %v3495_v38  ;;  %v3991_v10 = vadd.f32 %v7733_v35, %v3694_v22  ;;  %v3497_v51 = vpop.f32.mrb[31].mxu0  ;;  %v3696_v53 = vpop.f32.mrb[39].mxu1  ;;  %v4157_v23 = vld [vmem:[%s8235_s5 + $0x328] sm:$0xff]  ;;  %v4172_v38 = vld [vmem:[%s8235_s5 + $0x3a0] sm:$0xff] }
 0x251   :  { %v4271_v56 = vadd.f32 %v4151_v27, %v4031_v33  ;;  %v4217_v45 = vadd.f32 %v4097_v30, %v3977_v34  ;;  %v4046_v49 = vadd.f32 %v7670_v59, %v3497_v51  ;;  %v3992_v60 = vadd.f32 %v7741_v17, %v3696_v53  ;;  %v4079_v53 = vld [vmem:[%s8235_s5 + $0xb8] sm:$0xff] }
 0x252   :  { %4390 = vst [vmem:[%s8236_s6 + $0x2f0] sm:$0xff] %v4270_v43  ;;  %4336 = vst [vmem:[%s8236_s6 + $0x140] sm:$0xff] %v4216_v48  ;;  %v4285_v57 = vadd.f32 %v4165_v58, %v4045_v28  ;;  %v4231_v61 = vadd.f32 %v4111_v42, %v3991_v10  ;;  %v7911_v43 = vrot.slane %v7720_v21, %v3863_v52 }
 0x253   :  { %4391 = vst [vmem:[%s8236_s6 + $0x2f8] sm:$0xff] %v4271_v56  ;;  %4337 = vst [vmem:[%s8236_s6 + $0x148] sm:$0xff] %v4217_v45  ;;  %v4286_v59 = vadd.f32 %v4166_v37, %v4046_v49  ;;  %v4232_v62 = vadd.f32 %v4112_v54, %v3992_v60  ;;  %v7919_v48 = vrot.slane %v7720_v21, %v3867_v55  ;;  %v4065_v55 = vld [vmem:[%s8235_s5 + $0x48] sm:$0xff]  ;;  %v4080_v49 = vld [vmem:[%s8235_s5 + $0xc0] sm:$0xff] }
 0x254   :  { %4405 = vst [vmem:[%s8236_s6 + $0x368] sm:$0xff] %v4285_v57  ;;  %4351 = vst [vmem:[%s8236_s6 + $0x1b8] sm:$0xff] %v4231_v61 }
 0x255   :  { %4406 = vst [vmem:[%s8236_s6 + $0x370] sm:$0xff] %v4286_v59  ;;  %4352 = vst [vmem:[%s8236_s6 + $0x1c0] sm:$0xff] %v4232_v62  ;;  %v3700_v31 = vpop.f32.mrb[40].mxu1 }
 0x256   :  { %v4006_v0 = vadd.f32 %v7733_v35, %v3700_v31  ;;  %v3702_v7 = vpop.f32.mrb[41].mxu1  ;;  %v4094_v31 = vld [vmem:[%s8235_s5 + $0x130] sm:$0xff] }
 0x257   :  { %v4007_v4 = vadd.f32 %v7741_v17, %v3702_v7  ;;  %v3704_v1 = vpop.f32.mrb[42].mxu1  ;;  %v4095_v7 = vld [vmem:[%s8235_s5 + $0x138] sm:$0xff] }
 0x258   :  { %v4246_v2 = vadd.f32 %v4126_v63, %v4006_v0  ;;  %v4021_v8 = vadd.f32 %v7733_v35, %v3704_v1  ;;  %v3706_v9 = vpop.f32.mrb[43].mxu1  ;;  %v4109_v1 = vld [vmem:[%s8235_s5 + $0x1a8] sm:$0xff] }
 0x259   :  { %v4247_v12 = vadd.f32 %v4127_v3, %v4007_v4  ;;  %v4022_v14 = vadd.f32 %v7741_v17, %v3706_v9  ;;  %v4110_v9 = vld [vmem:[%s8235_s5 + $0x1b0] sm:$0xff] }
 0x25a   :  { %4366 = vst [vmem:[%s8236_s6 + $0x230] sm:$0xff] %v4246_v2  ;;  %v4261_v15 = vadd.f32 %v4141_v6, %v4021_v8 }
 0x25b   :  { %4367 = vst [vmem:[%s8236_s6 + $0x238] sm:$0xff] %v4247_v12  ;;  %v4262_v16 = vadd.f32 %v4142_v11, %v4022_v14 }
 0x25c   :  { %4381 = vst [vmem:[%s8236_s6 + $0x2a8] sm:$0xff] %v4261_v15 }
 0x25d   :  { %4382 = vst [vmem:[%s8236_s6 + $0x2b0] sm:$0xff] %v4262_v16  ;;  %v3710_v18 = vpop.f32.mrb[44].mxu1  ;;  %v7983_v16 = vrot.slane %v7720_v21, %v3887_v32  ;;  %v4125_v32 = vld [vmem:[%s8235_s5 + $0x228] sm:$0xff] }
 0x25e   :  { %v4036_v25 = vadd.f32 %v7733_v35, %v3710_v18  ;;  %v3712_v20 = vpop.f32.mrb[45].mxu1 }
 0x25f   :  { %v4037_v26 = vadd.f32 %v7741_v17, %v3712_v20  ;;  %v3714_v27 = vpop.f32.mrb[46].mxu1 }
 0x260   :  { %v4276_v30 = vadd.f32 %v4156_v19, %v4036_v25  ;;  %v4051_v33 = vadd.f32 %v7733_v35, %v3714_v27  ;;  %v3716_v34 = vpop.f32.mrb[47].mxu1  ;;  %v4124_v19 = vld [vmem:[%s8235_s5 + $0x220] sm:$0xff] }
 0x261   :  { %v4277_v58 = vadd.f32 %v4157_v23, %v4037_v26  ;;  %v4052_v22 = vadd.f32 %v7741_v17, %v3716_v34  ;;  %v4064_v17 = vld [vmem:[%s8235_s5 + $0x40] sm:$0xff]  ;;  %v4139_v34 = vld [vmem:[%s8235_s5 + $0x298] sm:$0xff] }
 0x262   :  { %4396 = vst [vmem:[%s8236_s6 + $0x320] sm:$0xff] %v4276_v30  ;;  %v4291_v42 = vadd.f32 %v4171_v29, %v4051_v33  ;;  %v4070_v29 = vld [vmem:[%s8235_s5 + $0x70] sm:$0xff] }
 0x263   :  { %4397 = vst [vmem:[%s8236_s6 + $0x328] sm:$0xff] %v4277_v58  ;;  %v4292_v35 = vadd.f32 %v4172_v38, %v4052_v22 }
 0x264   :  { %4411 = vst [vmem:[%s8236_s6 + $0x398] sm:$0xff] %v4291_v42 }
 0x265   :  { %4412 = vst [vmem:[%s8236_s6 + $0x3a0] sm:$0xff] %v4292_v35  ;;  %v3607_v52 = vpop.f32.mrb[32].mxu0 }
 0x266   :  { %v3944_v28 = vadd.f32 %v7911_v43, %v3607_v52  ;;  %v3609_v10 = vpop.f32.mrb[33].mxu0  ;;  %v4140_v52 = vld [vmem:[%s8235_s5 + $0x2a0] sm:$0xff] }
 0x267   :  { %v3945_v51 = vadd.f32 %v7919_v48, %v3609_v10  ;;  %v3611_v37 = vpop.f32.mrb[34].mxu0  ;;  %v4085_v10 = vld [vmem:[%s8235_s5 + $0xe8] sm:$0xff] }
 0x268   :  { %v4184_v54 = vadd.f32 %v4064_v17, %v3944_v28  ;;  %v3959_v56 = vadd.f32 %v7911_v43, %v3611_v37  ;;  %v3613_v45 = vpop.f32.mrb[35].mxu0 }
 0x269   :  { %v4185_v60 = vadd.f32 %v4065_v55, %v3945_v51  ;;  %v3960_v57 = vadd.f32 %v7919_v48, %v3613_v45  ;;  %v4154_v45 = vld [vmem:[%s8235_s5 + $0x310] sm:$0xff] }
 0x26a   :  { %4304 = vst [vmem:[%s8236_s6 + $0x40] sm:$0xff] %v4184_v54  ;;  %v4199_v61 = vadd.f32 %v4079_v53, %v3959_v56 }
 0x26b   :  { %4305 = vst [vmem:[%s8236_s6 + $0x48] sm:$0xff] %v4185_v60  ;;  %v4200_v59 = vadd.f32 %v4080_v49, %v3960_v57 }
 0x26c   :  { %4319 = vst [vmem:[%s8236_s6 + $0xb8] sm:$0xff] %v4199_v61 }
 0x26d   :  { %4320 = vst [vmem:[%s8236_s6 + $0xc0] sm:$0xff] %v4200_v59  ;;  %v3617_v62 = vpop.f32.mrb[36].mxu0  ;;  %v4155_v59 = vld [vmem:[%s8235_s5 + $0x318] sm:$0xff] }
 0x26e   :  { %v3974_v63 = vadd.f32 %v7911_v43, %v3617_v62  ;;  %v3619_v0 = vpop.f32.mrb[37].mxu0 }
 0x26f   :  { %v3975_v3 = vadd.f32 %v7919_v48, %v3619_v0  ;;  %v3621_v4 = vpop.f32.mrb[38].mxu0 }
 0x270   :  { %v4214_v6 = vadd.f32 %v4094_v31, %v3974_v63  ;;  %v3989_v2 = vadd.f32 %v7911_v43, %v3621_v4  ;;  %v3623_v8 = vpop.f32.mrb[39].mxu0  ;;  %v4100_v31 = vld [vmem:[%s8235_s5 + $0x160] sm:$0xff] }
 0x271   :  { %v4215_v11 = vadd.f32 %v4095_v7, %v3975_v3  ;;  %v3990_v12 = vadd.f32 %v7919_v48, %v3623_v8  ;;  %v4169_v7 = vld [vmem:[%s8235_s5 + $0x388] sm:$0xff]  ;;  %v4170_v8 = vld [vmem:[%s8235_s5 + $0x390] sm:$0xff] }
 0x272   :  { %4334 = vst [vmem:[%s8236_s6 + $0x130] sm:$0xff] %v4214_v6  ;;  %v4229_v14 = vadd.f32 %v4109_v1, %v3989_v2 }
 0x273   :  { %4335 = vst [vmem:[%s8236_s6 + $0x138] sm:$0xff] %v4215_v11  ;;  %v4230_v15 = vadd.f32 %v4110_v9, %v3990_v12  ;;  %v4115_v12 = vld [vmem:[%s8235_s5 + $0x1d8] sm:$0xff] }
 0x274   :  { %4349 = vst [vmem:[%s8236_s6 + $0x1a8] sm:$0xff] %v4229_v14 }
 0x275   :  { %4350 = vst [vmem:[%s8236_s6 + $0x1b0] sm:$0xff] %v4230_v15  ;;  %v3627_v18 = vpop.f32.mrb[40].mxu0  ;;  %v3826_v25 = vpop.f32.mrb[64].mxu1 }
 0x276   :  { %v4004_v20 = vadd.f32 %v7911_v43, %v3627_v18  ;;  %v3827_v23 = vadd.f32 %v7256_v24, %v3826_v25  ;;  %v3629_v26 = vpop.f32.mrb[41].mxu0  ;;  %v3828_v27 = vpop.f32.mrb[65].mxu1 }
 0x277   :  { %v4005_v30 = vadd.f32 %v7919_v48, %v3629_v26  ;;  %v3631_v33 = vpop.f32.mrb[42].mxu0  ;;  %v3829_v38 = vpop.f32.mrb[66].mxu1 }
 0x278   :  { %v4244_v58 = vadd.f32 %v4124_v19, %v4004_v20  ;;  %v3950_v24 = vadd.f32 %v7983_v16, %v3827_v23  ;;  %v4019_v22 = vadd.f32 %v7911_v43, %v3631_v33  ;;  %v3830_v42 = vadd.f32 %v7261_v5, %v3829_v38  ;;  %v3633_v35 = vpop.f32.mrb[43].mxu0  ;;  %v3831_v17 = vpop.f32.mrb[67].mxu1  ;;  %v4130_v23 = vld [vmem:[%s8235_s5 + $0x250] sm:$0xff] }
 0x279   :  { %v4245_v28 = vadd.f32 %v4125_v32, %v4005_v30  ;;  %v4020_v55 = vadd.f32 %v7919_v48, %v3633_v35  ;;  %v4145_v30 = vld [vmem:[%s8235_s5 + $0x2c8] sm:$0xff]  ;;  %v4175_v17 = vld [vmem:[%s8235_s5 + $0x3b8] sm:$0xff] }
 0x27a   :  { %4364 = vst [vmem:[%s8236_s6 + $0x220] sm:$0xff] %v4244_v58  ;;  %v4190_v51 = vadd.f32 %v4070_v29, %v3950_v24  ;;  %v4259_v37 = vadd.f32 %v4139_v34, %v4019_v22  ;;  %v3965_v5 = vadd.f32 %v7983_v16, %v3830_v42  ;;  %v4160_v24 = vld [vmem:[%s8235_s5 + $0x340] sm:$0xff] }
 0x27b   :  { %4365 = vst [vmem:[%s8236_s6 + $0x228] sm:$0xff] %v4245_v28  ;;  %v4260_v53 = vadd.f32 %v4140_v52, %v4020_v55  ;;  %v8110_v55 = vrot.slane %v7720_v21, %v3883_v46  ;;  %v4069_v46 = vld [vmem:[%s8235_s5 + $0x68] sm:$0xff] }
 0x27c   :  { %4310 = vst [vmem:[%s8236_s6 + $0x70] sm:$0xff] %v4190_v51  ;;  %4379 = vst [vmem:[%s8236_s6 + $0x298] sm:$0xff] %v4259_v37  ;;  %v4205_v54 = vadd.f32 %v4085_v10, %v3965_v5  ;;  %v4083_v5 = vld [vmem:[%s8235_s5 + $0xd8] sm:$0xff] }
 0x27d   :  { %4380 = vst [vmem:[%s8236_s6 + $0x2a0] sm:$0xff] %v4260_v53  ;;  %v3637_v56 = vpop.f32.mrb[44].mxu0  ;;  %v3834_v49 = vpop.f32.mrb[68].mxu1 }
 0x27e   :  { %4325 = vst [vmem:[%s8236_s6 + $0xe8] sm:$0xff] %v4205_v54  ;;  %v4034_v60 = vadd.f32 %v7911_v43, %v3637_v56  ;;  %v3835_v57 = vadd.f32 %v7267_v13, %v3834_v49  ;;  %v3639_v61 = vpop.f32.mrb[45].mxu0  ;;  %v3836_v62 = vpop.f32.mrb[69].mxu1 }
 0x27f   :  { %v4035_v63 = vadd.f32 %v7919_v48, %v3639_v61  ;;  %v3641_v0 = vpop.f32.mrb[46].mxu0  ;;  %v3837_v3 = vpop.f32.mrb[70].mxu1  ;;  %v4098_v62 = vld [vmem:[%s8235_s5 + $0x150] sm:$0xff] }
 0x280   :  { %v4274_v4 = vadd.f32 %v4154_v45, %v4034_v60  ;;  %v3980_v13 = vadd.f32 %v7983_v16, %v3835_v57  ;;  %v4049_v1 = vadd.f32 %v7911_v43, %v3641_v0  ;;  %v3838_v6 = vadd.f32 %v7269_v36, %v3837_v3  ;;  %v3643_v2 = vpop.f32.mrb[47].mxu0  ;;  %v3839_v9 = vpop.f32.mrb[71].mxu1  ;;  %v4084_v45 = vld [vmem:[%s8235_s5 + $0xe0] sm:$0xff]  ;;  %v4099_v0 = vld [vmem:[%s8235_s5 + $0x158] sm:$0xff] }
 0x281   :  { %v4275_v11 = vadd.f32 %v4155_v59, %v4035_v63  ;;  %v4050_v14 = vadd.f32 %v7919_v48, %v3643_v2  ;;  %v4114_v2 = vld [vmem:[%s8235_s5 + $0x1d0] sm:$0xff] }
 0x282   :  { %4394 = vst [vmem:[%s8236_s6 + $0x310] sm:$0xff] %v4274_v4  ;;  %v4220_v43 = vadd.f32 %v4100_v31, %v3980_v13  ;;  %v4289_v15 = vadd.f32 %v4169_v7, %v4049_v1  ;;  %v3995_v36 = vadd.f32 %v7983_v16, %v3838_v6  ;;  %v4113_v4 = vld [vmem:[%s8235_s5 + $0x1c8] sm:$0xff] }
 0x283   :  { %4395 = vst [vmem:[%s8236_s6 + $0x318] sm:$0xff] %v4275_v11  ;;  %v4290_v18 = vadd.f32 %v4170_v8, %v4050_v14 }
 0x284   :  { %4340 = vst [vmem:[%s8236_s6 + $0x160] sm:$0xff] %v4220_v43  ;;  %4409 = vst [vmem:[%s8236_s6 + $0x388] sm:$0xff] %v4289_v15  ;;  %v4235_v48 = vadd.f32 %v4115_v12, %v3995_v36  ;;  %v4128_v43 = vld [vmem:[%s8235_s5 + $0x240] sm:$0xff] }
 0x285   :  { %4410 = vst [vmem:[%s8236_s6 + $0x390] sm:$0xff] %v4290_v18  ;;  %v3842_v19 = vpop.f32.mrb[72].mxu1  ;;  %v4129_v18 = vld [vmem:[%s8235_s5 + $0x248] sm:$0xff] }
 0x286   :  { %4355 = vst [vmem:[%s8236_s6 + $0x1d8] sm:$0xff] %v4235_v48  ;;  %v3843_v25 = vadd.f32 %v7274_v39, %v3842_v19  ;;  %v3844_v20 = vpop.f32.mrb[73].mxu1 }
 0x287   :  { %v3845_v26 = vpop.f32.mrb[74].mxu1 }
 0x288   :  { %v4010_v32 = vadd.f32 %v7983_v16, %v3843_v25  ;;  %v3846_v27 = vadd.f32 %v7276_v41, %v3845_v26  ;;  %v3847_v29 = vpop.f32.mrb[75].mxu1  ;;  %v4143_v25 = vld [vmem:[%s8235_s5 + $0x2b8] sm:$0xff] }
 0x28a   :  { %v4250_v33 = vadd.f32 %v4130_v23, %v4010_v32  ;;  %v4025_v34 = vadd.f32 %v7983_v16, %v3846_v27  ;;  %v4144_v32 = vld [vmem:[%s8235_s5 + $0x2c0] sm:$0xff] }
 0x28c   :  { %4370 = vst [vmem:[%s8236_s6 + $0x250] sm:$0xff] %v4250_v33  ;;  %v4265_v39 = vadd.f32 %v4145_v30, %v4025_v34 }
 0x28d   :  { %v3850_v38 = vpop.f32.mrb[76].mxu1 }
 0x28e   :  { %4385 = vst [vmem:[%s8236_s6 + $0x2c8] sm:$0xff] %v4265_v39  ;;  %v3851_v41 = vadd.f32 %v7281_v44, %v3850_v38  ;;  %v3852_v58 = vpop.f32.mrb[77].mxu1  ;;  %v8105_v44 = vrot.slane %v7720_v21, %v3879_v40  ;;  %v4158_v39 = vld [vmem:[%s8235_s5 + $0x330] sm:$0xff] }
 0x28f   :  { %v3853_v22 = vpop.f32.mrb[78].mxu1  ;;  %v4159_v58 = vld [vmem:[%s8235_s5 + $0x338] sm:$0xff] }
 0x290   :  { %v4040_v42 = vadd.f32 %v7983_v16, %v3851_v41  ;;  %v3854_v35 = vadd.f32 %v7283_v50, %v3853_v22  ;;  %v3855_v52 = vpop.f32.mrb[79].mxu1 }
 0x292   :  { %v4280_v28 = vadd.f32 %v4160_v24, %v4040_v42  ;;  %v4055_v10 = vadd.f32 %v7983_v16, %v3854_v35  ;;  %v4068_v16 = vld [vmem:[%s8235_s5 + $0x60] sm:$0xff]  ;;  %v4173_v42 = vld [vmem:[%s8235_s5 + $0x3a8] sm:$0xff] }
 0x294   :  { %4400 = vst [vmem:[%s8236_s6 + $0x340] sm:$0xff] %v4280_v28  ;;  %v4295_v50 = vadd.f32 %v4175_v17, %v4055_v10  ;;  %v4174_v28 = vld [vmem:[%s8235_s5 + $0x3b0] sm:$0xff] }
 0x295   :  { %v3753_v51 = vpop.f32.mrb[48].mxu0 }
 0x296   :  { %4415 = vst [vmem:[%s8236_s6 + $0x3b8] sm:$0xff] %v4295_v50  ;;  %v3948_v40 = vadd.f32 %v8105_v44, %v3753_v51  ;;  %v3755_v47 = vpop.f32.mrb[49].mxu0 }
 0x297   :  { %v3949_v21 = vadd.f32 %v8110_v55, %v3755_v47  ;;  %v3757_v37 = vpop.f32.mrb[50].mxu0 }
 0x298   :  { %v4188_v53 = vadd.f32 %v4068_v16, %v3948_v40  ;;  %v3963_v54 = vadd.f32 %v8105_v44, %v3757_v37  ;;  %v3759_v56 = vpop.f32.mrb[51].mxu0 }
 0x299   :  { %v4189_v49 = vadd.f32 %v4069_v46, %v3949_v21  ;;  %v3964_v60 = vadd.f32 %v8110_v55, %v3759_v56 }
 0x29a   :  { %4308 = vst [vmem:[%s8236_s6 + $0x60] sm:$0xff] %v4188_v53  ;;  %v4203_v57 = vadd.f32 %v4083_v5, %v3963_v54 }
 0x29b   :  { %4309 = vst [vmem:[%s8236_s6 + $0x68] sm:$0xff] %v4189_v49  ;;  %v4204_v61 = vadd.f32 %v4084_v45, %v3964_v60 }
 0x29c   :  { %4323 = vst [vmem:[%s8236_s6 + $0xd8] sm:$0xff] %v4203_v57 }
 0x29d   :  { %4324 = vst [vmem:[%s8236_s6 + $0xe0] sm:$0xff] %v4204_v61  ;;  %v3763_v59 = vpop.f32.mrb[52].mxu0 }
 0x29e   :  { %v3978_v31 = vadd.f32 %v8105_v44, %v3763_v59  ;;  %v3765_v63 = vpop.f32.mrb[53].mxu0 }
 0x29f   :  { %v3979_v7 = vadd.f32 %v8110_v55, %v3765_v63  ;;  %v3767_v3 = vpop.f32.mrb[54].mxu0 }
 0x2a0   :  { %v4218_v13 = vadd.f32 %v4098_v62, %v3978_v31  ;;  %v3993_v1 = vadd.f32 %v8105_v44, %v3767_v3  ;;  %v3769_v6 = vpop.f32.mrb[55].mxu0 }
 0x2a1   :  { %v4219_v8 = vadd.f32 %v4099_v0, %v3979_v7  ;;  %v3994_v9 = vadd.f32 %v8110_v55, %v3769_v6 }
 0x2a2   :  { %4338 = vst [vmem:[%s8236_s6 + $0x150] sm:$0xff] %v4218_v13  ;;  %v4233_v11 = vadd.f32 %v4113_v4, %v3993_v1 }
 0x2a3   :  { %4339 = vst [vmem:[%s8236_s6 + $0x158] sm:$0xff] %v4219_v8  ;;  %v4234_v12 = vadd.f32 %v4114_v2, %v3994_v9 }
 0x2a4   :  { %4353 = vst [vmem:[%s8236_s6 + $0x1c8] sm:$0xff] %v4233_v11 }
 0x2a5   :  { %4354 = vst [vmem:[%s8236_s6 + $0x1d0] sm:$0xff] %v4234_v12  ;;  %v3773_v14 = vpop.f32.mrb[56].mxu0 }
 0x2a6   :  { %v4008_v15 = vadd.f32 %v8105_v44, %v3773_v14  ;;  %v3775_v36 = vpop.f32.mrb[57].mxu0 }
 0x2a7   :  { %v4009_v48 = vadd.f32 %v8110_v55, %v3775_v36  ;;  %v3777_v19 = vpop.f32.mrb[58].mxu0 }
 0x2a8   :  { %v4248_v20 = vadd.f32 %v4128_v43, %v4008_v15  ;;  %v4023_v23 = vadd.f32 %v8105_v44, %v3777_v19  ;;  %v3779_v26 = vpop.f32.mrb[59].mxu0 }
 0x2a9   :  { %v4249_v27 = vadd.f32 %v4129_v18, %v4009_v48  ;;  %v4024_v29 = vadd.f32 %v8110_v55, %v3779_v26 }
 0x2aa   :  { %4368 = vst [vmem:[%s8236_s6 + $0x240] sm:$0xff] %v4248_v20  ;;  %v4263_v30 = vadd.f32 %v4143_v25, %v4023_v23 }
 0x2ab   :  { %4369 = vst [vmem:[%s8236_s6 + $0x248] sm:$0xff] %v4249_v27  ;;  %v4264_v33 = vadd.f32 %v4144_v32, %v4024_v29 }
 0x2ac   :  { %4383 = vst [vmem:[%s8236_s6 + $0x2b8] sm:$0xff] %v4263_v30 }
 0x2ad   :  { %4384 = vst [vmem:[%s8236_s6 + $0x2c0] sm:$0xff] %v4264_v33  ;;  %v3783_v34 = vpop.f32.mrb[60].mxu0 }
 0x2ae   :  { %v4038_v38 = vadd.f32 %v8105_v44, %v3783_v34  ;;  %v3785_v41 = vpop.f32.mrb[61].mxu0 }
 0x2af   :  { %v4039_v24 = vadd.f32 %v8110_v55, %v3785_v41  ;;  %v3787_v22 = vpop.f32.mrb[62].mxu0 }
 0x2b0   :  { %v4278_v35 = vadd.f32 %v4158_v39, %v4038_v38  ;;  %v4053_v52 = vadd.f32 %v8105_v44, %v3787_v22  ;;  %v3789_v17 = vpop.f32.mrb[63].mxu0 }
 0x2b1   :  { %v4279_v10 = vadd.f32 %v4159_v58, %v4039_v24  ;;  %v4054_v50 = vadd.f32 %v8110_v55, %v3789_v17 }
 0x2b2   :  { %4398 = vst [vmem:[%s8236_s6 + $0x330] sm:$0xff] %v4278_v35  ;;  %v4293_v51 = vadd.f32 %v4173_v42, %v4053_v52 }
 0x2b3   :  { %4399 = vst [vmem:[%s8236_s6 + $0x338] sm:$0xff] %v4279_v10  ;;  %v4294_v16 = vadd.f32 %v4174_v28, %v4054_v50 }
 0x2b4   :  { %4413 = vst [vmem:[%s8236_s6 + $0x3a8] sm:$0xff] %v4293_v51 }
 0x2b5   :  { %4414 = vst [vmem:[%s8236_s6 + $0x3b0] sm:$0xff] %v4294_v16 }

</bundles_post_ra>
